<compile_context>
chip_gen: v7x
topology: tpu7x:2x2x1
jax: 0.10.0
libtpu: 0.0.40
codegen_flags: <defaults>
</compile_context>

<pallas_src>
import math
import functools

import jax
import jax.numpy as jnp
from jax import lax
from jax.experimental import pallas as pl
from jax.experimental.pallas import tpu as pltpu


# ----------------------------------------------------------------------------
# small helpers
# ----------------------------------------------------------------------------

def _act(x, name):
    # NOTE: every supported activation maps 0 -> 0, so applying it to the
    # zero-masked conv halo is safe.
    if name is None:
        return x
    if name == "lrelu_0.1":
        return jnp.where(x >= 0, x, 0.1 * x)
    if name == "lrelu_0.01":
        return jnp.where(x >= 0, x, 0.01 * x)
    if name == "relu":
        return jnp.maximum(x, 0.0)
    if name == "tanh":
        return jnp.tanh(x)
    raise ValueError(name)


def _pick_time_tile(t, row_bytes=0, cap=1024, mult=8, budget=6 * 1024 * 1024):
    """Largest divisor of t (multiple of `mult`, <= cap) whose block fits the
    per-buffer VMEM budget; falls back to t (full dim)."""
    if row_bytes > 0:
        cap = min(cap, max(mult, (budget // max(row_bytes, 1)) // mult * mult))
    if t <= cap:
        return t
    best = 0
    d = mult
    while d <= cap:
        if t % d == 0:
            best = d
        d += mult
    return best if best > 0 else t


def _cparams(semantics, block_bytes=0):
    limit = int(min(64 * 1024 * 1024,
                    max(32 * 1024 * 1024, 4 * block_bytes + 8 * 1024 * 1024)))
    return pltpu.CompilerParams(dimension_semantics=semantics,
                                vmem_limit_bytes=limit)


# ----------------------------------------------------------------------------
# conv1d (channels-last), time-tiled with 3-block halo, MXU matmul taps
# ----------------------------------------------------------------------------

def _conv_kernel(*refs, K, dil, tile, pad_l, t_in, cin, fold, halo,
                 pre_act, post_act, has_im, has_eb, has_om):
    it = iter(refs)
    x_refs = [next(it) for _ in range(3 if halo else 1)]
    m_refs = [next(it) for _ in range(3 if halo else 1)] if has_im else None
    w_ref, b_ref = next(it), next(it)
    eb_ref = next(it) if has_eb else None
    om_ref = next(it) if has_om else None
    o_ref = next(it)
    win_ref = next(it) if halo else None

    if halo:
        ti = pl.program_id(1)
        for p in range(3):
            piece = x_refs[p][...].astype(jnp.float32)
            if has_im:
                piece = piece * m_refs[p][...].astype(jnp.float32)
            pos = (ti + (p - 1)) * tile + lax.broadcasted_iota(
                jnp.int32, (tile, 1), 0)
            ok = jnp.logical_and(pos >= 0, pos < t_in).astype(jnp.float32)
            win_ref[pl.ds(p * tile, tile), :] = _act(piece * ok, pre_act)

        def tap(k):
            return win_ref[pl.ds(tile - pad_l + k * dil, tile), :]
    else:
        xw = x_refs[0][...].astype(jnp.float32)
        if has_im:
            xw = xw * m_refs[0][...].astype(jnp.float32)
        xw = _act(xw, pre_act)

        def tap(k):
            return xw

    if fold:
        xs = tap(0) if K == 1 else jnp.concatenate(
            [tap(k) for k in range(K)], axis=-1)
        y = jnp.dot(xs, w_ref[...].astype(jnp.float32),
                    preferred_element_type=jnp.float32)
    else:
        y = None
        for k in range(K):
            yk = jnp.dot(tap(k), w_ref[pl.ds(k * cin, cin), :].astype(jnp.float32),
                         preferred_element_type=jnp.float32)
            y = yk if y is None else y + yk

    y = y + b_ref[...].astype(jnp.float32)
    if has_eb:
        y = y + eb_ref[...].astype(jnp.float32)
    y = _act(y, post_act)
    if has_om:
        y = y * om_ref[...].astype(jnp.float32)
    o_ref[...] = y.astype(o_ref.dtype)


def conv1d(x, w, b=None, *, dilation=1, padding=0, pre_act=None, post_act=None,
           in_mask=None, out_mask=None, extra_bias=None):
    """1-D conv, channels-last. x:(B,T,Cin) w:(K,Cin,Cout) b:(Cout,)
    K>1 convs must be 'same' (pad_l+pad_r == (K-1)*dilation); time is tiled
    with a prev/cur/next halo and in-kernel edge masking (no wrapper pad)."""
    B, T, Cin = x.shape
    K, _, Cout = w.shape
    pad_l, pad_r = (padding, padding) if isinstance(padding, int) else padding
    halo = not (K == 1 and pad_l == 0 and pad_r == 0)
    if halo:
        assert pad_l + pad_r == (K - 1) * dilation, "only same-size convs"
    T_out = T

    row_bytes = 4 * ((3 if halo else 1) * (Cin + 1) + Cout + (3 * Cin if halo else 0))
    tile = _pick_time_tile(T_out, row_bytes)
    n_t = T_out // tile
    if halo:
        assert pad_l <= tile and pad_r <= tile, "halo larger than time tile"
    fold = (K * Cin) <= 256
    last_t = n_t - 1

    def m_prev(bi, ti):
        return (bi, jnp.maximum(ti - 1, 0), 0)

    def m_cur(bi, ti):
        return (bi, ti, 0)

    def m_next(bi, ti):
        return (bi, jnp.minimum(ti + 1, last_t), 0)

    xspec = lambda f: pl.BlockSpec((None, tile, Cin), f)
    mspec = lambda f: pl.BlockSpec((None, tile, 1), f)

    args, specs = [], []
    if halo:
        args += [x, x, x]
        specs += [xspec(m_prev), xspec(m_cur), xspec(m_next)]
    else:
        args += [x]
        specs += [xspec(m_cur)]
    if in_mask is not None:
        if halo:
            args += [in_mask, in_mask, in_mask]
            specs += [mspec(m_prev), mspec(m_cur), mspec(m_next)]
        else:
            args += [in_mask]
            specs += [mspec(m_cur)]
    w2 = w.reshape(K * Cin, Cout)
    b2 = (jnp.zeros((Cout,), x.dtype) if b is None else b).reshape(1, Cout)
    args += [w2, b2]
    specs += [pl.BlockSpec((K * Cin, Cout), lambda bi, ti: (0, 0)),
              pl.BlockSpec((1, Cout), lambda bi, ti: (0, 0))]
    if extra_bias is not None:
        args += [extra_bias]
        specs += [pl.BlockSpec((None, 1, Cout), lambda bi, ti: (bi, 0, 0))]
    if out_mask is not None:
        args += [out_mask]
        specs += [mspec(m_cur)]

    kern = functools.partial(
        _conv_kernel, K=K, dil=dilation, tile=tile, pad_l=pad_l, t_in=T,
        cin=Cin, fold=fold, halo=halo, pre_act=pre_act, post_act=post_act,
        has_im=in_mask is not None, has_eb=extra_bias is not None,
        has_om=out_mask is not None)

    blk = 4 * tile * ((3 if halo else 1) * Cin + Cout + (3 * Cin if halo else 0))
    blk += 4 * K * Cin * Cout
    return pl.pallas_call(
        kern,
        out_shape=jax.ShapeDtypeStruct((B, T_out, Cout), x.dtype),
        grid=(B, n_t),
        in_specs=specs,
        out_specs=pl.BlockSpec((None, tile, Cout), m_cur),
        scratch_shapes=([pltpu.VMEM((3 * tile, Cin), jnp.float32)] if halo else []),
        compiler_params=_cparams(("parallel", "parallel"), blk),
    )(*args)


# ----------------------------------------------------------------------------
# conv_post (Cout=1): channels-last input tiles, lane-dense (B, 1, T) output
# ----------------------------------------------------------------------------

def _conv_cf_kernel(xp_ref, xc_ref, xn_ref, w_ref, o_ref, win_ref, *, K, dil,
                    tile, pad_l, t_in, pre_act, post_act):
    ti = pl.program_id(1)
    x_refs = (xp_ref, xc_ref, xn_ref)
    for p in range(3):
        piece = x_refs[p][...].astype(jnp.float32)
        pos = (ti + (p - 1)) * tile + lax.broadcasted_iota(jnp.int32, (tile, 1), 0)
        ok = jnp.logical_and(pos >= 0, pos < t_in).astype(jnp.float32)
        win_ref[pl.ds(p * tile, tile), :] = _act(piece * ok, pre_act)
    xs = jnp.concatenate(
        [win_ref[pl.ds(tile - pad_l + k * dil, tile), :] for k in range(K)],
        axis=-1)                                            # (tile, K*Cin)
    y = lax.dot_general(w_ref[...].astype(jnp.float32), xs,
                        (((1,), (1,)), ((), ())),
                        preferred_element_type=jnp.float32)  # (1, tile)
    o_ref[...] = _act(y, post_act).astype(o_ref.dtype)


def conv1d_cf(x, w, *, dilation=1, padding=0, pre_act=None, post_act=None):
    """Final audio conv: channels-last input, channels-first (B,1,T) output."""
    B, T, Cin = x.shape
    K, _, Cout = w.shape
    assert Cout == 1
    pad_l, pad_r = (padding, padding) if isinstance(padding, int) else padding
    assert pad_l + pad_r == (K - 1) * dilation
    tile = _pick_time_tile(T, row_bytes=4 * (6 * Cin + 1), mult=128)
    n_t = T // tile
    assert pad_l <= tile and pad_r <= tile
    last_t = n_t - 1
    w_cf = jnp.transpose(w.reshape(K * Cin, Cout))          # (1, K*Cin)
    kern = functools.partial(_conv_cf_kernel, K=K, dil=dilation, tile=tile,
                             pad_l=pad_l, t_in=T, pre_act=pre_act,
                             post_act=post_act)
    blk = 4 * (6 * tile * Cin + tile + K * Cin)
    return pl.pallas_call(
        kern,
        out_shape=jax.ShapeDtypeStruct((B, 1, T), x.dtype),
        grid=(B, n_t),
        in_specs=[
            pl.BlockSpec((None, tile, Cin), lambda b, t: (b, jnp.maximum(t - 1, 0), 0)),
            pl.BlockSpec((None, tile, Cin), lambda b, t: (b, t, 0)),
            pl.BlockSpec((None, tile, Cin), lambda b, t: (b, jnp.minimum(t + 1, last_t), 0)),
            pl.BlockSpec((1, K * Cin), lambda b, t: (0, 0)),
        ],
        out_specs=pl.BlockSpec((None, 1, tile), lambda b, t: (b, 0, t)),
        scratch_shapes=[pltpu.VMEM((3 * tile, Cin), jnp.float32)],
        compiler_params=_cparams(("parallel", "parallel"), blk),
    )(x, x, x, w_cf)


# ----------------------------------------------------------------------------
# fused attention: QK^T + banded relative key bias + mask + softmax + PV +
# banded relative value contribution (query-tiled, no (T,T) HBM tensors)
# ----------------------------------------------------------------------------

def _attn_kernel(q_ref, k_ref, v_ref, ek_ref, ev_ref, mc_ref, mr_ref, o_ref,
                 *, scale, wc):
    q = q_ref[...].astype(jnp.float32) * scale               # (tq, dk)
    k = k_ref[...].astype(jnp.float32)                       # (T, dk)
    v = v_ref[...].astype(jnp.float32)
    tq = q.shape[0]
    T = k.shape[0]
    scores = lax.dot_general(q, k, (((1,), (1,)), ((), ())),
                             preferred_element_type=jnp.float32)   # (tq, T)
    ek = ek_ref[...].astype(jnp.float32)                     # (Wb, dk)
    P = lax.dot_general(q, ek, (((1,), (1,)), ((), ())),
                        preferred_element_type=jnp.float32)  # (tq, Wb)
    qt = pl.program_id(2)
    t_idx = qt * tq + lax.broadcasted_iota(jnp.int32, (tq, 1), 0)
    s_idx = lax.broadcasted_iota(jnp.int32, (tq, T), 1)
    rel = s_idx - t_idx                                      # (tq, T)
    wb = 2 * wc + 1
    for r in range(wb):                                      # banded rel->abs
        scores = scores + jnp.where(rel == (r - wc), P[:, r:r + 1], 0.0)
    valid = (mc_ref[...].astype(jnp.float32)
             * mr_ref[...].astype(jnp.float32)) > 0.0
    scores = jnp.where(valid, scores, -1e4)
    scores = scores - jnp.max(scores, axis=-1, keepdims=True)
    e = jnp.exp(scores)
    p = e * pl.reciprocal(jnp.sum(e, axis=-1, keepdims=True), approx=True)
    out = jnp.dot(p, v, preferred_element_type=jnp.float32)  # (tq, dk)
    ev = ev_ref[...].astype(jnp.float32)                     # (Wb, dk)
    for r in range(wb):                                      # banded abs->rel
        pr = jnp.sum(jnp.where(rel == (r - wc), p, 0.0), axis=-1, keepdims=True)
        out = out + pr * ev[r:r + 1, :]
    o_ref[...] = out.astype(o_ref.dtype)


def attention_core(qkv, ek, ev, mask_col, mask_row, scale, wc):
    """qkv:(3,B,H,T,dk)  ek/ev:(2*wc+1,dk)  mask_col:(B,T,1)  mask_row:(B,1,T)"""
    _, B, NH, T, dk = qkv.shape
    tq = _pick_time_tile(T, row_bytes=4 * (4 * T + 2 * dk), cap=256)
    n_q = T // tq
    wb = ek.shape[0]
    kern = functools.partial(_attn_kernel, scale=scale, wc=wc)
    blk = 4 * (tq * dk + 2 * T * dk + 2 * tq * T + 2 * wb * dk + tq + T)
    return pl.pallas_call(
        kern,
        out_shape=jax.ShapeDtypeStruct((B, NH, T, dk), qkv.dtype),
        grid=(B, NH, n_q),
        in_specs=[
            pl.BlockSpec((None, None, None, tq, dk), lambda b, h, t: (0, b, h, t, 0)),
            pl.BlockSpec((None, None, None, T, dk), lambda b, h, t: (1, b, h, 0, 0)),
            pl.BlockSpec((None, None, None, T, dk), lambda b, h, t: (2, b, h, 0, 0)),
            pl.BlockSpec((wb, dk), lambda b, h, t: (0, 0)),
            pl.BlockSpec((wb, dk), lambda b, h, t: (0, 0)),
            pl.BlockSpec((None, tq, 1), lambda b, h, t: (b, t, 0)),
            pl.BlockSpec((None, 1, T), lambda b, h, t: (b, 0, 0)),
        ],
        out_specs=pl.BlockSpec((None, None, tq, dk), lambda b, h, t: (b, h, t, 0)),
        compiler_params=_cparams(("parallel", "parallel", "parallel"), blk),
    )(qkv, qkv, qkv, ek, ev, mask_col, mask_row)


def _rel_band(emb, length, window):
    """(1, 2*window+1, dk) -> the (2*wc+1, dk) band used for this length
    (VITS zero-pads outside the window, so this is exact)."""
    wc = min(window, length - 1)
    return emb[0, window - wc: window + wc + 1], wc


# ----------------------------------------------------------------------------
# fused WaveNet layer (halo dilated in-conv + cond bias + gate + res/skip)
# ----------------------------------------------------------------------------

def _wn_layer_kernel(xp_ref, xc_ref, xn_ref, skip_ref, cond_ref, m_ref,
                     w_in_ref, b_in_ref, w_rs_ref, b_rs_ref, *rest,
                     K, dil, tile, pad_l, t_in, H, fold, last):
    if last:
        so_ref, win_ref = rest
    else:
        xo_ref, so_ref, win_ref = rest
    ti = pl.program_id(1)
    x_refs = (xp_ref, xc_ref, xn_ref)
    for p in range(3):
        piece = x_refs[p][...].astype(jnp.float32)
        pos = (ti + (p - 1)) * tile + lax.broadcasted_iota(jnp.int32, (tile, 1), 0)
        ok = jnp.logical_and(pos >= 0, pos < t_in).astype(jnp.float32)
        win_ref[pl.ds(p * tile, tile), :] = piece * ok

    def tap(k):
        return win_ref[pl.ds(tile - pad_l + k * dil, tile), :]

    if fold:
        xs = jnp.concatenate([tap(k) for k in range(K)], axis=-1)
        a = jnp.dot(xs, w_in_ref[...].astype(jnp.float32),
                    preferred_element_type=jnp.float32)
    else:
        a = None
        for k in range(K):
            ak = jnp.dot(tap(k), w_in_ref[pl.ds(k * H, H), :].astype(jnp.float32),
                         preferred_element_type=jnp.float32)
            a = ak if a is None else a + ak
    a = a + b_in_ref[...].astype(jnp.float32) + cond_ref[...].astype(jnp.float32)
    acts = jnp.tanh(a[:, :H]) * jax.nn.sigmoid(a[:, H:])     # (tile, H)

    rs = jnp.dot(acts, w_rs_ref[...].astype(jnp.float32),
                 preferred_element_type=jnp.float32) + b_rs_ref[...].astype(jnp.float32)
    m = m_ref[...].astype(jnp.float32)
    skip = skip_ref[...].astype(jnp.float32)
    if last:
        so_ref[...] = ((skip + rs) * m).astype(so_ref.dtype)
    else:
        xc = xc_ref[...].astype(jnp.float32)
        xo_ref[...] = ((xc + rs[:, :H]) * m).astype(xo_ref.dtype)
        so_ref[...] = (skip + rs[:, H:]).astype(so_ref.dtype)


def wn_layer(x, skip, cond_l, mask, lw, *, K, dil, last):
    B, T, H = x.shape
    pad_l = (K - 1) * dil // 2
    row_bytes = 4 * (3 * H + H + 1 + 2 * H + 3 * H)
    tile = _pick_time_tile(T, row_bytes)
    n_t = T // tile
    assert pad_l <= tile and (K - 1) * dil - pad_l <= tile
    fold = (K * H) <= 256
    last_t = n_t - 1
    rs_out = H if last else 2 * H

    def m_prev(b, t):
        return (b, jnp.maximum(t - 1, 0), 0)

    def m_cur(b, t):
        return (b, t, 0)

    def m_next(b, t):
        return (b, jnp.minimum(t + 1, last_t), 0)

    in_specs = [
        pl.BlockSpec((None, tile, H), m_prev),
        pl.BlockSpec((None, tile, H), m_cur),
        pl.BlockSpec((None, tile, H), m_next),
        pl.BlockSpec((None, tile, H), m_cur),
        pl.BlockSpec((None, 1, 2 * H), lambda b, t: (b, 0, 0)),
        pl.BlockSpec((None, tile, 1), m_cur),
        pl.BlockSpec((K * H, 2 * H), lambda b, t: (0, 0)),
        pl.BlockSpec((1, 2 * H), lambda b, t: (0, 0)),
        pl.BlockSpec((H, rs_out), lambda b, t: (0, 0)),
        pl.BlockSpec((1, rs_out), lambda b, t: (0, 0)),
    ]
    if last:
        out_shape = jax.ShapeDtypeStruct((B, T, H), x.dtype)
        out_specs = pl.BlockSpec((None, tile, H), m_cur)
    else:
        out_shape = (jax.ShapeDtypeStruct((B, T, H), x.dtype),
                     jax.ShapeDtypeStruct((B, T, H), x.dtype))
        out_specs = (pl.BlockSpec((None, tile, H), m_cur),
                     pl.BlockSpec((None, tile, H), m_cur))

    kern = functools.partial(_wn_layer_kernel, K=K, dil=dil, tile=tile,
                             pad_l=pad_l, t_in=T, H=H, fold=fold, last=last)
    blk = 4 * tile * (3 * H + H + 2 * H + 3 * H + 2 * H + 1)
    blk += 4 * (K * H * 2 * H + H * rs_out)
    return pl.pallas_call(
        kern, out_shape=out_shape, grid=(B, n_t),
        in_specs=in_specs, out_specs=out_specs,
        scratch_shapes=[pltpu.VMEM((3 * tile, H), jnp.float32)],
        compiler_params=_cparams(("parallel", "parallel"), blk),
    )(x, x, x, skip, cond_l, mask,
      lw['w_in'], lw['b_in'], lw['w_rs'], lw['b_rs'])


# ----------------------------------------------------------------------------
# LayerNorm fused with the residual add
# ----------------------------------------------------------------------------

def _ln_res_kernel(x_ref, y_ref, g_ref, b_ref, o_ref):
    x = x_ref[...].astype(jnp.float32) + y_ref[...].astype(jnp.float32)
    mu = jnp.mean(x, axis=-1, keepdims=True)
    xc = x - mu
    var = jnp.mean(xc * xc, axis=-1, keepdims=True)
    y = xc * lax.rsqrt(var + 1e-5)
    o_ref[...] = (y * g_ref[...].astype(jnp.float32)
                  + b_ref[...].astype(jnp.float32)).astype(o_ref.dtype)


def layer_norm_res(x, y, gamma, beta):
    B, T, C = x.shape
    tile = _pick_time_tile(T, row_bytes=4 * 3 * C)
    n_t = T // tile
    blk = 4 * tile * 3 * C
    return pl.pallas_call(
        _ln_res_kernel,
        out_shape=jax.ShapeDtypeStruct((B, T, C), x.dtype),
        grid=(B, n_t),
        in_specs=[
            pl.BlockSpec((None, tile, C), lambda b, t: (b, t, 0)),
            pl.BlockSpec((None, tile, C), lambda b, t: (b, t, 0)),
            pl.BlockSpec((1, C), lambda b, t: (0, 0)),
            pl.BlockSpec((1, C), lambda b, t: (0, 0)),
        ],
        out_specs=pl.BlockSpec((None, tile, C), lambda b, t: (b, t, 0)),
        compiler_params=_cparams(("parallel", "parallel"), blk),
    )(x, y, gamma, beta)


# ----------------------------------------------------------------------------
# plain-JAX glue
# ----------------------------------------------------------------------------

def sequence_mask(lengths, T, dtype):
    return (jnp.arange(T)[None, :] < lengths[:, None]).astype(dtype)[:, :, None]


def rand_slice_segments(z, lengths, segment_size, key):
    B, T, C = z.shape
    ids_str_max = (lengths - segment_size + 1).astype(jnp.float32)
    r = jax.random.uniform(key, (B,))
    ids = (r * ids_str_max).astype(jnp.int32)
    ids = jnp.clip(ids, 0, T - segment_size)
    z_slice = jax.vmap(
        lambda zb, s: lax.dynamic_slice(zb, (s, 0), (segment_size, C)))(z, ids)
    return z_slice, ids


def _polyphase_meta(u, ku):
    pt = (ku - u) // 2
    assert (ku - u) % 2 == 0, "upsample kernel - stride must be even"
    jmin = min(-((phi + pt) // u) for phi in range(u))
    jmax = max((ku - 1 - phi - pt) // u for phi in range(u))
    return pt, jmin, jmax


def convtr_as_conv_weights(w_t, b, u, ku):
    """ConvTranspose1d(stride=u, kernel=ku, padding=(ku-u)//2) rewritten as an
    exact 'same' Conv1d: weight (Kc, Cin, u*Cout) + bias (u*Cout,).  After the
    conv, reshape (B,T,u,Cout)->(B,T*u,Cout) (free, row-major) interleaves the
    phases.  w_t: (Cin, Cout, ku) PyTorch ConvTranspose1d layout."""
    Cin, Cout, _ = w_t.shape
    pt, jmin, jmax = _polyphase_meta(u, ku)
    Kc = jmax - jmin + 1
    wc = jnp.zeros((Kc, Cin, u * Cout), w_t.dtype)
    for phi in range(u):
        for j in range(jmin, jmax + 1):
            k = j * u + phi + pt
            if 0 <= k < ku:
                wc = wc.at[jmax - j, :, phi * Cout:(phi + 1) * Cout].set(w_t[:, :, k])
    return wc, jnp.tile(b, u)


def upsample(x, lw, *, u, ku):
    _, jmin, jmax = _polyphase_meta(u, ku)
    B, T, _ = x.shape
    Cout = lw['b'].shape[0] // u
    y = conv1d(x, lw['w'], lw['b'], padding=(jmax, -jmin), pre_act='lrelu_0.1')
    return y.reshape(B, T * u, Cout)        # free interleave of the u phases


# ----------------------------------------------------------------------------
# sub-modules
# ----------------------------------------------------------------------------

def attn_layer(lp, x, mask_col, mask_row, n_heads, window):
    B, T, C = x.shape
    dk = C // n_heads
    scale = 1.0 / math.sqrt(dk)
    qkv = conv1d(x, lp['qkv_w'], lp['qkv_b'])                      # (B, T, 3C)
    qkv = qkv.reshape(B, T, 3, n_heads, dk).transpose(2, 0, 3, 1, 4)
    ek, wc = _rel_band(lp['emb_rel_k'], T, window)
    ev, _ = _rel_band(lp['emb_rel_v'], T, window)
    o = attention_core(qkv, ek, ev, mask_col, mask_row, scale, wc)
    o = o.transpose(0, 2, 1, 3).reshape(B, T, C)
    return conv1d(o, lp['o']['w'], lp['o']['b'])


def ffn_layer(lp, x, x_mask, ks):
    pad = ((ks - 1) // 2, ks // 2)
    h = conv1d(x, lp['ffn1']['w'], lp['ffn1']['b'], padding=pad,
               in_mask=x_mask, post_act='relu')
    h = conv1d(h, lp['ffn2']['w'], lp['ffn2']['b'], padding=pad,
               in_mask=x_mask, out_mask=x_mask)
    return h


def encoder_fwd(ep, x, x_mask, cfg):
    mask_row = jnp.transpose(x_mask, (0, 2, 1))
    for lp in ep['layers']:
        y = attn_layer(lp, x, x_mask, mask_row, cfg['n_heads'], cfg['window'])
        x = layer_norm_res(x, y, lp['ln1_g'], lp['ln1_b'])
        y = ffn_layer(lp, x, x_mask, cfg['kernel_size'])
        x = layer_norm_res(x, y, lp['ln2_g'], lp['ln2_b'])
    return x


def text_encoder(ep, phone, phone_lengths, cfg):
    H = cfg['hidden']
    sq = math.sqrt(H)
    T = phone.shape[1]
    x_mask = sequence_mask(phone_lengths, T, phone.dtype)
    # emb_phone Linear + *sqrt(H) + leaky_relu(0.1) + *x_mask fused in one kernel
    x = conv1d(phone, ep['emb_phone']['w'] * sq, ep['emb_phone']['b'] * sq,
               post_act='lrelu_0.1', out_mask=x_mask)
    x = encoder_fwd(ep, x, x_mask, cfg)
    stats = conv1d(x, ep['proj']['w'], ep['proj']['b'], out_mask=x_mask)
    m, logs = jnp.split(stats, 2, axis=-1)
    return m, logs, x_mask


def wn_forward(wp, x, x_mask, g, *, ksize=5, dilation_rate=1):
    n_layers = len(wp['layers'])
    H = x.shape[-1]
    # cond_layer hoisted out of the kernels: one tiny matmul for all layers.
    cond_all = jnp.einsum('bog,gc->boc', g, wp['cond_w']) + wp['cond_b'][None, None, :]
    skip = jnp.zeros_like(x)
    for i, lw in enumerate(wp['layers']):
        dil = dilation_rate ** i
        cond_l = lax.slice_in_dim(cond_all, i * 2 * H, (i + 1) * 2 * H, axis=2)
        last = (i == n_layers - 1)
        if last:
            skip = wn_layer(x, skip, cond_l, x_mask, lw, K=ksize, dil=dil, last=True)
        else:
            x, skip = wn_layer(x, skip, cond_l, x_mask, lw, K=ksize, dil=dil, last=False)
    return skip


def posterior_encoder(eq, y, y_lengths, g, key, cfg):
    T = y.shape[1]
    y_mask = sequence_mask(y_lengths, T, y.dtype)
    x = conv1d(y, eq['pre']['w'], eq['pre']['b'], out_mask=y_mask)
    x = wn_forward(eq['wn'], x, y_mask, g)
    stats = conv1d(x, eq['proj']['w'], eq['proj']['b'], out_mask=y_mask)
    m, logs = jnp.split(stats, 2, axis=-1)
    z = (m + jax.random.normal(key, m.shape, m.dtype) * jnp.exp(logs)) * y_mask
    return z, m, logs, y_mask


def flow_forward(fp, x, x_mask, g, cfg):
    half = cfg['inter'] // 2
    for lp in fp:
        x0, x1 = x[:, :, :half], x[:, :, half:]
        h = conv1d(x0, lp['pre']['w'], lp['pre']['b'], out_mask=x_mask)
        h = wn_forward(lp['wn'], h, x_mask, g)
        m = conv1d(h, lp['post']['w'], lp['post']['b'], out_mask=x_mask)
        x1 = m + x1 * x_mask
        x = jnp.concatenate([x0, x1], axis=-1)
        # TODO(synk): fold this channel flip into the next pre-conv weights.
        x = x[:, :, ::-1]
    return x


def resblock1(rp, x, k, dils):
    for m in range(len(dils)):
        xt = conv1d(x, rp['c1'][m]['w'], rp['c1'][m]['b'], dilation=dils[m],
                    padding=dils[m] * (k - 1) // 2, pre_act='lrelu_0.1')
        xt = conv1d(xt, rp['c2'][m]['w'], rp['c2'][m]['b'], dilation=1,
                    padding=(k - 1) // 2, pre_act='lrelu_0.1')
        x = xt + x
    return x


def generator(dp, x, g, cfg):
    # x:(B,T,inter)  g:(B,1,gin)  ->  (B, 1, T*prod(upsample_rates))  (NCT)
    cond_bias = (jnp.einsum('bog,gc->boc', g, dp['cond']['w'][0])
                 + dp['cond']['b'][None, None, :])
    x = conv1d(x, dp['pre']['w'], dp['pre']['b'], padding=3, extra_bias=cond_bias)
    nk = len(cfg['resblock_kernel_sizes'])
    for i, (u, ku) in enumerate(zip(cfg['upsample_rates'],
                                    cfg['upsample_kernel_sizes'])):
        x = upsample(x, dp['ups'][i], u=u, ku=ku)
        xs = None
        for j in range(nk):
            r = resblock1(dp['res'][i][j], x,
                          cfg['resblock_kernel_sizes'][j],
                          cfg['resblock_dilation_sizes'][j])
            xs = r if xs is None else xs + r
        x = xs * (1.0 / nk)
    return conv1d_cf(x, dp['post']['w'], padding=3,
                     pre_act='lrelu_0.01', post_act='tanh')


# ----------------------------------------------------------------------------
# full forward (mirrors SynthesizerV2_NoF0.forward)
# ----------------------------------------------------------------------------

def synthesizer_forward(params, phone, phone_lengths, y, y_lengths, ds, key, *, cfg):
    k_post, k_slice = jax.random.split(key)
    g = params['emb_g'][ds][:, None, :]                             # (B,1,gin)
    m_p, logs_p, x_mask = text_encoder(params['enc_p'], phone, phone_lengths, cfg)
    y_t = jnp.transpose(y, (0, 2, 1))                               # NCT -> NTC
    z, m_q, logs_q, y_mask = posterior_encoder(params['enc_q'], y_t, y_lengths,
                                               g, k_post, cfg)
    z_p = flow_forward(params['flow'], z, y_mask, g, cfg)
    z_slice, ids_slice = rand_slice_segments(z, y_lengths, cfg['segment_size'],
                                             k_slice)
    o = generator(params['dec'], z_slice, g, cfg)                   # already NCT
    to_nct = lambda a: jnp.transpose(a, (0, 2, 1))
    return (o, ids_slice, to_nct(x_mask), to_nct(y_mask),
            tuple(to_nct(t) for t in (z, z_p, m_p, logs_p, m_q, logs_q)))


# ----------------------------------------------------------------------------
# deterministic parameter construction
# ----------------------------------------------------------------------------

class Init:
    def __init__(self, seed):
        self.key = jax.random.PRNGKey(seed)

    def take(self):
        self.key, k = jax.random.split(self.key)
        return k

    def n(self, shape, scale=0.05):
        return (scale * jax.random.normal(self.take(), shape)).astype(jnp.float32)

    def z(self, shape):
        return jnp.zeros(shape, jnp.float32)


def conv_p(init, K, cin, cout, zero=False):
    if zero:
        return {'w': init.z((K, cin, cout)), 'b': init.z((cout,))}
    return {'w': init.n((K, cin, cout)), 'b': init.n((cout,), 0.01)}


def build_wn(init, H, ksize, n_layers, gin):
    layers = []
    for i in range(n_layers):
        last = (i == n_layers - 1)
        rs_out = H if last else 2 * H
        layers.append({
            'w_in': init.n((ksize * H, 2 * H)),      # [tanh | sigmoid] columns
            'b_in': init.n((1, 2 * H), 0.01),
            'w_rs': init.n((H, rs_out)),             # [res | skip] columns
            'b_rs': init.n((1, rs_out), 0.01),
        })
    return {'layers': layers,
            'cond_w': init.n((gin, 2 * H * n_layers)),
            'cond_b': init.n((2 * H * n_layers,), 0.01)}


def build_params(cfg, seed=0):
    init = Init(seed)
    H, inter, gin = cfg['hidden'], cfg['inter'], cfg['gin']
    p = {}
    p['emb_g'] = init.n((cfg['spk_embed_dim'], gin), 0.1)

    # enc_p (TextEncoderV2, f0=False)
    ep = {'emb_phone': conv_p(init, 1, cfg['emb_dim'], H)}
    dk = H // cfg['n_heads']
    rel_std = dk ** -0.5
    ks = cfg['kernel_size']
    layers = []
    for _ in range(cfg['n_layers']):
        layers.append({
            'qkv_w': init.n((1, H, 3 * H)), 'qkv_b': init.n((3 * H,), 0.01),
            'o': conv_p(init, 1, H, H),
            'emb_rel_k': init.n((1, 2 * cfg['window'] + 1, dk), rel_std),
            'emb_rel_v': init.n((1, 2 * cfg['window'] + 1, dk), rel_std),
            'ln1_g': jnp.ones((1, H), jnp.float32),
            'ln1_b': jnp.zeros((1, H), jnp.float32),
            'ffn1': conv_p(init, ks, H, cfg['filter']),
            'ffn2': conv_p(init, ks, cfg['filter'], H),
            'ln2_g': jnp.ones((1, H), jnp.float32),
            'ln2_b': jnp.zeros((1, H), jnp.float32),
        })
    ep['layers'] = layers
    ep['proj'] = conv_p(init, 1, H, 2 * inter)
    p['enc_p'] = ep

    # enc_q (PosteriorEncoder, kernel 5, dilation 1, 16 layers)
    p['enc_q'] = {
        'pre': conv_p(init, 1, cfg['spec_channels'], H),
        'wn': build_wn(init, H, 5, cfg['enc_q_layers'], gin),
        'proj': conv_p(init, 1, H, 2 * inter),
    }

    # flow (ResidualCouplingBlock, 4 flows, mean_only, post conv zero-init)
    half = inter // 2
    p['flow'] = [{
        'pre': conv_p(init, 1, half, H),
        'wn': build_wn(init, H, 5, cfg['flow_wn_layers'], gin),
        'post': conv_p(init, 1, H, half, zero=True),
    } for _ in range(cfg['n_flows'])]

    # dec (HiFiGAN Generator); transposed convs stored as equivalent same-convs
    uic = cfg['upsample_initial_channel']
    d = {'pre': conv_p(init, 7, inter, uic), 'cond': conv_p(init, 1, gin, uic)}
    ups, res = [], []
    ch = uic
    for i, (u, ku) in enumerate(zip(cfg['upsample_rates'],
                                    cfg['upsample_kernel_sizes'])):
        cin, cout = uic // (2 ** i), uic // (2 ** (i + 1))
        w_t = init.n((cin, cout, ku))        # ConvTranspose1d weight layout
        b_t = init.n((cout,), 0.01)
        wc, bc = convtr_as_conv_weights(w_t, b_t, u, ku)
        ups.append({'w': wc, 'b': bc})
        blocks = []
        for k, dils in zip(cfg['resblock_kernel_sizes'],
                           cfg['resblock_dilation_sizes']):
            blocks.append({'c1': [conv_p(init, k, cout, cout) for _ in dils],
                           'c2': [conv_p(init, k, cout, cout) for _ in dils]})
        res.append(blocks)
        ch = cout
    d['ups'], d['res'] = ups, res
    d['post'] = {'w': init.n((7, ch, 1))}   # conv_post: bias=False
    p['dec'] = d
    return p


# ----------------------------------------------------------------------------
# main
# ----------------------------------------------------------------------------

if __name__ == "__main__":
    cfg = dict(
        spec_channels=32, segment_size=4, inter=32, hidden=32, filter=64,
        n_heads=2, n_layers=2, kernel_size=3, window=10,
        resblock_kernel_sizes=[3], resblock_dilation_sizes=[[1, 3, 5]],
        upsample_rates=[2, 2], upsample_initial_channel=32,
        upsample_kernel_sizes=[4, 4],
        spk_embed_dim=4, gin=16, emb_dim=768,
        enc_q_layers=16, flow_wn_layers=3, n_flows=4,
    )
    params = build_params(cfg, seed=0)

    key = jax.random.PRNGKey(0)
    kp, ky, kfwd = jax.random.split(key, 3)
    B, T_ph, T_spec = 2, 8, 8
    phone = jax.random.normal(kp, (B, T_ph, cfg['emb_dim']), jnp.float32)
    phone_lengths = jnp.array([8, 6], jnp.int32)
    y = jax.random.normal(ky, (B, cfg['spec_channels'], T_spec), jnp.float32)  # NCT
    y_lengths = jnp.array([8, 7], jnp.int32)
    ds = jnp.array([0, 3], jnp.int32)

    fwd = jax.jit(functools.partial(synthesizer_forward, cfg=cfg))
    out = fwd(params, phone, phone_lengths, y, y_lengths, ds, kfwd)
    out = jax.block_until_ready(out)

    o, ids_slice, x_mask, y_mask, (z, z_p, m_p, logs_p, m_q, logs_q) = out
    up_total = cfg['upsample_rates'][0] * cfg['upsample_rates'][1]
    assert o.shape == (B, 1, cfg['segment_size'] * up_total)
    assert x_mask.shape == (B, 1, T_ph) and y_mask.shape == (B, 1, T_spec)
    assert z.shape == (B, cfg['inter'], T_spec) and z_p.shape == z.shape
    assert m_p.shape == (B, cfg['inter'], T_ph) and logs_p.shape == m_p.shape
    assert m_q.shape == (B, cfg['inter'], T_spec) and logs_q.shape == m_q.shape
    assert ids_slice.shape == (B,)
    assert bool(jnp.all(jnp.isfinite(o)))
    print("KERNEL_OK")
</pallas_src>

<mosaic_0001>
module attributes {stable_mosaic.version = 11 : i64} {
  func.func @_conv_kernel(%arg0: i32, %arg1: i32, %arg2: memref<1x8x32xf32, #tpu.memory_space<vmem>>, %arg3: memref<32x32xf32, #tpu.memory_space<vmem>>, %arg4: memref<1x32xf32, #tpu.memory_space<vmem>>, %arg5: memref<1x8x1xf32, #tpu.memory_space<vmem>>, %arg6: memref<1x8x32xf32, #tpu.memory_space<vmem>>) attributes {dimension_semantics = [#tpu.dimension_semantics<parallel>, #tpu.dimension_semantics<parallel>], iteration_bounds = array<i64: 2, 1>, scalar_prefetch = 0 : i64, scratch_operands = 0 : i64, tpu.core_type = #tpu.core_type<tc>, window_params = [{transform_indices = @transform_0, window_bounds = array<i64: 1, 8, 32>}, {pipeline_mode = #tpu.pipeline_mode<synchronous>, transform_indices = @transform_1, window_bounds = array<i64: 32, 32>}, {pipeline_mode = #tpu.pipeline_mode<synchronous>, transform_indices = @transform_2, window_bounds = array<i64: 1, 32>}, {transform_indices = @transform_3, window_bounds = array<i64: 1, 8, 1>}, {transform_indices = @transform_4, window_bounds = array<i64: 1, 8, 32>}]} {
    %c0 = arith.constant 0 : index
    %c0_0 = arith.constant 0 : index
    %c0_1 = arith.constant 0 : index
    %0 = vector.load %arg2[%c0, %c0_0, %c0_1] : memref<1x8x32xf32, #tpu.memory_space<vmem>>, vector<1x8x32xf32>
    %1 = vector.shape_cast %0 : vector<1x8x32xf32> to vector<8x32xf32>
    %c0_2 = arith.constant 0 : index
    %c0_3 = arith.constant 0 : index
    %2 = vector.load %arg3[%c0_2, %c0_3] : memref<32x32xf32, #tpu.memory_space<vmem>>, vector<32x32xf32>
    %cst = arith.constant dense<0.000000e+00> : vector<8x32xf32>
    %3 = tpu.matmul %1, %2, %cst {dimension_numbers = #tpu.dot_dimension_numbers<[1], [0], [0], [1], [0, 0, 1, 1], [], []>} : vector<8x32xf32>, vector<32x32xf32>, vector<8x32xf32> -> vector<8x32xf32>
    %c0_4 = arith.constant 0 : index
    %c0_5 = arith.constant 0 : index
    %4 = vector.load %arg4[%c0_4, %c0_5] : memref<1x32xf32, #tpu.memory_space<vmem>>, vector<1x32xf32>
    %5 = vector.broadcast %4 : vector<1x32xf32> to vector<8x32xf32>
    %6 = arith.addf %3, %5 : vector<8x32xf32>
    %c0_6 = arith.constant 0 : index
    %c0_7 = arith.constant 0 : index
    %c0_8 = arith.constant 0 : index
    %7 = vector.load %arg5[%c0_6, %c0_7, %c0_8] : memref<1x8x1xf32, #tpu.memory_space<vmem>>, vector<1x8x1xf32>
    %8 = vector.shape_cast %7 : vector<1x8x1xf32> to vector<8x1xf32>
    %9 = vector.broadcast %8 : vector<8x1xf32> to vector<8x32xf32>
    %10 = arith.mulf %6, %9 : vector<8x32xf32>
    %c0_9 = arith.constant 0 : index
    %c0_10 = arith.constant 0 : index
    %c0_11 = arith.constant 0 : index
    %11 = vector.load %arg6[%c0_9, %c0_10, %c0_11] : memref<1x8x32xf32, #tpu.memory_space<vmem>>, vector<1x8x32xf32>
    %12 = vector.shape_cast %11 : vector<1x8x32xf32> to vector<8x32xf32>
    %13 = vector.shape_cast %10 : vector<8x32xf32> to vector<1x8x32xf32>
    tpu.vector_store %arg6[%c0_9, %c0_10, %c0_11], %13 {strides = array<i32>} : memref<1x8x32xf32, #tpu.memory_space<vmem>>, vector<1x8x32xf32>,
    return
  }
  func.func @transform_0(%arg0: i32, %arg1: i32) -> (i32, i32, i32) {
    %c0_i32 = arith.constant 0 : i32
    %c0_i32_0 = arith.constant 0 : i32
    return %arg0, %arg1, %c0_i32 : i32, i32, i32
  }
  func.func @transform_1(%arg0: i32, %arg1: i32) -> (i32, i32) {
    %c0_i32 = arith.constant 0 : i32
    %c0_i32_0 = arith.constant 0 : i32
    %c0_i32_1 = arith.constant 0 : i32
    return %c0_i32, %c0_i32_0 : i32, i32
  }
  func.func @transform_2(%arg0: i32, %arg1: i32) -> (i32, i32) {
    %c0_i32 = arith.constant 0 : i32
    %c0_i32_0 = arith.constant 0 : i32
    %c0_i32_1 = arith.constant 0 : i32
    return %c0_i32, %c0_i32_0 : i32, i32
  }
  func.func @transform_3(%arg0: i32, %arg1: i32) -> (i32, i32, i32) {
    %c0_i32 = arith.constant 0 : i32
    %c0_i32_0 = arith.constant 0 : i32
    return %arg0, %arg1, %c0_i32 : i32, i32, i32
  }
  func.func @transform_4(%arg0: i32, %arg1: i32) -> (i32, i32, i32) {
    %c0_i32 = arith.constant 0 : i32
    %c0_i32_0 = arith.constant 0 : i32
    return %arg0, %arg1, %c0_i32 : i32, i32, i32
  }
}

module attributes {stable_mosaic.version = 11 : i64} {
  func.func @_wn_layer_kernel(%arg0: i32, %arg1: i32, %arg2: memref<1x8x32xf32, #tpu.memory_space<vmem>>, %arg3: memref<1x8x32xf32, #tpu.memory_space<vmem>>, %arg4: memref<1x8x32xf32, #tpu.memory_space<vmem>>, %arg5: memref<1x8x32xf32, #tpu.memory_space<vmem>>, %arg6: memref<1x1x64xf32, #tpu.memory_space<vmem>>, %arg7: memref<1x8x1xf32, #tpu.memory_space<vmem>>, %arg8: memref<160x64xf32, #tpu.memory_space<vmem>>, %arg9: memref<1x64xf32, #tpu.memory_space<vmem>>, %arg10: memref<32x64xf32, #tpu.memory_space<vmem>>, %arg11: memref<1x64xf32, #tpu.memory_space<vmem>>, %arg12: memref<1x8x32xf32, #tpu.memory_space<vmem>>, %arg13: memref<1x8x32xf32, #tpu.memory_space<vmem>>, %arg14: memref<24x32xf32, #tpu.memory_space<vmem>>) attributes {dimension_semantics = [#tpu.dimension_semantics<parallel>, #tpu.dimension_semantics<parallel>], iteration_bounds = array<i64: 2, 1>, scalar_prefetch = 0 : i64, scratch_operands = 1 : i64, tpu.core_type = #tpu.core_type<tc>, window_params = [{transform_indices = @transform_0, window_bounds = array<i64: 1, 8, 32>}, {transform_indices = @transform_1, window_bounds = array<i64: 1, 8, 32>}, {transform_indices = @transform_2, window_bounds = array<i64: 1, 8, 32>}, {transform_indices = @transform_3, window_bounds = array<i64: 1, 8, 32>}, {transform_indices = @transform_4, window_bounds = array<i64: 1, 1, 64>}, {transform_indices = @transform_5, window_bounds = array<i64: 1, 8, 1>}, {pipeline_mode = #tpu.pipeline_mode<synchronous>, transform_indices = @transform_6, window_bounds = array<i64: 160, 64>}, {pipeline_mode = #tpu.pipeline_mode<synchronous>, transform_indices = @transform_7, window_bounds = array<i64: 1, 64>}, {pipeline_mode = #tpu.pipeline_mode<synchronous>, transform_indices = @transform_8, window_bounds = array<i64: 32, 64>}, {pipeline_mode = #tpu.pipeline_mode<synchronous>, transform_indices = @transform_9, window_bounds = array<i64: 1, 64>}, {transform_indices = @transform_10, window_bounds = array<i64: 1, 8, 32>}, {transform_indices = @transform_11, window_bounds = array<i64: 1, 8, 32>}]} {
    %c0 = arith.constant 0 : index
    %c0_0 = arith.constant 0 : index
    %c0_1 = arith.constant 0 : index
    %0 = vector.load %arg2[%c0, %c0_0, %c0_1] : memref<1x8x32xf32, #tpu.memory_space<vmem>>, vector<1x8x32xf32>
    %1 = vector.shape_cast %0 : vector<1x8x32xf32> to vector<8x32xf32>
    %c-1_i32 = arith.constant -1 : i32
    %2 = arith.addi %arg1, %c-1_i32 : i32
    %c8_i32 = arith.constant 8 : i32
    %3 = arith.muli %2, %c8_i32 : i32
    %4 = tpu.iota {dimensions = array<i32: 0>} : vector<8x1xi32>
    %5 = vector.broadcast %3 : i32 to vector<8x1xi32>
    %6 = arith.addi %5, %4 : vector<8x1xi32>
    %c0_i32 = arith.constant 0 : i32
    %7 = vector.broadcast %c0_i32 : i32 to vector<8x1xi32>
    %8 = arith.cmpi sge, %6, %7 : vector<8x1xi32>
    %c8_i32_2 = arith.constant 8 : i32
    %9 = vector.broadcast %c8_i32_2 : i32 to vector<8x1xi32>
    %10 = arith.cmpi slt, %6, %9 : vector<8x1xi32>
    %11 = arith.andi %8, %10 : vector<8x1xi1>
    %12 = arith.extui %11 : vector<8x1xi1> to vector<8x1xi32>
    %13 = arith.sitofp %12 : vector<8x1xi32> to vector<8x1xf32>
    %14 = vector.broadcast %13 : vector<8x1xf32> to vector<8x32xf32>
    %15 = arith.mulf %1, %14 : vector<8x32xf32>
    %c0_3 = arith.constant 0 : index
    %c0_4 = arith.constant 0 : index
    %16 = vector.load %arg14[%c0_3, %c0_4] : memref<24x32xf32, #tpu.memory_space<vmem>>, vector<8x32xf32>
    tpu.vector_store %arg14[%c0_3, %c0_4], %15 {strides = array<i32>} : memref<24x32xf32, #tpu.memory_space<vmem>>, vector<8x32xf32>,
    %c0_5 = arith.constant 0 : index
    %c0_6 = arith.constant 0 : index
    %c0_7 = arith.constant 0 : index
    %17 = vector.load %arg3[%c0_5, %c0_6, %c0_7] : memref<1x8x32xf32, #tpu.memory_space<vmem>>, vector<1x8x32xf32>
    %18 = vector.shape_cast %17 : vector<1x8x32xf32> to vector<8x32xf32>
    %c0_i32_8 = arith.constant 0 : i32
    %19 = arith.addi %arg1, %c0_i32_8 : i32
    %c8_i32_9 = arith.constant 8 : i32
    %20 = arith.muli %19, %c8_i32_9 : i32
    %21 = tpu.iota {dimensions = array<i32: 0>} : vector<8x1xi32>
    %22 = vector.broadcast %20 : i32 to vector<8x1xi32>
    %23 = arith.addi %22, %21 : vector<8x1xi32>
    %c0_i32_10 = arith.constant 0 : i32
    %24 = vector.broadcast %c0_i32_10 : i32 to vector<8x1xi32>
    %25 = arith.cmpi sge, %23, %24 : vector<8x1xi32>
    %c8_i32_11 = arith.constant 8 : i32
    %26 = vector.broadcast %c8_i32_11 : i32 to vector<8x1xi32>
    %27 = arith.cmpi slt, %23, %26 : vector<8x1xi32>
    %28 = arith.andi %25, %27 : vector<8x1xi1>
    %29 = arith.extui %28 : vector<8x1xi1> to vector<8x1xi32>
    %30 = arith.sitofp %29 : vector<8x1xi32> to vector<8x1xf32>
    %31 = vector.broadcast %30 : vector<8x1xf32> to vector<8x32xf32>
    %32 = arith.mulf %18, %31 : vector<8x32xf32>
    %c8 = arith.constant 8 : index
    %c0_12 = arith.constant 0 : index
    %33 = vector.load %arg14[%c8, %c0_12] : memref<24x32xf32, #tpu.memory_space<vmem>>, vector<8x32xf32>
    tpu.vector_store %arg14[%c8, %c0_12], %32 {strides = array<i32>} : memref<24x32xf32, #tpu.memory_space<vmem>>, vector<8x32xf32>,
    %c0_13 = arith.constant 0 : index
    %c0_14 = arith.constant 0 : index
    %c0_15 = arith.constant 0 : index
    %34 = vector.load %arg4[%c0_13, %c0_14, %c0_15] : memref<1x8x32xf32, #tpu.memory_space<vmem>>, vector<1x8x32xf32>
    %35 = vector.shape_cast %34 : vector<1x8x32xf32> to vector<8x32xf32>
    %c1_i32 = arith.constant 1 : i32
    %36 = arith.addi %arg1, %c1_i32 : i32
    %c8_i32_16 = arith.constant 8 : i32
    %37 = arith.muli %36, %c8_i32_16 : i32
    %38 = tpu.iota {dimensions = array<i32: 0>} : vector<8x1xi32>
    %39 = vector.broadcast %37 : i32 to vector<8x1xi32>
    %40 = arith.addi %39, %38 : vector<8x1xi32>
    %c0_i32_17 = arith.constant 0 : i32
    %41 = vector.broadcast %c0_i32_17 : i32 to vector<8x1xi32>
    %42 = arith.cmpi sge, %40, %41 : vector<8x1xi32>
    %c8_i32_18 = arith.constant 8 : i32
    %43 = vector.broadcast %c8_i32_18 : i32 to vector<8x1xi32>
    %44 = arith.cmpi slt, %40, %43 : vector<8x1xi32>
    %45 = arith.andi %42, %44 : vector<8x1xi1>
    %46 = arith.extui %45 : vector<8x1xi1> to vector<8x1xi32>
    %47 = arith.sitofp %46 : vector<8x1xi32> to vector<8x1xf32>
    %48 = vector.broadcast %47 : vector<8x1xf32> to vector<8x32xf32>
    %49 = arith.mulf %35, %48 : vector<8x32xf32>
    %c16 = arith.constant 16 : index
    %c0_19 = arith.constant 0 : index
    %50 = vector.load %arg14[%c16, %c0_19] : memref<24x32xf32, #tpu.memory_space<vmem>>, vector<8x32xf32>
    tpu.vector_store %arg14[%c16, %c0_19], %49 {strides = array<i32>} : memref<24x32xf32, #tpu.memory_space<vmem>>, vector<8x32xf32>,
    %c6 = arith.constant 6 : index
    %c0_20 = arith.constant 0 : index
    %51 = vector.load %arg14[%c6, %c0_20] : memref<24x32xf32, #tpu.memory_space<vmem>>, vector<8x32xf32>
    %c7 = arith.constant 7 : index
    %c0_21 = arith.constant 0 : index
    %52 = vector.load %arg14[%c7, %c0_21] : memref<24x32xf32, #tpu.memory_space<vmem>>, vector<8x32xf32>
    %c8_22 = arith.constant 8 : index
    %c0_23 = arith.constant 0 : index
    %53 = vector.load %arg14[%c8_22, %c0_23] : memref<24x32xf32, #tpu.memory_space<vmem>>, vector<8x32xf32>
    %c9 = arith.constant 9 : index
    %c0_24 = arith.constant 0 : index
    %54 = vector.load %arg14[%c9, %c0_24] : memref<24x32xf32, #tpu.memory_space<vmem>>, vector<8x32xf32>
    %c10 = arith.constant 10 : index
    %c0_25 = arith.constant 0 : index
    %55 = vector.load %arg14[%c10, %c0_25] : memref<24x32xf32, #tpu.memory_space<vmem>>, vector<8x32xf32>
    %56 = tpu.concatenate %51, %52, %53, %54, %55 in 1 : vector<8x32xf32>, vector<8x32xf32>, vector<8x32xf32>, vector<8x32xf32>, vector<8x32xf32> -> vector<8x160xf32>
    %c0_26 = arith.constant 0 : index
    %c0_27 = arith.constant 0 : index
    %57 = vector.load %arg8[%c0_26, %c0_27] : memref<160x64xf32, #tpu.memory_space<vmem>>, vector<160x64xf32>
    %cst = arith.constant dense<0.000000e+00> : vector<8x64xf32>
    %58 = tpu.matmul %56, %57, %cst {dimension_numbers = #tpu.dot_dimension_numbers<[1], [0], [0], [1], [0, 0, 1, 1], [], []>} : vector<8x160xf32>, vector<160x64xf32>, vector<8x64xf32> -> vector<8x64xf32>
    %c0_28 = arith.constant 0 : index
    %c0_29 = arith.constant 0 : index
    %59 = vector.load %arg9[%c0_28, %c0_29] : memref<1x64xf32, #tpu.memory_space<vmem>>, vector<1x64xf32>
    %60 = vector.broadcast %59 : vector<1x64xf32> to vector<8x64xf32>
    %61 = arith.addf %58, %60 : vector<8x64xf32>
    %c0_30 = arith.constant 0 : index
    %c0_31 = arith.constant 0 : index
    %c0_32 = arith.constant 0 : index
    %62 = vector.load %arg6[%c0_30, %c0_31, %c0_32] : memref<1x1x64xf32, #tpu.memory_space<vmem>>, vector<1x1x64xf32>
    %63 = vector.shape_cast %62 : vector<1x1x64xf32> to vector<1x64xf32>
    %64 = vector.broadcast %63 : vector<1x64xf32> to vector<8x64xf32>
    %65 = arith.addf %61, %64 : vector<8x64xf32>
    %66 = vector.extract_strided_slice %65 {offsets = [0, 0], sizes = [8, 32], strides = [1, 1]} : vector<8x64xf32> to vector<8x32xf32>
    %67 = math.tanh %66 : vector<8x32xf32>
    %68 = vector.extract_strided_slice %65 {offsets = [0, 32], sizes = [8, 32], strides = [1, 1]} : vector<8x64xf32> to vector<8x32xf32>
    %69 = arith.negf %68 : vector<8x32xf32>
    %70 = math.exp %69 : vector<8x32xf32>
    %cst_33 = arith.constant 1.000000e+00 : f32
    %71 = vector.broadcast %cst_33 : f32 to vector<8x32xf32>
    %72 = arith.addf %71, %70 : vector<8x32xf32>
    %73 = arith.divf %71, %72 : vector<8x32xf32>
    %74 = arith.mulf %67, %73 : vector<8x32xf32>
    %c0_34 = arith.constant 0 : index
    %c0_35 = arith.constant 0 : index
    %75 = vector.load %arg10[%c0_34, %c0_35] : memref<32x64xf32, #tpu.memory_space<vmem>>, vector<32x64xf32>
    %cst_36 = arith.constant dense<0.000000e+00> : vector<8x64xf32>
    %76 = tpu.matmul %74, %75, %cst_36 {dimension_numbers = #tpu.dot_dimension_numbers<[1], [0], [0], [1], [0, 0, 1, 1], [], []>} : vector<8x32xf32>, vector<32x64xf32>, vector<8x64xf32> -> vector<8x64xf32>
    %c0_37 = arith.constant 0 : index
    %c0_38 = arith.constant 0 : index
    %77 = vector.load %arg11[%c0_37, %c0_38] : memref<1x64xf32, #tpu.memory_space<vmem>>, vector<1x64xf32>
    %78 = vector.broadcast %77 : vector<1x64xf32> to vector<8x64xf32>
    %79 = arith.addf %76, %78 : vector<8x64xf32>
    %c0_39 = arith.constant 0 : index
    %c0_40 = arith.constant 0 : index
    %c0_41 = arith.constant 0 : index
    %80 = vector.load %arg7[%c0_39, %c0_40, %c0_41] : memref<1x8x1xf32, #tpu.memory_space<vmem>>, vector<1x8x1xf32>
    %81 = vector.shape_cast %80 : vector<1x8x1xf32> to vector<8x1xf32>
    %c0_42 = arith.constant 0 : index
    %c0_43 = arith.constant 0 : index
    %c0_44 = arith.constant 0 : index
    %82 = vector.load %arg5[%c0_42, %c0_43, %c0_44] : memref<1x8x32xf32, #tpu.memory_space<vmem>>, vector<1x8x32xf32>
    %83 = vector.shape_cast %82 : vector<1x8x32xf32> to vector<8x32xf32>
    %c0_45 = arith.constant 0 : index
    %c0_46 = arith.constant 0 : index
    %c0_47 = arith.constant 0 : index
    %84 = vector.load %arg3[%c0_45, %c0_46, %c0_47] : memref<1x8x32xf32, #tpu.memory_space<vmem>>, vector<1x8x32xf32>
    %85 = vector.shape_cast %84 : vector<1x8x32xf32> to vector<8x32xf32>
    %86 = vector.extract_strided_slice %79 {offsets = [0, 0], sizes = [8, 32], strides = [1, 1]} : vector<8x64xf32> to vector<8x32xf32>
    %87 = arith.addf %85, %86 : vector<8x32xf32>
    %88 = vector.broadcast %81 : vector<8x1xf32> to vector<8x32xf32>
    %89 = arith.mulf %87, %88 : vector<8x32xf32>
    %c0_48 = arith.constant 0 : index
    %c0_49 = arith.constant 0 : index
    %c0_50 = arith.constant 0 : index
    %90 = vector.load %arg12[%c0_48, %c0_49, %c0_50] : memref<1x8x32xf32, #tpu.memory_space<vmem>>, vector<1x8x32xf32>
    %91 = vector.shape_cast %90 : vector<1x8x32xf32> to vector<8x32xf32>
    %92 = vector.shape_cast %89 : vector<8x32xf32> to vector<1x8x32xf32>
    tpu.vector_store %arg12[%c0_48, %c0_49, %c0_50], %92 {strides = array<i32>} : memref<1x8x32xf32, #tpu.memory_space<vmem>>, vector<1x8x32xf32>,
    %93 = vector.extract_strided_slice %79 {offsets = [0, 32], sizes = [8, 32], strides = [1, 1]} : vector<8x64xf32> to vector<8x32xf32>
    %94 = arith.addf %83, %93 : vector<8x32xf32>
    %c0_51 = arith.constant 0 : index
    %c0_52 = arith.constant 0 : index
    %c0_53 = arith.constant 0 : index
    %95 = vector.load %arg13[%c0_51, %c0_52, %c0_53] : memref<1x8x32xf32, #tpu.memory_space<vmem>>, vector<1x8x32xf32>
    %96 = vector.shape_cast %95 : vector<1x8x32xf32> to vector<8x32xf32>
    %97 = vector.shape_cast %94 : vector<8x32xf32> to vector<1x8x32xf32>
    tpu.vector_store %arg13[%c0_51, %c0_52, %c0_53], %97 {strides = array<i32>} : memref<1x8x32xf32, #tpu.memory_space<vmem>>, vector<1x8x32xf32>,
    return
  }
  func.func @transform_0(%arg0: i32, %arg1: i32) -> (i32, i32, i32) {
    %c1_i32 = arith.constant 1 : i32
    %0 = arith.subi %arg1, %c1_i32 : i32
    %c0_i32 = arith.constant 0 : i32
    %1 = arith.maxsi %0, %c0_i32 : i32
    %c0_i32_0 = arith.constant 0 : i32
    %c0_i32_1 = arith.constant 0 : i32
    return %arg0, %1, %c0_i32_0 : i32, i32, i32
  }
  func.func @transform_1(%arg0: i32, %arg1: i32) -> (i32, i32, i32) {
    %c0_i32 = arith.constant 0 : i32
    %c0_i32_0 = arith.constant 0 : i32
    return %arg0, %arg1, %c0_i32 : i32, i32, i32
  }
  func.func @transform_2(%arg0: i32, %arg1: i32) -> (i32, i32, i32) {
    %c1_i32 = arith.constant 1 : i32
    %0 = arith.addi %arg1, %c1_i32 : i32
    %c0_i32 = arith.constant 0 : i32
    %1 = arith.minsi %0, %c0_i32 : i32
    %c0_i32_0 = arith.constant 0 : i32
    %c0_i32_1 = arith.constant 0 : i32
    return %arg0, %1, %c0_i32_0 : i32, i32, i32
  }
  func.func @transform_3(%arg0: i32, %arg1: i32) -> (i32, i32, i32) {
    %c0_i32 = arith.constant 0 : i32
    %c0_i32_0 = arith.constant 0 : i32
    return %arg0, %arg1, %c0_i32 : i32, i32, i32
  }
  func.func @transform_4(%arg0: i32, %arg1: i32) -> (i32, i32, i32) {
    %c0_i32 = arith.constant 0 : i32
    %c0_i32_0 = arith.constant 0 : i32
    %c0_i32_1 = arith.constant 0 : i32
    return %arg0, %c0_i32, %c0_i32_0 : i32, i32, i32
  }
  func.func @transform_5(%arg0: i32, %arg1: i32) -> (i32, i32, i32) {
    %c0_i32 = arith.constant 0 : i32
    %c0_i32_0 = arith.constant 0 : i32
    return %arg0, %arg1, %c0_i32 : i32, i32, i32
  }
  func.func @transform_6(%arg0: i32, %arg1: i32) -> (i32, i32) {
    %c0_i32 = arith.constant 0 : i32
    %c0_i32_0 = arith.constant 0 : i32
    %c0_i32_1 = arith.constant 0 : i32
    return %c0_i32, %c0_i32_0 : i32, i32
  }
  func.func @transform_7(%arg0: i32, %arg1: i32) -> (i32, i32) {
    %c0_i32 = arith.constant 0 : i32
    %c0_i32_0 = arith.constant 0 : i32
    %c0_i32_1 = arith.constant 0 : i32
    return %c0_i32, %c0_i32_0 : i32, i32
  }
  func.func @transform_8(%arg0: i32, %arg1: i32) -> (i32, i32) {
    %c0_i32 = arith.constant 0 : i32
    %c0_i32_0 = arith.constant 0 : i32
    %c0_i32_1 = arith.constant 0 : i32
    return %c0_i32, %c0_i32_0 : i32, i32
  }
  func.func @transform_9(%arg0: i32, %arg1: i32) -> (i32, i32) {
    %c0_i32 = arith.constant 0 : i32
    %c0_i32_0 = arith.constant 0 : i32
    %c0_i32_1 = arith.constant 0 : i32
    return %c0_i32, %c0_i32_0 : i32, i32
  }
  func.func @transform_10(%arg0: i32, %arg1: i32) -> (i32, i32, i32) {
    %c0_i32 = arith.constant 0 : i32
    %c0_i32_0 = arith.constant 0 : i32
    return %arg0, %arg1, %c0_i32 : i32, i32, i32
  }
  func.func @transform_11(%arg0: i32, %arg1: i32) -> (i32, i32, i32) {
    %c0_i32 = arith.constant 0 : i32
    %c0_i32_0 = arith.constant 0 : i32
    return %arg0, %arg1, %c0_i32 : i32, i32, i32
  }
}

module attributes {stable_mosaic.version = 11 : i64} {
  func.func @_conv_kernel(%arg0: i32, %arg1: i32, %arg2: memref<1x8x32xf32, #tpu.memory_space<vmem>>, %arg3: memref<32x64xf32, #tpu.memory_space<vmem>>, %arg4: memref<1x64xf32, #tpu.memory_space<vmem>>, %arg5: memref<1x8x1xf32, #tpu.memory_space<vmem>>, %arg6: memref<1x8x64xf32, #tpu.memory_space<vmem>>) attributes {dimension_semantics = [#tpu.dimension_semantics<parallel>, #tpu.dimension_semantics<parallel>], iteration_bounds = array<i64: 2, 1>, scalar_prefetch = 0 : i64, scratch_operands = 0 : i64, tpu.core_type = #tpu.core_type<tc>, window_params = [{transform_indices = @transform_0, window_bounds = array<i64: 1, 8, 32>}, {pipeline_mode = #tpu.pipeline_mode<synchronous>, transform_indices = @transform_1, window_bounds = array<i64: 32, 64>}, {pipeline_mode = #tpu.pipeline_mode<synchronous>, transform_indices = @transform_2, window_bounds = array<i64: 1, 64>}, {transform_indices = @transform_3, window_bounds = array<i64: 1, 8, 1>}, {transform_indices = @transform_4, window_bounds = array<i64: 1, 8, 64>}]} {
    %c0 = arith.constant 0 : index
    %c0_0 = arith.constant 0 : index
    %c0_1 = arith.constant 0 : index
    %0 = vector.load %arg2[%c0, %c0_0, %c0_1] : memref<1x8x32xf32, #tpu.memory_space<vmem>>, vector<1x8x32xf32>
    %1 = vector.shape_cast %0 : vector<1x8x32xf32> to vector<8x32xf32>
    %c0_2 = arith.constant 0 : index
    %c0_3 = arith.constant 0 : index
    %2 = vector.load %arg3[%c0_2, %c0_3] : memref<32x64xf32, #tpu.memory_space<vmem>>, vector<32x64xf32>
    %cst = arith.constant dense<0.000000e+00> : vector<8x64xf32>
    %3 = tpu.matmul %1, %2, %cst {dimension_numbers = #tpu.dot_dimension_numbers<[1], [0], [0], [1], [0, 0, 1, 1], [], []>} : vector<8x32xf32>, vector<32x64xf32>, vector<8x64xf32> -> vector<8x64xf32>
    %c0_4 = arith.constant 0 : index
    %c0_5 = arith.constant 0 : index
    %4 = vector.load %arg4[%c0_4, %c0_5] : memref<1x64xf32, #tpu.memory_space<vmem>>, vector<1x64xf32>
    %5 = vector.broadcast %4 : vector<1x64xf32> to vector<8x64xf32>
    %6 = arith.addf %3, %5 : vector<8x64xf32>
    %c0_6 = arith.constant 0 : index
    %c0_7 = arith.constant 0 : index
    %c0_8 = arith.constant 0 : index
    %7 = vector.load %arg5[%c0_6, %c0_7, %c0_8] : memref<1x8x1xf32, #tpu.memory_space<vmem>>, vector<1x8x1xf32>
    %8 = vector.shape_cast %7 : vector<1x8x1xf32> to vector<8x1xf32>
    %9 = vector.broadcast %8 : vector<8x1xf32> to vector<8x64xf32>
    %10 = arith.mulf %6, %9 : vector<8x64xf32>
    %c0_9 = arith.constant 0 : index
    %c0_10 = arith.constant 0 : index
    %c0_11 = arith.constant 0 : index
    %11 = vector.load %arg6[%c0_9, %c0_10, %c0_11] : memref<1x8x64xf32, #tpu.memory_space<vmem>>, vector<1x8x64xf32>
    %12 = vector.shape_cast %11 : vector<1x8x64xf32> to vector<8x64xf32>
    %13 = vector.shape_cast %10 : vector<8x64xf32> to vector<1x8x64xf32>
    tpu.vector_store %arg6[%c0_9, %c0_10, %c0_11], %13 {strides = array<i32>} : memref<1x8x64xf32, #tpu.memory_space<vmem>>, vector<1x8x64xf32>,
    return
  }
  func.func @transform_0(%arg0: i32, %arg1: i32) -> (i32, i32, i32) {
    %c0_i32 = arith.constant 0 : i32
    %c0_i32_0 = arith.constant 0 : i32
    return %arg0, %arg1, %c0_i32 : i32, i32, i32
  }
  func.func @transform_1(%arg0: i32, %arg1: i32) -> (i32, i32) {
    %c0_i32 = arith.constant 0 : i32
    %c0_i32_0 = arith.constant 0 : i32
    %c0_i32_1 = arith.constant 0 : i32
    return %c0_i32, %c0_i32_0 : i32, i32
  }
  func.func @transform_2(%arg0: i32, %arg1: i32) -> (i32, i32) {
    %c0_i32 = arith.constant 0 : i32
    %c0_i32_0 = arith.constant 0 : i32
    %c0_i32_1 = arith.constant 0 : i32
    return %c0_i32, %c0_i32_0 : i32, i32
  }
  func.func @transform_3(%arg0: i32, %arg1: i32) -> (i32, i32, i32) {
    %c0_i32 = arith.constant 0 : i32
    %c0_i32_0 = arith.constant 0 : i32
    return %arg0, %arg1, %c0_i32 : i32, i32, i32
  }
  func.func @transform_4(%arg0: i32, %arg1: i32) -> (i32, i32, i32) {
    %c0_i32 = arith.constant 0 : i32
    %c0_i32_0 = arith.constant 0 : i32
    return %arg0, %arg1, %c0_i32 : i32, i32, i32
  }
}

module attributes {stable_mosaic.version = 11 : i64} {
  func.func @_wn_layer_kernel(%arg0: i32, %arg1: i32, %arg2: memref<1x8x32xf32, #tpu.memory_space<vmem>>, %arg3: memref<1x8x32xf32, #tpu.memory_space<vmem>>, %arg4: memref<1x8x32xf32, #tpu.memory_space<vmem>>, %arg5: memref<1x8x32xf32, #tpu.memory_space<vmem>>, %arg6: memref<1x1x64xf32, #tpu.memory_space<vmem>>, %arg7: memref<1x8x1xf32, #tpu.memory_space<vmem>>, %arg8: memref<160x64xf32, #tpu.memory_space<vmem>>, %arg9: memref<1x64xf32, #tpu.memory_space<vmem>>, %arg10: memref<32x32xf32, #tpu.memory_space<vmem>>, %arg11: memref<1x32xf32, #tpu.memory_space<vmem>>, %arg12: memref<1x8x32xf32, #tpu.memory_space<vmem>>, %arg13: memref<24x32xf32, #tpu.memory_space<vmem>>) attributes {dimension_semantics = [#tpu.dimension_semantics<parallel>, #tpu.dimension_semantics<parallel>], iteration_bounds = array<i64: 2, 1>, scalar_prefetch = 0 : i64, scratch_operands = 1 : i64, tpu.core_type = #tpu.core_type<tc>, window_params = [{transform_indices = @transform_0, window_bounds = array<i64: 1, 8, 32>}, {transform_indices = @transform_1, window_bounds = array<i64: 1, 8, 32>}, {transform_indices = @transform_2, window_bounds = array<i64: 1, 8, 32>}, {transform_indices = @transform_3, window_bounds = array<i64: 1, 8, 32>}, {transform_indices = @transform_4, window_bounds = array<i64: 1, 1, 64>}, {transform_indices = @transform_5, window_bounds = array<i64: 1, 8, 1>}, {pipeline_mode = #tpu.pipeline_mode<synchronous>, transform_indices = @transform_6, window_bounds = array<i64: 160, 64>}, {pipeline_mode = #tpu.pipeline_mode<synchronous>, transform_indices = @transform_7, window_bounds = array<i64: 1, 64>}, {pipeline_mode = #tpu.pipeline_mode<synchronous>, transform_indices = @transform_8, window_bounds = array<i64: 32, 32>}, {pipeline_mode = #tpu.pipeline_mode<synchronous>, transform_indices = @transform_9, window_bounds = array<i64: 1, 32>}, {transform_indices = @transform_10, window_bounds = array<i64: 1, 8, 32>}]} {
    %c0 = arith.constant 0 : index
    %c0_0 = arith.constant 0 : index
    %c0_1 = arith.constant 0 : index
    %0 = vector.load %arg2[%c0, %c0_0, %c0_1] : memref<1x8x32xf32, #tpu.memory_space<vmem>>, vector<1x8x32xf32>
    %1 = vector.shape_cast %0 : vector<1x8x32xf32> to vector<8x32xf32>
    %c-1_i32 = arith.constant -1 : i32
    %2 = arith.addi %arg1, %c-1_i32 : i32
    %c8_i32 = arith.constant 8 : i32
    %3 = arith.muli %2, %c8_i32 : i32
    %4 = tpu.iota {dimensions = array<i32: 0>} : vector<8x1xi32>
    %5 = vector.broadcast %3 : i32 to vector<8x1xi32>
    %6 = arith.addi %5, %4 : vector<8x1xi32>
    %c0_i32 = arith.constant 0 : i32
    %7 = vector.broadcast %c0_i32 : i32 to vector<8x1xi32>
    %8 = arith.cmpi sge, %6, %7 : vector<8x1xi32>
    %c8_i32_2 = arith.constant 8 : i32
    %9 = vector.broadcast %c8_i32_2 : i32 to vector<8x1xi32>
    %10 = arith.cmpi slt, %6, %9 : vector<8x1xi32>
    %11 = arith.andi %8, %10 : vector<8x1xi1>
    %12 = arith.extui %11 : vector<8x1xi1> to vector<8x1xi32>
    %13 = arith.sitofp %12 : vector<8x1xi32> to vector<8x1xf32>
    %14 = vector.broadcast %13 : vector<8x1xf32> to vector<8x32xf32>
    %15 = arith.mulf %1, %14 : vector<8x32xf32>
    %c0_3 = arith.constant 0 : index
    %c0_4 = arith.constant 0 : index
    %16 = vector.load %arg13[%c0_3, %c0_4] : memref<24x32xf32, #tpu.memory_space<vmem>>, vector<8x32xf32>
    tpu.vector_store %arg13[%c0_3, %c0_4], %15 {strides = array<i32>} : memref<24x32xf32, #tpu.memory_space<vmem>>, vector<8x32xf32>,
    %c0_5 = arith.constant 0 : index
    %c0_6 = arith.constant 0 : index
    %c0_7 = arith.constant 0 : index
    %17 = vector.load %arg3[%c0_5, %c0_6, %c0_7] : memref<1x8x32xf32, #tpu.memory_space<vmem>>, vector<1x8x32xf32>
    %18 = vector.shape_cast %17 : vector<1x8x32xf32> to vector<8x32xf32>
    %c0_i32_8 = arith.constant 0 : i32
    %19 = arith.addi %arg1, %c0_i32_8 : i32
    %c8_i32_9 = arith.constant 8 : i32
    %20 = arith.muli %19, %c8_i32_9 : i32
    %21 = tpu.iota {dimensions = array<i32: 0>} : vector<8x1xi32>
    %22 = vector.broadcast %20 : i32 to vector<8x1xi32>
    %23 = arith.addi %22, %21 : vector<8x1xi32>
    %c0_i32_10 = arith.constant 0 : i32
    %24 = vector.broadcast %c0_i32_10 : i32 to vector<8x1xi32>
    %25 = arith.cmpi sge, %23, %24 : vector<8x1xi32>
    %c8_i32_11 = arith.constant 8 : i32
    %26 = vector.broadcast %c8_i32_11 : i32 to vector<8x1xi32>
    %27 = arith.cmpi slt, %23, %26 : vector<8x1xi32>
    %28 = arith.andi %25, %27 : vector<8x1xi1>
    %29 = arith.extui %28 : vector<8x1xi1> to vector<8x1xi32>
    %30 = arith.sitofp %29 : vector<8x1xi32> to vector<8x1xf32>
    %31 = vector.broadcast %30 : vector<8x1xf32> to vector<8x32xf32>
    %32 = arith.mulf %18, %31 : vector<8x32xf32>
    %c8 = arith.constant 8 : index
    %c0_12 = arith.constant 0 : index
    %33 = vector.load %arg13[%c8, %c0_12] : memref<24x32xf32, #tpu.memory_space<vmem>>, vector<8x32xf32>
    tpu.vector_store %arg13[%c8, %c0_12], %32 {strides = array<i32>} : memref<24x32xf32, #tpu.memory_space<vmem>>, vector<8x32xf32>,
    %c0_13 = arith.constant 0 : index
    %c0_14 = arith.constant 0 : index
    %c0_15 = arith.constant 0 : index
    %34 = vector.load %arg4[%c0_13, %c0_14, %c0_15] : memref<1x8x32xf32, #tpu.memory_space<vmem>>, vector<1x8x32xf32>
    %35 = vector.shape_cast %34 : vector<1x8x32xf32> to vector<8x32xf32>
    %c1_i32 = arith.constant 1 : i32
    %36 = arith.addi %arg1, %c1_i32 : i32
    %c8_i32_16 = arith.constant 8 : i32
    %37 = arith.muli %36, %c8_i32_16 : i32
    %38 = tpu.iota {dimensions = array<i32: 0>} : vector<8x1xi32>
    %39 = vector.broadcast %37 : i32 to vector<8x1xi32>
    %40 = arith.addi %39, %38 : vector<8x1xi32>
    %c0_i32_17 = arith.constant 0 : i32
    %41 = vector.broadcast %c0_i32_17 : i32 to vector<8x1xi32>
    %42 = arith.cmpi sge, %40, %41 : vector<8x1xi32>
    %c8_i32_18 = arith.constant 8 : i32
    %43 = vector.broadcast %c8_i32_18 : i32 to vector<8x1xi32>
    %44 = arith.cmpi slt, %40, %43 : vector<8x1xi32>
    %45 = arith.andi %42, %44 : vector<8x1xi1>
    %46 = arith.extui %45 : vector<8x1xi1> to vector<8x1xi32>
    %47 = arith.sitofp %46 : vector<8x1xi32> to vector<8x1xf32>
    %48 = vector.broadcast %47 : vector<8x1xf32> to vector<8x32xf32>
    %49 = arith.mulf %35, %48 : vector<8x32xf32>
    %c16 = arith.constant 16 : index
    %c0_19 = arith.constant 0 : index
    %50 = vector.load %arg13[%c16, %c0_19] : memref<24x32xf32, #tpu.memory_space<vmem>>, vector<8x32xf32>
    tpu.vector_store %arg13[%c16, %c0_19], %49 {strides = array<i32>} : memref<24x32xf32, #tpu.memory_space<vmem>>, vector<8x32xf32>,
    %c6 = arith.constant 6 : index
    %c0_20 = arith.constant 0 : index
    %51 = vector.load %arg13[%c6, %c0_20] : memref<24x32xf32, #tpu.memory_space<vmem>>, vector<8x32xf32>
    %c7 = arith.constant 7 : index
    %c0_21 = arith.constant 0 : index
    %52 = vector.load %arg13[%c7, %c0_21] : memref<24x32xf32, #tpu.memory_space<vmem>>, vector<8x32xf32>
    %c8_22 = arith.constant 8 : index
    %c0_23 = arith.constant 0 : index
    %53 = vector.load %arg13[%c8_22, %c0_23] : memref<24x32xf32, #tpu.memory_space<vmem>>, vector<8x32xf32>
    %c9 = arith.constant 9 : index
    %c0_24 = arith.constant 0 : index
    %54 = vector.load %arg13[%c9, %c0_24] : memref<24x32xf32, #tpu.memory_space<vmem>>, vector<8x32xf32>
    %c10 = arith.constant 10 : index
    %c0_25 = arith.constant 0 : index
    %55 = vector.load %arg13[%c10, %c0_25] : memref<24x32xf32, #tpu.memory_space<vmem>>, vector<8x32xf32>
    %56 = tpu.concatenate %51, %52, %53, %54, %55 in 1 : vector<8x32xf32>, vector<8x32xf32>, vector<8x32xf32>, vector<8x32xf32>, vector<8x32xf32> -> vector<8x160xf32>
    %c0_26 = arith.constant 0 : index
    %c0_27 = arith.constant 0 : index
    %57 = vector.load %arg8[%c0_26, %c0_27] : memref<160x64xf32, #tpu.memory_space<vmem>>, vector<160x64xf32>
    %cst = arith.constant dense<0.000000e+00> : vector<8x64xf32>
    %58 = tpu.matmul %56, %57, %cst {dimension_numbers = #tpu.dot_dimension_numbers<[1], [0], [0], [1], [0, 0, 1, 1], [], []>} : vector<8x160xf32>, vector<160x64xf32>, vector<8x64xf32> -> vector<8x64xf32>
    %c0_28 = arith.constant 0 : index
    %c0_29 = arith.constant 0 : index
    %59 = vector.load %arg9[%c0_28, %c0_29] : memref<1x64xf32, #tpu.memory_space<vmem>>, vector<1x64xf32>
    %60 = vector.broadcast %59 : vector<1x64xf32> to vector<8x64xf32>
    %61 = arith.addf %58, %60 : vector<8x64xf32>
    %c0_30 = arith.constant 0 : index
    %c0_31 = arith.constant 0 : index
    %c0_32 = arith.constant 0 : index
    %62 = vector.load %arg6[%c0_30, %c0_31, %c0_32] : memref<1x1x64xf32, #tpu.memory_space<vmem>>, vector<1x1x64xf32>
    %63 = vector.shape_cast %62 : vector<1x1x64xf32> to vector<1x64xf32>
    %64 = vector.broadcast %63 : vector<1x64xf32> to vector<8x64xf32>
    %65 = arith.addf %61, %64 : vector<8x64xf32>
    %66 = vector.extract_strided_slice %65 {offsets = [0, 0], sizes = [8, 32], strides = [1, 1]} : vector<8x64xf32> to vector<8x32xf32>
    %67 = math.tanh %66 : vector<8x32xf32>
    %68 = vector.extract_strided_slice %65 {offsets = [0, 32], sizes = [8, 32], strides = [1, 1]} : vector<8x64xf32> to vector<8x32xf32>
    %69 = arith.negf %68 : vector<8x32xf32>
    %70 = math.exp %69 : vector<8x32xf32>
    %cst_33 = arith.constant 1.000000e+00 : f32
    %71 = vector.broadcast %cst_33 : f32 to vector<8x32xf32>
    %72 = arith.addf %71, %70 : vector<8x32xf32>
    %73 = arith.divf %71, %72 : vector<8x32xf32>
    %74 = arith.mulf %67, %73 : vector<8x32xf32>
    %c0_34 = arith.constant 0 : index
    %c0_35 = arith.constant 0 : index
    %75 = vector.load %arg10[%c0_34, %c0_35] : memref<32x32xf32, #tpu.memory_space<vmem>>, vector<32x32xf32>
    %cst_36 = arith.constant dense<0.000000e+00> : vector<8x32xf32>
    %76 = tpu.matmul %74, %75, %cst_36 {dimension_numbers = #tpu.dot_dimension_numbers<[1], [0], [0], [1], [0, 0, 1, 1], [], []>} : vector<8x32xf32>, vector<32x32xf32>, vector<8x32xf32> -> vector<8x32xf32>
    %c0_37 = arith.constant 0 : index
    %c0_38 = arith.constant 0 : index
    %77 = vector.load %arg11[%c0_37, %c0_38] : memref<1x32xf32, #tpu.memory_space<vmem>>, vector<1x32xf32>
    %78 = vector.broadcast %77 : vector<1x32xf32> to vector<8x32xf32>
    %79 = arith.addf %76, %78 : vector<8x32xf32>
    %c0_39 = arith.constant 0 : index
    %c0_40 = arith.constant 0 : index
    %c0_41 = arith.constant 0 : index
    %80 = vector.load %arg7[%c0_39, %c0_40, %c0_41] : memref<1x8x1xf32, #tpu.memory_space<vmem>>, vector<1x8x1xf32>
    %81 = vector.shape_cast %80 : vector<1x8x1xf32> to vector<8x1xf32>
    %c0_42 = arith.constant 0 : index
    %c0_43 = arith.constant 0 : index
    %c0_44 = arith.constant 0 : index
    %82 = vector.load %arg5[%c0_42, %c0_43, %c0_44] : memref<1x8x32xf32, #tpu.memory_space<vmem>>, vector<1x8x32xf32>
    %83 = vector.shape_cast %82 : vector<1x8x32xf32> to vector<8x32xf32>
    %84 = arith.addf %83, %79 : vector<8x32xf32>
    %85 = vector.broadcast %81 : vector<8x1xf32> to vector<8x32xf32>
    %86 = arith.mulf %84, %85 : vector<8x32xf32>
    %c0_45 = arith.constant 0 : index
    %c0_46 = arith.constant 0 : index
    %c0_47 = arith.constant 0 : index
    %87 = vector.load %arg12[%c0_45, %c0_46, %c0_47] : memref<1x8x32xf32, #tpu.memory_space<vmem>>, vector<1x8x32xf32>
    %88 = vector.shape_cast %87 : vector<1x8x32xf32> to vector<8x32xf32>
    %89 = vector.shape_cast %86 : vector<8x32xf32> to vector<1x8x32xf32>
    tpu.vector_store %arg12[%c0_45, %c0_46, %c0_47], %89 {strides = array<i32>} : memref<1x8x32xf32, #tpu.memory_space<vmem>>, vector<1x8x32xf32>,
    return
  }
  func.func @transform_0(%arg0: i32, %arg1: i32) -> (i32, i32, i32) {
    %c1_i32 = arith.constant 1 : i32
    %0 = arith.subi %arg1, %c1_i32 : i32
    %c0_i32 = arith.constant 0 : i32
    %1 = arith.maxsi %0, %c0_i32 : i32
    %c0_i32_0 = arith.constant 0 : i32
    %c0_i32_1 = arith.constant 0 : i32
    return %arg0, %1, %c0_i32_0 : i32, i32, i32
  }
  func.func @transform_1(%arg0: i32, %arg1: i32) -> (i32, i32, i32) {
    %c0_i32 = arith.constant 0 : i32
    %c0_i32_0 = arith.constant 0 : i32
    return %arg0, %arg1, %c0_i32 : i32, i32, i32
  }
  func.func @transform_2(%arg0: i32, %arg1: i32) -> (i32, i32, i32) {
    %c1_i32 = arith.constant 1 : i32
    %0 = arith.addi %arg1, %c1_i32 : i32
    %c0_i32 = arith.constant 0 : i32
    %1 = arith.minsi %0, %c0_i32 : i32
    %c0_i32_0 = arith.constant 0 : i32
    %c0_i32_1 = arith.constant 0 : i32
    return %arg0, %1, %c0_i32_0 : i32, i32, i32
  }
  func.func @transform_3(%arg0: i32, %arg1: i32) -> (i32, i32, i32) {
    %c0_i32 = arith.constant 0 : i32
    %c0_i32_0 = arith.constant 0 : i32
    return %arg0, %arg1, %c0_i32 : i32, i32, i32
  }
  func.func @transform_4(%arg0: i32, %arg1: i32) -> (i32, i32, i32) {
    %c0_i32 = arith.constant 0 : i32
    %c0_i32_0 = arith.constant 0 : i32
    %c0_i32_1 = arith.constant 0 : i32
    return %arg0, %c0_i32, %c0_i32_0 : i32, i32, i32
  }
  func.func @transform_5(%arg0: i32, %arg1: i32) -> (i32, i32, i32) {
    %c0_i32 = arith.constant 0 : i32
    %c0_i32_0 = arith.constant 0 : i32
    return %arg0, %arg1, %c0_i32 : i32, i32, i32
  }
  func.func @transform_6(%arg0: i32, %arg1: i32) -> (i32, i32) {
    %c0_i32 = arith.constant 0 : i32
    %c0_i32_0 = arith.constant 0 : i32
    %c0_i32_1 = arith.constant 0 : i32
    return %c0_i32, %c0_i32_0 : i32, i32
  }
  func.func @transform_7(%arg0: i32, %arg1: i32) -> (i32, i32) {
    %c0_i32 = arith.constant 0 : i32
    %c0_i32_0 = arith.constant 0 : i32
    %c0_i32_1 = arith.constant 0 : i32
    return %c0_i32, %c0_i32_0 : i32, i32
  }
  func.func @transform_8(%arg0: i32, %arg1: i32) -> (i32, i32) {
    %c0_i32 = arith.constant 0 : i32
    %c0_i32_0 = arith.constant 0 : i32
    %c0_i32_1 = arith.constant 0 : i32
    return %c0_i32, %c0_i32_0 : i32, i32
  }
  func.func @transform_9(%arg0: i32, %arg1: i32) -> (i32, i32) {
    %c0_i32 = arith.constant 0 : i32
    %c0_i32_0 = arith.constant 0 : i32
    %c0_i32_1 = arith.constant 0 : i32
    return %c0_i32, %c0_i32_0 : i32, i32
  }
  func.func @transform_10(%arg0: i32, %arg1: i32) -> (i32, i32, i32) {
    %c0_i32 = arith.constant 0 : i32
    %c0_i32_0 = arith.constant 0 : i32
    return %arg0, %arg1, %c0_i32 : i32, i32, i32
  }
}

module attributes {stable_mosaic.version = 11 : i64} {
  func.func @_conv_kernel(%arg0: i32, %arg1: i32, %arg2: memref<1x8x16xf32, #tpu.memory_space<vmem>>, %arg3: memref<16x32xf32, #tpu.memory_space<vmem>>, %arg4: memref<1x32xf32, #tpu.memory_space<vmem>>, %arg5: memref<1x8x1xf32, #tpu.memory_space<vmem>>, %arg6: memref<1x8x32xf32, #tpu.memory_space<vmem>>) attributes {dimension_semantics = [#tpu.dimension_semantics<parallel>, #tpu.dimension_semantics<parallel>], iteration_bounds = array<i64: 2, 1>, scalar_prefetch = 0 : i64, scratch_operands = 0 : i64, tpu.core_type = #tpu.core_type<tc>, window_params = [{transform_indices = @transform_0, window_bounds = array<i64: 1, 8, 16>}, {pipeline_mode = #tpu.pipeline_mode<synchronous>, transform_indices = @transform_1, window_bounds = array<i64: 16, 32>}, {pipeline_mode = #tpu.pipeline_mode<synchronous>, transform_indices = @transform_2, window_bounds = array<i64: 1, 32>}, {transform_indices = @transform_3, window_bounds = array<i64: 1, 8, 1>}, {transform_indices = @transform_4, window_bounds = array<i64: 1, 8, 32>}]} {
    %c0 = arith.constant 0 : index
    %c0_0 = arith.constant 0 : index
    %c0_1 = arith.constant 0 : index
    %0 = vector.load %arg2[%c0, %c0_0, %c0_1] : memref<1x8x16xf32, #tpu.memory_space<vmem>>, vector<1x8x16xf32>
    %1 = vector.shape_cast %0 : vector<1x8x16xf32> to vector<8x16xf32>
    %c0_2 = arith.constant 0 : index
    %c0_3 = arith.constant 0 : index
    %2 = vector.load %arg3[%c0_2, %c0_3] : memref<16x32xf32, #tpu.memory_space<vmem>>, vector<16x32xf32>
    %cst = arith.constant dense<0.000000e+00> : vector<8x32xf32>
    %3 = tpu.matmul %1, %2, %cst {dimension_numbers = #tpu.dot_dimension_numbers<[1], [0], [0], [1], [0, 0, 1, 1], [], []>} : vector<8x16xf32>, vector<16x32xf32>, vector<8x32xf32> -> vector<8x32xf32>
    %c0_4 = arith.constant 0 : index
    %c0_5 = arith.constant 0 : index
    %4 = vector.load %arg4[%c0_4, %c0_5] : memref<1x32xf32, #tpu.memory_space<vmem>>, vector<1x32xf32>
    %5 = vector.broadcast %4 : vector<1x32xf32> to vector<8x32xf32>
    %6 = arith.addf %3, %5 : vector<8x32xf32>
    %c0_6 = arith.constant 0 : index
    %c0_7 = arith.constant 0 : index
    %c0_8 = arith.constant 0 : index
    %7 = vector.load %arg5[%c0_6, %c0_7, %c0_8] : memref<1x8x1xf32, #tpu.memory_space<vmem>>, vector<1x8x1xf32>
    %8 = vector.shape_cast %7 : vector<1x8x1xf32> to vector<8x1xf32>
    %9 = vector.broadcast %8 : vector<8x1xf32> to vector<8x32xf32>
    %10 = arith.mulf %6, %9 : vector<8x32xf32>
    %c0_9 = arith.constant 0 : index
    %c0_10 = arith.constant 0 : index
    %c0_11 = arith.constant 0 : index
    %11 = vector.load %arg6[%c0_9, %c0_10, %c0_11] : memref<1x8x32xf32, #tpu.memory_space<vmem>>, vector<1x8x32xf32>
    %12 = vector.shape_cast %11 : vector<1x8x32xf32> to vector<8x32xf32>
    %13 = vector.shape_cast %10 : vector<8x32xf32> to vector<1x8x32xf32>
    tpu.vector_store %arg6[%c0_9, %c0_10, %c0_11], %13 {strides = array<i32>} : memref<1x8x32xf32, #tpu.memory_space<vmem>>, vector<1x8x32xf32>,
    return
  }
  func.func @transform_0(%arg0: i32, %arg1: i32) -> (i32, i32, i32) {
    %c0_i32 = arith.constant 0 : i32
    %c0_i32_0 = arith.constant 0 : i32
    return %arg0, %arg1, %c0_i32 : i32, i32, i32
  }
  func.func @transform_1(%arg0: i32, %arg1: i32) -> (i32, i32) {
    %c0_i32 = arith.constant 0 : i32
    %c0_i32_0 = arith.constant 0 : i32
    %c0_i32_1 = arith.constant 0 : i32
    return %c0_i32, %c0_i32_0 : i32, i32
  }
  func.func @transform_2(%arg0: i32, %arg1: i32) -> (i32, i32) {
    %c0_i32 = arith.constant 0 : i32
    %c0_i32_0 = arith.constant 0 : i32
    %c0_i32_1 = arith.constant 0 : i32
    return %c0_i32, %c0_i32_0 : i32, i32
  }
  func.func @transform_3(%arg0: i32, %arg1: i32) -> (i32, i32, i32) {
    %c0_i32 = arith.constant 0 : i32
    %c0_i32_0 = arith.constant 0 : i32
    return %arg0, %arg1, %c0_i32 : i32, i32, i32
  }
  func.func @transform_4(%arg0: i32, %arg1: i32) -> (i32, i32, i32) {
    %c0_i32 = arith.constant 0 : i32
    %c0_i32_0 = arith.constant 0 : i32
    return %arg0, %arg1, %c0_i32 : i32, i32, i32
  }
}

module attributes {stable_mosaic.version = 11 : i64} {
  func.func @_conv_kernel(%arg0: i32, %arg1: i32, %arg2: memref<1x8x32xf32, #tpu.memory_space<vmem>>, %arg3: memref<32x16xf32, #tpu.memory_space<vmem>>, %arg4: memref<1x16xf32, #tpu.memory_space<vmem>>, %arg5: memref<1x8x1xf32, #tpu.memory_space<vmem>>, %arg6: memref<1x8x16xf32, #tpu.memory_space<vmem>>) attributes {dimension_semantics = [#tpu.dimension_semantics<parallel>, #tpu.dimension_semantics<parallel>], iteration_bounds = array<i64: 2, 1>, scalar_prefetch = 0 : i64, scratch_operands = 0 : i64, tpu.core_type = #tpu.core_type<tc>, window_params = [{transform_indices = @transform_0, window_bounds = array<i64: 1, 8, 32>}, {pipeline_mode = #tpu.pipeline_mode<synchronous>, transform_indices = @transform_1, window_bounds = array<i64: 32, 16>}, {pipeline_mode = #tpu.pipeline_mode<synchronous>, transform_indices = @transform_2, window_bounds = array<i64: 1, 16>}, {transform_indices = @transform_3, window_bounds = array<i64: 1, 8, 1>}, {transform_indices = @transform_4, window_bounds = array<i64: 1, 8, 16>}]} {
    %c0 = arith.constant 0 : index
    %c0_0 = arith.constant 0 : index
    %c0_1 = arith.constant 0 : index
    %0 = vector.load %arg2[%c0, %c0_0, %c0_1] : memref<1x8x32xf32, #tpu.memory_space<vmem>>, vector<1x8x32xf32>
    %1 = vector.shape_cast %0 : vector<1x8x32xf32> to vector<8x32xf32>
    %c0_2 = arith.constant 0 : index
    %c0_3 = arith.constant 0 : index
    %2 = vector.load %arg3[%c0_2, %c0_3] : memref<32x16xf32, #tpu.memory_space<vmem>>, vector<32x16xf32>
    %cst = arith.constant dense<0.000000e+00> : vector<8x16xf32>
    %3 = tpu.matmul %1, %2, %cst {dimension_numbers = #tpu.dot_dimension_numbers<[1], [0], [0], [1], [0, 0, 1, 1], [], []>} : vector<8x32xf32>, vector<32x16xf32>, vector<8x16xf32> -> vector<8x16xf32>
    %c0_4 = arith.constant 0 : index
    %c0_5 = arith.constant 0 : index
    %4 = vector.load %arg4[%c0_4, %c0_5] : memref<1x16xf32, #tpu.memory_space<vmem>>, vector<1x16xf32>
    %5 = vector.broadcast %4 : vector<1x16xf32> to vector<8x16xf32>
    %6 = arith.addf %3, %5 : vector<8x16xf32>
    %c0_6 = arith.constant 0 : index
    %c0_7 = arith.constant 0 : index
    %c0_8 = arith.constant 0 : index
    %7 = vector.load %arg5[%c0_6, %c0_7, %c0_8] : memref<1x8x1xf32, #tpu.memory_space<vmem>>, vector<1x8x1xf32>
    %8 = vector.shape_cast %7 : vector<1x8x1xf32> to vector<8x1xf32>
    %9 = vector.broadcast %8 : vector<8x1xf32> to vector<8x16xf32>
    %10 = arith.mulf %6, %9 : vector<8x16xf32>
    %c0_9 = arith.constant 0 : index
    %c0_10 = arith.constant 0 : index
    %c0_11 = arith.constant 0 : index
    %11 = vector.load %arg6[%c0_9, %c0_10, %c0_11] : memref<1x8x16xf32, #tpu.memory_space<vmem>>, vector<1x8x16xf32>
    %12 = vector.shape_cast %11 : vector<1x8x16xf32> to vector<8x16xf32>
    %13 = vector.shape_cast %10 : vector<8x16xf32> to vector<1x8x16xf32>
    tpu.vector_store %arg6[%c0_9, %c0_10, %c0_11], %13 {strides = array<i32>} : memref<1x8x16xf32, #tpu.memory_space<vmem>>, vector<1x8x16xf32>,
    return
  }
  func.func @transform_0(%arg0: i32, %arg1: i32) -> (i32, i32, i32) {
    %c0_i32 = arith.constant 0 : i32
    %c0_i32_0 = arith.constant 0 : i32
    return %arg0, %arg1, %c0_i32 : i32, i32, i32
  }
  func.func @transform_1(%arg0: i32, %arg1: i32) -> (i32, i32) {
    %c0_i32 = arith.constant 0 : i32
    %c0_i32_0 = arith.constant 0 : i32
    %c0_i32_1 = arith.constant 0 : i32
    return %c0_i32, %c0_i32_0 : i32, i32
  }
  func.func @transform_2(%arg0: i32, %arg1: i32) -> (i32, i32) {
    %c0_i32 = arith.constant 0 : i32
    %c0_i32_0 = arith.constant 0 : i32
    %c0_i32_1 = arith.constant 0 : i32
    return %c0_i32, %c0_i32_0 : i32, i32
  }
  func.func @transform_3(%arg0: i32, %arg1: i32) -> (i32, i32, i32) {
    %c0_i32 = arith.constant 0 : i32
    %c0_i32_0 = arith.constant 0 : i32
    return %arg0, %arg1, %c0_i32 : i32, i32, i32
  }
  func.func @transform_4(%arg0: i32, %arg1: i32) -> (i32, i32, i32) {
    %c0_i32 = arith.constant 0 : i32
    %c0_i32_0 = arith.constant 0 : i32
    return %arg0, %arg1, %c0_i32 : i32, i32, i32
  }
}

module attributes {stable_mosaic.version = 11 : i64} {
  func.func @_conv_kernel(%arg0: i32, %arg1: i32, %arg2: memref<1x4x32xf32, #tpu.memory_space<vmem>>, %arg3: memref<1x4x32xf32, #tpu.memory_space<vmem>>, %arg4: memref<1x4x32xf32, #tpu.memory_space<vmem>>, %arg5: memref<224x32xf32, #tpu.memory_space<vmem>>, %arg6: memref<1x32xf32, #tpu.memory_space<vmem>>, %arg7: memref<1x1x32xf32, #tpu.memory_space<vmem>>, %arg8: memref<1x4x32xf32, #tpu.memory_space<vmem>>, %arg9: memref<12x32xf32, #tpu.memory_space<vmem>>) attributes {dimension_semantics = [#tpu.dimension_semantics<parallel>, #tpu.dimension_semantics<parallel>], iteration_bounds = array<i64: 2, 1>, scalar_prefetch = 0 : i64, scratch_operands = 1 : i64, tpu.core_type = #tpu.core_type<tc>, window_params = [{transform_indices = @transform_0, window_bounds = array<i64: 1, 4, 32>}, {transform_indices = @transform_1, window_bounds = array<i64: 1, 4, 32>}, {transform_indices = @transform_2, window_bounds = array<i64: 1, 4, 32>}, {pipeline_mode = #tpu.pipeline_mode<synchronous>, transform_indices = @transform_3, window_bounds = array<i64: 224, 32>}, {pipeline_mode = #tpu.pipeline_mode<synchronous>, transform_indices = @transform_4, window_bounds = array<i64: 1, 32>}, {transform_indices = @transform_5, window_bounds = array<i64: 1, 1, 32>}, {transform_indices = @transform_6, window_bounds = array<i64: 1, 4, 32>}]} {
    %c0 = arith.constant 0 : index
    %c0_0 = arith.constant 0 : index
    %c0_1 = arith.constant 0 : index
    %0 = vector.load %arg2[%c0, %c0_0, %c0_1] : memref<1x4x32xf32, #tpu.memory_space<vmem>>, vector<1x4x32xf32>
    %1 = vector.shape_cast %0 : vector<1x4x32xf32> to vector<4x32xf32>
    %c-1_i32 = arith.constant -1 : i32
    %2 = arith.addi %arg1, %c-1_i32 : i32
    %c4_i32 = arith.constant 4 : i32
    %3 = arith.muli %2, %c4_i32 : i32
    %4 = tpu.iota {dimensions = array<i32: 0>} : vector<4x1xi32>
    %5 = vector.broadcast %3 : i32 to vector<4x1xi32>
    %6 = arith.addi %5, %4 : vector<4x1xi32>
    %c0_i32 = arith.constant 0 : i32
    %7 = vector.broadcast %c0_i32 : i32 to vector<4x1xi32>
    %8 = arith.cmpi sge, %6, %7 : vector<4x1xi32>
    %c4_i32_2 = arith.constant 4 : i32
    %9 = vector.broadcast %c4_i32_2 : i32 to vector<4x1xi32>
    %10 = arith.cmpi slt, %6, %9 : vector<4x1xi32>
    %11 = arith.andi %8, %10 : vector<4x1xi1>
    %12 = arith.extui %11 : vector<4x1xi1> to vector<4x1xi32>
    %13 = arith.sitofp %12 : vector<4x1xi32> to vector<4x1xf32>
    %14 = vector.broadcast %13 : vector<4x1xf32> to vector<4x32xf32>
    %15 = arith.mulf %1, %14 : vector<4x32xf32>
    %c0_3 = arith.constant 0 : index
    %c0_4 = arith.constant 0 : index
    %16 = vector.load %arg9[%c0_3, %c0_4] : memref<12x32xf32, #tpu.memory_space<vmem>>, vector<4x32xf32>
    tpu.vector_store %arg9[%c0_3, %c0_4], %15 {strides = array<i32>} : memref<12x32xf32, #tpu.memory_space<vmem>>, vector<4x32xf32>,
    %c0_5 = arith.constant 0 : index
    %c0_6 = arith.constant 0 : index
    %c0_7 = arith.constant 0 : index
    %17 = vector.load %arg3[%c0_5, %c0_6, %c0_7] : memref<1x4x32xf32, #tpu.memory_space<vmem>>, vector<1x4x32xf32>
    %18 = vector.shape_cast %17 : vector<1x4x32xf32> to vector<4x32xf32>
    %c0_i32_8 = arith.constant 0 : i32
    %19 = arith.addi %arg1, %c0_i32_8 : i32
    %c4_i32_9 = arith.constant 4 : i32
    %20 = arith.muli %19, %c4_i32_9 : i32
    %21 = tpu.iota {dimensions = array<i32: 0>} : vector<4x1xi32>
    %22 = vector.broadcast %20 : i32 to vector<4x1xi32>
    %23 = arith.addi %22, %21 : vector<4x1xi32>
    %c0_i32_10 = arith.constant 0 : i32
    %24 = vector.broadcast %c0_i32_10 : i32 to vector<4x1xi32>
    %25 = arith.cmpi sge, %23, %24 : vector<4x1xi32>
    %c4_i32_11 = arith.constant 4 : i32
    %26 = vector.broadcast %c4_i32_11 : i32 to vector<4x1xi32>
    %27 = arith.cmpi slt, %23, %26 : vector<4x1xi32>
    %28 = arith.andi %25, %27 : vector<4x1xi1>
    %29 = arith.extui %28 : vector<4x1xi1> to vector<4x1xi32>
    %30 = arith.sitofp %29 : vector<4x1xi32> to vector<4x1xf32>
    %31 = vector.broadcast %30 : vector<4x1xf32> to vector<4x32xf32>
    %32 = arith.mulf %18, %31 : vector<4x32xf32>
    %c4 = arith.constant 4 : index
    %c0_12 = arith.constant 0 : index
    %33 = vector.load %arg9[%c4, %c0_12] : memref<12x32xf32, #tpu.memory_space<vmem>>, vector<4x32xf32>
    tpu.vector_store %arg9[%c4, %c0_12], %32 {strides = array<i32>} : memref<12x32xf32, #tpu.memory_space<vmem>>, vector<4x32xf32>,
    %c0_13 = arith.constant 0 : index
    %c0_14 = arith.constant 0 : index
    %c0_15 = arith.constant 0 : index
    %34 = vector.load %arg4[%c0_13, %c0_14, %c0_15] : memref<1x4x32xf32, #tpu.memory_space<vmem>>, vector<1x4x32xf32>
    %35 = vector.shape_cast %34 : vector<1x4x32xf32> to vector<4x32xf32>
    %c1_i32 = arith.constant 1 : i32
    %36 = arith.addi %arg1, %c1_i32 : i32
    %c4_i32_16 = arith.constant 4 : i32
    %37 = arith.muli %36, %c4_i32_16 : i32
    %38 = tpu.iota {dimensions = array<i32: 0>} : vector<4x1xi32>
    %39 = vector.broadcast %37 : i32 to vector<4x1xi32>
    %40 = arith.addi %39, %38 : vector<4x1xi32>
    %c0_i32_17 = arith.constant 0 : i32
    %41 = vector.broadcast %c0_i32_17 : i32 to vector<4x1xi32>
    %42 = arith.cmpi sge, %40, %41 : vector<4x1xi32>
    %c4_i32_18 = arith.constant 4 : i32
    %43 = vector.broadcast %c4_i32_18 : i32 to vector<4x1xi32>
    %44 = arith.cmpi slt, %40, %43 : vector<4x1xi32>
    %45 = arith.andi %42, %44 : vector<4x1xi1>
    %46 = arith.extui %45 : vector<4x1xi1> to vector<4x1xi32>
    %47 = arith.sitofp %46 : vector<4x1xi32> to vector<4x1xf32>
    %48 = vector.broadcast %47 : vector<4x1xf32> to vector<4x32xf32>
    %49 = arith.mulf %35, %48 : vector<4x32xf32>
    %c8 = arith.constant 8 : index
    %c0_19 = arith.constant 0 : index
    %50 = vector.load %arg9[%c8, %c0_19] : memref<12x32xf32, #tpu.memory_space<vmem>>, vector<4x32xf32>
    tpu.vector_store %arg9[%c8, %c0_19], %49 {strides = array<i32>} : memref<12x32xf32, #tpu.memory_space<vmem>>, vector<4x32xf32>,
    %c1 = arith.constant 1 : index
    %c0_20 = arith.constant 0 : index
    %51 = vector.load %arg9[%c1, %c0_20] : memref<12x32xf32, #tpu.memory_space<vmem>>, vector<4x32xf32>
    %c2 = arith.constant 2 : index
    %c0_21 = arith.constant 0 : index
    %52 = vector.load %arg9[%c2, %c0_21] : memref<12x32xf32, #tpu.memory_space<vmem>>, vector<4x32xf32>
    %c3 = arith.constant 3 : index
    %c0_22 = arith.constant 0 : index
    %53 = vector.load %arg9[%c3, %c0_22] : memref<12x32xf32, #tpu.memory_space<vmem>>, vector<4x32xf32>
    %c4_23 = arith.constant 4 : index
    %c0_24 = arith.constant 0 : index
    %54 = vector.load %arg9[%c4_23, %c0_24] : memref<12x32xf32, #tpu.memory_space<vmem>>, vector<4x32xf32>
    %c5 = arith.constant 5 : index
    %c0_25 = arith.constant 0 : index
    %55 = vector.load %arg9[%c5, %c0_25] : memref<12x32xf32, #tpu.memory_space<vmem>>, vector<4x32xf32>
    %c6 = arith.constant 6 : index
    %c0_26 = arith.constant 0 : index
    %56 = vector.load %arg9[%c6, %c0_26] : memref<12x32xf32, #tpu.memory_space<vmem>>, vector<4x32xf32>
    %c7 = arith.constant 7 : index
    %c0_27 = arith.constant 0 : index
    %57 = vector.load %arg9[%c7, %c0_27] : memref<12x32xf32, #tpu.memory_space<vmem>>, vector<4x32xf32>
    %58 = tpu.concatenate %51, %52, %53, %54, %55, %56, %57 in 1 : vector<4x32xf32>, vector<4x32xf32>, vector<4x32xf32>, vector<4x32xf32>, vector<4x32xf32>, vector<4x32xf32>, vector<4x32xf32> -> vector<4x224xf32>
    %c0_28 = arith.constant 0 : index
    %c0_29 = arith.constant 0 : index
    %59 = vector.load %arg5[%c0_28, %c0_29] : memref<224x32xf32, #tpu.memory_space<vmem>>, vector<224x32xf32>
    %cst = arith.constant dense<0.000000e+00> : vector<4x32xf32>
    %60 = tpu.matmul %58, %59, %cst {dimension_numbers = #tpu.dot_dimension_numbers<[1], [0], [0], [1], [0, 0, 1, 1], [], []>} : vector<4x224xf32>, vector<224x32xf32>, vector<4x32xf32> -> vector<4x32xf32>
    %c0_30 = arith.constant 0 : index
    %c0_31 = arith.constant 0 : index
    %61 = vector.load %arg6[%c0_30, %c0_31] : memref<1x32xf32, #tpu.memory_space<vmem>>, vector<1x32xf32>
    %62 = vector.broadcast %61 : vector<1x32xf32> to vector<4x32xf32>
    %63 = arith.addf %60, %62 : vector<4x32xf32>
    %c0_32 = arith.constant 0 : index
    %c0_33 = arith.constant 0 : index
    %c0_34 = arith.constant 0 : index
    %64 = vector.load %arg7[%c0_32, %c0_33, %c0_34] : memref<1x1x32xf32, #tpu.memory_space<vmem>>, vector<1x1x32xf32>
    %65 = vector.shape_cast %64 : vector<1x1x32xf32> to vector<1x32xf32>
    %66 = vector.broadcast %65 : vector<1x32xf32> to vector<4x32xf32>
    %67 = arith.addf %63, %66 : vector<4x32xf32>
    %c0_35 = arith.constant 0 : index
    %c0_36 = arith.constant 0 : index
    %c0_37 = arith.constant 0 : index
    %68 = vector.load %arg8[%c0_35, %c0_36, %c0_37] : memref<1x4x32xf32, #tpu.memory_space<vmem>>, vector<1x4x32xf32>
    %69 = vector.shape_cast %68 : vector<1x4x32xf32> to vector<4x32xf32>
    %70 = vector.shape_cast %67 : vector<4x32xf32> to vector<1x4x32xf32>
    tpu.vector_store %arg8[%c0_35, %c0_36, %c0_37], %70 {strides = array<i32>} : memref<1x4x32xf32, #tpu.memory_space<vmem>>, vector<1x4x32xf32>,
    return
  }
  func.func @transform_0(%arg0: i32, %arg1: i32) -> (i32, i32, i32) {
    %c1_i32 = arith.constant 1 : i32
    %0 = arith.subi %arg1, %c1_i32 : i32
    %c0_i32 = arith.constant 0 : i32
    %1 = arith.maxsi %0, %c0_i32 : i32
    %c0_i32_0 = arith.constant 0 : i32
    %c0_i32_1 = arith.constant 0 : i32
    return %arg0, %1, %c0_i32_0 : i32, i32, i32
  }
  func.func @transform_1(%arg0: i32, %arg1: i32) -> (i32, i32, i32) {
    %c0_i32 = arith.constant 0 : i32
    %c0_i32_0 = arith.constant 0 : i32
    return %arg0, %arg1, %c0_i32 : i32, i32, i32
  }
  func.func @transform_2(%arg0: i32, %arg1: i32) -> (i32, i32, i32) {
    %c1_i32 = arith.constant 1 : i32
    %0 = arith.addi %arg1, %c1_i32 : i32
    %c0_i32 = arith.constant 0 : i32
    %1 = arith.minsi %0, %c0_i32 : i32
    %c0_i32_0 = arith.constant 0 : i32
    %c0_i32_1 = arith.constant 0 : i32
    return %arg0, %1, %c0_i32_0 : i32, i32, i32
  }
  func.func @transform_3(%arg0: i32, %arg1: i32) -> (i32, i32) {
    %c0_i32 = arith.constant 0 : i32
    %c0_i32_0 = arith.constant 0 : i32
    %c0_i32_1 = arith.constant 0 : i32
    return %c0_i32, %c0_i32_0 : i32, i32
  }
  func.func @transform_4(%arg0: i32, %arg1: i32) -> (i32, i32) {
    %c0_i32 = arith.constant 0 : i32
    %c0_i32_0 = arith.constant 0 : i32
    %c0_i32_1 = arith.constant 0 : i32
    return %c0_i32, %c0_i32_0 : i32, i32
  }
  func.func @transform_5(%arg0: i32, %arg1: i32) -> (i32, i32, i32) {
    %c0_i32 = arith.constant 0 : i32
    %c0_i32_0 = arith.constant 0 : i32
    %c0_i32_1 = arith.constant 0 : i32
    return %arg0, %c0_i32, %c0_i32_0 : i32, i32, i32
  }
  func.func @transform_6(%arg0: i32, %arg1: i32) -> (i32, i32, i32) {
    %c0_i32 = arith.constant 0 : i32
    %c0_i32_0 = arith.constant 0 : i32
    return %arg0, %arg1, %c0_i32 : i32, i32, i32
  }
}

module attributes {stable_mosaic.version = 11 : i64} {
  func.func @_conv_kernel(%arg0: i32, %arg1: i32, %arg2: memref<1x4x32xf32, #tpu.memory_space<vmem>>, %arg3: memref<1x4x32xf32, #tpu.memory_space<vmem>>, %arg4: memref<1x4x32xf32, #tpu.memory_space<vmem>>, %arg5: memref<96x32xf32, #tpu.memory_space<vmem>>, %arg6: memref<1x32xf32, #tpu.memory_space<vmem>>, %arg7: memref<1x4x32xf32, #tpu.memory_space<vmem>>, %arg8: memref<12x32xf32, #tpu.memory_space<vmem>>) attributes {dimension_semantics = [#tpu.dimension_semantics<parallel>, #tpu.dimension_semantics<parallel>], iteration_bounds = array<i64: 2, 1>, scalar_prefetch = 0 : i64, scratch_operands = 1 : i64, tpu.core_type = #tpu.core_type<tc>, window_params = [{transform_indices = @transform_0, window_bounds = array<i64: 1, 4, 32>}, {transform_indices = @transform_1, window_bounds = array<i64: 1, 4, 32>}, {transform_indices = @transform_2, window_bounds = array<i64: 1, 4, 32>}, {pipeline_mode = #tpu.pipeline_mode<synchronous>, transform_indices = @transform_3, window_bounds = array<i64: 96, 32>}, {pipeline_mode = #tpu.pipeline_mode<synchronous>, transform_indices = @transform_4, window_bounds = array<i64: 1, 32>}, {transform_indices = @transform_5, window_bounds = array<i64: 1, 4, 32>}]} {
    %c0 = arith.constant 0 : index
    %c0_0 = arith.constant 0 : index
    %c0_1 = arith.constant 0 : index
    %0 = vector.load %arg2[%c0, %c0_0, %c0_1] : memref<1x4x32xf32, #tpu.memory_space<vmem>>, vector<1x4x32xf32>
    %1 = vector.shape_cast %0 : vector<1x4x32xf32> to vector<4x32xf32>
    %c-1_i32 = arith.constant -1 : i32
    %2 = arith.addi %arg1, %c-1_i32 : i32
    %c4_i32 = arith.constant 4 : i32
    %3 = arith.muli %2, %c4_i32 : i32
    %4 = tpu.iota {dimensions = array<i32: 0>} : vector<4x1xi32>
    %5 = vector.broadcast %3 : i32 to vector<4x1xi32>
    %6 = arith.addi %5, %4 : vector<4x1xi32>
    %c0_i32 = arith.constant 0 : i32
    %7 = vector.broadcast %c0_i32 : i32 to vector<4x1xi32>
    %8 = arith.cmpi sge, %6, %7 : vector<4x1xi32>
    %c4_i32_2 = arith.constant 4 : i32
    %9 = vector.broadcast %c4_i32_2 : i32 to vector<4x1xi32>
    %10 = arith.cmpi slt, %6, %9 : vector<4x1xi32>
    %11 = arith.andi %8, %10 : vector<4x1xi1>
    %12 = arith.extui %11 : vector<4x1xi1> to vector<4x1xi32>
    %13 = arith.sitofp %12 : vector<4x1xi32> to vector<4x1xf32>
    %14 = vector.broadcast %13 : vector<4x1xf32> to vector<4x32xf32>
    %15 = arith.mulf %1, %14 : vector<4x32xf32>
    %cst = arith.constant 0.000000e+00 : f32
    %16 = vector.broadcast %cst : f32 to vector<4x32xf32>
    %17 = arith.cmpf oge, %15, %16 : vector<4x32xf32>
    %cst_3 = arith.constant 1.000000e-01 : f32
    %18 = vector.broadcast %cst_3 : f32 to vector<4x32xf32>
    %19 = arith.mulf %18, %15 : vector<4x32xf32>
    %20 = arith.select %17, %15, %19 : vector<4x32xi1>, vector<4x32xf32>
    %c0_4 = arith.constant 0 : index
    %c0_5 = arith.constant 0 : index
    %21 = vector.load %arg8[%c0_4, %c0_5] : memref<12x32xf32, #tpu.memory_space<vmem>>, vector<4x32xf32>
    tpu.vector_store %arg8[%c0_4, %c0_5], %20 {strides = array<i32>} : memref<12x32xf32, #tpu.memory_space<vmem>>, vector<4x32xf32>,
    %c0_6 = arith.constant 0 : index
    %c0_7 = arith.constant 0 : index
    %c0_8 = arith.constant 0 : index
    %22 = vector.load %arg3[%c0_6, %c0_7, %c0_8] : memref<1x4x32xf32, #tpu.memory_space<vmem>>, vector<1x4x32xf32>
    %23 = vector.shape_cast %22 : vector<1x4x32xf32> to vector<4x32xf32>
    %c0_i32_9 = arith.constant 0 : i32
    %24 = arith.addi %arg1, %c0_i32_9 : i32
    %c4_i32_10 = arith.constant 4 : i32
    %25 = arith.muli %24, %c4_i32_10 : i32
    %26 = tpu.iota {dimensions = array<i32: 0>} : vector<4x1xi32>
    %27 = vector.broadcast %25 : i32 to vector<4x1xi32>
    %28 = arith.addi %27, %26 : vector<4x1xi32>
    %c0_i32_11 = arith.constant 0 : i32
    %29 = vector.broadcast %c0_i32_11 : i32 to vector<4x1xi32>
    %30 = arith.cmpi sge, %28, %29 : vector<4x1xi32>
    %c4_i32_12 = arith.constant 4 : i32
    %31 = vector.broadcast %c4_i32_12 : i32 to vector<4x1xi32>
    %32 = arith.cmpi slt, %28, %31 : vector<4x1xi32>
    %33 = arith.andi %30, %32 : vector<4x1xi1>
    %34 = arith.extui %33 : vector<4x1xi1> to vector<4x1xi32>
    %35 = arith.sitofp %34 : vector<4x1xi32> to vector<4x1xf32>
    %36 = vector.broadcast %35 : vector<4x1xf32> to vector<4x32xf32>
    %37 = arith.mulf %23, %36 : vector<4x32xf32>
    %cst_13 = arith.constant 0.000000e+00 : f32
    %38 = vector.broadcast %cst_13 : f32 to vector<4x32xf32>
    %39 = arith.cmpf oge, %37, %38 : vector<4x32xf32>
    %cst_14 = arith.constant 1.000000e-01 : f32
    %40 = vector.broadcast %cst_14 : f32 to vector<4x32xf32>
    %41 = arith.mulf %40, %37 : vector<4x32xf32>
    %42 = arith.select %39, %37, %41 : vector<4x32xi1>, vector<4x32xf32>
    %c4 = arith.constant 4 : index
    %c0_15 = arith.constant 0 : index
    %43 = vector.load %arg8[%c4, %c0_15] : memref<12x32xf32, #tpu.memory_space<vmem>>, vector<4x32xf32>
    tpu.vector_store %arg8[%c4, %c0_15], %42 {strides = array<i32>} : memref<12x32xf32, #tpu.memory_space<vmem>>, vector<4x32xf32>,
    %c0_16 = arith.constant 0 : index
    %c0_17 = arith.constant 0 : index
    %c0_18 = arith.constant 0 : index
    %44 = vector.load %arg4[%c0_16, %c0_17, %c0_18] : memref<1x4x32xf32, #tpu.memory_space<vmem>>, vector<1x4x32xf32>
    %45 = vector.shape_cast %44 : vector<1x4x32xf32> to vector<4x32xf32>
    %c1_i32 = arith.constant 1 : i32
    %46 = arith.addi %arg1, %c1_i32 : i32
    %c4_i32_19 = arith.constant 4 : i32
    %47 = arith.muli %46, %c4_i32_19 : i32
    %48 = tpu.iota {dimensions = array<i32: 0>} : vector<4x1xi32>
    %49 = vector.broadcast %47 : i32 to vector<4x1xi32>
    %50 = arith.addi %49, %48 : vector<4x1xi32>
    %c0_i32_20 = arith.constant 0 : i32
    %51 = vector.broadcast %c0_i32_20 : i32 to vector<4x1xi32>
    %52 = arith.cmpi sge, %50, %51 : vector<4x1xi32>
    %c4_i32_21 = arith.constant 4 : i32
    %53 = vector.broadcast %c4_i32_21 : i32 to vector<4x1xi32>
    %54 = arith.cmpi slt, %50, %53 : vector<4x1xi32>
    %55 = arith.andi %52, %54 : vector<4x1xi1>
    %56 = arith.extui %55 : vector<4x1xi1> to vector<4x1xi32>
    %57 = arith.sitofp %56 : vector<4x1xi32> to vector<4x1xf32>
    %58 = vector.broadcast %57 : vector<4x1xf32> to vector<4x32xf32>
    %59 = arith.mulf %45, %58 : vector<4x32xf32>
    %cst_22 = arith.constant 0.000000e+00 : f32
    %60 = vector.broadcast %cst_22 : f32 to vector<4x32xf32>
    %61 = arith.cmpf oge, %59, %60 : vector<4x32xf32>
    %cst_23 = arith.constant 1.000000e-01 : f32
    %62 = vector.broadcast %cst_23 : f32 to vector<4x32xf32>
    %63 = arith.mulf %62, %59 : vector<4x32xf32>
    %64 = arith.select %61, %59, %63 : vector<4x32xi1>, vector<4x32xf32>
    %c8 = arith.constant 8 : index
    %c0_24 = arith.constant 0 : index
    %65 = vector.load %arg8[%c8, %c0_24] : memref<12x32xf32, #tpu.memory_space<vmem>>, vector<4x32xf32>
    tpu.vector_store %arg8[%c8, %c0_24], %64 {strides = array<i32>} : memref<12x32xf32, #tpu.memory_space<vmem>>, vector<4x32xf32>,
    %c3 = arith.constant 3 : index
    %c0_25 = arith.constant 0 : index
    %66 = vector.load %arg8[%c3, %c0_25] : memref<12x32xf32, #tpu.memory_space<vmem>>, vector<4x32xf32>
    %c4_26 = arith.constant 4 : index
    %c0_27 = arith.constant 0 : index
    %67 = vector.load %arg8[%c4_26, %c0_27] : memref<12x32xf32, #tpu.memory_space<vmem>>, vector<4x32xf32>
    %c5 = arith.constant 5 : index
    %c0_28 = arith.constant 0 : index
    %68 = vector.load %arg8[%c5, %c0_28] : memref<12x32xf32, #tpu.memory_space<vmem>>, vector<4x32xf32>
    %69 = tpu.concatenate %66, %67, %68 in 1 : vector<4x32xf32>, vector<4x32xf32>, vector<4x32xf32> -> vector<4x96xf32>
    %c0_29 = arith.constant 0 : index
    %c0_30 = arith.constant 0 : index
    %70 = vector.load %arg5[%c0_29, %c0_30] : memref<96x32xf32, #tpu.memory_space<vmem>>, vector<96x32xf32>
    %cst_31 = arith.constant dense<0.000000e+00> : vector<4x32xf32>
    %71 = tpu.matmul %69, %70, %cst_31 {dimension_numbers = #tpu.dot_dimension_numbers<[1], [0], [0], [1], [0, 0, 1, 1], [], []>} : vector<4x96xf32>, vector<96x32xf32>, vector<4x32xf32> -> vector<4x32xf32>
    %c0_32 = arith.constant 0 : index
    %c0_33 = arith.constant 0 : index
    %72 = vector.load %arg6[%c0_32, %c0_33] : memref<1x32xf32, #tpu.memory_space<vmem>>, vector<1x32xf32>
    %73 = vector.broadcast %72 : vector<1x32xf32> to vector<4x32xf32>
    %74 = arith.addf %71, %73 : vector<4x32xf32>
    %c0_34 = arith.constant 0 : index
    %c0_35 = arith.constant 0 : index
    %c0_36 = arith.constant 0 : index
    %75 = vector.load %arg7[%c0_34, %c0_35, %c0_36] : memref<1x4x32xf32, #tpu.memory_space<vmem>>, vector<1x4x32xf32>
    %76 = vector.shape_cast %75 : vector<1x4x32xf32> to vector<4x32xf32>
    %77 = vector.shape_cast %74 : vector<4x32xf32> to vector<1x4x32xf32>
    tpu.vector_store %arg7[%c0_34, %c0_35, %c0_36], %77 {strides = array<i32>} : memref<1x4x32xf32, #tpu.memory_space<vmem>>, vector<1x4x32xf32>,
    return
  }
  func.func @transform_0(%arg0: i32, %arg1: i32) -> (i32, i32, i32) {
    %c1_i32 = arith.constant 1 : i32
    %0 = arith.subi %arg1, %c1_i32 : i32
    %c0_i32 = arith.constant 0 : i32
    %1 = arith.maxsi %0, %c0_i32 : i32
    %c0_i32_0 = arith.constant 0 : i32
    %c0_i32_1 = arith.constant 0 : i32
    return %arg0, %1, %c0_i32_0 : i32, i32, i32
  }
  func.func @transform_1(%arg0: i32, %arg1: i32) -> (i32, i32, i32) {
    %c0_i32 = arith.constant 0 : i32
    %c0_i32_0 = arith.constant 0 : i32
    return %arg0, %arg1, %c0_i32 : i32, i32, i32
  }
  func.func @transform_2(%arg0: i32, %arg1: i32) -> (i32, i32, i32) {
    %c1_i32 = arith.constant 1 : i32
    %0 = arith.addi %arg1, %c1_i32 : i32
    %c0_i32 = arith.constant 0 : i32
    %1 = arith.minsi %0, %c0_i32 : i32
    %c0_i32_0 = arith.constant 0 : i32
    %c0_i32_1 = arith.constant 0 : i32
    return %arg0, %1, %c0_i32_0 : i32, i32, i32
  }
  func.func @transform_3(%arg0: i32, %arg1: i32) -> (i32, i32) {
    %c0_i32 = arith.constant 0 : i32
    %c0_i32_0 = arith.constant 0 : i32
    %c0_i32_1 = arith.constant 0 : i32
    return %c0_i32, %c0_i32_0 : i32, i32
  }
  func.func @transform_4(%arg0: i32, %arg1: i32) -> (i32, i32) {
    %c0_i32 = arith.constant 0 : i32
    %c0_i32_0 = arith.constant 0 : i32
    %c0_i32_1 = arith.constant 0 : i32
    return %c0_i32, %c0_i32_0 : i32, i32
  }
  func.func @transform_5(%arg0: i32, %arg1: i32) -> (i32, i32, i32) {
    %c0_i32 = arith.constant 0 : i32
    %c0_i32_0 = arith.constant 0 : i32
    return %arg0, %arg1, %c0_i32 : i32, i32, i32
  }
}

module attributes {stable_mosaic.version = 11 : i64} {
  func.func @_conv_kernel(%arg0: i32, %arg1: i32, %arg2: memref<1x8x16xf32, #tpu.memory_space<vmem>>, %arg3: memref<1x8x16xf32, #tpu.memory_space<vmem>>, %arg4: memref<1x8x16xf32, #tpu.memory_space<vmem>>, %arg5: memref<48x16xf32, #tpu.memory_space<vmem>>, %arg6: memref<1x16xf32, #tpu.memory_space<vmem>>, %arg7: memref<1x8x16xf32, #tpu.memory_space<vmem>>, %arg8: memref<24x16xf32, #tpu.memory_space<vmem>>) attributes {dimension_semantics = [#tpu.dimension_semantics<parallel>, #tpu.dimension_semantics<parallel>], iteration_bounds = array<i64: 2, 1>, scalar_prefetch = 0 : i64, scratch_operands = 1 : i64, tpu.core_type = #tpu.core_type<tc>, window_params = [{transform_indices = @transform_0, window_bounds = array<i64: 1, 8, 16>}, {transform_indices = @transform_1, window_bounds = array<i64: 1, 8, 16>}, {transform_indices = @transform_2, window_bounds = array<i64: 1, 8, 16>}, {pipeline_mode = #tpu.pipeline_mode<synchronous>, transform_indices = @transform_3, window_bounds = array<i64: 48, 16>}, {pipeline_mode = #tpu.pipeline_mode<synchronous>, transform_indices = @transform_4, window_bounds = array<i64: 1, 16>}, {transform_indices = @transform_5, window_bounds = array<i64: 1, 8, 16>}]} {
    %c0 = arith.constant 0 : index
    %c0_0 = arith.constant 0 : index
    %c0_1 = arith.constant 0 : index
    %0 = vector.load %arg2[%c0, %c0_0, %c0_1] : memref<1x8x16xf32, #tpu.memory_space<vmem>>, vector<1x8x16xf32>
    %1 = vector.shape_cast %0 : vector<1x8x16xf32> to vector<8x16xf32>
    %c-1_i32 = arith.constant -1 : i32
    %2 = arith.addi %arg1, %c-1_i32 : i32
    %c8_i32 = arith.constant 8 : i32
    %3 = arith.muli %2, %c8_i32 : i32
    %4 = tpu.iota {dimensions = array<i32: 0>} : vector<8x1xi32>
    %5 = vector.broadcast %3 : i32 to vector<8x1xi32>
    %6 = arith.addi %5, %4 : vector<8x1xi32>
    %c0_i32 = arith.constant 0 : i32
    %7 = vector.broadcast %c0_i32 : i32 to vector<8x1xi32>
    %8 = arith.cmpi sge, %6, %7 : vector<8x1xi32>
    %c8_i32_2 = arith.constant 8 : i32
    %9 = vector.broadcast %c8_i32_2 : i32 to vector<8x1xi32>
    %10 = arith.cmpi slt, %6, %9 : vector<8x1xi32>
    %11 = arith.andi %8, %10 : vector<8x1xi1>
    %12 = arith.extui %11 : vector<8x1xi1> to vector<8x1xi32>
    %13 = arith.sitofp %12 : vector<8x1xi32> to vector<8x1xf32>
    %14 = vector.broadcast %13 : vector<8x1xf32> to vector<8x16xf32>
    %15 = arith.mulf %1, %14 : vector<8x16xf32>
    %cst = arith.constant 0.000000e+00 : f32
    %16 = vector.broadcast %cst : f32 to vector<8x16xf32>
    %17 = arith.cmpf oge, %15, %16 : vector<8x16xf32>
    %cst_3 = arith.constant 1.000000e-01 : f32
    %18 = vector.broadcast %cst_3 : f32 to vector<8x16xf32>
    %19 = arith.mulf %18, %15 : vector<8x16xf32>
    %20 = arith.select %17, %15, %19 : vector<8x16xi1>, vector<8x16xf32>
    %c0_4 = arith.constant 0 : index
    %c0_5 = arith.constant 0 : index
    %21 = vector.load %arg8[%c0_4, %c0_5] : memref<24x16xf32, #tpu.memory_space<vmem>>, vector<8x16xf32>
    tpu.vector_store %arg8[%c0_4, %c0_5], %20 {strides = array<i32>} : memref<24x16xf32, #tpu.memory_space<vmem>>, vector<8x16xf32>,
    %c0_6 = arith.constant 0 : index
    %c0_7 = arith.constant 0 : index
    %c0_8 = arith.constant 0 : index
    %22 = vector.load %arg3[%c0_6, %c0_7, %c0_8] : memref<1x8x16xf32, #tpu.memory_space<vmem>>, vector<1x8x16xf32>
    %23 = vector.shape_cast %22 : vector<1x8x16xf32> to vector<8x16xf32>
    %c0_i32_9 = arith.constant 0 : i32
    %24 = arith.addi %arg1, %c0_i32_9 : i32
    %c8_i32_10 = arith.constant 8 : i32
    %25 = arith.muli %24, %c8_i32_10 : i32
    %26 = tpu.iota {dimensions = array<i32: 0>} : vector<8x1xi32>
    %27 = vector.broadcast %25 : i32 to vector<8x1xi32>
    %28 = arith.addi %27, %26 : vector<8x1xi32>
    %c0_i32_11 = arith.constant 0 : i32
    %29 = vector.broadcast %c0_i32_11 : i32 to vector<8x1xi32>
    %30 = arith.cmpi sge, %28, %29 : vector<8x1xi32>
    %c8_i32_12 = arith.constant 8 : i32
    %31 = vector.broadcast %c8_i32_12 : i32 to vector<8x1xi32>
    %32 = arith.cmpi slt, %28, %31 : vector<8x1xi32>
    %33 = arith.andi %30, %32 : vector<8x1xi1>
    %34 = arith.extui %33 : vector<8x1xi1> to vector<8x1xi32>
    %35 = arith.sitofp %34 : vector<8x1xi32> to vector<8x1xf32>
    %36 = vector.broadcast %35 : vector<8x1xf32> to vector<8x16xf32>
    %37 = arith.mulf %23, %36 : vector<8x16xf32>
    %cst_13 = arith.constant 0.000000e+00 : f32
    %38 = vector.broadcast %cst_13 : f32 to vector<8x16xf32>
    %39 = arith.cmpf oge, %37, %38 : vector<8x16xf32>
    %cst_14 = arith.constant 1.000000e-01 : f32
    %40 = vector.broadcast %cst_14 : f32 to vector<8x16xf32>
    %41 = arith.mulf %40, %37 : vector<8x16xf32>
    %42 = arith.select %39, %37, %41 : vector<8x16xi1>, vector<8x16xf32>
    %c8 = arith.constant 8 : index
    %c0_15 = arith.constant 0 : index
    %43 = vector.load %arg8[%c8, %c0_15] : memref<24x16xf32, #tpu.memory_space<vmem>>, vector<8x16xf32>
    tpu.vector_store %arg8[%c8, %c0_15], %42 {strides = array<i32>} : memref<24x16xf32, #tpu.memory_space<vmem>>, vector<8x16xf32>,
    %c0_16 = arith.constant 0 : index
    %c0_17 = arith.constant 0 : index
    %c0_18 = arith.constant 0 : index
    %44 = vector.load %arg4[%c0_16, %c0_17, %c0_18] : memref<1x8x16xf32, #tpu.memory_space<vmem>>, vector<1x8x16xf32>
    %45 = vector.shape_cast %44 : vector<1x8x16xf32> to vector<8x16xf32>
    %c1_i32 = arith.constant 1 : i32
    %46 = arith.addi %arg1, %c1_i32 : i32
    %c8_i32_19 = arith.constant 8 : i32
    %47 = arith.muli %46, %c8_i32_19 : i32
    %48 = tpu.iota {dimensions = array<i32: 0>} : vector<8x1xi32>
    %49 = vector.broadcast %47 : i32 to vector<8x1xi32>
    %50 = arith.addi %49, %48 : vector<8x1xi32>
    %c0_i32_20 = arith.constant 0 : i32
    %51 = vector.broadcast %c0_i32_20 : i32 to vector<8x1xi32>
    %52 = arith.cmpi sge, %50, %51 : vector<8x1xi32>
    %c8_i32_21 = arith.constant 8 : i32
    %53 = vector.broadcast %c8_i32_21 : i32 to vector<8x1xi32>
    %54 = arith.cmpi slt, %50, %53 : vector<8x1xi32>
    %55 = arith.andi %52, %54 : vector<8x1xi1>
    %56 = arith.extui %55 : vector<8x1xi1> to vector<8x1xi32>
    %57 = arith.sitofp %56 : vector<8x1xi32> to vector<8x1xf32>
    %58 = vector.broadcast %57 : vector<8x1xf32> to vector<8x16xf32>
    %59 = arith.mulf %45, %58 : vector<8x16xf32>
    %cst_22 = arith.constant 0.000000e+00 : f32
    %60 = vector.broadcast %cst_22 : f32 to vector<8x16xf32>
    %61 = arith.cmpf oge, %59, %60 : vector<8x16xf32>
    %cst_23 = arith.constant 1.000000e-01 : f32
    %62 = vector.broadcast %cst_23 : f32 to vector<8x16xf32>
    %63 = arith.mulf %62, %59 : vector<8x16xf32>
    %64 = arith.select %61, %59, %63 : vector<8x16xi1>, vector<8x16xf32>
    %c16 = arith.constant 16 : index
    %c0_24 = arith.constant 0 : index
    %65 = vector.load %arg8[%c16, %c0_24] : memref<24x16xf32, #tpu.memory_space<vmem>>, vector<8x16xf32>
    tpu.vector_store %arg8[%c16, %c0_24], %64 {strides = array<i32>} : memref<24x16xf32, #tpu.memory_space<vmem>>, vector<8x16xf32>,
    %c5 = arith.constant 5 : index
    %c0_25 = arith.constant 0 : index
    %66 = vector.load %arg8[%c5, %c0_25] : memref<24x16xf32, #tpu.memory_space<vmem>>, vector<8x16xf32>
    %c8_26 = arith.constant 8 : index
    %c0_27 = arith.constant 0 : index
    %67 = vector.load %arg8[%c8_26, %c0_27] : memref<24x16xf32, #tpu.memory_space<vmem>>, vector<8x16xf32>
    %c11 = arith.constant 11 : index
    %c0_28 = arith.constant 0 : index
    %68 = vector.load %arg8[%c11, %c0_28] : memref<24x16xf32, #tpu.memory_space<vmem>>, vector<8x16xf32>
    %69 = tpu.concatenate %66, %67, %68 in 1 : vector<8x16xf32>, vector<8x16xf32>, vector<8x16xf32> -> vector<8x48xf32>
    %c0_29 = arith.constant 0 : index
    %c0_30 = arith.constant 0 : index
    %70 = vector.load %arg5[%c0_29, %c0_30] : memref<48x16xf32, #tpu.memory_space<vmem>>, vector<48x16xf32>
    %cst_31 = arith.constant dense<0.000000e+00> : vector<8x16xf32>
    %71 = tpu.matmul %69, %70, %cst_31 {dimension_numbers = #tpu.dot_dimension_numbers<[1], [0], [0], [1], [0, 0, 1, 1], [], []>} : vector<8x48xf32>, vector<48x16xf32>, vector<8x16xf32> -> vector<8x16xf32>
    %c0_32 = arith.constant 0 : index
    %c0_33 = arith.constant 0 : index
    %72 = vector.load %arg6[%c0_32, %c0_33] : memref<1x16xf32, #tpu.memory_space<vmem>>, vector<1x16xf32>
    %73 = vector.broadcast %72 : vector<1x16xf32> to vector<8x16xf32>
    %74 = arith.addf %71, %73 : vector<8x16xf32>
    %c0_34 = arith.constant 0 : index
    %c0_35 = arith.constant 0 : index
    %c0_36 = arith.constant 0 : index
    %75 = vector.load %arg7[%c0_34, %c0_35, %c0_36] : memref<1x8x16xf32, #tpu.memory_space<vmem>>, vector<1x8x16xf32>
    %76 = vector.shape_cast %75 : vector<1x8x16xf32> to vector<8x16xf32>
    %77 = vector.shape_cast %74 : vector<8x16xf32> to vector<1x8x16xf32>
    tpu.vector_store %arg7[%c0_34, %c0_35, %c0_36], %77 {strides = array<i32>} : memref<1x8x16xf32, #tpu.memory_space<vmem>>, vector<1x8x16xf32>,
    return
  }
  func.func @transform_0(%arg0: i32, %arg1: i32) -> (i32, i32, i32) {
    %c1_i32 = arith.constant 1 : i32
    %0 = arith.subi %arg1, %c1_i32 : i32
    %c0_i32 = arith.constant 0 : i32
    %1 = arith.maxsi %0, %c0_i32 : i32
    %c0_i32_0 = arith.constant 0 : i32
    %c0_i32_1 = arith.constant 0 : i32
    return %arg0, %1, %c0_i32_0 : i32, i32, i32
  }
  func.func @transform_1(%arg0: i32, %arg1: i32) -> (i32, i32, i32) {
    %c0_i32 = arith.constant 0 : i32
    %c0_i32_0 = arith.constant 0 : i32
    return %arg0, %arg1, %c0_i32 : i32, i32, i32
  }
  func.func @transform_2(%arg0: i32, %arg1: i32) -> (i32, i32, i32) {
    %c1_i32 = arith.constant 1 : i32
    %0 = arith.addi %arg1, %c1_i32 : i32
    %c0_i32 = arith.constant 0 : i32
    %1 = arith.minsi %0, %c0_i32 : i32
    %c0_i32_0 = arith.constant 0 : i32
    %c0_i32_1 = arith.constant 0 : i32
    return %arg0, %1, %c0_i32_0 : i32, i32, i32
  }
  func.func @transform_3(%arg0: i32, %arg1: i32) -> (i32, i32) {
    %c0_i32 = arith.constant 0 : i32
    %c0_i32_0 = arith.constant 0 : i32
    %c0_i32_1 = arith.constant 0 : i32
    return %c0_i32, %c0_i32_0 : i32, i32
  }
  func.func @transform_4(%arg0: i32, %arg1: i32) -> (i32, i32) {
    %c0_i32 = arith.constant 0 : i32
    %c0_i32_0 = arith.constant 0 : i32
    %c0_i32_1 = arith.constant 0 : i32
    return %c0_i32, %c0_i32_0 : i32, i32
  }
  func.func @transform_5(%arg0: i32, %arg1: i32) -> (i32, i32, i32) {
    %c0_i32 = arith.constant 0 : i32
    %c0_i32_0 = arith.constant 0 : i32
    return %arg0, %arg1, %c0_i32 : i32, i32, i32
  }
}

module attributes {stable_mosaic.version = 11 : i64} {
  func.func @_conv_kernel(%arg0: i32, %arg1: i32, %arg2: memref<1x8x16xf32, #tpu.memory_space<vmem>>, %arg3: memref<1x8x16xf32, #tpu.memory_space<vmem>>, %arg4: memref<1x8x16xf32, #tpu.memory_space<vmem>>, %arg5: memref<48x16xf32, #tpu.memory_space<vmem>>, %arg6: memref<1x16xf32, #tpu.memory_space<vmem>>, %arg7: memref<1x8x16xf32, #tpu.memory_space<vmem>>, %arg8: memref<24x16xf32, #tpu.memory_space<vmem>>) attributes {dimension_semantics = [#tpu.dimension_semantics<parallel>, #tpu.dimension_semantics<parallel>], iteration_bounds = array<i64: 2, 1>, scalar_prefetch = 0 : i64, scratch_operands = 1 : i64, tpu.core_type = #tpu.core_type<tc>, window_params = [{transform_indices = @transform_0, window_bounds = array<i64: 1, 8, 16>}, {transform_indices = @transform_1, window_bounds = array<i64: 1, 8, 16>}, {transform_indices = @transform_2, window_bounds = array<i64: 1, 8, 16>}, {pipeline_mode = #tpu.pipeline_mode<synchronous>, transform_indices = @transform_3, window_bounds = array<i64: 48, 16>}, {pipeline_mode = #tpu.pipeline_mode<synchronous>, transform_indices = @transform_4, window_bounds = array<i64: 1, 16>}, {transform_indices = @transform_5, window_bounds = array<i64: 1, 8, 16>}]} {
    %c0 = arith.constant 0 : index
    %c0_0 = arith.constant 0 : index
    %c0_1 = arith.constant 0 : index
    %0 = vector.load %arg2[%c0, %c0_0, %c0_1] : memref<1x8x16xf32, #tpu.memory_space<vmem>>, vector<1x8x16xf32>
    %1 = vector.shape_cast %0 : vector<1x8x16xf32> to vector<8x16xf32>
    %c-1_i32 = arith.constant -1 : i32
    %2 = arith.addi %arg1, %c-1_i32 : i32
    %c8_i32 = arith.constant 8 : i32
    %3 = arith.muli %2, %c8_i32 : i32
    %4 = tpu.iota {dimensions = array<i32: 0>} : vector<8x1xi32>
    %5 = vector.broadcast %3 : i32 to vector<8x1xi32>
    %6 = arith.addi %5, %4 : vector<8x1xi32>
    %c0_i32 = arith.constant 0 : i32
    %7 = vector.broadcast %c0_i32 : i32 to vector<8x1xi32>
    %8 = arith.cmpi sge, %6, %7 : vector<8x1xi32>
    %c8_i32_2 = arith.constant 8 : i32
    %9 = vector.broadcast %c8_i32_2 : i32 to vector<8x1xi32>
    %10 = arith.cmpi slt, %6, %9 : vector<8x1xi32>
    %11 = arith.andi %8, %10 : vector<8x1xi1>
    %12 = arith.extui %11 : vector<8x1xi1> to vector<8x1xi32>
    %13 = arith.sitofp %12 : vector<8x1xi32> to vector<8x1xf32>
    %14 = vector.broadcast %13 : vector<8x1xf32> to vector<8x16xf32>
    %15 = arith.mulf %1, %14 : vector<8x16xf32>
    %cst = arith.constant 0.000000e+00 : f32
    %16 = vector.broadcast %cst : f32 to vector<8x16xf32>
    %17 = arith.cmpf oge, %15, %16 : vector<8x16xf32>
    %cst_3 = arith.constant 1.000000e-01 : f32
    %18 = vector.broadcast %cst_3 : f32 to vector<8x16xf32>
    %19 = arith.mulf %18, %15 : vector<8x16xf32>
    %20 = arith.select %17, %15, %19 : vector<8x16xi1>, vector<8x16xf32>
    %c0_4 = arith.constant 0 : index
    %c0_5 = arith.constant 0 : index
    %21 = vector.load %arg8[%c0_4, %c0_5] : memref<24x16xf32, #tpu.memory_space<vmem>>, vector<8x16xf32>
    tpu.vector_store %arg8[%c0_4, %c0_5], %20 {strides = array<i32>} : memref<24x16xf32, #tpu.memory_space<vmem>>, vector<8x16xf32>,
    %c0_6 = arith.constant 0 : index
    %c0_7 = arith.constant 0 : index
    %c0_8 = arith.constant 0 : index
    %22 = vector.load %arg3[%c0_6, %c0_7, %c0_8] : memref<1x8x16xf32, #tpu.memory_space<vmem>>, vector<1x8x16xf32>
    %23 = vector.shape_cast %22 : vector<1x8x16xf32> to vector<8x16xf32>
    %c0_i32_9 = arith.constant 0 : i32
    %24 = arith.addi %arg1, %c0_i32_9 : i32
    %c8_i32_10 = arith.constant 8 : i32
    %25 = arith.muli %24, %c8_i32_10 : i32
    %26 = tpu.iota {dimensions = array<i32: 0>} : vector<8x1xi32>
    %27 = vector.broadcast %25 : i32 to vector<8x1xi32>
    %28 = arith.addi %27, %26 : vector<8x1xi32>
    %c0_i32_11 = arith.constant 0 : i32
    %29 = vector.broadcast %c0_i32_11 : i32 to vector<8x1xi32>
    %30 = arith.cmpi sge, %28, %29 : vector<8x1xi32>
    %c8_i32_12 = arith.constant 8 : i32
    %31 = vector.broadcast %c8_i32_12 : i32 to vector<8x1xi32>
    %32 = arith.cmpi slt, %28, %31 : vector<8x1xi32>
    %33 = arith.andi %30, %32 : vector<8x1xi1>
    %34 = arith.extui %33 : vector<8x1xi1> to vector<8x1xi32>
    %35 = arith.sitofp %34 : vector<8x1xi32> to vector<8x1xf32>
    %36 = vector.broadcast %35 : vector<8x1xf32> to vector<8x16xf32>
    %37 = arith.mulf %23, %36 : vector<8x16xf32>
    %cst_13 = arith.constant 0.000000e+00 : f32
    %38 = vector.broadcast %cst_13 : f32 to vector<8x16xf32>
    %39 = arith.cmpf oge, %37, %38 : vector<8x16xf32>
    %cst_14 = arith.constant 1.000000e-01 : f32
    %40 = vector.broadcast %cst_14 : f32 to vector<8x16xf32>
    %41 = arith.mulf %40, %37 : vector<8x16xf32>
    %42 = arith.select %39, %37, %41 : vector<8x16xi1>, vector<8x16xf32>
    %c8 = arith.constant 8 : index
    %c0_15 = arith.constant 0 : index
    %43 = vector.load %arg8[%c8, %c0_15] : memref<24x16xf32, #tpu.memory_space<vmem>>, vector<8x16xf32>
    tpu.vector_store %arg8[%c8, %c0_15], %42 {strides = array<i32>} : memref<24x16xf32, #tpu.memory_space<vmem>>, vector<8x16xf32>,
    %c0_16 = arith.constant 0 : index
    %c0_17 = arith.constant 0 : index
    %c0_18 = arith.constant 0 : index
    %44 = vector.load %arg4[%c0_16, %c0_17, %c0_18] : memref<1x8x16xf32, #tpu.memory_space<vmem>>, vector<1x8x16xf32>
    %45 = vector.shape_cast %44 : vector<1x8x16xf32> to vector<8x16xf32>
    %c1_i32 = arith.constant 1 : i32
    %46 = arith.addi %arg1, %c1_i32 : i32
    %c8_i32_19 = arith.constant 8 : i32
    %47 = arith.muli %46, %c8_i32_19 : i32
    %48 = tpu.iota {dimensions = array<i32: 0>} : vector<8x1xi32>
    %49 = vector.broadcast %47 : i32 to vector<8x1xi32>
    %50 = arith.addi %49, %48 : vector<8x1xi32>
    %c0_i32_20 = arith.constant 0 : i32
    %51 = vector.broadcast %c0_i32_20 : i32 to vector<8x1xi32>
    %52 = arith.cmpi sge, %50, %51 : vector<8x1xi32>
    %c8_i32_21 = arith.constant 8 : i32
    %53 = vector.broadcast %c8_i32_21 : i32 to vector<8x1xi32>
    %54 = arith.cmpi slt, %50, %53 : vector<8x1xi32>
    %55 = arith.andi %52, %54 : vector<8x1xi1>
    %56 = arith.extui %55 : vector<8x1xi1> to vector<8x1xi32>
    %57 = arith.sitofp %56 : vector<8x1xi32> to vector<8x1xf32>
    %58 = vector.broadcast %57 : vector<8x1xf32> to vector<8x16xf32>
    %59 = arith.mulf %45, %58 : vector<8x16xf32>
    %cst_22 = arith.constant 0.000000e+00 : f32
    %60 = vector.broadcast %cst_22 : f32 to vector<8x16xf32>
    %61 = arith.cmpf oge, %59, %60 : vector<8x16xf32>
    %cst_23 = arith.constant 1.000000e-01 : f32
    %62 = vector.broadcast %cst_23 : f32 to vector<8x16xf32>
    %63 = arith.mulf %62, %59 : vector<8x16xf32>
    %64 = arith.select %61, %59, %63 : vector<8x16xi1>, vector<8x16xf32>
    %c16 = arith.constant 16 : index
    %c0_24 = arith.constant 0 : index
    %65 = vector.load %arg8[%c16, %c0_24] : memref<24x16xf32, #tpu.memory_space<vmem>>, vector<8x16xf32>
    tpu.vector_store %arg8[%c16, %c0_24], %64 {strides = array<i32>} : memref<24x16xf32, #tpu.memory_space<vmem>>, vector<8x16xf32>,
    %c7 = arith.constant 7 : index
    %c0_25 = arith.constant 0 : index
    %66 = vector.load %arg8[%c7, %c0_25] : memref<24x16xf32, #tpu.memory_space<vmem>>, vector<8x16xf32>
    %c8_26 = arith.constant 8 : index
    %c0_27 = arith.constant 0 : index
    %67 = vector.load %arg8[%c8_26, %c0_27] : memref<24x16xf32, #tpu.memory_space<vmem>>, vector<8x16xf32>
    %c9 = arith.constant 9 : index
    %c0_28 = arith.constant 0 : index
    %68 = vector.load %arg8[%c9, %c0_28] : memref<24x16xf32, #tpu.memory_space<vmem>>, vector<8x16xf32>
    %69 = tpu.concatenate %66, %67, %68 in 1 : vector<8x16xf32>, vector<8x16xf32>, vector<8x16xf32> -> vector<8x48xf32>
    %c0_29 = arith.constant 0 : index
    %c0_30 = arith.constant 0 : index
    %70 = vector.load %arg5[%c0_29, %c0_30] : memref<48x16xf32, #tpu.memory_space<vmem>>, vector<48x16xf32>
    %cst_31 = arith.constant dense<0.000000e+00> : vector<8x16xf32>
    %71 = tpu.matmul %69, %70, %cst_31 {dimension_numbers = #tpu.dot_dimension_numbers<[1], [0], [0], [1], [0, 0, 1, 1], [], []>} : vector<8x48xf32>, vector<48x16xf32>, vector<8x16xf32> -> vector<8x16xf32>
    %c0_32 = arith.constant 0 : index
    %c0_33 = arith.constant 0 : index
    %72 = vector.load %arg6[%c0_32, %c0_33] : memref<1x16xf32, #tpu.memory_space<vmem>>, vector<1x16xf32>
    %73 = vector.broadcast %72 : vector<1x16xf32> to vector<8x16xf32>
    %74 = arith.addf %71, %73 : vector<8x16xf32>
    %c0_34 = arith.constant 0 : index
    %c0_35 = arith.constant 0 : index
    %c0_36 = arith.constant 0 : index
    %75 = vector.load %arg7[%c0_34, %c0_35, %c0_36] : memref<1x8x16xf32, #tpu.memory_space<vmem>>, vector<1x8x16xf32>
    %76 = vector.shape_cast %75 : vector<1x8x16xf32> to vector<8x16xf32>
    %77 = vector.shape_cast %74 : vector<8x16xf32> to vector<1x8x16xf32>
    tpu.vector_store %arg7[%c0_34, %c0_35, %c0_36], %77 {strides = array<i32>} : memref<1x8x16xf32, #tpu.memory_space<vmem>>, vector<1x8x16xf32>,
    return
  }
  func.func @transform_0(%arg0: i32, %arg1: i32) -> (i32, i32, i32) {
    %c1_i32 = arith.constant 1 : i32
    %0 = arith.subi %arg1, %c1_i32 : i32
    %c0_i32 = arith.constant 0 : i32
    %1 = arith.maxsi %0, %c0_i32 : i32
    %c0_i32_0 = arith.constant 0 : i32
    %c0_i32_1 = arith.constant 0 : i32
    return %arg0, %1, %c0_i32_0 : i32, i32, i32
  }
  func.func @transform_1(%arg0: i32, %arg1: i32) -> (i32, i32, i32) {
    %c0_i32 = arith.constant 0 : i32
    %c0_i32_0 = arith.constant 0 : i32
    return %arg0, %arg1, %c0_i32 : i32, i32, i32
  }
  func.func @transform_2(%arg0: i32, %arg1: i32) -> (i32, i32, i32) {
    %c1_i32 = arith.constant 1 : i32
    %0 = arith.addi %arg1, %c1_i32 : i32
    %c0_i32 = arith.constant 0 : i32
    %1 = arith.minsi %0, %c0_i32 : i32
    %c0_i32_0 = arith.constant 0 : i32
    %c0_i32_1 = arith.constant 0 : i32
    return %arg0, %1, %c0_i32_0 : i32, i32, i32
  }
  func.func @transform_3(%arg0: i32, %arg1: i32) -> (i32, i32) {
    %c0_i32 = arith.constant 0 : i32
    %c0_i32_0 = arith.constant 0 : i32
    %c0_i32_1 = arith.constant 0 : i32
    return %c0_i32, %c0_i32_0 : i32, i32
  }
  func.func @transform_4(%arg0: i32, %arg1: i32) -> (i32, i32) {
    %c0_i32 = arith.constant 0 : i32
    %c0_i32_0 = arith.constant 0 : i32
    %c0_i32_1 = arith.constant 0 : i32
    return %c0_i32, %c0_i32_0 : i32, i32
  }
  func.func @transform_5(%arg0: i32, %arg1: i32) -> (i32, i32, i32) {
    %c0_i32 = arith.constant 0 : i32
    %c0_i32_0 = arith.constant 0 : i32
    return %arg0, %arg1, %c0_i32 : i32, i32, i32
  }
}

module attributes {stable_mosaic.version = 11 : i64} {
  func.func @_conv_kernel(%arg0: i32, %arg1: i32, %arg2: memref<1x8x16xf32, #tpu.memory_space<vmem>>, %arg3: memref<1x8x16xf32, #tpu.memory_space<vmem>>, %arg4: memref<1x8x16xf32, #tpu.memory_space<vmem>>, %arg5: memref<48x16xf32, #tpu.memory_space<vmem>>, %arg6: memref<1x16xf32, #tpu.memory_space<vmem>>, %arg7: memref<1x8x16xf32, #tpu.memory_space<vmem>>, %arg8: memref<24x16xf32, #tpu.memory_space<vmem>>) attributes {dimension_semantics = [#tpu.dimension_semantics<parallel>, #tpu.dimension_semantics<parallel>], iteration_bounds = array<i64: 2, 1>, scalar_prefetch = 0 : i64, scratch_operands = 1 : i64, tpu.core_type = #tpu.core_type<tc>, window_params = [{transform_indices = @transform_0, window_bounds = array<i64: 1, 8, 16>}, {transform_indices = @transform_1, window_bounds = array<i64: 1, 8, 16>}, {transform_indices = @transform_2, window_bounds = array<i64: 1, 8, 16>}, {pipeline_mode = #tpu.pipeline_mode<synchronous>, transform_indices = @transform_3, window_bounds = array<i64: 48, 16>}, {pipeline_mode = #tpu.pipeline_mode<synchronous>, transform_indices = @transform_4, window_bounds = array<i64: 1, 16>}, {transform_indices = @transform_5, window_bounds = array<i64: 1, 8, 16>}]} {
    %c0 = arith.constant 0 : index
    %c0_0 = arith.constant 0 : index
    %c0_1 = arith.constant 0 : index
    %0 = vector.load %arg2[%c0, %c0_0, %c0_1] : memref<1x8x16xf32, #tpu.memory_space<vmem>>, vector<1x8x16xf32>
    %1 = vector.shape_cast %0 : vector<1x8x16xf32> to vector<8x16xf32>
    %c-1_i32 = arith.constant -1 : i32
    %2 = arith.addi %arg1, %c-1_i32 : i32
    %c8_i32 = arith.constant 8 : i32
    %3 = arith.muli %2, %c8_i32 : i32
    %4 = tpu.iota {dimensions = array<i32: 0>} : vector<8x1xi32>
    %5 = vector.broadcast %3 : i32 to vector<8x1xi32>
    %6 = arith.addi %5, %4 : vector<8x1xi32>
    %c0_i32 = arith.constant 0 : i32
    %7 = vector.broadcast %c0_i32 : i32 to vector<8x1xi32>
    %8 = arith.cmpi sge, %6, %7 : vector<8x1xi32>
    %c8_i32_2 = arith.constant 8 : i32
    %9 = vector.broadcast %c8_i32_2 : i32 to vector<8x1xi32>
    %10 = arith.cmpi slt, %6, %9 : vector<8x1xi32>
    %11 = arith.andi %8, %10 : vector<8x1xi1>
    %12 = arith.extui %11 : vector<8x1xi1> to vector<8x1xi32>
    %13 = arith.sitofp %12 : vector<8x1xi32> to vector<8x1xf32>
    %14 = vector.broadcast %13 : vector<8x1xf32> to vector<8x16xf32>
    %15 = arith.mulf %1, %14 : vector<8x16xf32>
    %cst = arith.constant 0.000000e+00 : f32
    %16 = vector.broadcast %cst : f32 to vector<8x16xf32>
    %17 = arith.cmpf oge, %15, %16 : vector<8x16xf32>
    %cst_3 = arith.constant 1.000000e-01 : f32
    %18 = vector.broadcast %cst_3 : f32 to vector<8x16xf32>
    %19 = arith.mulf %18, %15 : vector<8x16xf32>
    %20 = arith.select %17, %15, %19 : vector<8x16xi1>, vector<8x16xf32>
    %c0_4 = arith.constant 0 : index
    %c0_5 = arith.constant 0 : index
    %21 = vector.load %arg8[%c0_4, %c0_5] : memref<24x16xf32, #tpu.memory_space<vmem>>, vector<8x16xf32>
    tpu.vector_store %arg8[%c0_4, %c0_5], %20 {strides = array<i32>} : memref<24x16xf32, #tpu.memory_space<vmem>>, vector<8x16xf32>,
    %c0_6 = arith.constant 0 : index
    %c0_7 = arith.constant 0 : index
    %c0_8 = arith.constant 0 : index
    %22 = vector.load %arg3[%c0_6, %c0_7, %c0_8] : memref<1x8x16xf32, #tpu.memory_space<vmem>>, vector<1x8x16xf32>
    %23 = vector.shape_cast %22 : vector<1x8x16xf32> to vector<8x16xf32>
    %c0_i32_9 = arith.constant 0 : i32
    %24 = arith.addi %arg1, %c0_i32_9 : i32
    %c8_i32_10 = arith.constant 8 : i32
    %25 = arith.muli %24, %c8_i32_10 : i32
    %26 = tpu.iota {dimensions = array<i32: 0>} : vector<8x1xi32>
    %27 = vector.broadcast %25 : i32 to vector<8x1xi32>
    %28 = arith.addi %27, %26 : vector<8x1xi32>
    %c0_i32_11 = arith.constant 0 : i32
    %29 = vector.broadcast %c0_i32_11 : i32 to vector<8x1xi32>
    %30 = arith.cmpi sge, %28, %29 : vector<8x1xi32>
    %c8_i32_12 = arith.constant 8 : i32
    %31 = vector.broadcast %c8_i32_12 : i32 to vector<8x1xi32>
    %32 = arith.cmpi slt, %28, %31 : vector<8x1xi32>
    %33 = arith.andi %30, %32 : vector<8x1xi1>
    %34 = arith.extui %33 : vector<8x1xi1> to vector<8x1xi32>
    %35 = arith.sitofp %34 : vector<8x1xi32> to vector<8x1xf32>
    %36 = vector.broadcast %35 : vector<8x1xf32> to vector<8x16xf32>
    %37 = arith.mulf %23, %36 : vector<8x16xf32>
    %cst_13 = arith.constant 0.000000e+00 : f32
    %38 = vector.broadcast %cst_13 : f32 to vector<8x16xf32>
    %39 = arith.cmpf oge, %37, %38 : vector<8x16xf32>
    %cst_14 = arith.constant 1.000000e-01 : f32
    %40 = vector.broadcast %cst_14 : f32 to vector<8x16xf32>
    %41 = arith.mulf %40, %37 : vector<8x16xf32>
    %42 = arith.select %39, %37, %41 : vector<8x16xi1>, vector<8x16xf32>
    %c8 = arith.constant 8 : index
    %c0_15 = arith.constant 0 : index
    %43 = vector.load %arg8[%c8, %c0_15] : memref<24x16xf32, #tpu.memory_space<vmem>>, vector<8x16xf32>
    tpu.vector_store %arg8[%c8, %c0_15], %42 {strides = array<i32>} : memref<24x16xf32, #tpu.memory_space<vmem>>, vector<8x16xf32>,
    %c0_16 = arith.constant 0 : index
    %c0_17 = arith.constant 0 : index
    %c0_18 = arith.constant 0 : index
    %44 = vector.load %arg4[%c0_16, %c0_17, %c0_18] : memref<1x8x16xf32, #tpu.memory_space<vmem>>, vector<1x8x16xf32>
    %45 = vector.shape_cast %44 : vector<1x8x16xf32> to vector<8x16xf32>
    %c1_i32 = arith.constant 1 : i32
    %46 = arith.addi %arg1, %c1_i32 : i32
    %c8_i32_19 = arith.constant 8 : i32
    %47 = arith.muli %46, %c8_i32_19 : i32
    %48 = tpu.iota {dimensions = array<i32: 0>} : vector<8x1xi32>
    %49 = vector.broadcast %47 : i32 to vector<8x1xi32>
    %50 = arith.addi %49, %48 : vector<8x1xi32>
    %c0_i32_20 = arith.constant 0 : i32
    %51 = vector.broadcast %c0_i32_20 : i32 to vector<8x1xi32>
    %52 = arith.cmpi sge, %50, %51 : vector<8x1xi32>
    %c8_i32_21 = arith.constant 8 : i32
    %53 = vector.broadcast %c8_i32_21 : i32 to vector<8x1xi32>
    %54 = arith.cmpi slt, %50, %53 : vector<8x1xi32>
    %55 = arith.andi %52, %54 : vector<8x1xi1>
    %56 = arith.extui %55 : vector<8x1xi1> to vector<8x1xi32>
    %57 = arith.sitofp %56 : vector<8x1xi32> to vector<8x1xf32>
    %58 = vector.broadcast %57 : vector<8x1xf32> to vector<8x16xf32>
    %59 = arith.mulf %45, %58 : vector<8x16xf32>
    %cst_22 = arith.constant 0.000000e+00 : f32
    %60 = vector.broadcast %cst_22 : f32 to vector<8x16xf32>
    %61 = arith.cmpf oge, %59, %60 : vector<8x16xf32>
    %cst_23 = arith.constant 1.000000e-01 : f32
    %62 = vector.broadcast %cst_23 : f32 to vector<8x16xf32>
    %63 = arith.mulf %62, %59 : vector<8x16xf32>
    %64 = arith.select %61, %59, %63 : vector<8x16xi1>, vector<8x16xf32>
    %c16 = arith.constant 16 : index
    %c0_24 = arith.constant 0 : index
    %65 = vector.load %arg8[%c16, %c0_24] : memref<24x16xf32, #tpu.memory_space<vmem>>, vector<8x16xf32>
    tpu.vector_store %arg8[%c16, %c0_24], %64 {strides = array<i32>} : memref<24x16xf32, #tpu.memory_space<vmem>>, vector<8x16xf32>,
    %c3 = arith.constant 3 : index
    %c0_25 = arith.constant 0 : index
    %66 = vector.load %arg8[%c3, %c0_25] : memref<24x16xf32, #tpu.memory_space<vmem>>, vector<8x16xf32>
    %c8_26 = arith.constant 8 : index
    %c0_27 = arith.constant 0 : index
    %67 = vector.load %arg8[%c8_26, %c0_27] : memref<24x16xf32, #tpu.memory_space<vmem>>, vector<8x16xf32>
    %c13 = arith.constant 13 : index
    %c0_28 = arith.constant 0 : index
    %68 = vector.load %arg8[%c13, %c0_28] : memref<24x16xf32, #tpu.memory_space<vmem>>, vector<8x16xf32>
    %69 = tpu.concatenate %66, %67, %68 in 1 : vector<8x16xf32>, vector<8x16xf32>, vector<8x16xf32> -> vector<8x48xf32>
    %c0_29 = arith.constant 0 : index
    %c0_30 = arith.constant 0 : index
    %70 = vector.load %arg5[%c0_29, %c0_30] : memref<48x16xf32, #tpu.memory_space<vmem>>, vector<48x16xf32>
    %cst_31 = arith.constant dense<0.000000e+00> : vector<8x16xf32>
    %71 = tpu.matmul %69, %70, %cst_31 {dimension_numbers = #tpu.dot_dimension_numbers<[1], [0], [0], [1], [0, 0, 1, 1], [], []>} : vector<8x48xf32>, vector<48x16xf32>, vector<8x16xf32> -> vector<8x16xf32>
    %c0_32 = arith.constant 0 : index
    %c0_33 = arith.constant 0 : index
    %72 = vector.load %arg6[%c0_32, %c0_33] : memref<1x16xf32, #tpu.memory_space<vmem>>, vector<1x16xf32>
    %73 = vector.broadcast %72 : vector<1x16xf32> to vector<8x16xf32>
    %74 = arith.addf %71, %73 : vector<8x16xf32>
    %c0_34 = arith.constant 0 : index
    %c0_35 = arith.constant 0 : index
    %c0_36 = arith.constant 0 : index
    %75 = vector.load %arg7[%c0_34, %c0_35, %c0_36] : memref<1x8x16xf32, #tpu.memory_space<vmem>>, vector<1x8x16xf32>
    %76 = vector.shape_cast %75 : vector<1x8x16xf32> to vector<8x16xf32>
    %77 = vector.shape_cast %74 : vector<8x16xf32> to vector<1x8x16xf32>
    tpu.vector_store %arg7[%c0_34, %c0_35, %c0_36], %77 {strides = array<i32>} : memref<1x8x16xf32, #tpu.memory_space<vmem>>, vector<1x8x16xf32>,
    return
  }
  func.func @transform_0(%arg0: i32, %arg1: i32) -> (i32, i32, i32) {
    %c1_i32 = arith.constant 1 : i32
    %0 = arith.subi %arg1, %c1_i32 : i32
    %c0_i32 = arith.constant 0 : i32
    %1 = arith.maxsi %0, %c0_i32 : i32
    %c0_i32_0 = arith.constant 0 : i32
    %c0_i32_1 = arith.constant 0 : i32
    return %arg0, %1, %c0_i32_0 : i32, i32, i32
  }
  func.func @transform_1(%arg0: i32, %arg1: i32) -> (i32, i32, i32) {
    %c0_i32 = arith.constant 0 : i32
    %c0_i32_0 = arith.constant 0 : i32
    return %arg0, %arg1, %c0_i32 : i32, i32, i32
  }
  func.func @transform_2(%arg0: i32, %arg1: i32) -> (i32, i32, i32) {
    %c1_i32 = arith.constant 1 : i32
    %0 = arith.addi %arg1, %c1_i32 : i32
    %c0_i32 = arith.constant 0 : i32
    %1 = arith.minsi %0, %c0_i32 : i32
    %c0_i32_0 = arith.constant 0 : i32
    %c0_i32_1 = arith.constant 0 : i32
    return %arg0, %1, %c0_i32_0 : i32, i32, i32
  }
  func.func @transform_3(%arg0: i32, %arg1: i32) -> (i32, i32) {
    %c0_i32 = arith.constant 0 : i32
    %c0_i32_0 = arith.constant 0 : i32
    %c0_i32_1 = arith.constant 0 : i32
    return %c0_i32, %c0_i32_0 : i32, i32
  }
  func.func @transform_4(%arg0: i32, %arg1: i32) -> (i32, i32) {
    %c0_i32 = arith.constant 0 : i32
    %c0_i32_0 = arith.constant 0 : i32
    %c0_i32_1 = arith.constant 0 : i32
    return %c0_i32, %c0_i32_0 : i32, i32
  }
  func.func @transform_5(%arg0: i32, %arg1: i32) -> (i32, i32, i32) {
    %c0_i32 = arith.constant 0 : i32
    %c0_i32_0 = arith.constant 0 : i32
    return %arg0, %arg1, %c0_i32 : i32, i32, i32
  }
}

module attributes {stable_mosaic.version = 11 : i64} {
  func.func @_conv_kernel(%arg0: i32, %arg1: i32, %arg2: memref<1x16x8xf32, #tpu.memory_space<vmem>>, %arg3: memref<1x16x8xf32, #tpu.memory_space<vmem>>, %arg4: memref<1x16x8xf32, #tpu.memory_space<vmem>>, %arg5: memref<24x8xf32, #tpu.memory_space<vmem>>, %arg6: memref<1x8xf32, #tpu.memory_space<vmem>>, %arg7: memref<1x16x8xf32, #tpu.memory_space<vmem>>, %arg8: memref<48x8xf32, #tpu.memory_space<vmem>>) attributes {dimension_semantics = [#tpu.dimension_semantics<parallel>, #tpu.dimension_semantics<parallel>], iteration_bounds = array<i64: 2, 1>, scalar_prefetch = 0 : i64, scratch_operands = 1 : i64, tpu.core_type = #tpu.core_type<tc>, window_params = [{transform_indices = @transform_0, window_bounds = array<i64: 1, 16, 8>}, {transform_indices = @transform_1, window_bounds = array<i64: 1, 16, 8>}, {transform_indices = @transform_2, window_bounds = array<i64: 1, 16, 8>}, {pipeline_mode = #tpu.pipeline_mode<synchronous>, transform_indices = @transform_3, window_bounds = array<i64: 24, 8>}, {pipeline_mode = #tpu.pipeline_mode<synchronous>, transform_indices = @transform_4, window_bounds = array<i64: 1, 8>}, {transform_indices = @transform_5, window_bounds = array<i64: 1, 16, 8>}]} {
    %c0 = arith.constant 0 : index
    %c0_0 = arith.constant 0 : index
    %c0_1 = arith.constant 0 : index
    %0 = vector.load %arg2[%c0, %c0_0, %c0_1] : memref<1x16x8xf32, #tpu.memory_space<vmem>>, vector<1x16x8xf32>
    %1 = vector.shape_cast %0 : vector<1x16x8xf32> to vector<16x8xf32>
    %c-1_i32 = arith.constant -1 : i32
    %2 = arith.addi %arg1, %c-1_i32 : i32
    %c16_i32 = arith.constant 16 : i32
    %3 = arith.muli %2, %c16_i32 : i32
    %4 = tpu.iota {dimensions = array<i32: 0>} : vector<16x1xi32>
    %5 = vector.broadcast %3 : i32 to vector<16x1xi32>
    %6 = arith.addi %5, %4 : vector<16x1xi32>
    %c0_i32 = arith.constant 0 : i32
    %7 = vector.broadcast %c0_i32 : i32 to vector<16x1xi32>
    %8 = arith.cmpi sge, %6, %7 : vector<16x1xi32>
    %c16_i32_2 = arith.constant 16 : i32
    %9 = vector.broadcast %c16_i32_2 : i32 to vector<16x1xi32>
    %10 = arith.cmpi slt, %6, %9 : vector<16x1xi32>
    %11 = arith.andi %8, %10 : vector<16x1xi1>
    %12 = arith.extui %11 : vector<16x1xi1> to vector<16x1xi32>
    %13 = arith.sitofp %12 : vector<16x1xi32> to vector<16x1xf32>
    %14 = vector.broadcast %13 : vector<16x1xf32> to vector<16x8xf32>
    %15 = arith.mulf %1, %14 : vector<16x8xf32>
    %cst = arith.constant 0.000000e+00 : f32
    %16 = vector.broadcast %cst : f32 to vector<16x8xf32>
    %17 = arith.cmpf oge, %15, %16 : vector<16x8xf32>
    %cst_3 = arith.constant 1.000000e-01 : f32
    %18 = vector.broadcast %cst_3 : f32 to vector<16x8xf32>
    %19 = arith.mulf %18, %15 : vector<16x8xf32>
    %20 = arith.select %17, %15, %19 : vector<16x8xi1>, vector<16x8xf32>
    %c0_4 = arith.constant 0 : index
    %c0_5 = arith.constant 0 : index
    %21 = vector.load %arg8[%c0_4, %c0_5] : memref<48x8xf32, #tpu.memory_space<vmem>>, vector<16x8xf32>
    tpu.vector_store %arg8[%c0_4, %c0_5], %20 {strides = array<i32>} : memref<48x8xf32, #tpu.memory_space<vmem>>, vector<16x8xf32>,
    %c0_6 = arith.constant 0 : index
    %c0_7 = arith.constant 0 : index
    %c0_8 = arith.constant 0 : index
    %22 = vector.load %arg3[%c0_6, %c0_7, %c0_8] : memref<1x16x8xf32, #tpu.memory_space<vmem>>, vector<1x16x8xf32>
    %23 = vector.shape_cast %22 : vector<1x16x8xf32> to vector<16x8xf32>
    %c0_i32_9 = arith.constant 0 : i32
    %24 = arith.addi %arg1, %c0_i32_9 : i32
    %c16_i32_10 = arith.constant 16 : i32
    %25 = arith.muli %24, %c16_i32_10 : i32
    %26 = tpu.iota {dimensions = array<i32: 0>} : vector<16x1xi32>
    %27 = vector.broadcast %25 : i32 to vector<16x1xi32>
    %28 = arith.addi %27, %26 : vector<16x1xi32>
    %c0_i32_11 = arith.constant 0 : i32
    %29 = vector.broadcast %c0_i32_11 : i32 to vector<16x1xi32>
    %30 = arith.cmpi sge, %28, %29 : vector<16x1xi32>
    %c16_i32_12 = arith.constant 16 : i32
    %31 = vector.broadcast %c16_i32_12 : i32 to vector<16x1xi32>
    %32 = arith.cmpi slt, %28, %31 : vector<16x1xi32>
    %33 = arith.andi %30, %32 : vector<16x1xi1>
    %34 = arith.extui %33 : vector<16x1xi1> to vector<16x1xi32>
    %35 = arith.sitofp %34 : vector<16x1xi32> to vector<16x1xf32>
    %36 = vector.broadcast %35 : vector<16x1xf32> to vector<16x8xf32>
    %37 = arith.mulf %23, %36 : vector<16x8xf32>
    %cst_13 = arith.constant 0.000000e+00 : f32
    %38 = vector.broadcast %cst_13 : f32 to vector<16x8xf32>
    %39 = arith.cmpf oge, %37, %38 : vector<16x8xf32>
    %cst_14 = arith.constant 1.000000e-01 : f32
    %40 = vector.broadcast %cst_14 : f32 to vector<16x8xf32>
    %41 = arith.mulf %40, %37 : vector<16x8xf32>
    %42 = arith.select %39, %37, %41 : vector<16x8xi1>, vector<16x8xf32>
    %c16 = arith.constant 16 : index
    %c0_15 = arith.constant 0 : index
    %43 = vector.load %arg8[%c16, %c0_15] : memref<48x8xf32, #tpu.memory_space<vmem>>, vector<16x8xf32>
    tpu.vector_store %arg8[%c16, %c0_15], %42 {strides = array<i32>} : memref<48x8xf32, #tpu.memory_space<vmem>>, vector<16x8xf32>,
    %c0_16 = arith.constant 0 : index
    %c0_17 = arith.constant 0 : index
    %c0_18 = arith.constant 0 : index
    %44 = vector.load %arg4[%c0_16, %c0_17, %c0_18] : memref<1x16x8xf32, #tpu.memory_space<vmem>>, vector<1x16x8xf32>
    %45 = vector.shape_cast %44 : vector<1x16x8xf32> to vector<16x8xf32>
    %c1_i32 = arith.constant 1 : i32
    %46 = arith.addi %arg1, %c1_i32 : i32
    %c16_i32_19 = arith.constant 16 : i32
    %47 = arith.muli %46, %c16_i32_19 : i32
    %48 = tpu.iota {dimensions = array<i32: 0>} : vector<16x1xi32>
    %49 = vector.broadcast %47 : i32 to vector<16x1xi32>
    %50 = arith.addi %49, %48 : vector<16x1xi32>
    %c0_i32_20 = arith.constant 0 : i32
    %51 = vector.broadcast %c0_i32_20 : i32 to vector<16x1xi32>
    %52 = arith.cmpi sge, %50, %51 : vector<16x1xi32>
    %c16_i32_21 = arith.constant 16 : i32
    %53 = vector.broadcast %c16_i32_21 : i32 to vector<16x1xi32>
    %54 = arith.cmpi slt, %50, %53 : vector<16x1xi32>
    %55 = arith.andi %52, %54 : vector<16x1xi1>
    %56 = arith.extui %55 : vector<16x1xi1> to vector<16x1xi32>
    %57 = arith.sitofp %56 : vector<16x1xi32> to vector<16x1xf32>
    %58 = vector.broadcast %57 : vector<16x1xf32> to vector<16x8xf32>
    %59 = arith.mulf %45, %58 : vector<16x8xf32>
    %cst_22 = arith.constant 0.000000e+00 : f32
    %60 = vector.broadcast %cst_22 : f32 to vector<16x8xf32>
    %61 = arith.cmpf oge, %59, %60 : vector<16x8xf32>
    %cst_23 = arith.constant 1.000000e-01 : f32
    %62 = vector.broadcast %cst_23 : f32 to vector<16x8xf32>
    %63 = arith.mulf %62, %59 : vector<16x8xf32>
    %64 = arith.select %61, %59, %63 : vector<16x8xi1>, vector<16x8xf32>
    %c32 = arith.constant 32 : index
    %c0_24 = arith.constant 0 : index
    %65 = vector.load %arg8[%c32, %c0_24] : memref<48x8xf32, #tpu.memory_space<vmem>>, vector<16x8xf32>
    tpu.vector_store %arg8[%c32, %c0_24], %64 {strides = array<i32>} : memref<48x8xf32, #tpu.memory_space<vmem>>, vector<16x8xf32>,
    %c15 = arith.constant 15 : index
    %c0_25 = arith.constant 0 : index
    %66 = vector.load %arg8[%c15, %c0_25] : memref<48x8xf32, #tpu.memory_space<vmem>>, vector<16x8xf32>
    %c16_26 = arith.constant 16 : index
    %c0_27 = arith.constant 0 : index
    %67 = vector.load %arg8[%c16_26, %c0_27] : memref<48x8xf32, #tpu.memory_space<vmem>>, vector<16x8xf32>
    %c17 = arith.constant 17 : index
    %c0_28 = arith.constant 0 : index
    %68 = vector.load %arg8[%c17, %c0_28] : memref<48x8xf32, #tpu.memory_space<vmem>>, vector<16x8xf32>
    %69 = tpu.concatenate %66, %67, %68 in 1 : vector<16x8xf32>, vector<16x8xf32>, vector<16x8xf32> -> vector<16x24xf32>
    %c0_29 = arith.constant 0 : index
    %c0_30 = arith.constant 0 : index
    %70 = vector.load %arg5[%c0_29, %c0_30] : memref<24x8xf32, #tpu.memory_space<vmem>>, vector<24x8xf32>
    %cst_31 = arith.constant dense<0.000000e+00> : vector<16x8xf32>
    %71 = tpu.matmul %69, %70, %cst_31 {dimension_numbers = #tpu.dot_dimension_numbers<[1], [0], [0], [1], [0, 0, 1, 1], [], []>} : vector<16x24xf32>, vector<24x8xf32>, vector<16x8xf32> -> vector<16x8xf32>
    %c0_32 = arith.constant 0 : index
    %c0_33 = arith.constant 0 : index
    %72 = vector.load %arg6[%c0_32, %c0_33] : memref<1x8xf32, #tpu.memory_space<vmem>>, vector<1x8xf32>
    %73 = vector.broadcast %72 : vector<1x8xf32> to vector<16x8xf32>
    %74 = arith.addf %71, %73 : vector<16x8xf32>
    %c0_34 = arith.constant 0 : index
    %c0_35 = arith.constant 0 : index
    %c0_36 = arith.constant 0 : index
    %75 = vector.load %arg7[%c0_34, %c0_35, %c0_36] : memref<1x16x8xf32, #tpu.memory_space<vmem>>, vector<1x16x8xf32>
    %76 = vector.shape_cast %75 : vector<1x16x8xf32> to vector<16x8xf32>
    %77 = vector.shape_cast %74 : vector<16x8xf32> to vector<1x16x8xf32>
    tpu.vector_store %arg7[%c0_34, %c0_35, %c0_36], %77 {strides = array<i32>} : memref<1x16x8xf32, #tpu.memory_space<vmem>>, vector<1x16x8xf32>,
    return
  }
  func.func @transform_0(%arg0: i32, %arg1: i32) -> (i32, i32, i32) {
    %c1_i32 = arith.constant 1 : i32
    %0 = arith.subi %arg1, %c1_i32 : i32
    %c0_i32 = arith.constant 0 : i32
    %1 = arith.maxsi %0, %c0_i32 : i32
    %c0_i32_0 = arith.constant 0 : i32
    %c0_i32_1 = arith.constant 0 : i32
    return %arg0, %1, %c0_i32_0 : i32, i32, i32
  }
  func.func @transform_1(%arg0: i32, %arg1: i32) -> (i32, i32, i32) {
    %c0_i32 = arith.constant 0 : i32
    %c0_i32_0 = arith.constant 0 : i32
    return %arg0, %arg1, %c0_i32 : i32, i32, i32
  }
  func.func @transform_2(%arg0: i32, %arg1: i32) -> (i32, i32, i32) {
    %c1_i32 = arith.constant 1 : i32
    %0 = arith.addi %arg1, %c1_i32 : i32
    %c0_i32 = arith.constant 0 : i32
    %1 = arith.minsi %0, %c0_i32 : i32
    %c0_i32_0 = arith.constant 0 : i32
    %c0_i32_1 = arith.constant 0 : i32
    return %arg0, %1, %c0_i32_0 : i32, i32, i32
  }
  func.func @transform_3(%arg0: i32, %arg1: i32) -> (i32, i32) {
    %c0_i32 = arith.constant 0 : i32
    %c0_i32_0 = arith.constant 0 : i32
    %c0_i32_1 = arith.constant 0 : i32
    return %c0_i32, %c0_i32_0 : i32, i32
  }
  func.func @transform_4(%arg0: i32, %arg1: i32) -> (i32, i32) {
    %c0_i32 = arith.constant 0 : i32
    %c0_i32_0 = arith.constant 0 : i32
    %c0_i32_1 = arith.constant 0 : i32
    return %c0_i32, %c0_i32_0 : i32, i32
  }
  func.func @transform_5(%arg0: i32, %arg1: i32) -> (i32, i32, i32) {
    %c0_i32 = arith.constant 0 : i32
    %c0_i32_0 = arith.constant 0 : i32
    return %arg0, %arg1, %c0_i32 : i32, i32, i32
  }
}

module attributes {stable_mosaic.version = 11 : i64} {
  func.func @_conv_kernel(%arg0: i32, %arg1: i32, %arg2: memref<1x16x8xf32, #tpu.memory_space<vmem>>, %arg3: memref<1x16x8xf32, #tpu.memory_space<vmem>>, %arg4: memref<1x16x8xf32, #tpu.memory_space<vmem>>, %arg5: memref<24x8xf32, #tpu.memory_space<vmem>>, %arg6: memref<1x8xf32, #tpu.memory_space<vmem>>, %arg7: memref<1x16x8xf32, #tpu.memory_space<vmem>>, %arg8: memref<48x8xf32, #tpu.memory_space<vmem>>) attributes {dimension_semantics = [#tpu.dimension_semantics<parallel>, #tpu.dimension_semantics<parallel>], iteration_bounds = array<i64: 2, 1>, scalar_prefetch = 0 : i64, scratch_operands = 1 : i64, tpu.core_type = #tpu.core_type<tc>, window_params = [{transform_indices = @transform_0, window_bounds = array<i64: 1, 16, 8>}, {transform_indices = @transform_1, window_bounds = array<i64: 1, 16, 8>}, {transform_indices = @transform_2, window_bounds = array<i64: 1, 16, 8>}, {pipeline_mode = #tpu.pipeline_mode<synchronous>, transform_indices = @transform_3, window_bounds = array<i64: 24, 8>}, {pipeline_mode = #tpu.pipeline_mode<synchronous>, transform_indices = @transform_4, window_bounds = array<i64: 1, 8>}, {transform_indices = @transform_5, window_bounds = array<i64: 1, 16, 8>}]} {
    %c0 = arith.constant 0 : index
    %c0_0 = arith.constant 0 : index
    %c0_1 = arith.constant 0 : index
    %0 = vector.load %arg2[%c0, %c0_0, %c0_1] : memref<1x16x8xf32, #tpu.memory_space<vmem>>, vector<1x16x8xf32>
    %1 = vector.shape_cast %0 : vector<1x16x8xf32> to vector<16x8xf32>
    %c-1_i32 = arith.constant -1 : i32
    %2 = arith.addi %arg1, %c-1_i32 : i32
    %c16_i32 = arith.constant 16 : i32
    %3 = arith.muli %2, %c16_i32 : i32
    %4 = tpu.iota {dimensions = array<i32: 0>} : vector<16x1xi32>
    %5 = vector.broadcast %3 : i32 to vector<16x1xi32>
    %6 = arith.addi %5, %4 : vector<16x1xi32>
    %c0_i32 = arith.constant 0 : i32
    %7 = vector.broadcast %c0_i32 : i32 to vector<16x1xi32>
    %8 = arith.cmpi sge, %6, %7 : vector<16x1xi32>
    %c16_i32_2 = arith.constant 16 : i32
    %9 = vector.broadcast %c16_i32_2 : i32 to vector<16x1xi32>
    %10 = arith.cmpi slt, %6, %9 : vector<16x1xi32>
    %11 = arith.andi %8, %10 : vector<16x1xi1>
    %12 = arith.extui %11 : vector<16x1xi1> to vector<16x1xi32>
    %13 = arith.sitofp %12 : vector<16x1xi32> to vector<16x1xf32>
    %14 = vector.broadcast %13 : vector<16x1xf32> to vector<16x8xf32>
    %15 = arith.mulf %1, %14 : vector<16x8xf32>
    %cst = arith.constant 0.000000e+00 : f32
    %16 = vector.broadcast %cst : f32 to vector<16x8xf32>
    %17 = arith.cmpf oge, %15, %16 : vector<16x8xf32>
    %cst_3 = arith.constant 1.000000e-01 : f32
    %18 = vector.broadcast %cst_3 : f32 to vector<16x8xf32>
    %19 = arith.mulf %18, %15 : vector<16x8xf32>
    %20 = arith.select %17, %15, %19 : vector<16x8xi1>, vector<16x8xf32>
    %c0_4 = arith.constant 0 : index
    %c0_5 = arith.constant 0 : index
    %21 = vector.load %arg8[%c0_4, %c0_5] : memref<48x8xf32, #tpu.memory_space<vmem>>, vector<16x8xf32>
    tpu.vector_store %arg8[%c0_4, %c0_5], %20 {strides = array<i32>} : memref<48x8xf32, #tpu.memory_space<vmem>>, vector<16x8xf32>,
    %c0_6 = arith.constant 0 : index
    %c0_7 = arith.constant 0 : index
    %c0_8 = arith.constant 0 : index
    %22 = vector.load %arg3[%c0_6, %c0_7, %c0_8] : memref<1x16x8xf32, #tpu.memory_space<vmem>>, vector<1x16x8xf32>
    %23 = vector.shape_cast %22 : vector<1x16x8xf32> to vector<16x8xf32>
    %c0_i32_9 = arith.constant 0 : i32
    %24 = arith.addi %arg1, %c0_i32_9 : i32
    %c16_i32_10 = arith.constant 16 : i32
    %25 = arith.muli %24, %c16_i32_10 : i32
    %26 = tpu.iota {dimensions = array<i32: 0>} : vector<16x1xi32>
    %27 = vector.broadcast %25 : i32 to vector<16x1xi32>
    %28 = arith.addi %27, %26 : vector<16x1xi32>
    %c0_i32_11 = arith.constant 0 : i32
    %29 = vector.broadcast %c0_i32_11 : i32 to vector<16x1xi32>
    %30 = arith.cmpi sge, %28, %29 : vector<16x1xi32>
    %c16_i32_12 = arith.constant 16 : i32
    %31 = vector.broadcast %c16_i32_12 : i32 to vector<16x1xi32>
    %32 = arith.cmpi slt, %28, %31 : vector<16x1xi32>
    %33 = arith.andi %30, %32 : vector<16x1xi1>
    %34 = arith.extui %33 : vector<16x1xi1> to vector<16x1xi32>
    %35 = arith.sitofp %34 : vector<16x1xi32> to vector<16x1xf32>
    %36 = vector.broadcast %35 : vector<16x1xf32> to vector<16x8xf32>
    %37 = arith.mulf %23, %36 : vector<16x8xf32>
    %cst_13 = arith.constant 0.000000e+00 : f32
    %38 = vector.broadcast %cst_13 : f32 to vector<16x8xf32>
    %39 = arith.cmpf oge, %37, %38 : vector<16x8xf32>
    %cst_14 = arith.constant 1.000000e-01 : f32
    %40 = vector.broadcast %cst_14 : f32 to vector<16x8xf32>
    %41 = arith.mulf %40, %37 : vector<16x8xf32>
    %42 = arith.select %39, %37, %41 : vector<16x8xi1>, vector<16x8xf32>
    %c16 = arith.constant 16 : index
    %c0_15 = arith.constant 0 : index
    %43 = vector.load %arg8[%c16, %c0_15] : memref<48x8xf32, #tpu.memory_space<vmem>>, vector<16x8xf32>
    tpu.vector_store %arg8[%c16, %c0_15], %42 {strides = array<i32>} : memref<48x8xf32, #tpu.memory_space<vmem>>, vector<16x8xf32>,
    %c0_16 = arith.constant 0 : index
    %c0_17 = arith.constant 0 : index
    %c0_18 = arith.constant 0 : index
    %44 = vector.load %arg4[%c0_16, %c0_17, %c0_18] : memref<1x16x8xf32, #tpu.memory_space<vmem>>, vector<1x16x8xf32>
    %45 = vector.shape_cast %44 : vector<1x16x8xf32> to vector<16x8xf32>
    %c1_i32 = arith.constant 1 : i32
    %46 = arith.addi %arg1, %c1_i32 : i32
    %c16_i32_19 = arith.constant 16 : i32
    %47 = arith.muli %46, %c16_i32_19 : i32
    %48 = tpu.iota {dimensions = array<i32: 0>} : vector<16x1xi32>
    %49 = vector.broadcast %47 : i32 to vector<16x1xi32>
    %50 = arith.addi %49, %48 : vector<16x1xi32>
    %c0_i32_20 = arith.constant 0 : i32
    %51 = vector.broadcast %c0_i32_20 : i32 to vector<16x1xi32>
    %52 = arith.cmpi sge, %50, %51 : vector<16x1xi32>
    %c16_i32_21 = arith.constant 16 : i32
    %53 = vector.broadcast %c16_i32_21 : i32 to vector<16x1xi32>
    %54 = arith.cmpi slt, %50, %53 : vector<16x1xi32>
    %55 = arith.andi %52, %54 : vector<16x1xi1>
    %56 = arith.extui %55 : vector<16x1xi1> to vector<16x1xi32>
    %57 = arith.sitofp %56 : vector<16x1xi32> to vector<16x1xf32>
    %58 = vector.broadcast %57 : vector<16x1xf32> to vector<16x8xf32>
    %59 = arith.mulf %45, %58 : vector<16x8xf32>
    %cst_22 = arith.constant 0.000000e+00 : f32
    %60 = vector.broadcast %cst_22 : f32 to vector<16x8xf32>
    %61 = arith.cmpf oge, %59, %60 : vector<16x8xf32>
    %cst_23 = arith.constant 1.000000e-01 : f32
    %62 = vector.broadcast %cst_23 : f32 to vector<16x8xf32>
    %63 = arith.mulf %62, %59 : vector<16x8xf32>
    %64 = arith.select %61, %59, %63 : vector<16x8xi1>, vector<16x8xf32>
    %c32 = arith.constant 32 : index
    %c0_24 = arith.constant 0 : index
    %65 = vector.load %arg8[%c32, %c0_24] : memref<48x8xf32, #tpu.memory_space<vmem>>, vector<16x8xf32>
    tpu.vector_store %arg8[%c32, %c0_24], %64 {strides = array<i32>} : memref<48x8xf32, #tpu.memory_space<vmem>>, vector<16x8xf32>,
    %c11 = arith.constant 11 : index
    %c0_25 = arith.constant 0 : index
    %66 = vector.load %arg8[%c11, %c0_25] : memref<48x8xf32, #tpu.memory_space<vmem>>, vector<16x8xf32>
    %c16_26 = arith.constant 16 : index
    %c0_27 = arith.constant 0 : index
    %67 = vector.load %arg8[%c16_26, %c0_27] : memref<48x8xf32, #tpu.memory_space<vmem>>, vector<16x8xf32>
    %c21 = arith.constant 21 : index
    %c0_28 = arith.constant 0 : index
    %68 = vector.load %arg8[%c21, %c0_28] : memref<48x8xf32, #tpu.memory_space<vmem>>, vector<16x8xf32>
    %69 = tpu.concatenate %66, %67, %68 in 1 : vector<16x8xf32>, vector<16x8xf32>, vector<16x8xf32> -> vector<16x24xf32>
    %c0_29 = arith.constant 0 : index
    %c0_30 = arith.constant 0 : index
    %70 = vector.load %arg5[%c0_29, %c0_30] : memref<24x8xf32, #tpu.memory_space<vmem>>, vector<24x8xf32>
    %cst_31 = arith.constant dense<0.000000e+00> : vector<16x8xf32>
    %71 = tpu.matmul %69, %70, %cst_31 {dimension_numbers = #tpu.dot_dimension_numbers<[1], [0], [0], [1], [0, 0, 1, 1], [], []>} : vector<16x24xf32>, vector<24x8xf32>, vector<16x8xf32> -> vector<16x8xf32>
    %c0_32 = arith.constant 0 : index
    %c0_33 = arith.constant 0 : index
    %72 = vector.load %arg6[%c0_32, %c0_33] : memref<1x8xf32, #tpu.memory_space<vmem>>, vector<1x8xf32>
    %73 = vector.broadcast %72 : vector<1x8xf32> to vector<16x8xf32>
    %74 = arith.addf %71, %73 : vector<16x8xf32>
    %c0_34 = arith.constant 0 : index
    %c0_35 = arith.constant 0 : index
    %c0_36 = arith.constant 0 : index
    %75 = vector.load %arg7[%c0_34, %c0_35, %c0_36] : memref<1x16x8xf32, #tpu.memory_space<vmem>>, vector<1x16x8xf32>
    %76 = vector.shape_cast %75 : vector<1x16x8xf32> to vector<16x8xf32>
    %77 = vector.shape_cast %74 : vector<16x8xf32> to vector<1x16x8xf32>
    tpu.vector_store %arg7[%c0_34, %c0_35, %c0_36], %77 {strides = array<i32>} : memref<1x16x8xf32, #tpu.memory_space<vmem>>, vector<1x16x8xf32>,
    return
  }
  func.func @transform_0(%arg0: i32, %arg1: i32) -> (i32, i32, i32) {
    %c1_i32 = arith.constant 1 : i32
    %0 = arith.subi %arg1, %c1_i32 : i32
    %c0_i32 = arith.constant 0 : i32
    %1 = arith.maxsi %0, %c0_i32 : i32
    %c0_i32_0 = arith.constant 0 : i32
    %c0_i32_1 = arith.constant 0 : i32
    return %arg0, %1, %c0_i32_0 : i32, i32, i32
  }
  func.func @transform_1(%arg0: i32, %arg1: i32) -> (i32, i32, i32) {
    %c0_i32 = arith.constant 0 : i32
    %c0_i32_0 = arith.constant 0 : i32
    return %arg0, %arg1, %c0_i32 : i32, i32, i32
  }
  func.func @transform_2(%arg0: i32, %arg1: i32) -> (i32, i32, i32) {
    %c1_i32 = arith.constant 1 : i32
    %0 = arith.addi %arg1, %c1_i32 : i32
    %c0_i32 = arith.constant 0 : i32
    %1 = arith.minsi %0, %c0_i32 : i32
    %c0_i32_0 = arith.constant 0 : i32
    %c0_i32_1 = arith.constant 0 : i32
    return %arg0, %1, %c0_i32_0 : i32, i32, i32
  }
  func.func @transform_3(%arg0: i32, %arg1: i32) -> (i32, i32) {
    %c0_i32 = arith.constant 0 : i32
    %c0_i32_0 = arith.constant 0 : i32
    %c0_i32_1 = arith.constant 0 : i32
    return %c0_i32, %c0_i32_0 : i32, i32
  }
  func.func @transform_4(%arg0: i32, %arg1: i32) -> (i32, i32) {
    %c0_i32 = arith.constant 0 : i32
    %c0_i32_0 = arith.constant 0 : i32
    %c0_i32_1 = arith.constant 0 : i32
    return %c0_i32, %c0_i32_0 : i32, i32
  }
  func.func @transform_5(%arg0: i32, %arg1: i32) -> (i32, i32, i32) {
    %c0_i32 = arith.constant 0 : i32
    %c0_i32_0 = arith.constant 0 : i32
    return %arg0, %arg1, %c0_i32 : i32, i32, i32
  }
}

module attributes {stable_mosaic.version = 11 : i64} {
  func.func @_conv_kernel(%arg0: i32, %arg1: i32, %arg2: memref<1x16x8xf32, #tpu.memory_space<vmem>>, %arg3: memref<1x16x8xf32, #tpu.memory_space<vmem>>, %arg4: memref<1x16x8xf32, #tpu.memory_space<vmem>>, %arg5: memref<24x8xf32, #tpu.memory_space<vmem>>, %arg6: memref<1x8xf32, #tpu.memory_space<vmem>>, %arg7: memref<1x16x8xf32, #tpu.memory_space<vmem>>, %arg8: memref<48x8xf32, #tpu.memory_space<vmem>>) attributes {dimension_semantics = [#tpu.dimension_semantics<parallel>, #tpu.dimension_semantics<parallel>], iteration_bounds = array<i64: 2, 1>, scalar_prefetch = 0 : i64, scratch_operands = 1 : i64, tpu.core_type = #tpu.core_type<tc>, window_params = [{transform_indices = @transform_0, window_bounds = array<i64: 1, 16, 8>}, {transform_indices = @transform_1, window_bounds = array<i64: 1, 16, 8>}, {transform_indices = @transform_2, window_bounds = array<i64: 1, 16, 8>}, {pipeline_mode = #tpu.pipeline_mode<synchronous>, transform_indices = @transform_3, window_bounds = array<i64: 24, 8>}, {pipeline_mode = #tpu.pipeline_mode<synchronous>, transform_indices = @transform_4, window_bounds = array<i64: 1, 8>}, {transform_indices = @transform_5, window_bounds = array<i64: 1, 16, 8>}]} {
    %c0 = arith.constant 0 : index
    %c0_0 = arith.constant 0 : index
    %c0_1 = arith.constant 0 : index
    %0 = vector.load %arg2[%c0, %c0_0, %c0_1] : memref<1x16x8xf32, #tpu.memory_space<vmem>>, vector<1x16x8xf32>
    %1 = vector.shape_cast %0 : vector<1x16x8xf32> to vector<16x8xf32>
    %c-1_i32 = arith.constant -1 : i32
    %2 = arith.addi %arg1, %c-1_i32 : i32
    %c16_i32 = arith.constant 16 : i32
    %3 = arith.muli %2, %c16_i32 : i32
    %4 = tpu.iota {dimensions = array<i32: 0>} : vector<16x1xi32>
    %5 = vector.broadcast %3 : i32 to vector<16x1xi32>
    %6 = arith.addi %5, %4 : vector<16x1xi32>
    %c0_i32 = arith.constant 0 : i32
    %7 = vector.broadcast %c0_i32 : i32 to vector<16x1xi32>
    %8 = arith.cmpi sge, %6, %7 : vector<16x1xi32>
    %c16_i32_2 = arith.constant 16 : i32
    %9 = vector.broadcast %c16_i32_2 : i32 to vector<16x1xi32>
    %10 = arith.cmpi slt, %6, %9 : vector<16x1xi32>
    %11 = arith.andi %8, %10 : vector<16x1xi1>
    %12 = arith.extui %11 : vector<16x1xi1> to vector<16x1xi32>
    %13 = arith.sitofp %12 : vector<16x1xi32> to vector<16x1xf32>
    %14 = vector.broadcast %13 : vector<16x1xf32> to vector<16x8xf32>
    %15 = arith.mulf %1, %14 : vector<16x8xf32>
    %cst = arith.constant 0.000000e+00 : f32
    %16 = vector.broadcast %cst : f32 to vector<16x8xf32>
    %17 = arith.cmpf oge, %15, %16 : vector<16x8xf32>
    %cst_3 = arith.constant 1.000000e-01 : f32
    %18 = vector.broadcast %cst_3 : f32 to vector<16x8xf32>
    %19 = arith.mulf %18, %15 : vector<16x8xf32>
    %20 = arith.select %17, %15, %19 : vector<16x8xi1>, vector<16x8xf32>
    %c0_4 = arith.constant 0 : index
    %c0_5 = arith.constant 0 : index
    %21 = vector.load %arg8[%c0_4, %c0_5] : memref<48x8xf32, #tpu.memory_space<vmem>>, vector<16x8xf32>
    tpu.vector_store %arg8[%c0_4, %c0_5], %20 {strides = array<i32>} : memref<48x8xf32, #tpu.memory_space<vmem>>, vector<16x8xf32>,
    %c0_6 = arith.constant 0 : index
    %c0_7 = arith.constant 0 : index
    %c0_8 = arith.constant 0 : index
    %22 = vector.load %arg3[%c0_6, %c0_7, %c0_8] : memref<1x16x8xf32, #tpu.memory_space<vmem>>, vector<1x16x8xf32>
    %23 = vector.shape_cast %22 : vector<1x16x8xf32> to vector<16x8xf32>
    %c0_i32_9 = arith.constant 0 : i32
    %24 = arith.addi %arg1, %c0_i32_9 : i32
    %c16_i32_10 = arith.constant 16 : i32
    %25 = arith.muli %24, %c16_i32_10 : i32
    %26 = tpu.iota {dimensions = array<i32: 0>} : vector<16x1xi32>
    %27 = vector.broadcast %25 : i32 to vector<16x1xi32>
    %28 = arith.addi %27, %26 : vector<16x1xi32>
    %c0_i32_11 = arith.constant 0 : i32
    %29 = vector.broadcast %c0_i32_11 : i32 to vector<16x1xi32>
    %30 = arith.cmpi sge, %28, %29 : vector<16x1xi32>
    %c16_i32_12 = arith.constant 16 : i32
    %31 = vector.broadcast %c16_i32_12 : i32 to vector<16x1xi32>
    %32 = arith.cmpi slt, %28, %31 : vector<16x1xi32>
    %33 = arith.andi %30, %32 : vector<16x1xi1>
    %34 = arith.extui %33 : vector<16x1xi1> to vector<16x1xi32>
    %35 = arith.sitofp %34 : vector<16x1xi32> to vector<16x1xf32>
    %36 = vector.broadcast %35 : vector<16x1xf32> to vector<16x8xf32>
    %37 = arith.mulf %23, %36 : vector<16x8xf32>
    %cst_13 = arith.constant 0.000000e+00 : f32
    %38 = vector.broadcast %cst_13 : f32 to vector<16x8xf32>
    %39 = arith.cmpf oge, %37, %38 : vector<16x8xf32>
    %cst_14 = arith.constant 1.000000e-01 : f32
    %40 = vector.broadcast %cst_14 : f32 to vector<16x8xf32>
    %41 = arith.mulf %40, %37 : vector<16x8xf32>
    %42 = arith.select %39, %37, %41 : vector<16x8xi1>, vector<16x8xf32>
    %c16 = arith.constant 16 : index
    %c0_15 = arith.constant 0 : index
    %43 = vector.load %arg8[%c16, %c0_15] : memref<48x8xf32, #tpu.memory_space<vmem>>, vector<16x8xf32>
    tpu.vector_store %arg8[%c16, %c0_15], %42 {strides = array<i32>} : memref<48x8xf32, #tpu.memory_space<vmem>>, vector<16x8xf32>,
    %c0_16 = arith.constant 0 : index
    %c0_17 = arith.constant 0 : index
    %c0_18 = arith.constant 0 : index
    %44 = vector.load %arg4[%c0_16, %c0_17, %c0_18] : memref<1x16x8xf32, #tpu.memory_space<vmem>>, vector<1x16x8xf32>
    %45 = vector.shape_cast %44 : vector<1x16x8xf32> to vector<16x8xf32>
    %c1_i32 = arith.constant 1 : i32
    %46 = arith.addi %arg1, %c1_i32 : i32
    %c16_i32_19 = arith.constant 16 : i32
    %47 = arith.muli %46, %c16_i32_19 : i32
    %48 = tpu.iota {dimensions = array<i32: 0>} : vector<16x1xi32>
    %49 = vector.broadcast %47 : i32 to vector<16x1xi32>
    %50 = arith.addi %49, %48 : vector<16x1xi32>
    %c0_i32_20 = arith.constant 0 : i32
    %51 = vector.broadcast %c0_i32_20 : i32 to vector<16x1xi32>
    %52 = arith.cmpi sge, %50, %51 : vector<16x1xi32>
    %c16_i32_21 = arith.constant 16 : i32
    %53 = vector.broadcast %c16_i32_21 : i32 to vector<16x1xi32>
    %54 = arith.cmpi slt, %50, %53 : vector<16x1xi32>
    %55 = arith.andi %52, %54 : vector<16x1xi1>
    %56 = arith.extui %55 : vector<16x1xi1> to vector<16x1xi32>
    %57 = arith.sitofp %56 : vector<16x1xi32> to vector<16x1xf32>
    %58 = vector.broadcast %57 : vector<16x1xf32> to vector<16x8xf32>
    %59 = arith.mulf %45, %58 : vector<16x8xf32>
    %cst_22 = arith.constant 0.000000e+00 : f32
    %60 = vector.broadcast %cst_22 : f32 to vector<16x8xf32>
    %61 = arith.cmpf oge, %59, %60 : vector<16x8xf32>
    %cst_23 = arith.constant 1.000000e-01 : f32
    %62 = vector.broadcast %cst_23 : f32 to vector<16x8xf32>
    %63 = arith.mulf %62, %59 : vector<16x8xf32>
    %64 = arith.select %61, %59, %63 : vector<16x8xi1>, vector<16x8xf32>
    %c32 = arith.constant 32 : index
    %c0_24 = arith.constant 0 : index
    %65 = vector.load %arg8[%c32, %c0_24] : memref<48x8xf32, #tpu.memory_space<vmem>>, vector<16x8xf32>
    tpu.vector_store %arg8[%c32, %c0_24], %64 {strides = array<i32>} : memref<48x8xf32, #tpu.memory_space<vmem>>, vector<16x8xf32>,
    %c13 = arith.constant 13 : index
    %c0_25 = arith.constant 0 : index
    %66 = vector.load %arg8[%c13, %c0_25] : memref<48x8xf32, #tpu.memory_space<vmem>>, vector<16x8xf32>
    %c16_26 = arith.constant 16 : index
    %c0_27 = arith.constant 0 : index
    %67 = vector.load %arg8[%c16_26, %c0_27] : memref<48x8xf32, #tpu.memory_space<vmem>>, vector<16x8xf32>
    %c19 = arith.constant 19 : index
    %c0_28 = arith.constant 0 : index
    %68 = vector.load %arg8[%c19, %c0_28] : memref<48x8xf32, #tpu.memory_space<vmem>>, vector<16x8xf32>
    %69 = tpu.concatenate %66, %67, %68 in 1 : vector<16x8xf32>, vector<16x8xf32>, vector<16x8xf32> -> vector<16x24xf32>
    %c0_29 = arith.constant 0 : index
    %c0_30 = arith.constant 0 : index
    %70 = vector.load %arg5[%c0_29, %c0_30] : memref<24x8xf32, #tpu.memory_space<vmem>>, vector<24x8xf32>
    %cst_31 = arith.constant dense<0.000000e+00> : vector<16x8xf32>
    %71 = tpu.matmul %69, %70, %cst_31 {dimension_numbers = #tpu.dot_dimension_numbers<[1], [0], [0], [1], [0, 0, 1, 1], [], []>} : vector<16x24xf32>, vector<24x8xf32>, vector<16x8xf32> -> vector<16x8xf32>
    %c0_32 = arith.constant 0 : index
    %c0_33 = arith.constant 0 : index
    %72 = vector.load %arg6[%c0_32, %c0_33] : memref<1x8xf32, #tpu.memory_space<vmem>>, vector<1x8xf32>
    %73 = vector.broadcast %72 : vector<1x8xf32> to vector<16x8xf32>
    %74 = arith.addf %71, %73 : vector<16x8xf32>
    %c0_34 = arith.constant 0 : index
    %c0_35 = arith.constant 0 : index
    %c0_36 = arith.constant 0 : index
    %75 = vector.load %arg7[%c0_34, %c0_35, %c0_36] : memref<1x16x8xf32, #tpu.memory_space<vmem>>, vector<1x16x8xf32>
    %76 = vector.shape_cast %75 : vector<1x16x8xf32> to vector<16x8xf32>
    %77 = vector.shape_cast %74 : vector<16x8xf32> to vector<1x16x8xf32>
    tpu.vector_store %arg7[%c0_34, %c0_35, %c0_36], %77 {strides = array<i32>} : memref<1x16x8xf32, #tpu.memory_space<vmem>>, vector<1x16x8xf32>,
    return
  }
  func.func @transform_0(%arg0: i32, %arg1: i32) -> (i32, i32, i32) {
    %c1_i32 = arith.constant 1 : i32
    %0 = arith.subi %arg1, %c1_i32 : i32
    %c0_i32 = arith.constant 0 : i32
    %1 = arith.maxsi %0, %c0_i32 : i32
    %c0_i32_0 = arith.constant 0 : i32
    %c0_i32_1 = arith.constant 0 : i32
    return %arg0, %1, %c0_i32_0 : i32, i32, i32
  }
  func.func @transform_1(%arg0: i32, %arg1: i32) -> (i32, i32, i32) {
    %c0_i32 = arith.constant 0 : i32
    %c0_i32_0 = arith.constant 0 : i32
    return %arg0, %arg1, %c0_i32 : i32, i32, i32
  }
  func.func @transform_2(%arg0: i32, %arg1: i32) -> (i32, i32, i32) {
    %c1_i32 = arith.constant 1 : i32
    %0 = arith.addi %arg1, %c1_i32 : i32
    %c0_i32 = arith.constant 0 : i32
    %1 = arith.minsi %0, %c0_i32 : i32
    %c0_i32_0 = arith.constant 0 : i32
    %c0_i32_1 = arith.constant 0 : i32
    return %arg0, %1, %c0_i32_0 : i32, i32, i32
  }
  func.func @transform_3(%arg0: i32, %arg1: i32) -> (i32, i32) {
    %c0_i32 = arith.constant 0 : i32
    %c0_i32_0 = arith.constant 0 : i32
    %c0_i32_1 = arith.constant 0 : i32
    return %c0_i32, %c0_i32_0 : i32, i32
  }
  func.func @transform_4(%arg0: i32, %arg1: i32) -> (i32, i32) {
    %c0_i32 = arith.constant 0 : i32
    %c0_i32_0 = arith.constant 0 : i32
    %c0_i32_1 = arith.constant 0 : i32
    return %c0_i32, %c0_i32_0 : i32, i32
  }
  func.func @transform_5(%arg0: i32, %arg1: i32) -> (i32, i32, i32) {
    %c0_i32 = arith.constant 0 : i32
    %c0_i32_0 = arith.constant 0 : i32
    return %arg0, %arg1, %c0_i32 : i32, i32, i32
  }
}

module attributes {stable_mosaic.version = 11 : i64} {
  func.func @_conv_cf_kernel(%arg0: i32, %arg1: i32, %arg2: memref<1x16x8xf32, #tpu.memory_space<vmem>>, %arg3: memref<1x16x8xf32, #tpu.memory_space<vmem>>, %arg4: memref<1x16x8xf32, #tpu.memory_space<vmem>>, %arg5: memref<1x56xf32, #tpu.memory_space<vmem>>, %arg6: memref<1x1x16xf32, #tpu.memory_space<vmem>>, %arg7: memref<48x8xf32, #tpu.memory_space<vmem>>) attributes {dimension_semantics = [#tpu.dimension_semantics<parallel>, #tpu.dimension_semantics<parallel>], iteration_bounds = array<i64: 2, 1>, scalar_prefetch = 0 : i64, scratch_operands = 1 : i64, tpu.core_type = #tpu.core_type<tc>, window_params = [{transform_indices = @transform_0, window_bounds = array<i64: 1, 16, 8>}, {transform_indices = @transform_1, window_bounds = array<i64: 1, 16, 8>}, {transform_indices = @transform_2, window_bounds = array<i64: 1, 16, 8>}, {pipeline_mode = #tpu.pipeline_mode<synchronous>, transform_indices = @transform_3, window_bounds = array<i64: 1, 56>}, {transform_indices = @transform_4, window_bounds = array<i64: 1, 1, 16>}]} {
    %c0 = arith.constant 0 : index
    %c0_0 = arith.constant 0 : index
    %c0_1 = arith.constant 0 : index
    %0 = vector.load %arg2[%c0, %c0_0, %c0_1] : memref<1x16x8xf32, #tpu.memory_space<vmem>>, vector<1x16x8xf32>
    %1 = vector.shape_cast %0 : vector<1x16x8xf32> to vector<16x8xf32>
    %c-1_i32 = arith.constant -1 : i32
    %2 = arith.addi %arg1, %c-1_i32 : i32
    %c16_i32 = arith.constant 16 : i32
    %3 = arith.muli %2, %c16_i32 : i32
    %4 = tpu.iota {dimensions = array<i32: 0>} : vector<16x1xi32>
    %5 = vector.broadcast %3 : i32 to vector<16x1xi32>
    %6 = arith.addi %5, %4 : vector<16x1xi32>
    %c0_i32 = arith.constant 0 : i32
    %7 = vector.broadcast %c0_i32 : i32 to vector<16x1xi32>
    %8 = arith.cmpi sge, %6, %7 : vector<16x1xi32>
    %c16_i32_2 = arith.constant 16 : i32
    %9 = vector.broadcast %c16_i32_2 : i32 to vector<16x1xi32>
    %10 = arith.cmpi slt, %6, %9 : vector<16x1xi32>
    %11 = arith.andi %8, %10 : vector<16x1xi1>
    %12 = arith.extui %11 : vector<16x1xi1> to vector<16x1xi32>
    %13 = arith.sitofp %12 : vector<16x1xi32> to vector<16x1xf32>
    %14 = vector.broadcast %13 : vector<16x1xf32> to vector<16x8xf32>
    %15 = arith.mulf %1, %14 : vector<16x8xf32>
    %cst = arith.constant 0.000000e+00 : f32
    %16 = vector.broadcast %cst : f32 to vector<16x8xf32>
    %17 = arith.cmpf oge, %15, %16 : vector<16x8xf32>
    %cst_3 = arith.constant 0.00999999977 : f32
    %18 = vector.broadcast %cst_3 : f32 to vector<16x8xf32>
    %19 = arith.mulf %18, %15 : vector<16x8xf32>
    %20 = arith.select %17, %15, %19 : vector<16x8xi1>, vector<16x8xf32>
    %c0_4 = arith.constant 0 : index
    %c0_5 = arith.constant 0 : index
    %21 = vector.load %arg7[%c0_4, %c0_5] : memref<48x8xf32, #tpu.memory_space<vmem>>, vector<16x8xf32>
    tpu.vector_store %arg7[%c0_4, %c0_5], %20 {strides = array<i32>} : memref<48x8xf32, #tpu.memory_space<vmem>>, vector<16x8xf32>,
    %c0_6 = arith.constant 0 : index
    %c0_7 = arith.constant 0 : index
    %c0_8 = arith.constant 0 : index
    %22 = vector.load %arg3[%c0_6, %c0_7, %c0_8] : memref<1x16x8xf32, #tpu.memory_space<vmem>>, vector<1x16x8xf32>
    %23 = vector.shape_cast %22 : vector<1x16x8xf32> to vector<16x8xf32>
    %c0_i32_9 = arith.constant 0 : i32
    %24 = arith.addi %arg1, %c0_i32_9 : i32
    %c16_i32_10 = arith.constant 16 : i32
    %25 = arith.muli %24, %c16_i32_10 : i32
    %26 = tpu.iota {dimensions = array<i32: 0>} : vector<16x1xi32>
    %27 = vector.broadcast %25 : i32 to vector<16x1xi32>
    %28 = arith.addi %27, %26 : vector<16x1xi32>
    %c0_i32_11 = arith.constant 0 : i32
    %29 = vector.broadcast %c0_i32_11 : i32 to vector<16x1xi32>
    %30 = arith.cmpi sge, %28, %29 : vector<16x1xi32>
    %c16_i32_12 = arith.constant 16 : i32
    %31 = vector.broadcast %c16_i32_12 : i32 to vector<16x1xi32>
    %32 = arith.cmpi slt, %28, %31 : vector<16x1xi32>
    %33 = arith.andi %30, %32 : vector<16x1xi1>
    %34 = arith.extui %33 : vector<16x1xi1> to vector<16x1xi32>
    %35 = arith.sitofp %34 : vector<16x1xi32> to vector<16x1xf32>
    %36 = vector.broadcast %35 : vector<16x1xf32> to vector<16x8xf32>
    %37 = arith.mulf %23, %36 : vector<16x8xf32>
    %cst_13 = arith.constant 0.000000e+00 : f32
    %38 = vector.broadcast %cst_13 : f32 to vector<16x8xf32>
    %39 = arith.cmpf oge, %37, %38 : vector<16x8xf32>
    %cst_14 = arith.constant 0.00999999977 : f32
    %40 = vector.broadcast %cst_14 : f32 to vector<16x8xf32>
    %41 = arith.mulf %40, %37 : vector<16x8xf32>
    %42 = arith.select %39, %37, %41 : vector<16x8xi1>, vector<16x8xf32>
    %c16 = arith.constant 16 : index
    %c0_15 = arith.constant 0 : index
    %43 = vector.load %arg7[%c16, %c0_15] : memref<48x8xf32, #tpu.memory_space<vmem>>, vector<16x8xf32>
    tpu.vector_store %arg7[%c16, %c0_15], %42 {strides = array<i32>} : memref<48x8xf32, #tpu.memory_space<vmem>>, vector<16x8xf32>,
    %c0_16 = arith.constant 0 : index
    %c0_17 = arith.constant 0 : index
    %c0_18 = arith.constant 0 : index
    %44 = vector.load %arg4[%c0_16, %c0_17, %c0_18] : memref<1x16x8xf32, #tpu.memory_space<vmem>>, vector<1x16x8xf32>
    %45 = vector.shape_cast %44 : vector<1x16x8xf32> to vector<16x8xf32>
    %c1_i32 = arith.constant 1 : i32
    %46 = arith.addi %arg1, %c1_i32 : i32
    %c16_i32_19 = arith.constant 16 : i32
    %47 = arith.muli %46, %c16_i32_19 : i32
    %48 = tpu.iota {dimensions = array<i32: 0>} : vector<16x1xi32>
    %49 = vector.broadcast %47 : i32 to vector<16x1xi32>
    %50 = arith.addi %49, %48 : vector<16x1xi32>
    %c0_i32_20 = arith.constant 0 : i32
    %51 = vector.broadcast %c0_i32_20 : i32 to vector<16x1xi32>
    %52 = arith.cmpi sge, %50, %51 : vector<16x1xi32>
    %c16_i32_21 = arith.constant 16 : i32
    %53 = vector.broadcast %c16_i32_21 : i32 to vector<16x1xi32>
    %54 = arith.cmpi slt, %50, %53 : vector<16x1xi32>
    %55 = arith.andi %52, %54 : vector<16x1xi1>
    %56 = arith.extui %55 : vector<16x1xi1> to vector<16x1xi32>
    %57 = arith.sitofp %56 : vector<16x1xi32> to vector<16x1xf32>
    %58 = vector.broadcast %57 : vector<16x1xf32> to vector<16x8xf32>
    %59 = arith.mulf %45, %58 : vector<16x8xf32>
    %cst_22 = arith.constant 0.000000e+00 : f32
    %60 = vector.broadcast %cst_22 : f32 to vector<16x8xf32>
    %61 = arith.cmpf oge, %59, %60 : vector<16x8xf32>
    %cst_23 = arith.constant 0.00999999977 : f32
    %62 = vector.broadcast %cst_23 : f32 to vector<16x8xf32>
    %63 = arith.mulf %62, %59 : vector<16x8xf32>
    %64 = arith.select %61, %59, %63 : vector<16x8xi1>, vector<16x8xf32>
    %c32 = arith.constant 32 : index
    %c0_24 = arith.constant 0 : index
    %65 = vector.load %arg7[%c32, %c0_24] : memref<48x8xf32, #tpu.memory_space<vmem>>, vector<16x8xf32>
    tpu.vector_store %arg7[%c32, %c0_24], %64 {strides = array<i32>} : memref<48x8xf32, #tpu.memory_space<vmem>>, vector<16x8xf32>,
    %c13 = arith.constant 13 : index
    %c0_25 = arith.constant 0 : index
    %66 = vector.load %arg7[%c13, %c0_25] : memref<48x8xf32, #tpu.memory_space<vmem>>, vector<16x8xf32>
    %c14 = arith.constant 14 : index
    %c0_26 = arith.constant 0 : index
    %67 = vector.load %arg7[%c14, %c0_26] : memref<48x8xf32, #tpu.memory_space<vmem>>, vector<16x8xf32>
    %c15 = arith.constant 15 : index
    %c0_27 = arith.constant 0 : index
    %68 = vector.load %arg7[%c15, %c0_27] : memref<48x8xf32, #tpu.memory_space<vmem>>, vector<16x8xf32>
    %c16_28 = arith.constant 16 : index
    %c0_29 = arith.constant 0 : index
    %69 = vector.load %arg7[%c16_28, %c0_29] : memref<48x8xf32, #tpu.memory_space<vmem>>, vector<16x8xf32>
    %c17 = arith.constant 17 : index
    %c0_30 = arith.constant 0 : index
    %70 = vector.load %arg7[%c17, %c0_30] : memref<48x8xf32, #tpu.memory_space<vmem>>, vector<16x8xf32>
    %c18 = arith.constant 18 : index
    %c0_31 = arith.constant 0 : index
    %71 = vector.load %arg7[%c18, %c0_31] : memref<48x8xf32, #tpu.memory_space<vmem>>, vector<16x8xf32>
    %c19 = arith.constant 19 : index
    %c0_32 = arith.constant 0 : index
    %72 = vector.load %arg7[%c19, %c0_32] : memref<48x8xf32, #tpu.memory_space<vmem>>, vector<16x8xf32>
    %73 = tpu.concatenate %66, %67, %68, %69, %70, %71, %72 in 1 : vector<16x8xf32>, vector<16x8xf32>, vector<16x8xf32>, vector<16x8xf32>, vector<16x8xf32>, vector<16x8xf32>, vector<16x8xf32> -> vector<16x56xf32>
    %c0_33 = arith.constant 0 : index
    %c0_34 = arith.constant 0 : index
    %74 = vector.load %arg5[%c0_33, %c0_34] : memref<1x56xf32, #tpu.memory_space<vmem>>, vector<1x56xf32>
    %cst_35 = arith.constant dense<0.000000e+00> : vector<1x16xf32>
    %75 = tpu.matmul %74, %73, %cst_35 {dimension_numbers = #tpu.dot_dimension_numbers<[1], [1], [0], [0], [0, 0, 1, 0], [], []>} : vector<1x56xf32>, vector<16x56xf32>, vector<1x16xf32> -> vector<1x16xf32>
    %76 = math.tanh %75 : vector<1x16xf32>
    %c0_36 = arith.constant 0 : index
    %c0_37 = arith.constant 0 : index
    %c0_38 = arith.constant 0 : index
    %77 = vector.load %arg6[%c0_36, %c0_37, %c0_38] : memref<1x1x16xf32, #tpu.memory_space<vmem>>, vector<1x1x16xf32>
    %78 = vector.shape_cast %77 : vector<1x1x16xf32> to vector<1x16xf32>
    %79 = vector.shape_cast %76 : vector<1x16xf32> to vector<1x1x16xf32>
    tpu.vector_store %arg6[%c0_36, %c0_37, %c0_38], %79 {strides = array<i32>} : memref<1x1x16xf32, #tpu.memory_space<vmem>>, vector<1x1x16xf32>,
    return
  }
  func.func @transform_0(%arg0: i32, %arg1: i32) -> (i32, i32, i32) {
    %c1_i32 = arith.constant 1 : i32
    %0 = arith.subi %arg1, %c1_i32 : i32
    %c0_i32 = arith.constant 0 : i32
    %1 = arith.maxsi %0, %c0_i32 : i32
    %c0_i32_0 = arith.constant 0 : i32
    %c0_i32_1 = arith.constant 0 : i32
    return %arg0, %1, %c0_i32_0 : i32, i32, i32
  }
  func.func @transform_1(%arg0: i32, %arg1: i32) -> (i32, i32, i32) {
    %c0_i32 = arith.constant 0 : i32
    %c0_i32_0 = arith.constant 0 : i32
    return %arg0, %arg1, %c0_i32 : i32, i32, i32
  }
  func.func @transform_2(%arg0: i32, %arg1: i32) -> (i32, i32, i32) {
    %c1_i32 = arith.constant 1 : i32
    %0 = arith.addi %arg1, %c1_i32 : i32
    %c0_i32 = arith.constant 0 : i32
    %1 = arith.minsi %0, %c0_i32 : i32
    %c0_i32_0 = arith.constant 0 : i32
    %c0_i32_1 = arith.constant 0 : i32
    return %arg0, %1, %c0_i32_0 : i32, i32, i32
  }
  func.func @transform_3(%arg0: i32, %arg1: i32) -> (i32, i32) {
    %c0_i32 = arith.constant 0 : i32
    %c0_i32_0 = arith.constant 0 : i32
    %c0_i32_1 = arith.constant 0 : i32
    return %c0_i32, %c0_i32_0 : i32, i32
  }
  func.func @transform_4(%arg0: i32, %arg1: i32) -> (i32, i32, i32) {
    %c0_i32 = arith.constant 0 : i32
    %c0_i32_0 = arith.constant 0 : i32
    return %arg0, %c0_i32, %arg1 : i32, i32, i32
  }
}

module attributes {stable_mosaic.version = 11 : i64} {
  func.func @_conv_kernel(%arg0: i32, %arg1: i32, %arg2: memref<1x8x768xf32, #tpu.memory_space<vmem>>, %arg3: memref<768x32xf32, #tpu.memory_space<vmem>>, %arg4: memref<1x32xf32, #tpu.memory_space<vmem>>, %arg5: memref<1x8x1xf32, #tpu.memory_space<vmem>>, %arg6: memref<1x8x32xf32, #tpu.memory_space<vmem>>) attributes {dimension_semantics = [#tpu.dimension_semantics<parallel>, #tpu.dimension_semantics<parallel>], iteration_bounds = array<i64: 2, 1>, scalar_prefetch = 0 : i64, scratch_operands = 0 : i64, tpu.core_type = #tpu.core_type<tc>, window_params = [{transform_indices = @transform_0, window_bounds = array<i64: 1, 8, 768>}, {pipeline_mode = #tpu.pipeline_mode<synchronous>, transform_indices = @transform_1, window_bounds = array<i64: 768, 32>}, {pipeline_mode = #tpu.pipeline_mode<synchronous>, transform_indices = @transform_2, window_bounds = array<i64: 1, 32>}, {transform_indices = @transform_3, window_bounds = array<i64: 1, 8, 1>}, {transform_indices = @transform_4, window_bounds = array<i64: 1, 8, 32>}]} {
    %c0 = arith.constant 0 : index
    %c0_0 = arith.constant 0 : index
    %c0_1 = arith.constant 0 : index
    %0 = vector.load %arg2[%c0, %c0_0, %c0_1] : memref<1x8x768xf32, #tpu.memory_space<vmem>>, vector<1x8x768xf32>
    %1 = vector.shape_cast %0 : vector<1x8x768xf32> to vector<8x768xf32>
    %c0_2 = arith.constant 0 : index
    %c0_3 = arith.constant 0 : index
    %2 = vector.load %arg3[%c0_2, %c0_3] : memref<768x32xf32, #tpu.memory_space<vmem>>, vector<768x32xf32>
    %cst = arith.constant dense<0.000000e+00> : vector<8x32xf32>
    %3 = tpu.matmul %1, %2, %cst {dimension_numbers = #tpu.dot_dimension_numbers<[1], [0], [0], [1], [0, 0, 1, 1], [], []>} : vector<8x768xf32>, vector<768x32xf32>, vector<8x32xf32> -> vector<8x32xf32>
    %c0_4 = arith.constant 0 : index
    %c0_5 = arith.constant 0 : index
    %4 = vector.load %arg4[%c0_4, %c0_5] : memref<1x32xf32, #tpu.memory_space<vmem>>, vector<1x32xf32>
    %5 = vector.broadcast %4 : vector<1x32xf32> to vector<8x32xf32>
    %6 = arith.addf %3, %5 : vector<8x32xf32>
    %cst_6 = arith.constant 0.000000e+00 : f32
    %7 = vector.broadcast %cst_6 : f32 to vector<8x32xf32>
    %8 = arith.cmpf oge, %6, %7 : vector<8x32xf32>
    %cst_7 = arith.constant 1.000000e-01 : f32
    %9 = vector.broadcast %cst_7 : f32 to vector<8x32xf32>
    %10 = arith.mulf %9, %6 : vector<8x32xf32>
    %11 = arith.select %8, %6, %10 : vector<8x32xi1>, vector<8x32xf32>
    %c0_8 = arith.constant 0 : index
    %c0_9 = arith.constant 0 : index
    %c0_10 = arith.constant 0 : index
    %12 = vector.load %arg5[%c0_8, %c0_9, %c0_10] : memref<1x8x1xf32, #tpu.memory_space<vmem>>, vector<1x8x1xf32>
    %13 = vector.shape_cast %12 : vector<1x8x1xf32> to vector<8x1xf32>
    %14 = vector.broadcast %13 : vector<8x1xf32> to vector<8x32xf32>
    %15 = arith.mulf %11, %14 : vector<8x32xf32>
    %c0_11 = arith.constant 0 : index
    %c0_12 = arith.constant 0 : index
    %c0_13 = arith.constant 0 : index
    %16 = vector.load %arg6[%c0_11, %c0_12, %c0_13] : memref<1x8x32xf32, #tpu.memory_space<vmem>>, vector<1x8x32xf32>
    %17 = vector.shape_cast %16 : vector<1x8x32xf32> to vector<8x32xf32>
    %18 = vector.shape_cast %15 : vector<8x32xf32> to vector<1x8x32xf32>
    tpu.vector_store %arg6[%c0_11, %c0_12, %c0_13], %18 {strides = array<i32>} : memref<1x8x32xf32, #tpu.memory_space<vmem>>, vector<1x8x32xf32>,
    return
  }
  func.func @transform_0(%arg0: i32, %arg1: i32) -> (i32, i32, i32) {
    %c0_i32 = arith.constant 0 : i32
    %c0_i32_0 = arith.constant 0 : i32
    return %arg0, %arg1, %c0_i32 : i32, i32, i32
  }
  func.func @transform_1(%arg0: i32, %arg1: i32) -> (i32, i32) {
    %c0_i32 = arith.constant 0 : i32
    %c0_i32_0 = arith.constant 0 : i32
    %c0_i32_1 = arith.constant 0 : i32
    return %c0_i32, %c0_i32_0 : i32, i32
  }
  func.func @transform_2(%arg0: i32, %arg1: i32) -> (i32, i32) {
    %c0_i32 = arith.constant 0 : i32
    %c0_i32_0 = arith.constant 0 : i32
    %c0_i32_1 = arith.constant 0 : i32
    return %c0_i32, %c0_i32_0 : i32, i32
  }
  func.func @transform_3(%arg0: i32, %arg1: i32) -> (i32, i32, i32) {
    %c0_i32 = arith.constant 0 : i32
    %c0_i32_0 = arith.constant 0 : i32
    return %arg0, %arg1, %c0_i32 : i32, i32, i32
  }
  func.func @transform_4(%arg0: i32, %arg1: i32) -> (i32, i32, i32) {
    %c0_i32 = arith.constant 0 : i32
    %c0_i32_0 = arith.constant 0 : i32
    return %arg0, %arg1, %c0_i32 : i32, i32, i32
  }
}

module attributes {stable_mosaic.version = 11 : i64} {
  func.func @_conv_kernel(%arg0: i32, %arg1: i32, %arg2: memref<1x8x32xf32, #tpu.memory_space<vmem>>, %arg3: memref<32x96xf32, #tpu.memory_space<vmem>>, %arg4: memref<1x96xf32, #tpu.memory_space<vmem>>, %arg5: memref<1x8x96xf32, #tpu.memory_space<vmem>>) attributes {dimension_semantics = [#tpu.dimension_semantics<parallel>, #tpu.dimension_semantics<parallel>], iteration_bounds = array<i64: 2, 1>, scalar_prefetch = 0 : i64, scratch_operands = 0 : i64, tpu.core_type = #tpu.core_type<tc>, window_params = [{transform_indices = @transform_0, window_bounds = array<i64: 1, 8, 32>}, {pipeline_mode = #tpu.pipeline_mode<synchronous>, transform_indices = @transform_1, window_bounds = array<i64: 32, 96>}, {pipeline_mode = #tpu.pipeline_mode<synchronous>, transform_indices = @transform_2, window_bounds = array<i64: 1, 96>}, {transform_indices = @transform_3, window_bounds = array<i64: 1, 8, 96>}]} {
    %c0 = arith.constant 0 : index
    %c0_0 = arith.constant 0 : index
    %c0_1 = arith.constant 0 : index
    %0 = vector.load %arg2[%c0, %c0_0, %c0_1] : memref<1x8x32xf32, #tpu.memory_space<vmem>>, vector<1x8x32xf32>
    %1 = vector.shape_cast %0 : vector<1x8x32xf32> to vector<8x32xf32>
    %c0_2 = arith.constant 0 : index
    %c0_3 = arith.constant 0 : index
    %2 = vector.load %arg3[%c0_2, %c0_3] : memref<32x96xf32, #tpu.memory_space<vmem>>, vector<32x96xf32>
    %cst = arith.constant dense<0.000000e+00> : vector<8x96xf32>
    %3 = tpu.matmul %1, %2, %cst {dimension_numbers = #tpu.dot_dimension_numbers<[1], [0], [0], [1], [0, 0, 1, 1], [], []>} : vector<8x32xf32>, vector<32x96xf32>, vector<8x96xf32> -> vector<8x96xf32>
    %c0_4 = arith.constant 0 : index
    %c0_5 = arith.constant 0 : index
    %4 = vector.load %arg4[%c0_4, %c0_5] : memref<1x96xf32, #tpu.memory_space<vmem>>, vector<1x96xf32>
    %5 = vector.broadcast %4 : vector<1x96xf32> to vector<8x96xf32>
    %6 = arith.addf %3, %5 : vector<8x96xf32>
    %c0_6 = arith.constant 0 : index
    %c0_7 = arith.constant 0 : index
    %c0_8 = arith.constant 0 : index
    %7 = vector.load %arg5[%c0_6, %c0_7, %c0_8] : memref<1x8x96xf32, #tpu.memory_space<vmem>>, vector<1x8x96xf32>
    %8 = vector.shape_cast %7 : vector<1x8x96xf32> to vector<8x96xf32>
    %9 = vector.shape_cast %6 : vector<8x96xf32> to vector<1x8x96xf32>
    tpu.vector_store %arg5[%c0_6, %c0_7, %c0_8], %9 {strides = array<i32>} : memref<1x8x96xf32, #tpu.memory_space<vmem>>, vector<1x8x96xf32>,
    return
  }
  func.func @transform_0(%arg0: i32, %arg1: i32) -> (i32, i32, i32) {
    %c0_i32 = arith.constant 0 : i32
    %c0_i32_0 = arith.constant 0 : i32
    return %arg0, %arg1, %c0_i32 : i32, i32, i32
  }
  func.func @transform_1(%arg0: i32, %arg1: i32) -> (i32, i32) {
    %c0_i32 = arith.constant 0 : i32
    %c0_i32_0 = arith.constant 0 : i32
    %c0_i32_1 = arith.constant 0 : i32
    return %c0_i32, %c0_i32_0 : i32, i32
  }
  func.func @transform_2(%arg0: i32, %arg1: i32) -> (i32, i32) {
    %c0_i32 = arith.constant 0 : i32
    %c0_i32_0 = arith.constant 0 : i32
    %c0_i32_1 = arith.constant 0 : i32
    return %c0_i32, %c0_i32_0 : i32, i32
  }
  func.func @transform_3(%arg0: i32, %arg1: i32) -> (i32, i32, i32) {
    %c0_i32 = arith.constant 0 : i32
    %c0_i32_0 = arith.constant 0 : i32
    return %arg0, %arg1, %c0_i32 : i32, i32, i32
  }
}

module attributes {stable_mosaic.version = 11 : i64} {
  func.func @_attn_kernel(%arg0: i32, %arg1: i32, %arg2: i32, %arg3: memref<1x1x1x8x16xf32, #tpu.memory_space<vmem>>, %arg4: memref<1x1x1x8x16xf32, #tpu.memory_space<vmem>>, %arg5: memref<1x1x1x8x16xf32, #tpu.memory_space<vmem>>, %arg6: memref<15x16xf32, #tpu.memory_space<vmem>>, %arg7: memref<15x16xf32, #tpu.memory_space<vmem>>, %arg8: memref<1x8x1xf32, #tpu.memory_space<vmem>>, %arg9: memref<1x1x8xf32, #tpu.memory_space<vmem>>, %arg10: memref<1x1x8x16xf32, #tpu.memory_space<vmem>>) attributes {dimension_semantics = [#tpu.dimension_semantics<parallel>, #tpu.dimension_semantics<parallel>, #tpu.dimension_semantics<parallel>], iteration_bounds = array<i64: 2, 2, 1>, scalar_prefetch = 0 : i64, scratch_operands = 0 : i64, tpu.core_type = #tpu.core_type<tc>, window_params = [{transform_indices = @transform_0, window_bounds = array<i64: 1, 1, 1, 8, 16>}, {transform_indices = @transform_1, window_bounds = array<i64: 1, 1, 1, 8, 16>}, {transform_indices = @transform_2, window_bounds = array<i64: 1, 1, 1, 8, 16>}, {pipeline_mode = #tpu.pipeline_mode<synchronous>, transform_indices = @transform_3, window_bounds = array<i64: 15, 16>}, {pipeline_mode = #tpu.pipeline_mode<synchronous>, transform_indices = @transform_4, window_bounds = array<i64: 15, 16>}, {transform_indices = @transform_5, window_bounds = array<i64: 1, 8, 1>}, {transform_indices = @transform_6, window_bounds = array<i64: 1, 1, 8>}, {transform_indices = @transform_7, window_bounds = array<i64: 1, 1, 8, 16>}]} {
    %c0 = arith.constant 0 : index
    %c0_0 = arith.constant 0 : index
    %c0_1 = arith.constant 0 : index
    %c0_2 = arith.constant 0 : index
    %c0_3 = arith.constant 0 : index
    %0 = vector.load %arg3[%c0, %c0_0, %c0_1, %c0_2, %c0_3] : memref<1x1x1x8x16xf32, #tpu.memory_space<vmem>>, vector<1x1x1x8x16xf32>
    %1 = vector.shape_cast %0 : vector<1x1x1x8x16xf32> to vector<8x16xf32>
    %cst = arith.constant 2.500000e-01 : f32
    %2 = vector.broadcast %cst : f32 to vector<8x16xf32>
    %3 = arith.mulf %1, %2 : vector<8x16xf32>
    %c0_4 = arith.constant 0 : index
    %c0_5 = arith.constant 0 : index
    %c0_6 = arith.constant 0 : index
    %c0_7 = arith.constant 0 : index
    %c0_8 = arith.constant 0 : index
    %4 = vector.load %arg4[%c0_4, %c0_5, %c0_6, %c0_7, %c0_8] : memref<1x1x1x8x16xf32, #tpu.memory_space<vmem>>, vector<1x1x1x8x16xf32>
    %5 = vector.shape_cast %4 : vector<1x1x1x8x16xf32> to vector<8x16xf32>
    %c0_9 = arith.constant 0 : index
    %c0_10 = arith.constant 0 : index
    %c0_11 = arith.constant 0 : index
    %c0_12 = arith.constant 0 : index
    %c0_13 = arith.constant 0 : index
    %6 = vector.load %arg5[%c0_9, %c0_10, %c0_11, %c0_12, %c0_13] : memref<1x1x1x8x16xf32, #tpu.memory_space<vmem>>, vector<1x1x1x8x16xf32>
    %7 = vector.shape_cast %6 : vector<1x1x1x8x16xf32> to vector<8x16xf32>
    %cst_14 = arith.constant dense<0.000000e+00> : vector<8x8xf32>
    %8 = tpu.matmul %3, %5, %cst_14 {dimension_numbers = #tpu.dot_dimension_numbers<[1], [1], [0], [0], [0, 0, 1, 0], [], []>} : vector<8x16xf32>, vector<8x16xf32>, vector<8x8xf32> -> vector<8x8xf32>
    %c0_15 = arith.constant 0 : index
    %c0_16 = arith.constant 0 : index
    %9 = vector.load %arg6[%c0_15, %c0_16] : memref<15x16xf32, #tpu.memory_space<vmem>>, vector<15x16xf32>
    %cst_17 = arith.constant dense<0.000000e+00> : vector<8x15xf32>
    %10 = tpu.matmul %3, %9, %cst_17 {dimension_numbers = #tpu.dot_dimension_numbers<[1], [1], [0], [0], [0, 0, 1, 0], [], []>} : vector<8x16xf32>, vector<15x16xf32>, vector<8x15xf32> -> vector<8x15xf32>
    %c8_i32 = arith.constant 8 : i32
    %11 = arith.muli %arg2, %c8_i32 : i32
    %12 = tpu.iota {dimensions = array<i32: 0>} : vector<8x1xi32>
    %13 = vector.broadcast %11 : i32 to vector<8x1xi32>
    %14 = arith.addi %13, %12 : vector<8x1xi32>
    %15 = tpu.iota {dimensions = array<i32: 1>} : vector<8x8xi32>
    %16 = vector.broadcast %14 : vector<8x1xi32> to vector<8x8xi32>
    %17 = arith.subi %15, %16 : vector<8x8xi32>
    %c-7_i32 = arith.constant -7 : i32
    %18 = vector.broadcast %c-7_i32 : i32 to vector<8x8xi32>
    %19 = arith.cmpi eq, %17, %18 : vector<8x8xi32>
    %20 = vector.extract_strided_slice %10 {offsets = [0, 0], sizes = [8, 1], strides = [1, 1]} : vector<8x15xf32> to vector<8x1xf32>
    %cst_18 = arith.constant 0.000000e+00 : f32
    %21 = vector.shape_cast %20 : vector<8x1xf32> to vector<8x1xf32>
    %22 = vector.broadcast %21 : vector<8x1xf32> to vector<8x8xf32>
    %23 = vector.broadcast %cst_18 : f32 to vector<8x8xf32>
    %24 = arith.select %19, %22, %23 : vector<8x8xi1>, vector<8x8xf32>
    %25 = arith.addf %8, %24 : vector<8x8xf32>
    %c-6_i32 = arith.constant -6 : i32
    %26 = vector.broadcast %c-6_i32 : i32 to vector<8x8xi32>
    %27 = arith.cmpi eq, %17, %26 : vector<8x8xi32>
    %28 = vector.extract_strided_slice %10 {offsets = [0, 1], sizes = [8, 1], strides = [1, 1]} : vector<8x15xf32> to vector<8x1xf32>
    %cst_19 = arith.constant 0.000000e+00 : f32
    %29 = vector.shape_cast %28 : vector<8x1xf32> to vector<8x1xf32>
    %30 = vector.broadcast %29 : vector<8x1xf32> to vector<8x8xf32>
    %31 = vector.broadcast %cst_19 : f32 to vector<8x8xf32>
    %32 = arith.select %27, %30, %31 : vector<8x8xi1>, vector<8x8xf32>
    %33 = arith.addf %25, %32 : vector<8x8xf32>
    %c-5_i32 = arith.constant -5 : i32
    %34 = vector.broadcast %c-5_i32 : i32 to vector<8x8xi32>
    %35 = arith.cmpi eq, %17, %34 : vector<8x8xi32>
    %36 = vector.extract_strided_slice %10 {offsets = [0, 2], sizes = [8, 1], strides = [1, 1]} : vector<8x15xf32> to vector<8x1xf32>
    %cst_20 = arith.constant 0.000000e+00 : f32
    %37 = vector.shape_cast %36 : vector<8x1xf32> to vector<8x1xf32>
    %38 = vector.broadcast %37 : vector<8x1xf32> to vector<8x8xf32>
    %39 = vector.broadcast %cst_20 : f32 to vector<8x8xf32>
    %40 = arith.select %35, %38, %39 : vector<8x8xi1>, vector<8x8xf32>
    %41 = arith.addf %33, %40 : vector<8x8xf32>
    %c-4_i32 = arith.constant -4 : i32
    %42 = vector.broadcast %c-4_i32 : i32 to vector<8x8xi32>
    %43 = arith.cmpi eq, %17, %42 : vector<8x8xi32>
    %44 = vector.extract_strided_slice %10 {offsets = [0, 3], sizes = [8, 1], strides = [1, 1]} : vector<8x15xf32> to vector<8x1xf32>
    %cst_21 = arith.constant 0.000000e+00 : f32
    %45 = vector.shape_cast %44 : vector<8x1xf32> to vector<8x1xf32>
    %46 = vector.broadcast %45 : vector<8x1xf32> to vector<8x8xf32>
    %47 = vector.broadcast %cst_21 : f32 to vector<8x8xf32>
    %48 = arith.select %43, %46, %47 : vector<8x8xi1>, vector<8x8xf32>
    %49 = arith.addf %41, %48 : vector<8x8xf32>
    %c-3_i32 = arith.constant -3 : i32
    %50 = vector.broadcast %c-3_i32 : i32 to vector<8x8xi32>
    %51 = arith.cmpi eq, %17, %50 : vector<8x8xi32>
    %52 = vector.extract_strided_slice %10 {offsets = [0, 4], sizes = [8, 1], strides = [1, 1]} : vector<8x15xf32> to vector<8x1xf32>
    %cst_22 = arith.constant 0.000000e+00 : f32
    %53 = vector.shape_cast %52 : vector<8x1xf32> to vector<8x1xf32>
    %54 = vector.broadcast %53 : vector<8x1xf32> to vector<8x8xf32>
    %55 = vector.broadcast %cst_22 : f32 to vector<8x8xf32>
    %56 = arith.select %51, %54, %55 : vector<8x8xi1>, vector<8x8xf32>
    %57 = arith.addf %49, %56 : vector<8x8xf32>
    %c-2_i32 = arith.constant -2 : i32
    %58 = vector.broadcast %c-2_i32 : i32 to vector<8x8xi32>
    %59 = arith.cmpi eq, %17, %58 : vector<8x8xi32>
    %60 = vector.extract_strided_slice %10 {offsets = [0, 5], sizes = [8, 1], strides = [1, 1]} : vector<8x15xf32> to vector<8x1xf32>
    %cst_23 = arith.constant 0.000000e+00 : f32
    %61 = vector.shape_cast %60 : vector<8x1xf32> to vector<8x1xf32>
    %62 = vector.broadcast %61 : vector<8x1xf32> to vector<8x8xf32>
    %63 = vector.broadcast %cst_23 : f32 to vector<8x8xf32>
    %64 = arith.select %59, %62, %63 : vector<8x8xi1>, vector<8x8xf32>
    %65 = arith.addf %57, %64 : vector<8x8xf32>
    %c-1_i32 = arith.constant -1 : i32
    %66 = vector.broadcast %c-1_i32 : i32 to vector<8x8xi32>
    %67 = arith.cmpi eq, %17, %66 : vector<8x8xi32>
    %68 = vector.extract_strided_slice %10 {offsets = [0, 6], sizes = [8, 1], strides = [1, 1]} : vector<8x15xf32> to vector<8x1xf32>
    %cst_24 = arith.constant 0.000000e+00 : f32
    %69 = vector.shape_cast %68 : vector<8x1xf32> to vector<8x1xf32>
    %70 = vector.broadcast %69 : vector<8x1xf32> to vector<8x8xf32>
    %71 = vector.broadcast %cst_24 : f32 to vector<8x8xf32>
    %72 = arith.select %67, %70, %71 : vector<8x8xi1>, vector<8x8xf32>
    %73 = arith.addf %65, %72 : vector<8x8xf32>
    %c0_i32 = arith.constant 0 : i32
    %74 = vector.broadcast %c0_i32 : i32 to vector<8x8xi32>
    %75 = arith.cmpi eq, %17, %74 : vector<8x8xi32>
    %76 = vector.extract_strided_slice %10 {offsets = [0, 7], sizes = [8, 1], strides = [1, 1]} : vector<8x15xf32> to vector<8x1xf32>
    %cst_25 = arith.constant 0.000000e+00 : f32
    %77 = vector.shape_cast %76 : vector<8x1xf32> to vector<8x1xf32>
    %78 = vector.broadcast %77 : vector<8x1xf32> to vector<8x8xf32>
    %79 = vector.broadcast %cst_25 : f32 to vector<8x8xf32>
    %80 = arith.select %75, %78, %79 : vector<8x8xi1>, vector<8x8xf32>
    %81 = arith.addf %73, %80 : vector<8x8xf32>
    %c1_i32 = arith.constant 1 : i32
    %82 = vector.broadcast %c1_i32 : i32 to vector<8x8xi32>
    %83 = arith.cmpi eq, %17, %82 : vector<8x8xi32>
    %84 = vector.extract_strided_slice %10 {offsets = [0, 8], sizes = [8, 1], strides = [1, 1]} : vector<8x15xf32> to vector<8x1xf32>
    %cst_26 = arith.constant 0.000000e+00 : f32
    %85 = vector.shape_cast %84 : vector<8x1xf32> to vector<8x1xf32>
    %86 = vector.broadcast %85 : vector<8x1xf32> to vector<8x8xf32>
    %87 = vector.broadcast %cst_26 : f32 to vector<8x8xf32>
    %88 = arith.select %83, %86, %87 : vector<8x8xi1>, vector<8x8xf32>
    %89 = arith.addf %81, %88 : vector<8x8xf32>
    %c2_i32 = arith.constant 2 : i32
    %90 = vector.broadcast %c2_i32 : i32 to vector<8x8xi32>
    %91 = arith.cmpi eq, %17, %90 : vector<8x8xi32>
    %92 = vector.extract_strided_slice %10 {offsets = [0, 9], sizes = [8, 1], strides = [1, 1]} : vector<8x15xf32> to vector<8x1xf32>
    %cst_27 = arith.constant 0.000000e+00 : f32
    %93 = vector.shape_cast %92 : vector<8x1xf32> to vector<8x1xf32>
    %94 = vector.broadcast %93 : vector<8x1xf32> to vector<8x8xf32>
    %95 = vector.broadcast %cst_27 : f32 to vector<8x8xf32>
    %96 = arith.select %91, %94, %95 : vector<8x8xi1>, vector<8x8xf32>
    %97 = arith.addf %89, %96 : vector<8x8xf32>
    %c3_i32 = arith.constant 3 : i32
    %98 = vector.broadcast %c3_i32 : i32 to vector<8x8xi32>
    %99 = arith.cmpi eq, %17, %98 : vector<8x8xi32>
    %100 = vector.extract_strided_slice %10 {offsets = [0, 10], sizes = [8, 1], strides = [1, 1]} : vector<8x15xf32> to vector<8x1xf32>
    %cst_28 = arith.constant 0.000000e+00 : f32
    %101 = vector.shape_cast %100 : vector<8x1xf32> to vector<8x1xf32>
    %102 = vector.broadcast %101 : vector<8x1xf32> to vector<8x8xf32>
    %103 = vector.broadcast %cst_28 : f32 to vector<8x8xf32>
    %104 = arith.select %99, %102, %103 : vector<8x8xi1>, vector<8x8xf32>
    %105 = arith.addf %97, %104 : vector<8x8xf32>
    %c4_i32 = arith.constant 4 : i32
    %106 = vector.broadcast %c4_i32 : i32 to vector<8x8xi32>
    %107 = arith.cmpi eq, %17, %106 : vector<8x8xi32>
    %108 = vector.extract_strided_slice %10 {offsets = [0, 11], sizes = [8, 1], strides = [1, 1]} : vector<8x15xf32> to vector<8x1xf32>
    %cst_29 = arith.constant 0.000000e+00 : f32
    %109 = vector.shape_cast %108 : vector<8x1xf32> to vector<8x1xf32>
    %110 = vector.broadcast %109 : vector<8x1xf32> to vector<8x8xf32>
    %111 = vector.broadcast %cst_29 : f32 to vector<8x8xf32>
    %112 = arith.select %107, %110, %111 : vector<8x8xi1>, vector<8x8xf32>
    %113 = arith.addf %105, %112 : vector<8x8xf32>
    %c5_i32 = arith.constant 5 : i32
    %114 = vector.broadcast %c5_i32 : i32 to vector<8x8xi32>
    %115 = arith.cmpi eq, %17, %114 : vector<8x8xi32>
    %116 = vector.extract_strided_slice %10 {offsets = [0, 12], sizes = [8, 1], strides = [1, 1]} : vector<8x15xf32> to vector<8x1xf32>
    %cst_30 = arith.constant 0.000000e+00 : f32
    %117 = vector.shape_cast %116 : vector<8x1xf32> to vector<8x1xf32>
    %118 = vector.broadcast %117 : vector<8x1xf32> to vector<8x8xf32>
    %119 = vector.broadcast %cst_30 : f32 to vector<8x8xf32>
    %120 = arith.select %115, %118, %119 : vector<8x8xi1>, vector<8x8xf32>
    %121 = arith.addf %113, %120 : vector<8x8xf32>
    %c6_i32 = arith.constant 6 : i32
    %122 = vector.broadcast %c6_i32 : i32 to vector<8x8xi32>
    %123 = arith.cmpi eq, %17, %122 : vector<8x8xi32>
    %124 = vector.extract_strided_slice %10 {offsets = [0, 13], sizes = [8, 1], strides = [1, 1]} : vector<8x15xf32> to vector<8x1xf32>
    %cst_31 = arith.constant 0.000000e+00 : f32
    %125 = vector.shape_cast %124 : vector<8x1xf32> to vector<8x1xf32>
    %126 = vector.broadcast %125 : vector<8x1xf32> to vector<8x8xf32>
    %127 = vector.broadcast %cst_31 : f32 to vector<8x8xf32>
    %128 = arith.select %123, %126, %127 : vector<8x8xi1>, vector<8x8xf32>
    %129 = arith.addf %121, %128 : vector<8x8xf32>
    %c7_i32 = arith.constant 7 : i32
    %130 = vector.broadcast %c7_i32 : i32 to vector<8x8xi32>
    %131 = arith.cmpi eq, %17, %130 : vector<8x8xi32>
    %132 = vector.extract_strided_slice %10 {offsets = [0, 14], sizes = [8, 1], strides = [1, 1]} : vector<8x15xf32> to vector<8x1xf32>
    %cst_32 = arith.constant 0.000000e+00 : f32
    %133 = vector.shape_cast %132 : vector<8x1xf32> to vector<8x1xf32>
    %134 = vector.broadcast %133 : vector<8x1xf32> to vector<8x8xf32>
    %135 = vector.broadcast %cst_32 : f32 to vector<8x8xf32>
    %136 = arith.select %131, %134, %135 : vector<8x8xi1>, vector<8x8xf32>
    %137 = arith.addf %129, %136 : vector<8x8xf32>
    %c0_33 = arith.constant 0 : index
    %c0_34 = arith.constant 0 : index
    %c0_35 = arith.constant 0 : index
    %138 = vector.load %arg8[%c0_33, %c0_34, %c0_35] : memref<1x8x1xf32, #tpu.memory_space<vmem>>, vector<1x8x1xf32>
    %139 = vector.shape_cast %138 : vector<1x8x1xf32> to vector<8x1xf32>
    %c0_36 = arith.constant 0 : index
    %c0_37 = arith.constant 0 : index
    %c0_38 = arith.constant 0 : index
    %140 = vector.load %arg9[%c0_36, %c0_37, %c0_38] : memref<1x1x8xf32, #tpu.memory_space<vmem>>, vector<1x1x8xf32>
    %141 = vector.shape_cast %140 : vector<1x1x8xf32> to vector<1x8xf32>
    %142 = vector.broadcast %139 : vector<8x1xf32> to vector<8x8xf32>
    %143 = vector.broadcast %141 : vector<1x8xf32> to vector<8x8xf32>
    %144 = arith.mulf %142, %143 : vector<8x8xf32>
    %cst_39 = arith.constant 0.000000e+00 : f32
    %145 = vector.broadcast %cst_39 : f32 to vector<8x8xf32>
    %146 = arith.cmpf ogt, %144, %145 : vector<8x8xf32>
    %cst_40 = arith.constant -1.000000e+04 : f32
    %147 = vector.broadcast %cst_40 : f32 to vector<8x8xf32>
    %148 = arith.select %146, %137, %147 : vector<8x8xi1>, vector<8x8xf32>
    %cst_41 = arith.constant dense<0xFF800000> : vector<8xf32>
    %149 = vector.multi_reduction <maximumf>, %148, %cst_41 [1] : vector<8x8xf32> to vector<8xf32>
    %150 = vector.shape_cast %149 : vector<8xf32> to vector<8x1xf32>
    %151 = vector.broadcast %150 : vector<8x1xf32> to vector<8x8xf32>
    %152 = arith.subf %148, %151 : vector<8x8xf32>
    %153 = math.exp %152 : vector<8x8xf32>
    %cst_42 = arith.constant dense<0.000000e+00> : vector<8xf32>
    %154 = vector.multi_reduction <add>, %153, %cst_42 [1] : vector<8x8xf32> to vector<8xf32>
    %155 = vector.shape_cast %154 : vector<8xf32> to vector<8x1xf32>
    %156 = tpu.reciprocal %155 {approx = true} : vector<8x1xf32> -> vector<8x1xf32>
    %157 = vector.broadcast %156 : vector<8x1xf32> to vector<8x8xf32>
    %158 = arith.mulf %153, %157 : vector<8x8xf32>
    %cst_43 = arith.constant dense<0.000000e+00> : vector<8x16xf32>
    %159 = tpu.matmul %158, %7, %cst_43 {dimension_numbers = #tpu.dot_dimension_numbers<[1], [0], [0], [1], [0, 0, 1, 1], [], []>} : vector<8x8xf32>, vector<8x16xf32>, vector<8x16xf32> -> vector<8x16xf32>
    %c0_44 = arith.constant 0 : index
    %c0_45 = arith.constant 0 : index
    %160 = vector.load %arg7[%c0_44, %c0_45] : memref<15x16xf32, #tpu.memory_space<vmem>>, vector<15x16xf32>
    %c-7_i32_46 = arith.constant -7 : i32
    %161 = vector.broadcast %c-7_i32_46 : i32 to vector<8x8xi32>
    %162 = arith.cmpi eq, %17, %161 : vector<8x8xi32>
    %cst_47 = arith.constant 0.000000e+00 : f32
    %163 = vector.broadcast %cst_47 : f32 to vector<8x8xf32>
    %164 = arith.select %162, %158, %163 : vector<8x8xi1>, vector<8x8xf32>
    %cst_48 = arith.constant dense<0.000000e+00> : vector<8xf32>
    %165 = vector.multi_reduction <add>, %164, %cst_48 [1] : vector<8x8xf32> to vector<8xf32>
    %166 = vector.shape_cast %165 : vector<8xf32> to vector<8x1xf32>
    %167 = vector.extract_strided_slice %160 {offsets = [0, 0], sizes = [1, 16], strides = [1, 1]} : vector<15x16xf32> to vector<1x16xf32>
    %168 = vector.broadcast %166 : vector<8x1xf32> to vector<8x16xf32>
    %169 = vector.broadcast %167 : vector<1x16xf32> to vector<8x16xf32>
    %170 = arith.mulf %168, %169 : vector<8x16xf32>
    %171 = arith.addf %159, %170 : vector<8x16xf32>
    %c-6_i32_49 = arith.constant -6 : i32
    %172 = vector.broadcast %c-6_i32_49 : i32 to vector<8x8xi32>
    %173 = arith.cmpi eq, %17, %172 : vector<8x8xi32>
    %cst_50 = arith.constant 0.000000e+00 : f32
    %174 = vector.broadcast %cst_50 : f32 to vector<8x8xf32>
    %175 = arith.select %173, %158, %174 : vector<8x8xi1>, vector<8x8xf32>
    %cst_51 = arith.constant dense<0.000000e+00> : vector<8xf32>
    %176 = vector.multi_reduction <add>, %175, %cst_51 [1] : vector<8x8xf32> to vector<8xf32>
    %177 = vector.shape_cast %176 : vector<8xf32> to vector<8x1xf32>
    %178 = vector.extract_strided_slice %160 {offsets = [1, 0], sizes = [1, 16], strides = [1, 1]} : vector<15x16xf32> to vector<1x16xf32>
    %179 = vector.broadcast %177 : vector<8x1xf32> to vector<8x16xf32>
    %180 = vector.broadcast %178 : vector<1x16xf32> to vector<8x16xf32>
    %181 = arith.mulf %179, %180 : vector<8x16xf32>
    %182 = arith.addf %171, %181 : vector<8x16xf32>
    %c-5_i32_52 = arith.constant -5 : i32
    %183 = vector.broadcast %c-5_i32_52 : i32 to vector<8x8xi32>
    %184 = arith.cmpi eq, %17, %183 : vector<8x8xi32>
    %cst_53 = arith.constant 0.000000e+00 : f32
    %185 = vector.broadcast %cst_53 : f32 to vector<8x8xf32>
    %186 = arith.select %184, %158, %185 : vector<8x8xi1>, vector<8x8xf32>
    %cst_54 = arith.constant dense<0.000000e+00> : vector<8xf32>
    %187 = vector.multi_reduction <add>, %186, %cst_54 [1] : vector<8x8xf32> to vector<8xf32>
    %188 = vector.shape_cast %187 : vector<8xf32> to vector<8x1xf32>
    %189 = vector.extract_strided_slice %160 {offsets = [2, 0], sizes = [1, 16], strides = [1, 1]} : vector<15x16xf32> to vector<1x16xf32>
    %190 = vector.broadcast %188 : vector<8x1xf32> to vector<8x16xf32>
    %191 = vector.broadcast %189 : vector<1x16xf32> to vector<8x16xf32>
    %192 = arith.mulf %190, %191 : vector<8x16xf32>
    %193 = arith.addf %182, %192 : vector<8x16xf32>
    %c-4_i32_55 = arith.constant -4 : i32
    %194 = vector.broadcast %c-4_i32_55 : i32 to vector<8x8xi32>
    %195 = arith.cmpi eq, %17, %194 : vector<8x8xi32>
    %cst_56 = arith.constant 0.000000e+00 : f32
    %196 = vector.broadcast %cst_56 : f32 to vector<8x8xf32>
    %197 = arith.select %195, %158, %196 : vector<8x8xi1>, vector<8x8xf32>
    %cst_57 = arith.constant dense<0.000000e+00> : vector<8xf32>
    %198 = vector.multi_reduction <add>, %197, %cst_57 [1] : vector<8x8xf32> to vector<8xf32>
    %199 = vector.shape_cast %198 : vector<8xf32> to vector<8x1xf32>
    %200 = vector.extract_strided_slice %160 {offsets = [3, 0], sizes = [1, 16], strides = [1, 1]} : vector<15x16xf32> to vector<1x16xf32>
    %201 = vector.broadcast %199 : vector<8x1xf32> to vector<8x16xf32>
    %202 = vector.broadcast %200 : vector<1x16xf32> to vector<8x16xf32>
    %203 = arith.mulf %201, %202 : vector<8x16xf32>
    %204 = arith.addf %193, %203 : vector<8x16xf32>
    %c-3_i32_58 = arith.constant -3 : i32
    %205 = vector.broadcast %c-3_i32_58 : i32 to vector<8x8xi32>
    %206 = arith.cmpi eq, %17, %205 : vector<8x8xi32>
    %cst_59 = arith.constant 0.000000e+00 : f32
    %207 = vector.broadcast %cst_59 : f32 to vector<8x8xf32>
    %208 = arith.select %206, %158, %207 : vector<8x8xi1>, vector<8x8xf32>
    %cst_60 = arith.constant dense<0.000000e+00> : vector<8xf32>
    %209 = vector.multi_reduction <add>, %208, %cst_60 [1] : vector<8x8xf32> to vector<8xf32>
    %210 = vector.shape_cast %209 : vector<8xf32> to vector<8x1xf32>
    %211 = vector.extract_strided_slice %160 {offsets = [4, 0], sizes = [1, 16], strides = [1, 1]} : vector<15x16xf32> to vector<1x16xf32>
    %212 = vector.broadcast %210 : vector<8x1xf32> to vector<8x16xf32>
    %213 = vector.broadcast %211 : vector<1x16xf32> to vector<8x16xf32>
    %214 = arith.mulf %212, %213 : vector<8x16xf32>
    %215 = arith.addf %204, %214 : vector<8x16xf32>
    %c-2_i32_61 = arith.constant -2 : i32
    %216 = vector.broadcast %c-2_i32_61 : i32 to vector<8x8xi32>
    %217 = arith.cmpi eq, %17, %216 : vector<8x8xi32>
    %cst_62 = arith.constant 0.000000e+00 : f32
    %218 = vector.broadcast %cst_62 : f32 to vector<8x8xf32>
    %219 = arith.select %217, %158, %218 : vector<8x8xi1>, vector<8x8xf32>
    %cst_63 = arith.constant dense<0.000000e+00> : vector<8xf32>
    %220 = vector.multi_reduction <add>, %219, %cst_63 [1] : vector<8x8xf32> to vector<8xf32>
    %221 = vector.shape_cast %220 : vector<8xf32> to vector<8x1xf32>
    %222 = vector.extract_strided_slice %160 {offsets = [5, 0], sizes = [1, 16], strides = [1, 1]} : vector<15x16xf32> to vector<1x16xf32>
    %223 = vector.broadcast %221 : vector<8x1xf32> to vector<8x16xf32>
    %224 = vector.broadcast %222 : vector<1x16xf32> to vector<8x16xf32>
    %225 = arith.mulf %223, %224 : vector<8x16xf32>
    %226 = arith.addf %215, %225 : vector<8x16xf32>
    %c-1_i32_64 = arith.constant -1 : i32
    %227 = vector.broadcast %c-1_i32_64 : i32 to vector<8x8xi32>
    %228 = arith.cmpi eq, %17, %227 : vector<8x8xi32>
    %cst_65 = arith.constant 0.000000e+00 : f32
    %229 = vector.broadcast %cst_65 : f32 to vector<8x8xf32>
    %230 = arith.select %228, %158, %229 : vector<8x8xi1>, vector<8x8xf32>
    %cst_66 = arith.constant dense<0.000000e+00> : vector<8xf32>
    %231 = vector.multi_reduction <add>, %230, %cst_66 [1] : vector<8x8xf32> to vector<8xf32>
    %232 = vector.shape_cast %231 : vector<8xf32> to vector<8x1xf32>
    %233 = vector.extract_strided_slice %160 {offsets = [6, 0], sizes = [1, 16], strides = [1, 1]} : vector<15x16xf32> to vector<1x16xf32>
    %234 = vector.broadcast %232 : vector<8x1xf32> to vector<8x16xf32>
    %235 = vector.broadcast %233 : vector<1x16xf32> to vector<8x16xf32>
    %236 = arith.mulf %234, %235 : vector<8x16xf32>
    %237 = arith.addf %226, %236 : vector<8x16xf32>
    %c0_i32_67 = arith.constant 0 : i32
    %238 = vector.broadcast %c0_i32_67 : i32 to vector<8x8xi32>
    %239 = arith.cmpi eq, %17, %238 : vector<8x8xi32>
    %cst_68 = arith.constant 0.000000e+00 : f32
    %240 = vector.broadcast %cst_68 : f32 to vector<8x8xf32>
    %241 = arith.select %239, %158, %240 : vector<8x8xi1>, vector<8x8xf32>
    %cst_69 = arith.constant dense<0.000000e+00> : vector<8xf32>
    %242 = vector.multi_reduction <add>, %241, %cst_69 [1] : vector<8x8xf32> to vector<8xf32>
    %243 = vector.shape_cast %242 : vector<8xf32> to vector<8x1xf32>
    %244 = vector.extract_strided_slice %160 {offsets = [7, 0], sizes = [1, 16], strides = [1, 1]} : vector<15x16xf32> to vector<1x16xf32>
    %245 = vector.broadcast %243 : vector<8x1xf32> to vector<8x16xf32>
    %246 = vector.broadcast %244 : vector<1x16xf32> to vector<8x16xf32>
    %247 = arith.mulf %245, %246 : vector<8x16xf32>
    %248 = arith.addf %237, %247 : vector<8x16xf32>
    %c1_i32_70 = arith.constant 1 : i32
    %249 = vector.broadcast %c1_i32_70 : i32 to vector<8x8xi32>
    %250 = arith.cmpi eq, %17, %249 : vector<8x8xi32>
    %cst_71 = arith.constant 0.000000e+00 : f32
    %251 = vector.broadcast %cst_71 : f32 to vector<8x8xf32>
    %252 = arith.select %250, %158, %251 : vector<8x8xi1>, vector<8x8xf32>
    %cst_72 = arith.constant dense<0.000000e+00> : vector<8xf32>
    %253 = vector.multi_reduction <add>, %252, %cst_72 [1] : vector<8x8xf32> to vector<8xf32>
    %254 = vector.shape_cast %253 : vector<8xf32> to vector<8x1xf32>
    %255 = vector.extract_strided_slice %160 {offsets = [8, 0], sizes = [1, 16], strides = [1, 1]} : vector<15x16xf32> to vector<1x16xf32>
    %256 = vector.broadcast %254 : vector<8x1xf32> to vector<8x16xf32>
    %257 = vector.broadcast %255 : vector<1x16xf32> to vector<8x16xf32>
    %258 = arith.mulf %256, %257 : vector<8x16xf32>
    %259 = arith.addf %248, %258 : vector<8x16xf32>
    %c2_i32_73 = arith.constant 2 : i32
    %260 = vector.broadcast %c2_i32_73 : i32 to vector<8x8xi32>
    %261 = arith.cmpi eq, %17, %260 : vector<8x8xi32>
    %cst_74 = arith.constant 0.000000e+00 : f32
    %262 = vector.broadcast %cst_74 : f32 to vector<8x8xf32>
    %263 = arith.select %261, %158, %262 : vector<8x8xi1>, vector<8x8xf32>
    %cst_75 = arith.constant dense<0.000000e+00> : vector<8xf32>
    %264 = vector.multi_reduction <add>, %263, %cst_75 [1] : vector<8x8xf32> to vector<8xf32>
    %265 = vector.shape_cast %264 : vector<8xf32> to vector<8x1xf32>
    %266 = vector.extract_strided_slice %160 {offsets = [9, 0], sizes = [1, 16], strides = [1, 1]} : vector<15x16xf32> to vector<1x16xf32>
    %267 = vector.broadcast %265 : vector<8x1xf32> to vector<8x16xf32>
    %268 = vector.broadcast %266 : vector<1x16xf32> to vector<8x16xf32>
    %269 = arith.mulf %267, %268 : vector<8x16xf32>
    %270 = arith.addf %259, %269 : vector<8x16xf32>
    %c3_i32_76 = arith.constant 3 : i32
    %271 = vector.broadcast %c3_i32_76 : i32 to vector<8x8xi32>
    %272 = arith.cmpi eq, %17, %271 : vector<8x8xi32>
    %cst_77 = arith.constant 0.000000e+00 : f32
    %273 = vector.broadcast %cst_77 : f32 to vector<8x8xf32>
    %274 = arith.select %272, %158, %273 : vector<8x8xi1>, vector<8x8xf32>
    %cst_78 = arith.constant dense<0.000000e+00> : vector<8xf32>
    %275 = vector.multi_reduction <add>, %274, %cst_78 [1] : vector<8x8xf32> to vector<8xf32>
    %276 = vector.shape_cast %275 : vector<8xf32> to vector<8x1xf32>
    %277 = vector.extract_strided_slice %160 {offsets = [10, 0], sizes = [1, 16], strides = [1, 1]} : vector<15x16xf32> to vector<1x16xf32>
    %278 = vector.broadcast %276 : vector<8x1xf32> to vector<8x16xf32>
    %279 = vector.broadcast %277 : vector<1x16xf32> to vector<8x16xf32>
    %280 = arith.mulf %278, %279 : vector<8x16xf32>
    %281 = arith.addf %270, %280 : vector<8x16xf32>
    %c4_i32_79 = arith.constant 4 : i32
    %282 = vector.broadcast %c4_i32_79 : i32 to vector<8x8xi32>
    %283 = arith.cmpi eq, %17, %282 : vector<8x8xi32>
    %cst_80 = arith.constant 0.000000e+00 : f32
    %284 = vector.broadcast %cst_80 : f32 to vector<8x8xf32>
    %285 = arith.select %283, %158, %284 : vector<8x8xi1>, vector<8x8xf32>
    %cst_81 = arith.constant dense<0.000000e+00> : vector<8xf32>
    %286 = vector.multi_reduction <add>, %285, %cst_81 [1] : vector<8x8xf32> to vector<8xf32>
    %287 = vector.shape_cast %286 : vector<8xf32> to vector<8x1xf32>
    %288 = vector.extract_strided_slice %160 {offsets = [11, 0], sizes = [1, 16], strides = [1, 1]} : vector<15x16xf32> to vector<1x16xf32>
    %289 = vector.broadcast %287 : vector<8x1xf32> to vector<8x16xf32>
    %290 = vector.broadcast %288 : vector<1x16xf32> to vector<8x16xf32>
    %291 = arith.mulf %289, %290 : vector<8x16xf32>
    %292 = arith.addf %281, %291 : vector<8x16xf32>
    %c5_i32_82 = arith.constant 5 : i32
    %293 = vector.broadcast %c5_i32_82 : i32 to vector<8x8xi32>
    %294 = arith.cmpi eq, %17, %293 : vector<8x8xi32>
    %cst_83 = arith.constant 0.000000e+00 : f32
    %295 = vector.broadcast %cst_83 : f32 to vector<8x8xf32>
    %296 = arith.select %294, %158, %295 : vector<8x8xi1>, vector<8x8xf32>
    %cst_84 = arith.constant dense<0.000000e+00> : vector<8xf32>
    %297 = vector.multi_reduction <add>, %296, %cst_84 [1] : vector<8x8xf32> to vector<8xf32>
    %298 = vector.shape_cast %297 : vector<8xf32> to vector<8x1xf32>
    %299 = vector.extract_strided_slice %160 {offsets = [12, 0], sizes = [1, 16], strides = [1, 1]} : vector<15x16xf32> to vector<1x16xf32>
    %300 = vector.broadcast %298 : vector<8x1xf32> to vector<8x16xf32>
    %301 = vector.broadcast %299 : vector<1x16xf32> to vector<8x16xf32>
    %302 = arith.mulf %300, %301 : vector<8x16xf32>
    %303 = arith.addf %292, %302 : vector<8x16xf32>
    %c6_i32_85 = arith.constant 6 : i32
    %304 = vector.broadcast %c6_i32_85 : i32 to vector<8x8xi32>
    %305 = arith.cmpi eq, %17, %304 : vector<8x8xi32>
    %cst_86 = arith.constant 0.000000e+00 : f32
    %306 = vector.broadcast %cst_86 : f32 to vector<8x8xf32>
    %307 = arith.select %305, %158, %306 : vector<8x8xi1>, vector<8x8xf32>
    %cst_87 = arith.constant dense<0.000000e+00> : vector<8xf32>
    %308 = vector.multi_reduction <add>, %307, %cst_87 [1] : vector<8x8xf32> to vector<8xf32>
    %309 = vector.shape_cast %308 : vector<8xf32> to vector<8x1xf32>
    %310 = vector.extract_strided_slice %160 {offsets = [13, 0], sizes = [1, 16], strides = [1, 1]} : vector<15x16xf32> to vector<1x16xf32>
    %311 = vector.broadcast %309 : vector<8x1xf32> to vector<8x16xf32>
    %312 = vector.broadcast %310 : vector<1x16xf32> to vector<8x16xf32>
    %313 = arith.mulf %311, %312 : vector<8x16xf32>
    %314 = arith.addf %303, %313 : vector<8x16xf32>
    %c7_i32_88 = arith.constant 7 : i32
    %315 = vector.broadcast %c7_i32_88 : i32 to vector<8x8xi32>
    %316 = arith.cmpi eq, %17, %315 : vector<8x8xi32>
    %cst_89 = arith.constant 0.000000e+00 : f32
    %317 = vector.broadcast %cst_89 : f32 to vector<8x8xf32>
    %318 = arith.select %316, %158, %317 : vector<8x8xi1>, vector<8x8xf32>
    %cst_90 = arith.constant dense<0.000000e+00> : vector<8xf32>
    %319 = vector.multi_reduction <add>, %318, %cst_90 [1] : vector<8x8xf32> to vector<8xf32>
    %320 = vector.shape_cast %319 : vector<8xf32> to vector<8x1xf32>
    %321 = vector.extract_strided_slice %160 {offsets = [14, 0], sizes = [1, 16], strides = [1, 1]} : vector<15x16xf32> to vector<1x16xf32>
    %322 = vector.broadcast %320 : vector<8x1xf32> to vector<8x16xf32>
    %323 = vector.broadcast %321 : vector<1x16xf32> to vector<8x16xf32>
    %324 = arith.mulf %322, %323 : vector<8x16xf32>
    %325 = arith.addf %314, %324 : vector<8x16xf32>
    %c0_91 = arith.constant 0 : index
    %c0_92 = arith.constant 0 : index
    %c0_93 = arith.constant 0 : index
    %c0_94 = arith.constant 0 : index
    %326 = vector.load %arg10[%c0_91, %c0_92, %c0_93, %c0_94] : memref<1x1x8x16xf32, #tpu.memory_space<vmem>>, vector<1x1x8x16xf32>
    %327 = vector.shape_cast %326 : vector<1x1x8x16xf32> to vector<8x16xf32>
    %328 = vector.shape_cast %325 : vector<8x16xf32> to vector<1x1x8x16xf32>
    tpu.vector_store %arg10[%c0_91, %c0_92, %c0_93, %c0_94], %328 {strides = array<i32>} : memref<1x1x8x16xf32, #tpu.memory_space<vmem>>, vector<1x1x8x16xf32>,
    return
  }
  func.func @transform_0(%arg0: i32, %arg1: i32, %arg2: i32) -> (i32, i32, i32, i32, i32) {
    %c0_i32 = arith.constant 0 : i32
    %c0_i32_0 = arith.constant 0 : i32
    %c0_i32_1 = arith.constant 0 : i32
    return %c0_i32, %arg0, %arg1, %arg2, %c0_i32_0 : i32, i32, i32, i32, i32
  }
  func.func @transform_1(%arg0: i32, %arg1: i32, %arg2: i32) -> (i32, i32, i32, i32, i32) {
    %c1_i32 = arith.constant 1 : i32
    %c0_i32 = arith.constant 0 : i32
    %c0_i32_0 = arith.constant 0 : i32
    %c0_i32_1 = arith.constant 0 : i32
    return %c1_i32, %arg0, %arg1, %c0_i32, %c0_i32_0 : i32, i32, i32, i32, i32
  }
  func.func @transform_2(%arg0: i32, %arg1: i32, %arg2: i32) -> (i32, i32, i32, i32, i32) {
    %c2_i32 = arith.constant 2 : i32
    %c0_i32 = arith.constant 0 : i32
    %c0_i32_0 = arith.constant 0 : i32
    %c0_i32_1 = arith.constant 0 : i32
    return %c2_i32, %arg0, %arg1, %c0_i32, %c0_i32_0 : i32, i32, i32, i32, i32
  }
  func.func @transform_3(%arg0: i32, %arg1: i32, %arg2: i32) -> (i32, i32) {
    %c0_i32 = arith.constant 0 : i32
    %c0_i32_0 = arith.constant 0 : i32
    %c0_i32_1 = arith.constant 0 : i32
    return %c0_i32, %c0_i32_0 : i32, i32
  }
  func.func @transform_4(%arg0: i32, %arg1: i32, %arg2: i32) -> (i32, i32) {
    %c0_i32 = arith.constant 0 : i32
    %c0_i32_0 = arith.constant 0 : i32
    %c0_i32_1 = arith.constant 0 : i32
    return %c0_i32, %c0_i32_0 : i32, i32
  }
  func.func @transform_5(%arg0: i32, %arg1: i32, %arg2: i32) -> (i32, i32, i32) {
    %c0_i32 = arith.constant 0 : i32
    %c0_i32_0 = arith.constant 0 : i32
    return %arg0, %arg2, %c0_i32 : i32, i32, i32
  }
  func.func @transform_6(%arg0: i32, %arg1: i32, %arg2: i32) -> (i32, i32, i32) {
    %c0_i32 = arith.constant 0 : i32
    %c0_i32_0 = arith.constant 0 : i32
    %c0_i32_1 = arith.constant 0 : i32
    return %arg0, %c0_i32, %c0_i32_0 : i32, i32, i32
  }
  func.func @transform_7(%arg0: i32, %arg1: i32, %arg2: i32) -> (i32, i32, i32, i32) {
    %c0_i32 = arith.constant 0 : i32
    %c0_i32_0 = arith.constant 0 : i32
    return %arg0, %arg1, %arg2, %c0_i32 : i32, i32, i32, i32
  }
}

module attributes {stable_mosaic.version = 11 : i64} {
  func.func @_conv_kernel(%arg0: i32, %arg1: i32, %arg2: memref<1x8x32xf32, #tpu.memory_space<vmem>>, %arg3: memref<32x32xf32, #tpu.memory_space<vmem>>, %arg4: memref<1x32xf32, #tpu.memory_space<vmem>>, %arg5: memref<1x8x32xf32, #tpu.memory_space<vmem>>) attributes {dimension_semantics = [#tpu.dimension_semantics<parallel>, #tpu.dimension_semantics<parallel>], iteration_bounds = array<i64: 2, 1>, scalar_prefetch = 0 : i64, scratch_operands = 0 : i64, tpu.core_type = #tpu.core_type<tc>, window_params = [{transform_indices = @transform_0, window_bounds = array<i64: 1, 8, 32>}, {pipeline_mode = #tpu.pipeline_mode<synchronous>, transform_indices = @transform_1, window_bounds = array<i64: 32, 32>}, {pipeline_mode = #tpu.pipeline_mode<synchronous>, transform_indices = @transform_2, window_bounds = array<i64: 1, 32>}, {transform_indices = @transform_3, window_bounds = array<i64: 1, 8, 32>}]} {
    %c0 = arith.constant 0 : index
    %c0_0 = arith.constant 0 : index
    %c0_1 = arith.constant 0 : index
    %0 = vector.load %arg2[%c0, %c0_0, %c0_1] : memref<1x8x32xf32, #tpu.memory_space<vmem>>, vector<1x8x32xf32>
    %1 = vector.shape_cast %0 : vector<1x8x32xf32> to vector<8x32xf32>
    %c0_2 = arith.constant 0 : index
    %c0_3 = arith.constant 0 : index
    %2 = vector.load %arg3[%c0_2, %c0_3] : memref<32x32xf32, #tpu.memory_space<vmem>>, vector<32x32xf32>
    %cst = arith.constant dense<0.000000e+00> : vector<8x32xf32>
    %3 = tpu.matmul %1, %2, %cst {dimension_numbers = #tpu.dot_dimension_numbers<[1], [0], [0], [1], [0, 0, 1, 1], [], []>} : vector<8x32xf32>, vector<32x32xf32>, vector<8x32xf32> -> vector<8x32xf32>
    %c0_4 = arith.constant 0 : index
    %c0_5 = arith.constant 0 : index
    %4 = vector.load %arg4[%c0_4, %c0_5] : memref<1x32xf32, #tpu.memory_space<vmem>>, vector<1x32xf32>
    %5 = vector.broadcast %4 : vector<1x32xf32> to vector<8x32xf32>
    %6 = arith.addf %3, %5 : vector<8x32xf32>
    %c0_6 = arith.constant 0 : index
    %c0_7 = arith.constant 0 : index
    %c0_8 = arith.constant 0 : index
    %7 = vector.load %arg5[%c0_6, %c0_7, %c0_8] : memref<1x8x32xf32, #tpu.memory_space<vmem>>, vector<1x8x32xf32>
    %8 = vector.shape_cast %7 : vector<1x8x32xf32> to vector<8x32xf32>
    %9 = vector.shape_cast %6 : vector<8x32xf32> to vector<1x8x32xf32>
    tpu.vector_store %arg5[%c0_6, %c0_7, %c0_8], %9 {strides = array<i32>} : memref<1x8x32xf32, #tpu.memory_space<vmem>>, vector<1x8x32xf32>,
    return
  }
  func.func @transform_0(%arg0: i32, %arg1: i32) -> (i32, i32, i32) {
    %c0_i32 = arith.constant 0 : i32
    %c0_i32_0 = arith.constant 0 : i32
    return %arg0, %arg1, %c0_i32 : i32, i32, i32
  }
  func.func @transform_1(%arg0: i32, %arg1: i32) -> (i32, i32) {
    %c0_i32 = arith.constant 0 : i32
    %c0_i32_0 = arith.constant 0 : i32
    %c0_i32_1 = arith.constant 0 : i32
    return %c0_i32, %c0_i32_0 : i32, i32
  }
  func.func @transform_2(%arg0: i32, %arg1: i32) -> (i32, i32) {
    %c0_i32 = arith.constant 0 : i32
    %c0_i32_0 = arith.constant 0 : i32
    %c0_i32_1 = arith.constant 0 : i32
    return %c0_i32, %c0_i32_0 : i32, i32
  }
  func.func @transform_3(%arg0: i32, %arg1: i32) -> (i32, i32, i32) {
    %c0_i32 = arith.constant 0 : i32
    %c0_i32_0 = arith.constant 0 : i32
    return %arg0, %arg1, %c0_i32 : i32, i32, i32
  }
}

module attributes {stable_mosaic.version = 11 : i64} {
  func.func @_ln_res_kernel(%arg0: i32, %arg1: i32, %arg2: memref<1x8x32xf32, #tpu.memory_space<vmem>>, %arg3: memref<1x8x32xf32, #tpu.memory_space<vmem>>, %arg4: memref<1x32xf32, #tpu.memory_space<vmem>>, %arg5: memref<1x32xf32, #tpu.memory_space<vmem>>, %arg6: memref<1x8x32xf32, #tpu.memory_space<vmem>>) attributes {dimension_semantics = [#tpu.dimension_semantics<parallel>, #tpu.dimension_semantics<parallel>], iteration_bounds = array<i64: 2, 1>, scalar_prefetch = 0 : i64, scratch_operands = 0 : i64, tpu.core_type = #tpu.core_type<tc>, window_params = [{transform_indices = @transform_0, window_bounds = array<i64: 1, 8, 32>}, {transform_indices = @transform_1, window_bounds = array<i64: 1, 8, 32>}, {pipeline_mode = #tpu.pipeline_mode<synchronous>, transform_indices = @transform_2, window_bounds = array<i64: 1, 32>}, {pipeline_mode = #tpu.pipeline_mode<synchronous>, transform_indices = @transform_3, window_bounds = array<i64: 1, 32>}, {transform_indices = @transform_4, window_bounds = array<i64: 1, 8, 32>}]} {
    %c0 = arith.constant 0 : index
    %c0_0 = arith.constant 0 : index
    %c0_1 = arith.constant 0 : index
    %0 = vector.load %arg2[%c0, %c0_0, %c0_1] : memref<1x8x32xf32, #tpu.memory_space<vmem>>, vector<1x8x32xf32>
    %1 = vector.shape_cast %0 : vector<1x8x32xf32> to vector<8x32xf32>
    %c0_2 = arith.constant 0 : index
    %c0_3 = arith.constant 0 : index
    %c0_4 = arith.constant 0 : index
    %2 = vector.load %arg3[%c0_2, %c0_3, %c0_4] : memref<1x8x32xf32, #tpu.memory_space<vmem>>, vector<1x8x32xf32>
    %3 = vector.shape_cast %2 : vector<1x8x32xf32> to vector<8x32xf32>
    %4 = arith.addf %1, %3 : vector<8x32xf32>
    %cst = arith.constant dense<0.000000e+00> : vector<8xf32>
    %5 = vector.multi_reduction <add>, %4, %cst [1] : vector<8x32xf32> to vector<8xf32>
    %6 = vector.shape_cast %5 : vector<8xf32> to vector<8x1xf32>
    %cst_5 = arith.constant 3.200000e+01 : f32
    %7 = vector.broadcast %cst_5 : f32 to vector<8x1xf32>
    %8 = arith.divf %6, %7 : vector<8x1xf32>
    %9 = vector.broadcast %8 : vector<8x1xf32> to vector<8x32xf32>
    %10 = arith.subf %4, %9 : vector<8x32xf32>
    %11 = arith.mulf %10, %10 : vector<8x32xf32>
    %cst_6 = arith.constant dense<0.000000e+00> : vector<8xf32>
    %12 = vector.multi_reduction <add>, %11, %cst_6 [1] : vector<8x32xf32> to vector<8xf32>
    %13 = vector.shape_cast %12 : vector<8xf32> to vector<8x1xf32>
    %cst_7 = arith.constant 3.200000e+01 : f32
    %14 = vector.broadcast %cst_7 : f32 to vector<8x1xf32>
    %15 = arith.divf %13, %14 : vector<8x1xf32>
    %cst_8 = arith.constant 9.99999974E-6 : f32
    %16 = vector.broadcast %cst_8 : f32 to vector<8x1xf32>
    %17 = arith.addf %15, %16 : vector<8x1xf32>
    %18 = math.rsqrt %17 : vector<8x1xf32>
    %19 = vector.broadcast %18 : vector<8x1xf32> to vector<8x32xf32>
    %20 = arith.mulf %10, %19 : vector<8x32xf32>
    %c0_9 = arith.constant 0 : index
    %c0_10 = arith.constant 0 : index
    %21 = vector.load %arg4[%c0_9, %c0_10] : memref<1x32xf32, #tpu.memory_space<vmem>>, vector<1x32xf32>
    %22 = vector.broadcast %21 : vector<1x32xf32> to vector<8x32xf32>
    %23 = arith.mulf %20, %22 : vector<8x32xf32>
    %c0_11 = arith.constant 0 : index
    %c0_12 = arith.constant 0 : index
    %24 = vector.load %arg5[%c0_11, %c0_12] : memref<1x32xf32, #tpu.memory_space<vmem>>, vector<1x32xf32>
    %25 = vector.broadcast %24 : vector<1x32xf32> to vector<8x32xf32>
    %26 = arith.addf %23, %25 : vector<8x32xf32>
    %c0_13 = arith.constant 0 : index
    %c0_14 = arith.constant 0 : index
    %c0_15 = arith.constant 0 : index
    %27 = vector.load %arg6[%c0_13, %c0_14, %c0_15] : memref<1x8x32xf32, #tpu.memory_space<vmem>>, vector<1x8x32xf32>
    %28 = vector.shape_cast %27 : vector<1x8x32xf32> to vector<8x32xf32>
    %29 = vector.shape_cast %26 : vector<8x32xf32> to vector<1x8x32xf32>
    tpu.vector_store %arg6[%c0_13, %c0_14, %c0_15], %29 {strides = array<i32>} : memref<1x8x32xf32, #tpu.memory_space<vmem>>, vector<1x8x32xf32>,
    return
  }
  func.func @transform_0(%arg0: i32, %arg1: i32) -> (i32, i32, i32) {
    %c0_i32 = arith.constant 0 : i32
    %c0_i32_0 = arith.constant 0 : i32
    return %arg0, %arg1, %c0_i32 : i32, i32, i32
  }
  func.func @transform_1(%arg0: i32, %arg1: i32) -> (i32, i32, i32) {
    %c0_i32 = arith.constant 0 : i32
    %c0_i32_0 = arith.constant 0 : i32
    return %arg0, %arg1, %c0_i32 : i32, i32, i32
  }
  func.func @transform_2(%arg0: i32, %arg1: i32) -> (i32, i32) {
    %c0_i32 = arith.constant 0 : i32
    %c0_i32_0 = arith.constant 0 : i32
    %c0_i32_1 = arith.constant 0 : i32
    return %c0_i32, %c0_i32_0 : i32, i32
  }
  func.func @transform_3(%arg0: i32, %arg1: i32) -> (i32, i32) {
    %c0_i32 = arith.constant 0 : i32
    %c0_i32_0 = arith.constant 0 : i32
    %c0_i32_1 = arith.constant 0 : i32
    return %c0_i32, %c0_i32_0 : i32, i32
  }
  func.func @transform_4(%arg0: i32, %arg1: i32) -> (i32, i32, i32) {
    %c0_i32 = arith.constant 0 : i32
    %c0_i32_0 = arith.constant 0 : i32
    return %arg0, %arg1, %c0_i32 : i32, i32, i32
  }
}

module attributes {stable_mosaic.version = 11 : i64} {
  func.func @_conv_kernel(%arg0: i32, %arg1: i32, %arg2: memref<1x8x32xf32, #tpu.memory_space<vmem>>, %arg3: memref<1x8x32xf32, #tpu.memory_space<vmem>>, %arg4: memref<1x8x32xf32, #tpu.memory_space<vmem>>, %arg5: memref<1x8x1xf32, #tpu.memory_space<vmem>>, %arg6: memref<1x8x1xf32, #tpu.memory_space<vmem>>, %arg7: memref<1x8x1xf32, #tpu.memory_space<vmem>>, %arg8: memref<96x64xf32, #tpu.memory_space<vmem>>, %arg9: memref<1x64xf32, #tpu.memory_space<vmem>>, %arg10: memref<1x8x64xf32, #tpu.memory_space<vmem>>, %arg11: memref<24x32xf32, #tpu.memory_space<vmem>>) attributes {dimension_semantics = [#tpu.dimension_semantics<parallel>, #tpu.dimension_semantics<parallel>], iteration_bounds = array<i64: 2, 1>, scalar_prefetch = 0 : i64, scratch_operands = 1 : i64, tpu.core_type = #tpu.core_type<tc>, window_params = [{transform_indices = @transform_0, window_bounds = array<i64: 1, 8, 32>}, {transform_indices = @transform_1, window_bounds = array<i64: 1, 8, 32>}, {transform_indices = @transform_2, window_bounds = array<i64: 1, 8, 32>}, {transform_indices = @transform_3, window_bounds = array<i64: 1, 8, 1>}, {transform_indices = @transform_4, window_bounds = array<i64: 1, 8, 1>}, {transform_indices = @transform_5, window_bounds = array<i64: 1, 8, 1>}, {pipeline_mode = #tpu.pipeline_mode<synchronous>, transform_indices = @transform_6, window_bounds = array<i64: 96, 64>}, {pipeline_mode = #tpu.pipeline_mode<synchronous>, transform_indices = @transform_7, window_bounds = array<i64: 1, 64>}, {transform_indices = @transform_8, window_bounds = array<i64: 1, 8, 64>}]} {
    %c0 = arith.constant 0 : index
    %c0_0 = arith.constant 0 : index
    %c0_1 = arith.constant 0 : index
    %0 = vector.load %arg2[%c0, %c0_0, %c0_1] : memref<1x8x32xf32, #tpu.memory_space<vmem>>, vector<1x8x32xf32>
    %1 = vector.shape_cast %0 : vector<1x8x32xf32> to vector<8x32xf32>
    %c0_2 = arith.constant 0 : index
    %c0_3 = arith.constant 0 : index
    %c0_4 = arith.constant 0 : index
    %2 = vector.load %arg5[%c0_2, %c0_3, %c0_4] : memref<1x8x1xf32, #tpu.memory_space<vmem>>, vector<1x8x1xf32>
    %3 = vector.shape_cast %2 : vector<1x8x1xf32> to vector<8x1xf32>
    %4 = vector.broadcast %3 : vector<8x1xf32> to vector<8x32xf32>
    %5 = arith.mulf %1, %4 : vector<8x32xf32>
    %c-1_i32 = arith.constant -1 : i32
    %6 = arith.addi %arg1, %c-1_i32 : i32
    %c8_i32 = arith.constant 8 : i32
    %7 = arith.muli %6, %c8_i32 : i32
    %8 = tpu.iota {dimensions = array<i32: 0>} : vector<8x1xi32>
    %9 = vector.broadcast %7 : i32 to vector<8x1xi32>
    %10 = arith.addi %9, %8 : vector<8x1xi32>
    %c0_i32 = arith.constant 0 : i32
    %11 = vector.broadcast %c0_i32 : i32 to vector<8x1xi32>
    %12 = arith.cmpi sge, %10, %11 : vector<8x1xi32>
    %c8_i32_5 = arith.constant 8 : i32
    %13 = vector.broadcast %c8_i32_5 : i32 to vector<8x1xi32>
    %14 = arith.cmpi slt, %10, %13 : vector<8x1xi32>
    %15 = arith.andi %12, %14 : vector<8x1xi1>
    %16 = arith.extui %15 : vector<8x1xi1> to vector<8x1xi32>
    %17 = arith.sitofp %16 : vector<8x1xi32> to vector<8x1xf32>
    %18 = vector.broadcast %17 : vector<8x1xf32> to vector<8x32xf32>
    %19 = arith.mulf %5, %18 : vector<8x32xf32>
    %c0_6 = arith.constant 0 : index
    %c0_7 = arith.constant 0 : index
    %20 = vector.load %arg11[%c0_6, %c0_7] : memref<24x32xf32, #tpu.memory_space<vmem>>, vector<8x32xf32>
    tpu.vector_store %arg11[%c0_6, %c0_7], %19 {strides = array<i32>} : memref<24x32xf32, #tpu.memory_space<vmem>>, vector<8x32xf32>,
    %c0_8 = arith.constant 0 : index
    %c0_9 = arith.constant 0 : index
    %c0_10 = arith.constant 0 : index
    %21 = vector.load %arg3[%c0_8, %c0_9, %c0_10] : memref<1x8x32xf32, #tpu.memory_space<vmem>>, vector<1x8x32xf32>
    %22 = vector.shape_cast %21 : vector<1x8x32xf32> to vector<8x32xf32>
    %c0_11 = arith.constant 0 : index
    %c0_12 = arith.constant 0 : index
    %c0_13 = arith.constant 0 : index
    %23 = vector.load %arg6[%c0_11, %c0_12, %c0_13] : memref<1x8x1xf32, #tpu.memory_space<vmem>>, vector<1x8x1xf32>
    %24 = vector.shape_cast %23 : vector<1x8x1xf32> to vector<8x1xf32>
    %25 = vector.broadcast %24 : vector<8x1xf32> to vector<8x32xf32>
    %26 = arith.mulf %22, %25 : vector<8x32xf32>
    %c0_i32_14 = arith.constant 0 : i32
    %27 = arith.addi %arg1, %c0_i32_14 : i32
    %c8_i32_15 = arith.constant 8 : i32
    %28 = arith.muli %27, %c8_i32_15 : i32
    %29 = tpu.iota {dimensions = array<i32: 0>} : vector<8x1xi32>
    %30 = vector.broadcast %28 : i32 to vector<8x1xi32>
    %31 = arith.addi %30, %29 : vector<8x1xi32>
    %c0_i32_16 = arith.constant 0 : i32
    %32 = vector.broadcast %c0_i32_16 : i32 to vector<8x1xi32>
    %33 = arith.cmpi sge, %31, %32 : vector<8x1xi32>
    %c8_i32_17 = arith.constant 8 : i32
    %34 = vector.broadcast %c8_i32_17 : i32 to vector<8x1xi32>
    %35 = arith.cmpi slt, %31, %34 : vector<8x1xi32>
    %36 = arith.andi %33, %35 : vector<8x1xi1>
    %37 = arith.extui %36 : vector<8x1xi1> to vector<8x1xi32>
    %38 = arith.sitofp %37 : vector<8x1xi32> to vector<8x1xf32>
    %39 = vector.broadcast %38 : vector<8x1xf32> to vector<8x32xf32>
    %40 = arith.mulf %26, %39 : vector<8x32xf32>
    %c8 = arith.constant 8 : index
    %c0_18 = arith.constant 0 : index
    %41 = vector.load %arg11[%c8, %c0_18] : memref<24x32xf32, #tpu.memory_space<vmem>>, vector<8x32xf32>
    tpu.vector_store %arg11[%c8, %c0_18], %40 {strides = array<i32>} : memref<24x32xf32, #tpu.memory_space<vmem>>, vector<8x32xf32>,
    %c0_19 = arith.constant 0 : index
    %c0_20 = arith.constant 0 : index
    %c0_21 = arith.constant 0 : index
    %42 = vector.load %arg4[%c0_19, %c0_20, %c0_21] : memref<1x8x32xf32, #tpu.memory_space<vmem>>, vector<1x8x32xf32>
    %43 = vector.shape_cast %42 : vector<1x8x32xf32> to vector<8x32xf32>
    %c0_22 = arith.constant 0 : index
    %c0_23 = arith.constant 0 : index
    %c0_24 = arith.constant 0 : index
    %44 = vector.load %arg7[%c0_22, %c0_23, %c0_24] : memref<1x8x1xf32, #tpu.memory_space<vmem>>, vector<1x8x1xf32>
    %45 = vector.shape_cast %44 : vector<1x8x1xf32> to vector<8x1xf32>
    %46 = vector.broadcast %45 : vector<8x1xf32> to vector<8x32xf32>
    %47 = arith.mulf %43, %46 : vector<8x32xf32>
    %c1_i32 = arith.constant 1 : i32
    %48 = arith.addi %arg1, %c1_i32 : i32
    %c8_i32_25 = arith.constant 8 : i32
    %49 = arith.muli %48, %c8_i32_25 : i32
    %50 = tpu.iota {dimensions = array<i32: 0>} : vector<8x1xi32>
    %51 = vector.broadcast %49 : i32 to vector<8x1xi32>
    %52 = arith.addi %51, %50 : vector<8x1xi32>
    %c0_i32_26 = arith.constant 0 : i32
    %53 = vector.broadcast %c0_i32_26 : i32 to vector<8x1xi32>
    %54 = arith.cmpi sge, %52, %53 : vector<8x1xi32>
    %c8_i32_27 = arith.constant 8 : i32
    %55 = vector.broadcast %c8_i32_27 : i32 to vector<8x1xi32>
    %56 = arith.cmpi slt, %52, %55 : vector<8x1xi32>
    %57 = arith.andi %54, %56 : vector<8x1xi1>
    %58 = arith.extui %57 : vector<8x1xi1> to vector<8x1xi32>
    %59 = arith.sitofp %58 : vector<8x1xi32> to vector<8x1xf32>
    %60 = vector.broadcast %59 : vector<8x1xf32> to vector<8x32xf32>
    %61 = arith.mulf %47, %60 : vector<8x32xf32>
    %c16 = arith.constant 16 : index
    %c0_28 = arith.constant 0 : index
    %62 = vector.load %arg11[%c16, %c0_28] : memref<24x32xf32, #tpu.memory_space<vmem>>, vector<8x32xf32>
    tpu.vector_store %arg11[%c16, %c0_28], %61 {strides = array<i32>} : memref<24x32xf32, #tpu.memory_space<vmem>>, vector<8x32xf32>,
    %c7 = arith.constant 7 : index
    %c0_29 = arith.constant 0 : index
    %63 = vector.load %arg11[%c7, %c0_29] : memref<24x32xf32, #tpu.memory_space<vmem>>, vector<8x32xf32>
    %c8_30 = arith.constant 8 : index
    %c0_31 = arith.constant 0 : index
    %64 = vector.load %arg11[%c8_30, %c0_31] : memref<24x32xf32, #tpu.memory_space<vmem>>, vector<8x32xf32>
    %c9 = arith.constant 9 : index
    %c0_32 = arith.constant 0 : index
    %65 = vector.load %arg11[%c9, %c0_32] : memref<24x32xf32, #tpu.memory_space<vmem>>, vector<8x32xf32>
    %66 = tpu.concatenate %63, %64, %65 in 1 : vector<8x32xf32>, vector<8x32xf32>, vector<8x32xf32> -> vector<8x96xf32>
    %c0_33 = arith.constant 0 : index
    %c0_34 = arith.constant 0 : index
    %67 = vector.load %arg8[%c0_33, %c0_34] : memref<96x64xf32, #tpu.memory_space<vmem>>, vector<96x64xf32>
    %cst = arith.constant dense<0.000000e+00> : vector<8x64xf32>
    %68 = tpu.matmul %66, %67, %cst {dimension_numbers = #tpu.dot_dimension_numbers<[1], [0], [0], [1], [0, 0, 1, 1], [], []>} : vector<8x96xf32>, vector<96x64xf32>, vector<8x64xf32> -> vector<8x64xf32>
    %c0_35 = arith.constant 0 : index
    %c0_36 = arith.constant 0 : index
    %69 = vector.load %arg9[%c0_35, %c0_36] : memref<1x64xf32, #tpu.memory_space<vmem>>, vector<1x64xf32>
    %70 = vector.broadcast %69 : vector<1x64xf32> to vector<8x64xf32>
    %71 = arith.addf %68, %70 : vector<8x64xf32>
    %cst_37 = arith.constant 0.000000e+00 : f32
    %72 = vector.broadcast %cst_37 : f32 to vector<8x64xf32>
    %73 = arith.maximumf %71, %72 : vector<8x64xf32>
    %c0_38 = arith.constant 0 : index
    %c0_39 = arith.constant 0 : index
    %c0_40 = arith.constant 0 : index
    %74 = vector.load %arg10[%c0_38, %c0_39, %c0_40] : memref<1x8x64xf32, #tpu.memory_space<vmem>>, vector<1x8x64xf32>
    %75 = vector.shape_cast %74 : vector<1x8x64xf32> to vector<8x64xf32>
    %76 = vector.shape_cast %73 : vector<8x64xf32> to vector<1x8x64xf32>
    tpu.vector_store %arg10[%c0_38, %c0_39, %c0_40], %76 {strides = array<i32>} : memref<1x8x64xf32, #tpu.memory_space<vmem>>, vector<1x8x64xf32>,
    return
  }
  func.func @transform_0(%arg0: i32, %arg1: i32) -> (i32, i32, i32) {
    %c1_i32 = arith.constant 1 : i32
    %0 = arith.subi %arg1, %c1_i32 : i32
    %c0_i32 = arith.constant 0 : i32
    %1 = arith.maxsi %0, %c0_i32 : i32
    %c0_i32_0 = arith.constant 0 : i32
    %c0_i32_1 = arith.constant 0 : i32
    return %arg0, %1, %c0_i32_0 : i32, i32, i32
  }
  func.func @transform_1(%arg0: i32, %arg1: i32) -> (i32, i32, i32) {
    %c0_i32 = arith.constant 0 : i32
    %c0_i32_0 = arith.constant 0 : i32
    return %arg0, %arg1, %c0_i32 : i32, i32, i32
  }
  func.func @transform_2(%arg0: i32, %arg1: i32) -> (i32, i32, i32) {
    %c1_i32 = arith.constant 1 : i32
    %0 = arith.addi %arg1, %c1_i32 : i32
    %c0_i32 = arith.constant 0 : i32
    %1 = arith.minsi %0, %c0_i32 : i32
    %c0_i32_0 = arith.constant 0 : i32
    %c0_i32_1 = arith.constant 0 : i32
    return %arg0, %1, %c0_i32_0 : i32, i32, i32
  }
  func.func @transform_3(%arg0: i32, %arg1: i32) -> (i32, i32, i32) {
    %c1_i32 = arith.constant 1 : i32
    %0 = arith.subi %arg1, %c1_i32 : i32
    %c0_i32 = arith.constant 0 : i32
    %1 = arith.maxsi %0, %c0_i32 : i32
    %c0_i32_0 = arith.constant 0 : i32
    %c0_i32_1 = arith.constant 0 : i32
    return %arg0, %1, %c0_i32_0 : i32, i32, i32
  }
  func.func @transform_4(%arg0: i32, %arg1: i32) -> (i32, i32, i32) {
    %c0_i32 = arith.constant 0 : i32
    %c0_i32_0 = arith.constant 0 : i32
    return %arg0, %arg1, %c0_i32 : i32, i32, i32
  }
  func.func @transform_5(%arg0: i32, %arg1: i32) -> (i32, i32, i32) {
    %c1_i32 = arith.constant 1 : i32
    %0 = arith.addi %arg1, %c1_i32 : i32
    %c0_i32 = arith.constant 0 : i32
    %1 = arith.minsi %0, %c0_i32 : i32
    %c0_i32_0 = arith.constant 0 : i32
    %c0_i32_1 = arith.constant 0 : i32
    return %arg0, %1, %c0_i32_0 : i32, i32, i32
  }
  func.func @transform_6(%arg0: i32, %arg1: i32) -> (i32, i32) {
    %c0_i32 = arith.constant 0 : i32
    %c0_i32_0 = arith.constant 0 : i32
    %c0_i32_1 = arith.constant 0 : i32
    return %c0_i32, %c0_i32_0 : i32, i32
  }
  func.func @transform_7(%arg0: i32, %arg1: i32) -> (i32, i32) {
    %c0_i32 = arith.constant 0 : i32
    %c0_i32_0 = arith.constant 0 : i32
    %c0_i32_1 = arith.constant 0 : i32
    return %c0_i32, %c0_i32_0 : i32, i32
  }
  func.func @transform_8(%arg0: i32, %arg1: i32) -> (i32, i32, i32) {
    %c0_i32 = arith.constant 0 : i32
    %c0_i32_0 = arith.constant 0 : i32
    return %arg0, %arg1, %c0_i32 : i32, i32, i32
  }
}

module attributes {stable_mosaic.version = 11 : i64} {
  func.func @_conv_kernel(%arg0: i32, %arg1: i32, %arg2: memref<1x8x64xf32, #tpu.memory_space<vmem>>, %arg3: memref<1x8x64xf32, #tpu.memory_space<vmem>>, %arg4: memref<1x8x64xf32, #tpu.memory_space<vmem>>, %arg5: memref<1x8x1xf32, #tpu.memory_space<vmem>>, %arg6: memref<1x8x1xf32, #tpu.memory_space<vmem>>, %arg7: memref<1x8x1xf32, #tpu.memory_space<vmem>>, %arg8: memref<192x32xf32, #tpu.memory_space<vmem>>, %arg9: memref<1x32xf32, #tpu.memory_space<vmem>>, %arg10: memref<1x8x1xf32, #tpu.memory_space<vmem>>, %arg11: memref<1x8x32xf32, #tpu.memory_space<vmem>>, %arg12: memref<24x64xf32, #tpu.memory_space<vmem>>) attributes {dimension_semantics = [#tpu.dimension_semantics<parallel>, #tpu.dimension_semantics<parallel>], iteration_bounds = array<i64: 2, 1>, scalar_prefetch = 0 : i64, scratch_operands = 1 : i64, tpu.core_type = #tpu.core_type<tc>, window_params = [{transform_indices = @transform_0, window_bounds = array<i64: 1, 8, 64>}, {transform_indices = @transform_1, window_bounds = array<i64: 1, 8, 64>}, {transform_indices = @transform_2, window_bounds = array<i64: 1, 8, 64>}, {transform_indices = @transform_3, window_bounds = array<i64: 1, 8, 1>}, {transform_indices = @transform_4, window_bounds = array<i64: 1, 8, 1>}, {transform_indices = @transform_5, window_bounds = array<i64: 1, 8, 1>}, {pipeline_mode = #tpu.pipeline_mode<synchronous>, transform_indices = @transform_6, window_bounds = array<i64: 192, 32>}, {pipeline_mode = #tpu.pipeline_mode<synchronous>, transform_indices = @transform_7, window_bounds = array<i64: 1, 32>}, {transform_indices = @transform_8, window_bounds = array<i64: 1, 8, 1>}, {transform_indices = @transform_9, window_bounds = array<i64: 1, 8, 32>}]} {
    %c0 = arith.constant 0 : index
    %c0_0 = arith.constant 0 : index
    %c0_1 = arith.constant 0 : index
    %0 = vector.load %arg2[%c0, %c0_0, %c0_1] : memref<1x8x64xf32, #tpu.memory_space<vmem>>, vector<1x8x64xf32>
    %1 = vector.shape_cast %0 : vector<1x8x64xf32> to vector<8x64xf32>
    %c0_2 = arith.constant 0 : index
    %c0_3 = arith.constant 0 : index
    %c0_4 = arith.constant 0 : index
    %2 = vector.load %arg5[%c0_2, %c0_3, %c0_4] : memref<1x8x1xf32, #tpu.memory_space<vmem>>, vector<1x8x1xf32>
    %3 = vector.shape_cast %2 : vector<1x8x1xf32> to vector<8x1xf32>
    %4 = vector.broadcast %3 : vector<8x1xf32> to vector<8x64xf32>
    %5 = arith.mulf %1, %4 : vector<8x64xf32>
    %c-1_i32 = arith.constant -1 : i32
    %6 = arith.addi %arg1, %c-1_i32 : i32
    %c8_i32 = arith.constant 8 : i32
    %7 = arith.muli %6, %c8_i32 : i32
    %8 = tpu.iota {dimensions = array<i32: 0>} : vector<8x1xi32>
    %9 = vector.broadcast %7 : i32 to vector<8x1xi32>
    %10 = arith.addi %9, %8 : vector<8x1xi32>
    %c0_i32 = arith.constant 0 : i32
    %11 = vector.broadcast %c0_i32 : i32 to vector<8x1xi32>
    %12 = arith.cmpi sge, %10, %11 : vector<8x1xi32>
    %c8_i32_5 = arith.constant 8 : i32
    %13 = vector.broadcast %c8_i32_5 : i32 to vector<8x1xi32>
    %14 = arith.cmpi slt, %10, %13 : vector<8x1xi32>
    %15 = arith.andi %12, %14 : vector<8x1xi1>
    %16 = arith.extui %15 : vector<8x1xi1> to vector<8x1xi32>
    %17 = arith.sitofp %16 : vector<8x1xi32> to vector<8x1xf32>
    %18 = vector.broadcast %17 : vector<8x1xf32> to vector<8x64xf32>
    %19 = arith.mulf %5, %18 : vector<8x64xf32>
    %c0_6 = arith.constant 0 : index
    %c0_7 = arith.constant 0 : index
    %20 = vector.load %arg12[%c0_6, %c0_7] : memref<24x64xf32, #tpu.memory_space<vmem>>, vector<8x64xf32>
    tpu.vector_store %arg12[%c0_6, %c0_7], %19 {strides = array<i32>} : memref<24x64xf32, #tpu.memory_space<vmem>>, vector<8x64xf32>,
    %c0_8 = arith.constant 0 : index
    %c0_9 = arith.constant 0 : index
    %c0_10 = arith.constant 0 : index
    %21 = vector.load %arg3[%c0_8, %c0_9, %c0_10] : memref<1x8x64xf32, #tpu.memory_space<vmem>>, vector<1x8x64xf32>
    %22 = vector.shape_cast %21 : vector<1x8x64xf32> to vector<8x64xf32>
    %c0_11 = arith.constant 0 : index
    %c0_12 = arith.constant 0 : index
    %c0_13 = arith.constant 0 : index
    %23 = vector.load %arg6[%c0_11, %c0_12, %c0_13] : memref<1x8x1xf32, #tpu.memory_space<vmem>>, vector<1x8x1xf32>
    %24 = vector.shape_cast %23 : vector<1x8x1xf32> to vector<8x1xf32>
    %25 = vector.broadcast %24 : vector<8x1xf32> to vector<8x64xf32>
    %26 = arith.mulf %22, %25 : vector<8x64xf32>
    %c0_i32_14 = arith.constant 0 : i32
    %27 = arith.addi %arg1, %c0_i32_14 : i32
    %c8_i32_15 = arith.constant 8 : i32
    %28 = arith.muli %27, %c8_i32_15 : i32
    %29 = tpu.iota {dimensions = array<i32: 0>} : vector<8x1xi32>
    %30 = vector.broadcast %28 : i32 to vector<8x1xi32>
    %31 = arith.addi %30, %29 : vector<8x1xi32>
    %c0_i32_16 = arith.constant 0 : i32
    %32 = vector.broadcast %c0_i32_16 : i32 to vector<8x1xi32>
    %33 = arith.cmpi sge, %31, %32 : vector<8x1xi32>
    %c8_i32_17 = arith.constant 8 : i32
    %34 = vector.broadcast %c8_i32_17 : i32 to vector<8x1xi32>
    %35 = arith.cmpi slt, %31, %34 : vector<8x1xi32>
    %36 = arith.andi %33, %35 : vector<8x1xi1>
    %37 = arith.extui %36 : vector<8x1xi1> to vector<8x1xi32>
    %38 = arith.sitofp %37 : vector<8x1xi32> to vector<8x1xf32>
    %39 = vector.broadcast %38 : vector<8x1xf32> to vector<8x64xf32>
    %40 = arith.mulf %26, %39 : vector<8x64xf32>
    %c8 = arith.constant 8 : index
    %c0_18 = arith.constant 0 : index
    %41 = vector.load %arg12[%c8, %c0_18] : memref<24x64xf32, #tpu.memory_space<vmem>>, vector<8x64xf32>
    tpu.vector_store %arg12[%c8, %c0_18], %40 {strides = array<i32>} : memref<24x64xf32, #tpu.memory_space<vmem>>, vector<8x64xf32>,
    %c0_19 = arith.constant 0 : index
    %c0_20 = arith.constant 0 : index
    %c0_21 = arith.constant 0 : index
    %42 = vector.load %arg4[%c0_19, %c0_20, %c0_21] : memref<1x8x64xf32, #tpu.memory_space<vmem>>, vector<1x8x64xf32>
    %43 = vector.shape_cast %42 : vector<1x8x64xf32> to vector<8x64xf32>
    %c0_22 = arith.constant 0 : index
    %c0_23 = arith.constant 0 : index
    %c0_24 = arith.constant 0 : index
    %44 = vector.load %arg7[%c0_22, %c0_23, %c0_24] : memref<1x8x1xf32, #tpu.memory_space<vmem>>, vector<1x8x1xf32>
    %45 = vector.shape_cast %44 : vector<1x8x1xf32> to vector<8x1xf32>
    %46 = vector.broadcast %45 : vector<8x1xf32> to vector<8x64xf32>
    %47 = arith.mulf %43, %46 : vector<8x64xf32>
    %c1_i32 = arith.constant 1 : i32
    %48 = arith.addi %arg1, %c1_i32 : i32
    %c8_i32_25 = arith.constant 8 : i32
    %49 = arith.muli %48, %c8_i32_25 : i32
    %50 = tpu.iota {dimensions = array<i32: 0>} : vector<8x1xi32>
    %51 = vector.broadcast %49 : i32 to vector<8x1xi32>
    %52 = arith.addi %51, %50 : vector<8x1xi32>
    %c0_i32_26 = arith.constant 0 : i32
    %53 = vector.broadcast %c0_i32_26 : i32 to vector<8x1xi32>
    %54 = arith.cmpi sge, %52, %53 : vector<8x1xi32>
    %c8_i32_27 = arith.constant 8 : i32
    %55 = vector.broadcast %c8_i32_27 : i32 to vector<8x1xi32>
    %56 = arith.cmpi slt, %52, %55 : vector<8x1xi32>
    %57 = arith.andi %54, %56 : vector<8x1xi1>
    %58 = arith.extui %57 : vector<8x1xi1> to vector<8x1xi32>
    %59 = arith.sitofp %58 : vector<8x1xi32> to vector<8x1xf32>
    %60 = vector.broadcast %59 : vector<8x1xf32> to vector<8x64xf32>
    %61 = arith.mulf %47, %60 : vector<8x64xf32>
    %c16 = arith.constant 16 : index
    %c0_28 = arith.constant 0 : index
    %62 = vector.load %arg12[%c16, %c0_28] : memref<24x64xf32, #tpu.memory_space<vmem>>, vector<8x64xf32>
    tpu.vector_store %arg12[%c16, %c0_28], %61 {strides = array<i32>} : memref<24x64xf32, #tpu.memory_space<vmem>>, vector<8x64xf32>,
    %c7 = arith.constant 7 : index
    %c0_29 = arith.constant 0 : index
    %63 = vector.load %arg12[%c7, %c0_29] : memref<24x64xf32, #tpu.memory_space<vmem>>, vector<8x64xf32>
    %c8_30 = arith.constant 8 : index
    %c0_31 = arith.constant 0 : index
    %64 = vector.load %arg12[%c8_30, %c0_31] : memref<24x64xf32, #tpu.memory_space<vmem>>, vector<8x64xf32>
    %c9 = arith.constant 9 : index
    %c0_32 = arith.constant 0 : index
    %65 = vector.load %arg12[%c9, %c0_32] : memref<24x64xf32, #tpu.memory_space<vmem>>, vector<8x64xf32>
    %66 = tpu.concatenate %63, %64, %65 in 1 : vector<8x64xf32>, vector<8x64xf32>, vector<8x64xf32> -> vector<8x192xf32>
    %c0_33 = arith.constant 0 : index
    %c0_34 = arith.constant 0 : index
    %67 = vector.load %arg8[%c0_33, %c0_34] : memref<192x32xf32, #tpu.memory_space<vmem>>, vector<192x32xf32>
    %cst = arith.constant dense<0.000000e+00> : vector<8x32xf32>
    %68 = tpu.matmul %66, %67, %cst {dimension_numbers = #tpu.dot_dimension_numbers<[1], [0], [0], [1], [0, 0, 1, 1], [], []>} : vector<8x192xf32>, vector<192x32xf32>, vector<8x32xf32> -> vector<8x32xf32>
    %c0_35 = arith.constant 0 : index
    %c0_36 = arith.constant 0 : index
    %69 = vector.load %arg9[%c0_35, %c0_36] : memref<1x32xf32, #tpu.memory_space<vmem>>, vector<1x32xf32>
    %70 = vector.broadcast %69 : vector<1x32xf32> to vector<8x32xf32>
    %71 = arith.addf %68, %70 : vector<8x32xf32>
    %c0_37 = arith.constant 0 : index
    %c0_38 = arith.constant 0 : index
    %c0_39 = arith.constant 0 : index
    %72 = vector.load %arg10[%c0_37, %c0_38, %c0_39] : memref<1x8x1xf32, #tpu.memory_space<vmem>>, vector<1x8x1xf32>
    %73 = vector.shape_cast %72 : vector<1x8x1xf32> to vector<8x1xf32>
    %74 = vector.broadcast %73 : vector<8x1xf32> to vector<8x32xf32>
    %75 = arith.mulf %71, %74 : vector<8x32xf32>
    %c0_40 = arith.constant 0 : index
    %c0_41 = arith.constant 0 : index
    %c0_42 = arith.constant 0 : index
    %76 = vector.load %arg11[%c0_40, %c0_41, %c0_42] : memref<1x8x32xf32, #tpu.memory_space<vmem>>, vector<1x8x32xf32>
    %77 = vector.shape_cast %76 : vector<1x8x32xf32> to vector<8x32xf32>
    %78 = vector.shape_cast %75 : vector<8x32xf32> to vector<1x8x32xf32>
    tpu.vector_store %arg11[%c0_40, %c0_41, %c0_42], %78 {strides = array<i32>} : memref<1x8x32xf32, #tpu.memory_space<vmem>>, vector<1x8x32xf32>,
    return
  }
  func.func @transform_0(%arg0: i32, %arg1: i32) -> (i32, i32, i32) {
    %c1_i32 = arith.constant 1 : i32
    %0 = arith.subi %arg1, %c1_i32 : i32
    %c0_i32 = arith.constant 0 : i32
    %1 = arith.maxsi %0, %c0_i32 : i32
    %c0_i32_0 = arith.constant 0 : i32
    %c0_i32_1 = arith.constant 0 : i32
    return %arg0, %1, %c0_i32_0 : i32, i32, i32
  }
  func.func @transform_1(%arg0: i32, %arg1: i32) -> (i32, i32, i32) {
    %c0_i32 = arith.constant 0 : i32
    %c0_i32_0 = arith.constant 0 : i32
    return %arg0, %arg1, %c0_i32 : i32, i32, i32
  }
  func.func @transform_2(%arg0: i32, %arg1: i32) -> (i32, i32, i32) {
    %c1_i32 = arith.constant 1 : i32
    %0 = arith.addi %arg1, %c1_i32 : i32
    %c0_i32 = arith.constant 0 : i32
    %1 = arith.minsi %0, %c0_i32 : i32
    %c0_i32_0 = arith.constant 0 : i32
    %c0_i32_1 = arith.constant 0 : i32
    return %arg0, %1, %c0_i32_0 : i32, i32, i32
  }
  func.func @transform_3(%arg0: i32, %arg1: i32) -> (i32, i32, i32) {
    %c1_i32 = arith.constant 1 : i32
    %0 = arith.subi %arg1, %c1_i32 : i32
    %c0_i32 = arith.constant 0 : i32
    %1 = arith.maxsi %0, %c0_i32 : i32
    %c0_i32_0 = arith.constant 0 : i32
    %c0_i32_1 = arith.constant 0 : i32
    return %arg0, %1, %c0_i32_0 : i32, i32, i32
  }
  func.func @transform_4(%arg0: i32, %arg1: i32) -> (i32, i32, i32) {
    %c0_i32 = arith.constant 0 : i32
    %c0_i32_0 = arith.constant 0 : i32
    return %arg0, %arg1, %c0_i32 : i32, i32, i32
  }
  func.func @transform_5(%arg0: i32, %arg1: i32) -> (i32, i32, i32) {
    %c1_i32 = arith.constant 1 : i32
    %0 = arith.addi %arg1, %c1_i32 : i32
    %c0_i32 = arith.constant 0 : i32
    %1 = arith.minsi %0, %c0_i32 : i32
    %c0_i32_0 = arith.constant 0 : i32
    %c0_i32_1 = arith.constant 0 : i32
    return %arg0, %1, %c0_i32_0 : i32, i32, i32
  }
  func.func @transform_6(%arg0: i32, %arg1: i32) -> (i32, i32) {
    %c0_i32 = arith.constant 0 : i32
    %c0_i32_0 = arith.constant 0 : i32
    %c0_i32_1 = arith.constant 0 : i32
    return %c0_i32, %c0_i32_0 : i32, i32
  }
  func.func @transform_7(%arg0: i32, %arg1: i32) -> (i32, i32) {
    %c0_i32 = arith.constant 0 : i32
    %c0_i32_0 = arith.constant 0 : i32
    %c0_i32_1 = arith.constant 0 : i32
    return %c0_i32, %c0_i32_0 : i32, i32
  }
  func.func @transform_8(%arg0: i32, %arg1: i32) -> (i32, i32, i32) {
    %c0_i32 = arith.constant 0 : i32
    %c0_i32_0 = arith.constant 0 : i32
    return %arg0, %arg1, %c0_i32 : i32, i32, i32
  }
  func.func @transform_9(%arg0: i32, %arg1: i32) -> (i32, i32, i32) {
    %c0_i32 = arith.constant 0 : i32
    %c0_i32_0 = arith.constant 0 : i32
    return %arg0, %arg1, %c0_i32 : i32, i32, i32
  }
}

</mosaic_0001>

<bundles_post_ra>
// kernel: synthesizer_forward.80
= control target key start
LH: loop header
LB: loop body
LE: loop exit
PB: predicated region body
PF: predicated region fallthrough
CT: control target
= control target key end

     0   :  { %s551_s15 = smov 0   ;;  %s553_s16 = smov 0   ;;  %s602_s0 = inlined_call_operand.vmem [shape: f32[2,8,32], index: 0, kind: input, shape index: {}]   ;;  %s603_s1 = inlined_call_operand.vmem [shape: f32[32,32], index: 1, kind: input, shape index: {}]   ;;  %s604_s2 = inlined_call_operand.vmem [shape: f32[1,32], index: 2, kind: input, shape index: {}]   ;;  %s605_s3 = inlined_call_operand.vmem [shape: f32[2,8,1], index: 3, kind: input, shape index: {}]   ;;  %s606_s4 = inlined_call_operand.vmem [shape: f32[2,8,32], index: 4, kind: output, shape index: {}]  }
   0x1   :  { %s555_s17 = smov 0  }
   0x2 LB: > { %s26_s18 = sadd.s32 1, %s516_s16  ;;  %p439_p0 = scmp.ge.s32.totalorder %s520_s17, 1  ;;  %s520_s17 = sphi %s555_s17, %s14_s17   ;;  %s516_s16 = sphi %s553_s16, %s608_s16   ;;  %s512_s15 = sphi %s551_s15, %s607_s15  }
   0x3   : > { %p28_p1 = scmp.ge.s32.totalorder %s26_s18, 2  ;;  %p194_p2 = scmp.lt.s32.totalorder %s520_s17, 3 }
   0x5   : > { %s610_s18 = smov (%p28_p1, %s26_s18), 0  ;;  %p195_p3 = pnand %p439_p0, %p194_p2 }
   0x6   : > { %v253_v0 = vld [vmem:[%s603_s1] sm:$0xff] (!%p195_p3)  ;;  %v254_v1 = vld [vmem:[%s603_s1 + $0x8] sm:$0xff] (!%p195_p3)  ;;  %v255_v2 = vld [vmem:[%s603_s1 + $0x10] sm:$0xff] (!%p195_p3)  ;;  %v522_v3 = vmov (!%p195_p3), 0.0|0.0   ;;  %vm523_vm0 = vmmov (!%p195_p3), 0   ;;  %v524_v6 = vmov (!%p195_p3), 0.0  }
   0x7   : > { %198 = sbr.rel (%p195_p3) target bundleno = 235 (0xeb), region = 36  ;;  %463 = vmatprep.subr.bf16.mxu0 (!%p195_p3), %v522_v3  ;;  %v464_v4 = vpack.c.bf16 (!%p195_p3), %v254_v1, %v253_v0  ;;  %v256_v5 = vld [vmem:[%s603_s1 + $0x18] sm:$0xff] (!%p195_p3)  ;;  %460 = vmatprep.mubr.msk.f32.mxu0 (!%p195_p3), %vm523_vm0, %v524_v6  ;;  %p231_p4 = scmp.lt.s32.totalorder (!%p195_p3), %s512_s15, 1  ;;  %v525_v7 = vmov (!%p195_p3), 0   ;;  %vm264_vm1 = vcmask (!%p195_p3), 261120  }
   0x8   : > { %497 = vset.pattern.permute.xlu0 (!%p195_p3), %v525_v7  ;;  %v467_v8 = vpack.c.bf16 (!%p195_p3), %v256_v5, %v255_v2  ;;  %v443_v11 = vld [vmem:[%s604_s2] ss:$0 sm:$0xff] (!%p195_p3) }
   0x9   : > { %465 = vmatpush3.bf16.msra.mxu0 (!%p195_p3), %v464_v4 }
   0xa   : > { %466 = vmatprep.subr.bf16.mxu0 (!%p195_p3), %v522_v3 }
   0xd   : > { %468 = vmatpush3.bf16.msra.mxu0 (!%p195_p3), %v467_v8 }
   0xe   : > { %s612_s15 = smov (!%p231_p4, %s512_s15), 1 }
   0xf   : > { %s440_s27 = sshll.u32 %s612_s15, 3 }
  0x10   : > { %s237_s30 = scalar_lea.vmem %s602_s0, %s440_s27  ;;  %s244_s7 = scalar_lea.vmem %s605_s3, %s440_s27 }
  0x11   : > { %v252_v9 = vld [vmem:[%s237_s30] sm:$0xff]  ;;  %s251_s12 = scalar_lea.vmem %s606_s4, %s440_s27 }
  0x12   : > { %v338_v10 = vld [vmem:[%s244_s7] sm:$0xff]  ;;  %461 = vmatmul.mubr.msk.f32.vlgmr.msra.gmra.mrb[0].mxu0 %vm264_vm1, %v252_v9 }
  0x13   : > { %341 = vperm.xlu0 %497, %v338_v10  }
  0x92   : > { %v342_v13 = vpop.permute.xlu0 %341 }
  0xe5   : > { %v334_v12 = vpop.f32.mrb[0].mxu0 }
  0xe6   : > { %v335_v14 = vadd.f32 %v443_v11, %v334_v12  ;;  %v462_v15 = vpop.f32.mrb[1].mxu0 }
  0xe8   : > { %v344_v16 = vmul.f32 %v342_v13, %v335_v14 }
  0xea   : > { %345 = vst.msk [vmem:[%s251_s12] sm:$0xff] %vm264_vm1, %v344_v16 }
  0xeb PF: > { %s14_s17 = sadd.s32 1, %s520_s17   ;;  %s607_s15 = smov %s516_s16 }
  0xec   : > { %p11_p5 = scmp.ge.s32.totalorder %s14_s17, 4   ;;  %s608_s16 = smov %s610_s18 }
  0xee   :  { %13 = sbr.rel (!%p11_p5) target bundleno = 2 (0x2), region = 69 }

// kernel: synthesizer_forward.97
= control target key start
LH: loop header
LB: loop body
LE: loop exit
PB: predicated region body
PF: predicated region fallthrough
CT: control target
= control target key end

     0   :  { %s552_s15 = smov 0   ;;  %s554_s16 = smov 0   ;;  %s603_s0 = inlined_call_operand.vmem [shape: f32[2,8,32], index: 0, kind: input, shape index: {}]   ;;  %s604_s1 = inlined_call_operand.vmem [shape: f32[32,64], index: 1, kind: input, shape index: {}]   ;;  %s605_s2 = inlined_call_operand.vmem [shape: f32[1,64], index: 2, kind: input, shape index: {}]   ;;  %s606_s3 = inlined_call_operand.vmem [shape: f32[2,8,1], index: 3, kind: input, shape index: {}]   ;;  %s607_s4 = inlined_call_operand.vmem [shape: f32[2,8,64], index: 4, kind: output, shape index: {}]  }
   0x1   :  { %s556_s17 = smov 0  }
   0x2 LB: > { %s26_s18 = sadd.s32 1, %s517_s16  ;;  %p440_p0 = scmp.ge.s32.totalorder %s521_s17, 1  ;;  %s521_s17 = sphi %s556_s17, %s14_s17   ;;  %s517_s16 = sphi %s554_s16, %s609_s16   ;;  %s513_s15 = sphi %s552_s15, %s608_s15  }
   0x3   : > { %p28_p1 = scmp.ge.s32.totalorder %s26_s18, 2  ;;  %p194_p2 = scmp.lt.s32.totalorder %s521_s17, 3 }
   0x5   : > { %s611_s18 = smov (%p28_p1, %s26_s18), 0  ;;  %p195_p3 = pnand %p440_p0, %p194_p2 }
   0x6   : > { %v253_v0 = vld [vmem:[%s604_s1] sm:$0xff] (!%p195_p3)  ;;  %v254_v1 = vld [vmem:[%s604_s1 + $0x8] sm:$0xff] (!%p195_p3)  ;;  %v255_v2 = vld [vmem:[%s604_s1 + $0x10] sm:$0xff] (!%p195_p3)  ;;  %v523_v3 = vmov (!%p195_p3), 0.0|0.0   ;;  %vm524_vm0 = vmmov (!%p195_p3), 0   ;;  %v525_v6 = vmov (!%p195_p3), 0.0  }
   0x7   : > { %198 = sbr.rel (%p195_p3) target bundleno = 235 (0xeb), region = 36  ;;  %464 = vmatprep.subr.bf16.mxu0 (!%p195_p3), %v523_v3  ;;  %v465_v4 = vpack.c.bf16 (!%p195_p3), %v254_v1, %v253_v0  ;;  %v256_v5 = vld [vmem:[%s604_s1 + $0x18] sm:$0xff] (!%p195_p3)  ;;  %461 = vmatprep.mubr.msk.f32.mxu0 (!%p195_p3), %vm524_vm0, %v525_v6  ;;  %p231_p4 = scmp.lt.s32.totalorder (!%p195_p3), %s513_s15, 1  ;;  %v526_v7 = vmov (!%p195_p3), 0   ;;  %vm264_vm1 = vcmask (!%p195_p3), 261120   ;;  %vm345_vm2 = vcmask (!%p195_p3), 523264  }
   0x8   : > { %498 = vset.pattern.permute.xlu0 (!%p195_p3), %v526_v7  ;;  %v468_v8 = vpack.c.bf16 (!%p195_p3), %v256_v5, %v255_v2  ;;  %v444_v11 = vld [vmem:[%s605_s2] ss:$0 sm:$0xff] (!%p195_p3) }
   0x9   : > { %466 = vmatpush3.bf16.msra.mxu0 (!%p195_p3), %v465_v4 }
   0xa   : > { %467 = vmatprep.subr.bf16.mxu0 (!%p195_p3), %v523_v3 }
   0xd   : > { %469 = vmatpush3.bf16.msra.mxu0 (!%p195_p3), %v468_v8 }
   0xe   : > { %s613_s15 = smov (!%p231_p4, %s513_s15), 1 }
   0xf   : > { %s441_s27 = sshll.u32 %s613_s15, 3 }
  0x10   : > { %s237_s30 = scalar_lea.vmem %s603_s0, %s441_s27  ;;  %s244_s7 = scalar_lea.vmem %s606_s3, %s441_s27 }
  0x11   : > { %v252_v9 = vld [vmem:[%s237_s30] sm:$0xff]  ;;  %s251_s12 = scalar_lea.vmem %s607_s4, %s441_s27 }
  0x12   : > { %v338_v10 = vld [vmem:[%s244_s7] sm:$0xff]  ;;  %462 = vmatmul.mubr.msk.f32.vlgmr.msra.gmra.mrb[0].mxu0 %vm264_vm1, %v252_v9 }
  0x13   : > { %341 = vperm.xlu0 %498, %v338_v10  }
  0x92   : > { %v342_v13 = vpop.permute.xlu0 %341 }
  0xe5   : > { %v334_v12 = vpop.f32.mrb[0].mxu0 }
  0xe6   : > { %v335_v14 = vadd.f32 %v444_v11, %v334_v12  ;;  %v463_v15 = vpop.f32.mrb[1].mxu0 }
  0xe8   : > { %v344_v16 = vmul.f32 %v342_v13, %v335_v14 }
  0xea   : > { %346 = vst.msk [vmem:[%s251_s12] sm:$0xff] %vm345_vm2, %v344_v16 }
  0xeb PF: > { %s14_s17 = sadd.s32 1, %s521_s17   ;;  %s608_s15 = smov %s517_s16 }
  0xec   : > { %p11_p5 = scmp.ge.s32.totalorder %s14_s17, 4   ;;  %s609_s16 = smov %s611_s18 }
  0xee   :  { %13 = sbr.rel (!%p11_p5) target bundleno = 2 (0x2), region = 69 }

// kernel: synthesizer_forward.81
= control target key start
LH: loop header
LB: loop body
LE: loop exit
PB: predicated region body
PF: predicated region fallthrough
CT: control target
= control target key end

     0   :  { %s1266_s17 = smov 0   ;;  %s1268_s18 = smov 0   ;;  %s1435_s0 = inlined_call_operand.vmem [shape: f32[2,8,32], index: 0, kind: input, shape index: {}, may-alias: {0,1,2}]   ;;  %s1436_s1 = inlined_call_operand.vmem [shape: f32[2,8,32], index: 1, kind: input, shape index: {}, may-alias: {0,1,2}]   ;;  %s1437_s2 = inlined_call_operand.vmem [shape: f32[2,8,32], index: 2, kind: input, shape index: {}, may-alias: {0,1,2}]   ;;  %s1438_s3 = inlined_call_operand.vmem [shape: f32[2,8,32], index: 3, kind: input, shape index: {}]   ;;  %s1439_s4 = inlined_call_operand.vmem [shape: f32[2,1,64], index: 4, kind: input, shape index: {}]   ;;  %s1440_s5 = inlined_call_operand.vmem [shape: f32[2,8,1], index: 5, kind: input, shape index: {}]   ;;  %s1441_s6 = inlined_call_operand.vmem [shape: f32[160,64], index: 6, kind: input, shape index: {}]   ;;  %s1442_s7 = inlined_call_operand.vmem [shape: f32[1,64], index: 7, kind: input, shape index: {}]   ;;  %s1443_s8 = inlined_call_operand.vmem [shape: f32[32,64], index: 8, kind: input, shape index: {}]   ;;  %s1444_s9 = inlined_call_operand.vmem [shape: f32[1,64], index: 9, kind: input, shape index: {}]   ;;  %s1445_s10 = inlined_call_operand.vmem [shape: f32[2,8,32], index: 10, kind: output, shape index: {0}]   ;;  %s1446_s11 = inlined_call_operand.vmem [shape: f32[2,8,32], index: 11, kind: output, shape index: {1}]  }
   0x1   :  { %s1270_s19 = smov 0  }
   0x2 LB: > { %s34_s20 = sadd.s32 1, %s1193_s18  ;;  %p1069_p0 = scmp.ge.s32.totalorder %s1197_s19, 1  ;;  %s1197_s19 = sphi %s1270_s19, %s22_s19   ;;  %s1193_s18 = sphi %s1268_s18, %s1448_s18   ;;  %s1189_s17 = sphi %s1266_s17, %s1447_s17  }
   0x3   : > { %p36_p1 = scmp.ge.s32.totalorder %s34_s20, 2  ;;  %p448_p2 = scmp.lt.s32.totalorder %s1197_s19, 3 }
   0x5   : > { %s1450_s20 = smov (%p36_p1, %s34_s20), 0  ;;  %p449_p3 = pnand %p1069_p0, %p448_p2 }
   0x6   : > { %p539_p4 = scmp.lt.s32.totalorder (!%p449_p3), %s1189_s17, 1  ;;  %v660_v0 = vld [vmem:[%s1441_s6] sm:$0xff] (!%p449_p3)  ;;  %v661_v1 = vld [vmem:[%s1441_s6 + $0x8] sm:$0xff] (!%p449_p3)  ;;  %v1199_v2 = vmov (!%p449_p3), 0.0|0.0   ;;  %v662_v4 = vld [vmem:[%s1441_s6 + $0x10] sm:$0xff] (!%p449_p3)  ;;  %vm613_vm0 = vcmask (!%p449_p3), 261120  }
   0x7   : > { %452 = sbr.rel (%p449_p3) target bundleno = 840 (0x348), region = 60  ;;  %1101 = vmatprep.subr.bf16.mxu0 (!%p449_p3), %v1199_v2  ;;  %v1102_v3 = vpack.c.bf16 (!%p449_p3), %v661_v1, %v660_v0  ;;  %v663_v5 = vld [vmem:[%s1441_s6 + $0x18] sm:$0xff] (!%p449_p3)  ;;  %1131 = vmatprep.subr.bf16.mxu1 (!%p449_p3), %v1199_v2  ;;  %v664_v7 = vld [vmem:[%s1441_s6 + $0x20] sm:$0xff] (!%p449_p3)  ;;  %v665_v8 = vld [vmem:[%s1441_s6 + $0x28] sm:$0xff] (!%p449_p3)  ;;  %s1200_s26 = smov (!%p449_p3), 32   ;;  %vm656_vm1 = vcmask (!%p449_p3), 523264  }
   0x8   : > { %v1105_v6 = vpack.c.bf16 (!%p449_p3), %v663_v5, %v662_v4  ;;  %v1108_v13 = vpack.c.bf16 (!%p449_p3), %v665_v8, %v664_v7  ;;  %v666_v15 = vld [vmem:[%s1441_s6 + $0x30] sm:$0xff] (!%p449_p3)  ;;  %v667_v16 = vld [vmem:[%s1441_s6 + $0x38] sm:$0xff] (!%p449_p3)  ;;  %v668_v18 = vld [vmem:[%s1441_s6 + $0x40] sm:$0xff] (!%p449_p3)  ;;  %s1202_s14 = smov (!%p449_p3), 64   ;;  %vm658_vm2 = vcmask (!%p449_p3), 785408   ;;  %vm1203_vm3 = vmmov (!%p449_p3), 0  }
   0x9   : > { %1103 = vmatpush1.bf16.msra.mxu0 (!%p449_p3), %v1102_v3  ;;  %v1111_v17 = vpack.c.bf16 (!%p449_p3), %v667_v16, %v666_v15  ;;  %v669_v19 = vld [vmem:[%s1441_s6 + $0x48] sm:$0xff] (!%p449_p3)  ;;  %v670_v22 = vld [vmem:[%s1441_s6 + $0x50] sm:$0xff] (!%p449_p3)  ;;  %v671_v23 = vld [vmem:[%s1441_s6 + $0x58] sm:$0xff] (!%p449_p3)  ;;  %v1204_v62 = vmov (!%p449_p3), 0.0   ;;  %v1205_v63 = vmov (!%p449_p3), 0  }
   0xa   : > { %1104 = vmatprep.subr.bf16.mxu0 (!%p449_p3), %v1199_v2  ;;  %v1114_v20 = vpack.c.bf16 (!%p449_p3), %v669_v19, %v668_v18  ;;  %v1117_v27 = vpack.c.bf16 (!%p449_p3), %v671_v23, %v670_v22  ;;  %v672_v28 = vld [vmem:[%s1441_s6 + $0x60] sm:$0xff] (!%p449_p3)  ;;  %v673_v29 = vld [vmem:[%s1441_s6 + $0x68] sm:$0xff] (!%p449_p3)  ;;  %v674_v31 = vld [vmem:[%s1441_s6 + $0x70] sm:$0xff] (!%p449_p3)  ;;  %1098 = vmatprep.mubr.msk.f32.mxu1 (!%p449_p3), %vm1203_vm3, %v1204_v62 }
   0xb   : > { %v1120_v30 = vpack.c.bf16 (!%p449_p3), %v673_v29, %v672_v28  ;;  %v675_v32 = vld [vmem:[%s1441_s6 + $0x78] sm:$0xff] (!%p449_p3)  ;;  %v676_v34 = vld [vmem:[%s1441_s6 + $0x80] sm:$0xff] (!%p449_p3)  ;;  %v677_v35 = vld [vmem:[%s1441_s6 + $0x88] sm:$0xff] (!%p449_p3)  ;;  %1168 = vset.pattern.permute.xlu0 (!%p449_p3), %v1205_v63 }
   0xc   : > { %v1123_v33 = vpack.c.bf16 (!%p449_p3), %v675_v32, %v674_v31  ;;  %v1126_v36 = vpack.c.bf16 (!%p449_p3), %v677_v35, %v676_v34  ;;  %v678_v37 = vld [vmem:[%s1441_s6 + $0x90] sm:$0xff] (!%p449_p3)  ;;  %v679_v38 = vld [vmem:[%s1441_s6 + $0x98] sm:$0xff] (!%p449_p3)  ;;  %v780_v47 = vld [vmem:[%s1443_s8] sm:$0xff] (!%p449_p3) }
   0xd   : > { %1106 = vmatpush1.bf16.msra.mxu0 (!%p449_p3), %v1105_v6  ;;  %v1129_v39 = vpack.c.bf16 (!%p449_p3), %v679_v38, %v678_v37  ;;  %v781_v48 = vld [vmem:[%s1443_s8 + $0x8] sm:$0xff] (!%p449_p3)  ;;  %v782_v49 = vld [vmem:[%s1443_s8 + $0x10] sm:$0xff] (!%p449_p3)  ;;  %v783_v51 = vld [vmem:[%s1443_s8 + $0x18] sm:$0xff] (!%p449_p3) }
   0xe   : > { %s1452_s17 = smov (!%p539_p4, %s1189_s17), 1  ;;  %1107 = vmatprep.subr.bf16.mxu0 %v1199_v2  ;;  %v1132_v50 = vpack.c.bf16 %v781_v48, %v780_v47  ;;  %v1135_v52 = vpack.c.bf16 %v783_v51, %v782_v49  ;;  %v1077_v53 = vld [vmem:[%s1442_s7] ss:$0 sm:$0xff] }
   0xf   : > { %s1301_s29 = sshll.u32 %s1452_s17, 3  ;;  %s578_s30 = scalar_lea.vmem %s1439_s4, %s1452_s17  ;;  %v1081_v5 = vld [vmem:[%s1444_s9] ss:$0 sm:$0xff] }
  0x10   : > { %s545_s21 = scalar_lea.vmem %s1435_s0, %s1301_s29  ;;  %s555_s24 = scalar_lea.vmem %s1436_s1, %s1301_s29  ;;  %1133 = vmatpush3.bf16.msra.mxu1 %v1132_v50  ;;  %v1079_v55 = vld [vmem:[%s578_s30] ss:$0 sm:$0xff] }
  0x11   : > { %v600_v9 = vld [vmem:[%s545_s21] sm:$0xff]  ;;  %s565_s27 = scalar_lea.vmem %s1437_s2, %s1301_s29  ;;  %1109 = vmatpush1.bf16.msra.mxu0 %v1108_v13  ;;  %1134 = vmatprep.subr.bf16.mxu1 %v1199_v2  ;;  %s585_s17 = scalar_lea.vmem %s1440_s5, %s1301_s29 }
  0x12   : > { %v1318_v10 = vld [vmem:[%s555_s24] sm:$0xff]  ;;  %v612_v11 = vmul.f32 0.0, %v600_v9  ;;  %1110 = vmatprep.subr.bf16.mxu0 %v1199_v2  ;;  %s592_s24 = scalar_lea.vmem %s1445_s10, %s1301_s29  ;;  %s575_s28 = scalar_lea.vmem %s1438_s3, %s1301_s29 }
  0x13   : > { %625 = vst.msk [vmem:[#allocation2 + $0x8] sm:$0xff] %vm613_vm0, %v1318_v10  ;;  %v626_v12 = vld [vmem:[%s565_s27] sm:$0xff]  ;;  %s1201_s27 = smov 96   ;;  %s599_s13 = scalar_lea.vmem %s1446_s11, %s1301_s29 }
  0x14   : > { %v636_v14 = vmul.f32 0.0, %v626_v12  ;;  %614 = vst.msk [vmem:[#allocation2] sm:$0xff] %vm613_vm0, %v612_v11  ;;  %1136 = vmatpush3.bf16.msra.mxu1 %v1135_v52  ;;  %v864_v0 = vld [vmem:[%s585_s17] sm:$0xff] }
  0x15   : > { %1112 = vmatpush1.bf16.msra.mxu0 %v1111_v17  ;;  %v865_v13 = vld [vmem:[%s575_s28] sm:$0xff] }
  0x16   : > { %637 = vst.msk [vmem:[#allocation2 + $0x10] sm:$0xff] %vm613_vm0, %v636_v14  ;;  %1113 = vmatprep.subr.bf16.mxu0 %v1199_v2 }
  0x19   : > { %1115 = vmatpush1.bf16.msra.mxu0 %v1114_v20 }
  0x1a   : > { %v640_v26 = vld [vmem:[#allocation2 + $0x8] sm:$0xff]  ;;  %1116 = vmatprep.subr.bf16.mxu0 %v1199_v2 }
  0x1b   : > { %v639_v21 = vld [vmem:[#allocation2 + $0x7] sm:$0xff] }
  0x1c   : > { %644 = vrot.lane.b32.xlu0 %v639_v21, %s1200_s26  ;;  %v638_v41 = vld [vmem:[#allocation2 + $0x6] sm:$0xff] }
  0x1d   : > { %v641_v24 = vld [vmem:[#allocation2 + $0x9] sm:$0xff]  ;;  %1118 = vmatpush1.bf16.msra.mxu0 %v1117_v27 }
  0x1e   : > { %v642_v25 = vld [vmem:[#allocation2 + $0xa] sm:$0xff]  ;;  %652 = vrot.lane.b32.xlu1 %v641_v24, %s1201_s27  ;;  %1119 = vmatprep.subr.bf16.mxu0 %v1199_v2 }
  0x1f   : > { %1078 = vmatprep.mubr.msk.f32.mxu0 %vm613_vm0, %v642_v25 }
  0x20   : > { %648 = vrot.lane.b32.xlu0 %v640_v26, %s1202_s14 }
  0x21   : > { %1121 = vmatpush1.bf16.msra.mxu0 %v1120_v30 }
  0x22   : > { %1122 = vmatprep.subr.bf16.mxu0 %v1199_v2 }
  0x24   : > { %870 = vperm.xlu0 %1168, %v864_v0  }
  0x25   : > { %1124 = vmatpush1.bf16.msra.mxu0 %v1123_v33 }
  0x26   : > { %1125 = vmatprep.subr.bf16.mxu0 %v1199_v2 }
  0x29   : > { %1127 = vmatpush1.bf16.msra.mxu0 %v1126_v36 }
  0x2a   : > { %1128 = vmatprep.subr.bf16.mxu0 %v1199_v2 }
  0x2d   : > { %1130 = vmatpush1.bf16.msra.mxu0 %v1129_v39 }
  0x8e   : > { %v645_v40 = vpop.permute.xlu0 %644 }
  0x8f   : > { %v655_v43 = vsel %vm613_vm0, %v638_v41, %v645_v40 }
  0x90   : > { %v653_v42 = vpop.permute.xlu1 %652 }
  0x92   : > { %v649_v44 = vpop.permute.xlu0 %648 }
  0x93   : > { %v657_v45 = vsel %vm656_vm1, %v655_v43, %v649_v44 }
  0x94   : > { %v659_v46 = vsel %vm658_vm2, %v657_v45, %v653_v42 }
  0x95   : > { %755 = vmatmul.mubr.f32.vlgmr.msra.gmra.mrb[0].mxu0 %v659_v46 }
  0xa3   : > { %v871_v9 = vpop.permute.xlu0 %870 }
 0x168   : > { %v756_v54 = vpop.f32.mrb[0].mxu0 }
 0x169   : > { %v757_v56 = vadd.f32 %v1077_v53, %v756_v54  ;;  %v758_v57 = vpop.f32.mrb[1].mxu0 }
 0x16b   : > { %v767_v58 = vadd.f32 %v1079_v55, %v757_v56 }
 0x16d   : > { %v1080_v59 = vmul.f32 -1.442695, %v767_v58 }
 0x16f   : > { %1169 = vpow2.f32 %v1080_v59 }
 0x179   : > { %v1170_v60 = vpop.eup %1169 }
 0x17a   : > { %v772_v61 = vadd.f32 1.0, %v1170_v60 }
 0x17c   : > { %1171 = vrcp.f32 %v772_v61 }
 0x17d   : > { %1173 = vtanh.f32 %v767_v58 }
 0x186   : > { %v1172_v1 = vpop.eup %1171 }
 0x187   : > { %776 = vrot.lane.b32.xlu1 %v1172_v1, %s1201_s27  ;;  %v1174_v2 = vpop.eup %1173 }
 0x1f9   : > { %v777_v3 = vpop.permute.xlu1 %776 }
 0x1fa   : > { %v779_v4 = vmul.f32 %v1174_v2, %v777_v3 }
 0x1fc   : > { %1099 = vmatmul.mubr.msk.f32.vlgmr.msra.gmra.mrb[0].mxu1 %vm613_vm0, %v779_v4 }
 0x2cf   : > { %v860_v6 = vpop.f32.mrb[0].mxu1 }
 0x2d0   : > { %v861_v7 = vadd.f32 %v1081_v5, %v860_v6  ;;  %v1100_v8 = vpop.f32.mrb[1].mxu1 }
 0x2d2   : > { %876 = vrot.lane.b32.xlu1 %v861_v7, %s1201_s27  ;;  %v867_v11 = vadd.f32 %v861_v7, %v1318_v10 }
 0x2d4   : > { %v873_v12 = vmul.f32 %v871_v9, %v867_v11 }
 0x2d6   : > { %874 = vst.msk [vmem:[%s592_s24] sm:$0xff] %vm613_vm0, %v873_v12 }
 0x344   : > { %v877_v14 = vpop.permute.xlu1 %876 }
 0x345   : > { %v879_v15 = vadd.f32 %v877_v14, %v865_v13 }
 0x347   : > { %880 = vst.msk [vmem:[%s599_s13] sm:$0xff] %vm613_vm0, %v879_v15 }
 0x348 PF: > { %s22_s19 = sadd.s32 1, %s1197_s19   ;;  %s1447_s17 = smov %s1193_s18 }
 0x349   : > { %p19_p5 = scmp.ge.s32.totalorder %s22_s19, 4   ;;  %s1448_s18 = smov %s1450_s20 }
 0x34b   :  { %21 = sbr.rel (!%p19_p5) target bundleno = 2 (0x2), region = 117 }

// kernel: synthesizer_forward.96
= control target key start
LH: loop header
LB: loop body
LE: loop exit
PB: predicated region body
PF: predicated region fallthrough
CT: control target
= control target key end

     0   :  { %s1166_s13 = smov 0   ;;  %s1168_s14 = smov 0   ;;  %s1325_s0 = inlined_call_operand.vmem [shape: f32[2,8,32], index: 0, kind: input, shape index: {}, may-alias: {0,1,2}]   ;;  %s1326_s1 = inlined_call_operand.vmem [shape: f32[2,8,32], index: 1, kind: input, shape index: {}, may-alias: {0,1,2}]   ;;  %s1327_s2 = inlined_call_operand.vmem [shape: f32[2,8,32], index: 2, kind: input, shape index: {}, may-alias: {0,1,2}]   ;;  %s1328_s3 = inlined_call_operand.vmem [shape: f32[2,8,32], index: 3, kind: input, shape index: {}]   ;;  %s1329_s4 = inlined_call_operand.vmem [shape: f32[2,1,64], index: 4, kind: input, shape index: {}]   ;;  %s1330_s5 = inlined_call_operand.vmem [shape: f32[2,8,1], index: 5, kind: input, shape index: {}]   ;;  %s1331_s6 = inlined_call_operand.vmem [shape: f32[160,64], index: 6, kind: input, shape index: {}]   ;;  %s1332_s7 = inlined_call_operand.vmem [shape: f32[1,64], index: 7, kind: input, shape index: {}]   ;;  %s1333_s8 = inlined_call_operand.vmem [shape: f32[32,32], index: 8, kind: input, shape index: {}]   ;;  %s1334_s9 = inlined_call_operand.vmem [shape: f32[1,32], index: 9, kind: input, shape index: {}]   ;;  %s1335_s10 = inlined_call_operand.vmem [shape: f32[2,8,32], index: 10, kind: output, shape index: {}]  }
   0x1   :  { %s1170_s15 = smov 0  }
   0x2 LB: > { %s32_s16 = sadd.s32 1, %s1098_s14  ;;  %p975_p0 = scmp.ge.s32.totalorder %s1102_s15, 1  ;;  %s1102_s15 = sphi %s1170_s15, %s20_s15   ;;  %s1098_s14 = sphi %s1168_s14, %s1337_s14   ;;  %s1094_s13 = sphi %s1166_s13, %s1336_s13  }
   0x3   : > { %p34_p1 = scmp.ge.s32.totalorder %s32_s16, 2  ;;  %p418_p2 = scmp.lt.s32.totalorder %s1102_s15, 3 }
   0x5   : > { %s1339_s16 = smov (%p34_p1, %s32_s16), 0  ;;  %p419_p3 = pnand %p975_p0, %p418_p2 }
   0x6   : > { %p500_p4 = scmp.lt.s32.totalorder (!%p419_p3), %s1094_s13, 1  ;;  %v614_v0 = vld [vmem:[%s1331_s6] sm:$0xff] (!%p419_p3)  ;;  %v615_v1 = vld [vmem:[%s1331_s6 + $0x8] sm:$0xff] (!%p419_p3)  ;;  %v1104_v2 = vmov (!%p419_p3), 0.0|0.0   ;;  %v616_v4 = vld [vmem:[%s1331_s6 + $0x10] sm:$0xff] (!%p419_p3)  ;;  %vm567_vm0 = vcmask (!%p419_p3), 261120  }
   0x7   : > { %422 = sbr.rel (%p419_p3) target bundleno = 727 (0x2d7), region = 60  ;;  %1006 = vmatprep.subr.bf16.mxu0 (!%p419_p3), %v1104_v2  ;;  %v1007_v3 = vpack.c.bf16 (!%p419_p3), %v615_v1, %v614_v0  ;;  %v617_v5 = vld [vmem:[%s1331_s6 + $0x18] sm:$0xff] (!%p419_p3)  ;;  %1036 = vmatprep.subr.bf16.mxu1 (!%p419_p3), %v1104_v2  ;;  %v618_v7 = vld [vmem:[%s1331_s6 + $0x20] sm:$0xff] (!%p419_p3)  ;;  %v619_v8 = vld [vmem:[%s1331_s6 + $0x28] sm:$0xff] (!%p419_p3)  ;;  %s1105_s20 = smov (!%p419_p3), 32   ;;  %vm610_vm1 = vcmask (!%p419_p3), 523264  }
   0x8   : > { %v1010_v6 = vpack.c.bf16 (!%p419_p3), %v617_v5, %v616_v4  ;;  %v1013_v13 = vpack.c.bf16 (!%p419_p3), %v619_v8, %v618_v7  ;;  %v620_v15 = vld [vmem:[%s1331_s6 + $0x30] sm:$0xff] (!%p419_p3)  ;;  %v621_v16 = vld [vmem:[%s1331_s6 + $0x38] sm:$0xff] (!%p419_p3)  ;;  %v622_v18 = vld [vmem:[%s1331_s6 + $0x40] sm:$0xff] (!%p419_p3)  ;;  %s1106_s21 = smov (!%p419_p3), 96   ;;  %s1107_s27 = smov (!%p419_p3), 64   ;;  %vm612_vm2 = vcmask (!%p419_p3), 785408  }
   0x9   : > { %1008 = vmatpush1.bf16.msra.mxu0 (!%p419_p3), %v1007_v3  ;;  %v1016_v17 = vpack.c.bf16 (!%p419_p3), %v621_v16, %v620_v15  ;;  %v623_v19 = vld [vmem:[%s1331_s6 + $0x48] sm:$0xff] (!%p419_p3)  ;;  %v624_v22 = vld [vmem:[%s1331_s6 + $0x50] sm:$0xff] (!%p419_p3)  ;;  %v625_v23 = vld [vmem:[%s1331_s6 + $0x58] sm:$0xff] (!%p419_p3)  ;;  %vm1108_vm3 = vmmov (!%p419_p3), 0   ;;  %v1109_v62 = vmov (!%p419_p3), 0.0   ;;  %v1110_v63 = vmov (!%p419_p3), 0  }
   0xa   : > { %1009 = vmatprep.subr.bf16.mxu0 (!%p419_p3), %v1104_v2  ;;  %v1019_v20 = vpack.c.bf16 (!%p419_p3), %v623_v19, %v622_v18  ;;  %v1022_v27 = vpack.c.bf16 (!%p419_p3), %v625_v23, %v624_v22  ;;  %v626_v28 = vld [vmem:[%s1331_s6 + $0x60] sm:$0xff] (!%p419_p3)  ;;  %v627_v29 = vld [vmem:[%s1331_s6 + $0x68] sm:$0xff] (!%p419_p3)  ;;  %v628_v31 = vld [vmem:[%s1331_s6 + $0x70] sm:$0xff] (!%p419_p3)  ;;  %1003 = vmatprep.mubr.msk.f32.mxu1 (!%p419_p3), %vm1108_vm3, %v1109_v62 }
   0xb   : > { %v1025_v30 = vpack.c.bf16 (!%p419_p3), %v627_v29, %v626_v28  ;;  %v629_v32 = vld [vmem:[%s1331_s6 + $0x78] sm:$0xff] (!%p419_p3)  ;;  %v630_v34 = vld [vmem:[%s1331_s6 + $0x80] sm:$0xff] (!%p419_p3)  ;;  %v631_v35 = vld [vmem:[%s1331_s6 + $0x88] sm:$0xff] (!%p419_p3)  ;;  %1073 = vset.pattern.permute.xlu0 (!%p419_p3), %v1110_v63 }
   0xc   : > { %v1028_v33 = vpack.c.bf16 (!%p419_p3), %v629_v32, %v628_v31  ;;  %v1031_v36 = vpack.c.bf16 (!%p419_p3), %v631_v35, %v630_v34  ;;  %v632_v37 = vld [vmem:[%s1331_s6 + $0x90] sm:$0xff] (!%p419_p3)  ;;  %v633_v38 = vld [vmem:[%s1331_s6 + $0x98] sm:$0xff] (!%p419_p3)  ;;  %v734_v47 = vld [vmem:[%s1333_s8] sm:$0xff] (!%p419_p3) }
   0xd   : > { %1011 = vmatpush1.bf16.msra.mxu0 (!%p419_p3), %v1010_v6  ;;  %v1034_v39 = vpack.c.bf16 (!%p419_p3), %v633_v38, %v632_v37  ;;  %v735_v48 = vld [vmem:[%s1333_s8 + $0x8] sm:$0xff] (!%p419_p3)  ;;  %v736_v49 = vld [vmem:[%s1333_s8 + $0x10] sm:$0xff] (!%p419_p3)  ;;  %v737_v51 = vld [vmem:[%s1333_s8 + $0x18] sm:$0xff] (!%p419_p3) }
   0xe   : > { %s1341_s13 = smov (!%p500_p4, %s1094_s13), 1  ;;  %1012 = vmatprep.subr.bf16.mxu0 %v1104_v2  ;;  %v1037_v50 = vpack.c.bf16 %v735_v48, %v734_v47  ;;  %v1040_v52 = vpack.c.bf16 %v737_v51, %v736_v49  ;;  %v982_v53 = vld [vmem:[%s1332_s7] ss:$0 sm:$0xff] }
   0xf   : > { %s1201_s25 = sshll.u32 %s1341_s13, 3  ;;  %v986_v5 = vld [vmem:[%s1334_s9] ss:$0 sm:$0xff] }
  0x10   : > { %s506_s12 = scalar_lea.vmem %s1325_s0, %s1201_s25  ;;  %s516_s19 = scalar_lea.vmem %s1326_s1, %s1201_s25  ;;  %1038 = vmatpush3.bf16.msra.mxu1 %v1037_v50 }
  0x11   : > { %v554_v9 = vld [vmem:[%s506_s12] sm:$0xff]  ;;  %s526_s22 = scalar_lea.vmem %s1327_s2, %s1201_s25  ;;  %1014 = vmatpush1.bf16.msra.mxu0 %v1013_v13  ;;  %1039 = vmatprep.subr.bf16.mxu1 %v1104_v2  ;;  %s546_s26 = scalar_lea.vmem %s1330_s5, %s1201_s25 }
  0x12   : > { %v569_v10 = vld [vmem:[%s516_s19] sm:$0xff]  ;;  %v566_v11 = vmul.f32 0.0, %v554_v9  ;;  %1015 = vmatprep.subr.bf16.mxu0 %v1104_v2  ;;  %s536_s29 = scalar_lea.vmem %s1328_s3, %s1201_s25  ;;  %s553_s17 = scalar_lea.vmem %s1335_s10, %s1201_s25 }
  0x13   : > { %579 = vst.msk [vmem:[#allocation2 + $0x8] sm:$0xff] %vm567_vm0, %v569_v10  ;;  %v580_v12 = vld [vmem:[%s526_s22] sm:$0xff] }
  0x14   : > { %v590_v14 = vmul.f32 0.0, %v580_v12  ;;  %568 = vst.msk [vmem:[#allocation2] sm:$0xff] %vm567_vm0, %v566_v11  ;;  %1041 = vmatpush3.bf16.msra.mxu1 %v1040_v52  ;;  %v818_v0 = vld [vmem:[%s546_s26] sm:$0xff] }
  0x15   : > { %1017 = vmatpush1.bf16.msra.mxu0 %v1016_v17  ;;  %v819_v7 = vld [vmem:[%s536_s29] sm:$0xff] }
  0x16   : > { %591 = vst.msk [vmem:[#allocation2 + $0x10] sm:$0xff] %vm567_vm0, %v590_v14  ;;  %1018 = vmatprep.subr.bf16.mxu0 %v1104_v2 }
  0x19   : > { %1020 = vmatpush1.bf16.msra.mxu0 %v1019_v20 }
  0x1a   : > { %v594_v26 = vld [vmem:[#allocation2 + $0x8] sm:$0xff]  ;;  %1021 = vmatprep.subr.bf16.mxu0 %v1104_v2 }
  0x1b   : > { %v593_v21 = vld [vmem:[#allocation2 + $0x7] sm:$0xff] }
  0x1c   : > { %598 = vrot.lane.b32.xlu0 %v593_v21, %s1105_s20  ;;  %v592_v41 = vld [vmem:[#allocation2 + $0x6] sm:$0xff]  ;;  %s539_s20 = scalar_lea.vmem %s1329_s4, %s1341_s13 }
  0x1d   : > { %v595_v24 = vld [vmem:[#allocation2 + $0x9] sm:$0xff]  ;;  %1023 = vmatpush1.bf16.msra.mxu0 %v1022_v27  ;;  %v984_v55 = vld [vmem:[%s539_s20] ss:$0 sm:$0xff] }
  0x1e   : > { %v596_v25 = vld [vmem:[#allocation2 + $0xa] sm:$0xff]  ;;  %606 = vrot.lane.b32.xlu1 %v595_v24, %s1106_s21  ;;  %1024 = vmatprep.subr.bf16.mxu0 %v1104_v2 }
  0x1f   : > { %983 = vmatprep.mubr.msk.f32.mxu0 %vm567_vm0, %v596_v25 }
  0x20   : > { %602 = vrot.lane.b32.xlu0 %v594_v26, %s1107_s27 }
  0x21   : > { %1026 = vmatpush1.bf16.msra.mxu0 %v1025_v30 }
  0x22   : > { %1027 = vmatprep.subr.bf16.mxu0 %v1104_v2 }
  0x24   : > { %823 = vperm.xlu0 %1073, %v818_v0  }
  0x25   : > { %1029 = vmatpush1.bf16.msra.mxu0 %v1028_v33 }
  0x26   : > { %1030 = vmatprep.subr.bf16.mxu0 %v1104_v2 }
  0x29   : > { %1032 = vmatpush1.bf16.msra.mxu0 %v1031_v36 }
  0x2a   : > { %1033 = vmatprep.subr.bf16.mxu0 %v1104_v2 }
  0x2d   : > { %1035 = vmatpush1.bf16.msra.mxu0 %v1034_v39 }
  0x8e   : > { %v599_v40 = vpop.permute.xlu0 %598 }
  0x8f   : > { %v609_v43 = vsel %vm567_vm0, %v592_v41, %v599_v40 }
  0x90   : > { %v607_v42 = vpop.permute.xlu1 %606 }
  0x92   : > { %v603_v44 = vpop.permute.xlu0 %602 }
  0x93   : > { %v611_v45 = vsel %vm610_vm1, %v609_v43, %v603_v44 }
  0x94   : > { %v613_v46 = vsel %vm612_vm2, %v611_v45, %v607_v42 }
  0x95   : > { %709 = vmatmul.mubr.f32.vlgmr.msra.gmra.mrb[0].mxu0 %v613_v46 }
  0xa3   : > { %v824_v10 = vpop.permute.xlu0 %823 }
 0x168   : > { %v710_v54 = vpop.f32.mrb[0].mxu0 }
 0x169   : > { %v711_v56 = vadd.f32 %v982_v53, %v710_v54  ;;  %v712_v57 = vpop.f32.mrb[1].mxu0 }
 0x16b   : > { %v721_v58 = vadd.f32 %v984_v55, %v711_v56 }
 0x16d   : > { %v985_v59 = vmul.f32 -1.442695, %v721_v58 }
 0x16f   : > { %1074 = vpow2.f32 %v985_v59 }
 0x179   : > { %v1075_v60 = vpop.eup %1074 }
 0x17a   : > { %v726_v61 = vadd.f32 1.0, %v1075_v60 }
 0x17c   : > { %1076 = vrcp.f32 %v726_v61 }
 0x17d   : > { %1078 = vtanh.f32 %v721_v58 }
 0x186   : > { %v1077_v1 = vpop.eup %1076 }
 0x187   : > { %730 = vrot.lane.b32.xlu1 %v1077_v1, %s1106_s21  ;;  %v1079_v2 = vpop.eup %1078 }
 0x1f9   : > { %v731_v3 = vpop.permute.xlu1 %730 }
 0x1fa   : > { %v733_v4 = vmul.f32 %v1079_v2, %v731_v3 }
 0x1fc   : > { %1004 = vmatmul.mubr.msk.f32.vlgmr.msra.gmra.mrb[0].mxu1 %vm567_vm0, %v733_v4 }
 0x2cf   : > { %v814_v6 = vpop.f32.mrb[0].mxu1 }
 0x2d0   : > { %v815_v8 = vadd.f32 %v986_v5, %v814_v6  ;;  %v1005_v9 = vpop.f32.mrb[1].mxu1 }
 0x2d2   : > { %v820_v11 = vadd.f32 %v819_v7, %v815_v8 }
 0x2d4   : > { %v826_v12 = vmul.f32 %v824_v10, %v820_v11 }
 0x2d6   : > { %827 = vst.msk [vmem:[%s553_s17] sm:$0xff] %vm567_vm0, %v826_v12 }
 0x2d7 PF: > { %s20_s15 = sadd.s32 1, %s1102_s15   ;;  %s1336_s13 = smov %s1098_s14 }
 0x2d8   : > { %p17_p5 = scmp.ge.s32.totalorder %s20_s15, 4   ;;  %s1337_s14 = smov %s1339_s16 }
 0x2da   :  { %19 = sbr.rel (!%p17_p5) target bundleno = 2 (0x2), region = 105 }

// kernel: reverse
= control target key start
LH: loop header
LB: loop body
LE: loop exit
PB: predicated region body
PF: predicated region fallthrough
CT: control target
= control target key end

     0   :  { %v2_v0 = vlaneseq  ;;  %s117_s0 = inlined_call_operand.vmem [shape: f32[2,8,16], index: 0, kind: input, shape index: {}]   ;;  %s118_s1 = inlined_call_operand.vmem [shape: f32[2,8,16], index: 1, kind: output, shape index: {}]  }
   0x1   :  { %v34_v2 = vld [vmem:[%s117_s0] sm:$0xff]  ;;  %v36_v3 = vld [vmem:[%s117_s0 + $0x8] sm:$0xff] }
   0x2   :  { %v3_v1 = vsub.s32 15, %v2_v0 }
   0x4   :  { %4 = vset.pattern.permute.xlu0 %v3_v1 }
   0x5   :  { %42 = vperm.xlu0 %4, %v34_v2  }
   0x9   :  { %48 = vperm.xlu0 %4, %v36_v3  }
  0x84   :  { %v43_v4 = vpop.permute.xlu0 %42 }
  0x85   :  { %81 = vst [vmem:[%s118_s1] sm:$0xff] %v43_v4 }
  0x88   :  { %v49_v5 = vpop.permute.xlu0 %48 }
  0x89   :  { %83 = vst [vmem:[%s118_s1 + $0x8] sm:$0xff] %v49_v5 }

// kernel: synthesizer_forward.118
= control target key start
LH: loop header
LB: loop body
LE: loop exit
PB: predicated region body
PF: predicated region fallthrough
CT: control target
= control target key end

     0   :  { %s552_s15 = smov 0   ;;  %s554_s16 = smov 0   ;;  %s603_s0 = inlined_call_operand.vmem [shape: f32[2,8,32], index: 0, kind: input, shape index: {}]   ;;  %s604_s1 = inlined_call_operand.vmem [shape: f32[32,16], index: 1, kind: input, shape index: {}]   ;;  %s605_s2 = inlined_call_operand.vmem [shape: f32[1,16], index: 2, kind: input, shape index: {}]   ;;  %s606_s3 = inlined_call_operand.vmem [shape: f32[2,8,1], index: 3, kind: input, shape index: {}]   ;;  %s607_s4 = inlined_call_operand.vmem [shape: f32[2,8,16], index: 4, kind: output, shape index: {}]  }
   0x1   :  { %s556_s17 = smov 0  }
   0x2 LB: > { %s26_s18 = sadd.s32 1, %s517_s16  ;;  %p440_p0 = scmp.ge.s32.totalorder %s521_s17, 1  ;;  %s521_s17 = sphi %s556_s17, %s14_s17   ;;  %s517_s16 = sphi %s554_s16, %s609_s16   ;;  %s513_s15 = sphi %s552_s15, %s608_s15  }
   0x3   : > { %p28_p1 = scmp.ge.s32.totalorder %s26_s18, 2  ;;  %p194_p2 = scmp.lt.s32.totalorder %s521_s17, 3 }
   0x5   : > { %s611_s18 = smov (%p28_p1, %s26_s18), 0  ;;  %p195_p3 = pnand %p440_p0, %p194_p2 }
   0x6   : > { %v253_v0 = vld [vmem:[%s604_s1] sm:$0xff] (!%p195_p3)  ;;  %v254_v1 = vld [vmem:[%s604_s1 + $0x8] sm:$0xff] (!%p195_p3)  ;;  %v255_v2 = vld [vmem:[%s604_s1 + $0x10] sm:$0xff] (!%p195_p3)  ;;  %v523_v3 = vmov (!%p195_p3), 0.0|0.0   ;;  %vm524_vm0 = vmmov (!%p195_p3), 0   ;;  %v525_v6 = vmov (!%p195_p3), 0.0  }
   0x7   : > { %198 = sbr.rel (%p195_p3) target bundleno = 235 (0xeb), region = 36  ;;  %464 = vmatprep.subr.bf16.mxu0 (!%p195_p3), %v523_v3  ;;  %v465_v4 = vpack.c.bf16 (!%p195_p3), %v254_v1, %v253_v0  ;;  %v256_v5 = vld [vmem:[%s604_s1 + $0x18] sm:$0xff] (!%p195_p3)  ;;  %461 = vmatprep.mubr.msk.f32.mxu0 (!%p195_p3), %vm524_vm0, %v525_v6  ;;  %p231_p4 = scmp.lt.s32.totalorder (!%p195_p3), %s513_s15, 1  ;;  %v526_v7 = vmov (!%p195_p3), 0   ;;  %vm264_vm1 = vcmask (!%p195_p3), 261120   ;;  %vm345_vm2 = vcmask (!%p195_p3), 130048  }
   0x8   : > { %498 = vset.pattern.permute.xlu0 (!%p195_p3), %v526_v7  ;;  %v468_v8 = vpack.c.bf16 (!%p195_p3), %v256_v5, %v255_v2  ;;  %v444_v11 = vld [vmem:[%s605_s2] ss:$0 sm:$0xff] (!%p195_p3) }
   0x9   : > { %466 = vmatpush3.bf16.msra.mxu0 (!%p195_p3), %v465_v4 }
   0xa   : > { %467 = vmatprep.subr.bf16.mxu0 (!%p195_p3), %v523_v3 }
   0xd   : > { %469 = vmatpush3.bf16.msra.mxu0 (!%p195_p3), %v468_v8 }
   0xe   : > { %s613_s15 = smov (!%p231_p4, %s513_s15), 1 }
   0xf   : > { %s441_s27 = sshll.u32 %s613_s15, 3 }
  0x10   : > { %s237_s30 = scalar_lea.vmem %s603_s0, %s441_s27  ;;  %s244_s7 = scalar_lea.vmem %s606_s3, %s441_s27 }
  0x11   : > { %v252_v9 = vld [vmem:[%s237_s30] sm:$0xff]  ;;  %s251_s12 = scalar_lea.vmem %s607_s4, %s441_s27 }
  0x12   : > { %v338_v10 = vld [vmem:[%s244_s7] sm:$0xff]  ;;  %462 = vmatmul.mubr.msk.f32.vlgmr.msra.gmra.mrb[0].mxu0 %vm264_vm1, %v252_v9 }
  0x13   : > { %341 = vperm.xlu0 %498, %v338_v10  }
  0x92   : > { %v342_v13 = vpop.permute.xlu0 %341 }
  0xe5   : > { %v334_v12 = vpop.f32.mrb[0].mxu0 }
  0xe6   : > { %v335_v14 = vadd.f32 %v444_v11, %v334_v12  ;;  %v463_v15 = vpop.f32.mrb[1].mxu0 }
  0xe8   : > { %v344_v16 = vmul.f32 %v342_v13, %v335_v14 }
  0xea   : > { %346 = vst.msk [vmem:[%s251_s12] sm:$0xff] %vm345_vm2, %v344_v16 }
  0xeb PF: > { %s14_s17 = sadd.s32 1, %s521_s17   ;;  %s608_s15 = smov %s517_s16 }
  0xec   : > { %p11_p5 = scmp.ge.s32.totalorder %s14_s17, 4   ;;  %s609_s16 = smov %s611_s18 }
  0xee   :  { %13 = sbr.rel (!%p11_p5) target bundleno = 2 (0x2), region = 69 }

// kernel: synthesizer_forward.114
= control target key start
LH: loop header
LB: loop body
LE: loop exit
PB: predicated region body
PF: predicated region fallthrough
CT: control target
= control target key end

     0   :  { %s541_s15 = smov 0   ;;  %s543_s16 = smov 0   ;;  %s586_s0 = inlined_call_operand.vmem [shape: f32[2,8,16], index: 0, kind: input, shape index: {}]   ;;  %s587_s1 = inlined_call_operand.vmem [shape: f32[16,32], index: 1, kind: input, shape index: {}]   ;;  %s588_s2 = inlined_call_operand.vmem [shape: f32[1,32], index: 2, kind: input, shape index: {}]   ;;  %s589_s3 = inlined_call_operand.vmem [shape: f32[2,8,1], index: 3, kind: input, shape index: {}]   ;;  %s590_s4 = inlined_call_operand.vmem [shape: f32[2,8,32], index: 4, kind: output, shape index: {}]  }
   0x1   :  { %s545_s17 = smov 0  }
   0x2 LB: > { %s26_s18 = sadd.s32 1, %s506_s16  ;;  %p438_p0 = scmp.ge.s32.totalorder %s510_s17, 1  ;;  %s510_s17 = sphi %s545_s17, %s14_s17   ;;  %s506_s16 = sphi %s543_s16, %s592_s16   ;;  %s502_s15 = sphi %s541_s15, %s591_s15  }
   0x3   : > { %p28_p1 = scmp.ge.s32.totalorder %s26_s18, 2  ;;  %p194_p2 = scmp.lt.s32.totalorder %s510_s17, 3 }
   0x5   : > { %s594_s18 = smov (%p28_p1, %s26_s18), 0  ;;  %p195_p3 = pnand %p438_p0, %p194_p2 }
   0x6   : > { %v253_v0 = vld [vmem:[%s587_s1] sm:$0xff] (!%p195_p3)  ;;  %v254_v1 = vld [vmem:[%s587_s1 + $0x8] sm:$0xff] (!%p195_p3)  ;;  %p231_p4 = scmp.lt.s32.totalorder (!%p195_p3), %s502_s15, 1  ;;  %v512_v2 = vmov (!%p195_p3), 0.0|0.0   ;;  %vm513_vm0 = vmmov (!%p195_p3), 0   ;;  %v514_v4 = vmov (!%p195_p3), 0.0  }
   0x7   : > { %198 = sbr.rel (%p195_p3) target bundleno = 235 (0xeb), region = 36  ;;  %456 = vmatprep.subr.bf16.mxu0 (!%p195_p3), %v512_v2  ;;  %v457_v3 = vpack.c.bf16 (!%p195_p3), %v254_v1, %v253_v0  ;;  %453 = vmatprep.mubr.msk.f32.mxu0 (!%p195_p3), %vm513_vm0, %v514_v4  ;;  %v515_v5 = vmov (!%p195_p3), 0   ;;  %vm262_vm1 = vcmask (!%p195_p3), 130048   ;;  %v442_v8 = vld [vmem:[%s588_s2] ss:$0 sm:$0xff] (!%p195_p3)  ;;  %vm343_vm2 = vcmask (!%p195_p3), 261120  }
   0x8   : > { %487 = vset.pattern.permute.xlu0 (!%p195_p3), %v515_v5 }
   0x9   : > { %458 = vmatpush3.bf16.msra.mxu0 (!%p195_p3), %v457_v3 }
   0xe   : > { %s596_s15 = smov (!%p231_p4, %s502_s15), 1 }
   0xf   : > { %s439_s23 = sshll.u32 %s596_s15, 3 }
  0x10   : > { %s237_s26 = scalar_lea.vmem %s586_s0, %s439_s23  ;;  %s244_s29 = scalar_lea.vmem %s589_s3, %s439_s23 }
  0x11   : > { %v252_v6 = vld [vmem:[%s237_s26] sm:$0xff]  ;;  %s251_s8 = scalar_lea.vmem %s590_s4, %s439_s23 }
  0x12   : > { %v336_v7 = vld [vmem:[%s244_s29] sm:$0xff]  ;;  %454 = vmatmul.mubr.msk.f32.vlgmr.msra.gmra.mrb[0].mxu0 %vm262_vm1, %v252_v6 }
  0x13   : > { %339 = vperm.xlu0 %487, %v336_v7  }
  0x92   : > { %v340_v10 = vpop.permute.xlu0 %339 }
  0xe5   : > { %v332_v9 = vpop.f32.mrb[0].mxu0 }
  0xe6   : > { %v333_v11 = vadd.f32 %v442_v8, %v332_v9  ;;  %v455_v12 = vpop.f32.mrb[1].mxu0 }
  0xe8   : > { %v342_v13 = vmul.f32 %v340_v10, %v333_v11 }
  0xea   : > { %344 = vst.msk [vmem:[%s251_s8] sm:$0xff] %vm343_vm2, %v342_v13 }
  0xeb PF: > { %s14_s17 = sadd.s32 1, %s510_s17   ;;  %s591_s15 = smov %s506_s16 }
  0xec   : > { %p11_p5 = scmp.ge.s32.totalorder %s14_s17, 4   ;;  %s592_s16 = smov %s594_s18 }
  0xee   :  { %13 = sbr.rel (!%p11_p5) target bundleno = 2 (0x2), region = 69 }

// kernel: synthesizer_forward.98
= control target key start
LH: loop header
LB: loop body
LE: loop exit
PB: predicated region body
PF: predicated region fallthrough
CT: control target
= control target key end

     0   :  { %s844_s21 = smov 0   ;;  %s846_s22 = smov 0   ;;  %s1001_s0 = inlined_call_operand.vmem [shape: f32[2,4,32], index: 0, kind: input, shape index: {}, may-alias: {0,1,2}]   ;;  %s1002_s1 = inlined_call_operand.vmem [shape: f32[2,4,32], index: 1, kind: input, shape index: {}, may-alias: {0,1,2}]   ;;  %s1003_s2 = inlined_call_operand.vmem [shape: f32[2,4,32], index: 2, kind: input, shape index: {}, may-alias: {0,1,2}]   ;;  %s1004_s3 = inlined_call_operand.vmem [shape: f32[224,32], index: 3, kind: input, shape index: {}]   ;;  %s1005_s4 = inlined_call_operand.vmem [shape: f32[1,32], index: 4, kind: input, shape index: {}]   ;;  %s1006_s5 = inlined_call_operand.vmem [shape: f32[2,1,32], index: 5, kind: input, shape index: {}]   ;;  %s1007_s6 = inlined_call_operand.vmem [shape: f32[2,4,32], index: 6, kind: output, shape index: {}]  }
   0x1   :  { %s848_s23 = smov 0  }
   0x2 LB: > { %s28_s24 = sadd.s32 1, %s798_s22  ;;  %p697_p0 = scmp.ge.s32.totalorder %s802_s23, 1  ;;  %s802_s23 = sphi %s848_s23, %s16_s23   ;;  %s798_s22 = sphi %s846_s22, %s1009_s22   ;;  %s794_s21 = sphi %s844_s21, %s1008_s21  }
   0x3   : > { %p30_p1 = scmp.ge.s32.totalorder %s28_s24, 2  ;;  %p290_p2 = scmp.lt.s32.totalorder %s802_s23, 3 }
   0x5   : > { %s1011_s24 = smov (%p30_p1, %s28_s24), 0  ;;  %p291_p3 = pnand %p697_p0, %p290_p2 }
   0x6   : > { %p350_p4 = scmp.lt.s32.totalorder (!%p291_p3), %s794_s21, 1  ;;  %v393_v0 = vlaneseq (!%p291_p3)  ;;  %v463_v1 = vld [vmem:[%s1004_s3] sm:$0xff] (!%p291_p3)  ;;  %v804_v2 = vmov (!%p291_p3), 0.0|0.0   ;;  %v464_v3 = vld [vmem:[%s1004_s3 + $0x8] sm:$0xff] (!%p291_p3)  ;;  %v465_v4 = vld [vmem:[%s1004_s3 + $0x10] sm:$0xff] (!%p291_p3)  ;;  %v805_v10 = vmov (!%p291_p3), 0.0  }
   0x7   : > { %294 = sbr.rel (%p291_p3) target bundleno = 370 (0x172), region = 44  ;;  %709 = vmatprep.subr.bf16.mxu0 (!%p291_p3), %v804_v2  ;;  %v466_v5 = vld [vmem:[%s1004_s3 + $0x18] sm:$0xff] (!%p291_p3)  ;;  %v710_v7 = vpack.c.bf16 (!%p291_p3), %v464_v3, %v463_v1  ;;  %v467_v12 = vld [vmem:[%s1004_s3 + $0x20] sm:$0xff] (!%p291_p3)  ;;  %v468_v13 = vld [vmem:[%s1004_s3 + $0x28] sm:$0xff] (!%p291_p3)  ;;  %vm403_vm1 = vcmask (!%p291_p3), 257024   ;;  %s807_s17 = smov (!%p291_p3), 64  }
   0x8   : > { %v394_v6 = vshrl.u32 (!%p291_p3), %v393_v0, 7  ;;  %v713_v9 = vpack.c.bf16 (!%p291_p3), %v466_v5, %v465_v4  ;;  %v716_v21 = vpack.c.bf16 (!%p291_p3), %v468_v13, %v467_v12  ;;  %v469_v22 = vld [vmem:[%s1004_s3 + $0x30] sm:$0xff] (!%p291_p3)  ;;  %v470_v23 = vld [vmem:[%s1004_s3 + $0x38] sm:$0xff] (!%p291_p3)  ;;  %v471_v25 = vld [vmem:[%s1004_s3 + $0x40] sm:$0xff] (!%p291_p3)  ;;  %vm455_vm3 = vcmask (!%p291_p3), 261120  }
   0x9   : > { %711 = vmatpush1.bf16.msra.mxu0 (!%p291_p3), %v710_v7  ;;  %v719_v24 = vpack.c.bf16 (!%p291_p3), %v470_v23, %v469_v22  ;;  %v472_v26 = vld [vmem:[%s1004_s3 + $0x48] sm:$0xff] (!%p291_p3)  ;;  %v473_v30 = vld [vmem:[%s1004_s3 + $0x50] sm:$0xff] (!%p291_p3)  ;;  %v474_v31 = vld [vmem:[%s1004_s3 + $0x58] sm:$0xff] (!%p291_p3)  ;;  %vm457_vm4 = vcmask (!%p291_p3), 523264   ;;  %vm459_vm5 = vcmask (!%p291_p3), 785408  }
   0xa   : > { %vm410_vm0 = vcmp.lt.s32.totalorder (!%p291_p3), %v394_v6, 4  ;;  %v396_v8 = vadd.s32 (!%p291_p3), 4294967292, %v394_v6  ;;  %712 = vmatprep.subr.bf16.mxu0 (!%p291_p3), %v804_v2  ;;  %v722_v28 = vpack.c.bf16 (!%p291_p3), %v472_v26, %v471_v25  ;;  %v725_v34 = vpack.c.bf16 (!%p291_p3), %v474_v31, %v473_v30  ;;  %v475_v35 = vld [vmem:[%s1004_s3 + $0x60] sm:$0xff] (!%p291_p3)  ;;  %v476_v36 = vld [vmem:[%s1004_s3 + $0x68] sm:$0xff] (!%p291_p3)  ;;  %v477_v39 = vld [vmem:[%s1004_s3 + $0x70] sm:$0xff] (!%p291_p3) }
   0xb   : > { %v703_v11 = vsel (!%p291_p3), %vm410_vm0, 1.0, %v805_v10  ;;  %v728_v38 = vpack.c.bf16 (!%p291_p3), %v476_v36, %v475_v35  ;;  %v478_v40 = vld [vmem:[%s1004_s3 + $0x78] sm:$0xff] (!%p291_p3)  ;;  %v479_v42 = vld [vmem:[%s1004_s3 + $0x80] sm:$0xff] (!%p291_p3)  ;;  %v480_v43 = vld [vmem:[%s1004_s3 + $0x88] sm:$0xff] (!%p291_p3) }
   0xc   : > { %vm397_vm2 = vcmp.ge.s32.totalorder (!%p291_p3), %v396_v8, 0  ;;  %v731_v41 = vpack.c.bf16 (!%p291_p3), %v478_v40, %v477_v39  ;;  %v734_v44 = vpack.c.bf16 (!%p291_p3), %v480_v43, %v479_v42  ;;  %v481_v45 = vld [vmem:[%s1004_s3 + $0x90] sm:$0xff] (!%p291_p3)  ;;  %v482_v46 = vld [vmem:[%s1004_s3 + $0x98] sm:$0xff] (!%p291_p3)  ;;  %v483_v48 = vld [vmem:[%s1004_s3 + $0xa0] sm:$0xff] (!%p291_p3) }
   0xd   : > { %v702_v19 = vsel (!%p291_p3), %vm397_vm2, 1.0, %v805_v10  ;;  %714 = vmatpush1.bf16.msra.mxu0 (!%p291_p3), %v713_v9  ;;  %v737_v47 = vpack.c.bf16 (!%p291_p3), %v482_v46, %v481_v45  ;;  %v484_v49 = vld [vmem:[%s1004_s3 + $0xa8] sm:$0xff] (!%p291_p3)  ;;  %v485_v51 = vld [vmem:[%s1004_s3 + $0xb0] sm:$0xff] (!%p291_p3)  ;;  %v486_v52 = vld [vmem:[%s1004_s3 + $0xb8] sm:$0xff] (!%p291_p3) }
   0xe   : > { %s1013_s21 = smov (!%p350_p4, %s794_s21), 1  ;;  %715 = vmatprep.subr.bf16.mxu0 %v804_v2  ;;  %v740_v50 = vpack.c.bf16 %v484_v49, %v483_v48  ;;  %v743_v53 = vpack.c.bf16 %v486_v52, %v485_v51  ;;  %v487_v54 = vld [vmem:[%s1004_s3 + $0xc0] sm:$0xff]  ;;  %v488_v55 = vld [vmem:[%s1004_s3 + $0xc8] sm:$0xff]  ;;  %v489_v57 = vld [vmem:[%s1004_s3 + $0xd0] sm:$0xff] }
   0xf   : > { %s878_s9 = sshll.u32 %s1013_s21, 2  ;;  %v746_v56 = vpack.c.bf16 %v488_v55, %v487_v54  ;;  %v490_v58 = vld [vmem:[%s1004_s3 + $0xd8] sm:$0xff] }
  0x10   : > { %s366_s12 = scalar_lea.vmem %s1002_s1, %s878_s9  ;;  %s376_s15 = scalar_lea.vmem %s1003_s2, %s878_s9  ;;  %v749_v59 = vpack.c.bf16 %v490_v58, %v489_v57 }
  0x11   : > { %v405_v14 = vld [vmem:[%s366_s12] sm:$0xf]  ;;  %s356_s26 = scalar_lea.vmem %s1001_s0, %s878_s9  ;;  %717 = vmatpush1.bf16.msra.mxu0 %v716_v21  ;;  %s806_s12 = smov 32  }
  0x12   : > { %v416_v15 = vld [vmem:[%s376_s15] sm:$0xf]  ;;  %v414_v16 = vmul.f32 %v703_v11, %v405_v14  ;;  %718 = vmatprep.subr.bf16.mxu0 %v804_v2  ;;  %s382_s15 = scalar_lea.vmem %s1006_s5, %s1013_s21  ;;  %s389_s20 = scalar_lea.vmem %s1007_s6, %s878_s9 }
  0x13   : > { %v426_v17 = vmul.f32 0.0, %v416_v15  ;;  %v390_v18 = vld [vmem:[%s356_s26] sm:$0xf]  ;;  %s808_s26 = smov 96  }
  0x14   : > { %v402_v20 = vmul.f32 %v702_v19, %v390_v18  ;;  %415 = vst.msk [vmem:[#allocation2 + $0x4] sm:$0xf] %vm403_vm1, %v414_v16  ;;  %v706_v10 = vld [vmem:[%s382_s15] ss:$0 sm:$0xff] }
  0x15   : > { %427 = vst.msk [vmem:[#allocation2 + $0x8] sm:$0xf] %vm403_vm1, %v426_v17  ;;  %720 = vmatpush1.bf16.msra.mxu0 %v719_v24 }
  0x16   : > { %404 = vst.msk [vmem:[#allocation2] sm:$0xf] %vm403_vm1, %v402_v20  ;;  %721 = vmatprep.subr.bf16.mxu0 %v804_v2 }
  0x19   : > { %723 = vmatpush1.bf16.msra.mxu0 %v722_v28 }
  0x1a   : > { %724 = vmatprep.subr.bf16.mxu0 %v804_v2 }
  0x1b   : > { %v431_v37 = vld [vmem:[#allocation2 + $0x4] sm:$0xf] }
  0x1c   : > { %v433_v27 = vld [vmem:[#allocation2 + $0x6] sm:$0xf] }
  0x1d   : > { %448 = vrot.lane.b32.xlu0 %v433_v27, %s806_s12  ;;  %v430_v29 = vld [vmem:[#allocation2 + $0x3] sm:$0xf]  ;;  %v434_v33 = vld [vmem:[#allocation2 + $0x7] sm:$0xf]  ;;  %726 = vmatpush1.bf16.msra.mxu0 %v725_v34 }
  0x1e   : > { %440 = vrot.lane.b32.xlu1 %v430_v29, %s807_s17  ;;  %v429_v32 = vld [vmem:[#allocation2 + $0x2] sm:$0xf]  ;;  %727 = vmatprep.subr.bf16.mxu0 %v804_v2 }
  0x1f   : > { %v432_v62 = vld [vmem:[#allocation2 + $0x5] sm:$0xf]  ;;  %v428_v63 = vld [vmem:[#allocation2 + $0x1] sm:$0xf] }
  0x21   : > { %436 = vrot.lane.b32.xlu0 %v429_v32, %s806_s12  ;;  %729 = vmatpush1.bf16.msra.mxu0 %v728_v38 }
  0x22   : > { %452 = vrot.lane.b32.xlu1 %v434_v33, %s807_s17  ;;  %730 = vmatprep.subr.bf16.mxu0 %v804_v2 }
  0x25   : > { %444 = vrot.lane.b32.xlu0 %v431_v37, %s808_s26  ;;  %732 = vmatpush1.bf16.msra.mxu0 %v731_v41 }
  0x26   : > { %733 = vmatprep.subr.bf16.mxu0 %v804_v2 }
  0x29   : > { %735 = vmatpush1.bf16.msra.mxu0 %v734_v44 }
  0x2a   : > { %736 = vmatprep.subr.bf16.mxu0 %v804_v2 }
  0x2d   : > { %738 = vmatpush1.bf16.msra.mxu0 %v737_v47 }
  0x2e   : > { %739 = vmatprep.subr.bf16.mxu0 %v804_v2 }
  0x31   : > { %741 = vmatpush1.bf16.msra.mxu0 %v740_v50 }
  0x32   : > { %742 = vmatprep.subr.bf16.mxu0 %v804_v2 }
  0x35   : > { %744 = vmatpush1.bf16.msra.mxu0 %v743_v53 }
  0x36   : > { %745 = vmatprep.subr.bf16.mxu0 %v804_v2 }
  0x39   : > { %747 = vmatpush1.bf16.msra.mxu0 %v746_v56 }
  0x3a   : > { %748 = vmatprep.subr.bf16.mxu0 %v804_v2  ;;  %v704_v2 = vld [vmem:[%s1005_s4] ss:$0 sm:$0xff] }
  0x3d   : > { %750 = vmatpush1.bf16.msra.mxu0 %v749_v59 }
  0x8f   : > { %v449_v60 = vpop.permute.xlu0 %448 }
  0x90   : > { %v441_v61 = vpop.permute.xlu1 %440  ;;  %v461_v1 = vsel %vm455_vm3, %v432_v62, %v449_v60 }
  0x93   : > { %v437_v0 = vpop.permute.xlu0 %436 }
  0x94   : > { %v456_v3 = vsel %vm455_vm3, %v428_v63, %v437_v0  ;;  %v453_v4 = vpop.permute.xlu1 %452 }
  0x95   : > { %v462_v5 = vsel %vm457_vm4, %v461_v1, %v453_v4  ;;  %v458_v7 = vsel %vm457_vm4, %v456_v3, %v441_v61 }
  0x96   : > { %705 = vmatprep.mubr.msk.f32.mxu0 %vm459_vm5, %v462_v5 }
  0x97   : > { %v445_v6 = vpop.permute.xlu0 %444 }
  0x98   : > { %v460_v8 = vsel %vm459_vm5, %v458_v7, %v445_v6 }
  0x99   : > { %566 = vmatmul.mubr.f32.vlgmr.msra.gmra.mrb[0].mxu0 %v460_v8 }
 0x16c   : > { %v567_v9 = vpop.f32.mrb[0].mxu0 }
 0x16d   : > { %v568_v11 = vadd.f32 %v704_v2, %v567_v9  ;;  %v569_v12 = vpop.f32.mrb[1].mxu0 }
 0x16f   : > { %v578_v13 = vadd.f32 %v706_v10, %v568_v11 }
 0x171   : > { %579 = vst.msk [vmem:[%s389_s20] sm:$0xf] %vm403_vm1, %v578_v13 }
 0x172 PF: > { %s16_s23 = sadd.s32 1, %s802_s23   ;;  %s1008_s21 = smov %s798_s22 }
 0x173   : > { %p13_p5 = scmp.ge.s32.totalorder %s16_s23, 4   ;;  %s1009_s22 = smov %s1011_s24 }
 0x175   :  { %15 = sbr.rel (!%p13_p5) target bundleno = 2 (0x2), region = 83 }

// kernel: synthesizer_forward.99
= control target key start
LH: loop header
LB: loop body
LE: loop exit
PB: predicated region body
PF: predicated region fallthrough
CT: control target
= control target key end

     0   :  { %s770_s18 = smov 0   ;;  %s772_s19 = smov 0   ;;  %s864_s0 = inlined_call_operand.vmem [shape: f32[2,4,32], index: 0, kind: input, shape index: {}, may-alias: {0,1,2}]   ;;  %s865_s1 = inlined_call_operand.vmem [shape: f32[2,4,32], index: 1, kind: input, shape index: {}, may-alias: {0,1,2}]   ;;  %s866_s2 = inlined_call_operand.vmem [shape: f32[2,4,32], index: 2, kind: input, shape index: {}, may-alias: {0,1,2}]   ;;  %s867_s3 = inlined_call_operand.vmem [shape: f32[96,32], index: 3, kind: input, shape index: {}]   ;;  %s868_s4 = inlined_call_operand.vmem [shape: f32[1,32], index: 4, kind: input, shape index: {}]   ;;  %s869_s5 = inlined_call_operand.vmem [shape: f32[2,4,32], index: 5, kind: output, shape index: {}]  }
   0x1   :  { %s774_s20 = smov 0  }
   0x2 LB: > { %s27_s21 = sadd.s32 1, %s729_s19  ;;  %p613_p0 = scmp.ge.s32.totalorder %s733_s20, 1  ;;  %s733_s20 = sphi %s774_s20, %s15_s20   ;;  %s729_s19 = sphi %s772_s19, %s871_s19   ;;  %s725_s18 = sphi %s770_s18, %s870_s18  }
   0x3   : > { %p29_p1 = scmp.ge.s32.totalorder %s27_s21, 2  ;;  %p257_p2 = scmp.lt.s32.totalorder %s733_s20, 3 }
   0x5   : > { %s873_s21 = smov (%p29_p1, %s27_s21), 0  ;;  %p258_p3 = pnand %p613_p0, %p257_p2 }
   0x6   : > { %p312_p4 = scmp.lt.s32.totalorder (!%p258_p3), %s725_s18, 1  ;;  %v352_v0 = vlaneseq (!%p258_p3)  ;;  %v411_v1 = vld [vmem:[%s867_s3] sm:$0xff] (!%p258_p3)  ;;  %v735_v2 = vmov (!%p258_p3), 0.0|0.0   ;;  %v412_v3 = vld [vmem:[%s867_s3 + $0x8] sm:$0xff] (!%p258_p3)  ;;  %v413_v4 = vld [vmem:[%s867_s3 + $0x10] sm:$0xff] (!%p258_p3)  ;;  %v736_v10 = vmov (!%p258_p3), 0.0  }
   0x7   : > { %261 = sbr.rel (%p258_p3) target bundleno = 366 (0x16e), region = 40  ;;  %664 = vmatprep.subr.bf16.mxu0 (!%p258_p3), %v735_v2  ;;  %v414_v5 = vld [vmem:[%s867_s3 + $0x18] sm:$0xff] (!%p258_p3)  ;;  %v665_v7 = vpack.c.bf16 (!%p258_p3), %v412_v3, %v411_v1  ;;  %v415_v12 = vld [vmem:[%s867_s3 + $0x20] sm:$0xff] (!%p258_p3)  ;;  %v416_v13 = vld [vmem:[%s867_s3 + $0x28] sm:$0xff] (!%p258_p3)  ;;  %vm365_vm2 = vcmask (!%p258_p3), 257024   ;;  %vm737_vm6 = vmmov (!%p258_p3), 0  }
   0x8   : > { %v353_v6 = vshrl.u32 (!%p258_p3), %v352_v0, 7  ;;  %v668_v8 = vpack.c.bf16 (!%p258_p3), %v414_v5, %v413_v4  ;;  %v671_v20 = vpack.c.bf16 (!%p258_p3), %v416_v13, %v415_v12  ;;  %v417_v21 = vld [vmem:[%s867_s3 + $0x30] sm:$0xff] (!%p258_p3)  ;;  %v418_v22 = vld [vmem:[%s867_s3 + $0x38] sm:$0xff] (!%p258_p3)  ;;  %661 = vmatprep.mubr.msk.f32.mxu0 (!%p258_p3), %vm737_vm6, %v736_v10  ;;  %v419_v31 = vld [vmem:[%s867_s3 + $0x40] sm:$0xff] (!%p258_p3)  ;;  %s738_s10 = smov (!%p258_p3), 32   ;;  %vm407_vm7 = vcmask (!%p258_p3), 261120  }
   0x9   : > { %666 = vmatpush3.bf16.msra.mxu0 (!%p258_p3), %v665_v7  ;;  %v674_v29 = vpack.c.bf16 (!%p258_p3), %v418_v22, %v417_v21  ;;  %v420_v32 = vld [vmem:[%s867_s3 + $0x48] sm:$0xff] (!%p258_p3)  ;;  %v421_v34 = vld [vmem:[%s867_s3 + $0x50] sm:$0xff] (!%p258_p3)  ;;  %v422_v35 = vld [vmem:[%s867_s3 + $0x58] sm:$0xff] (!%p258_p3)  ;;  %vm409_vm8 = vcmask (!%p258_p3), 523264   ;;  %vm430_vm9 = vcmask (!%p258_p3), 785408  }
   0xa   : > { %vm372_vm0 = vcmp.lt.s32.totalorder (!%p258_p3), %v353_v6, 4  ;;  %v355_v9 = vadd.s32 (!%p258_p3), 4294967292, %v353_v6  ;;  %667 = vmatprep.subr.bf16.mxu0 (!%p258_p3), %v735_v2  ;;  %v677_v33 = vpack.c.bf16 (!%p258_p3), %v420_v32, %v419_v31  ;;  %v680_v37 = vpack.c.bf16 (!%p258_p3), %v422_v35, %v421_v34  ;;  %v620_v44 = vld [vmem:[%s868_s4] ss:$0 sm:$0xff] (!%p258_p3) }
   0xb   : > { %v619_v11 = vsel (!%p258_p3), %vm372_vm0, 1.0, %v736_v10 }
   0xc   : > { %vm356_vm1 = vcmp.ge.s32.totalorder (!%p258_p3), %v355_v9, 0 }
   0xd   : > { %v618_v18 = vsel (!%p258_p3), %vm356_vm1, 1.0, %v736_v10  ;;  %669 = vmatpush3.bf16.msra.mxu0 (!%p258_p3), %v668_v8 }
   0xe   : > { %s875_s18 = smov (!%p312_p4, %s725_s18), 1  ;;  %670 = vmatprep.subr.bf16.mxu0 %v735_v2 }
   0xf   : > { %s801_s30 = sshll.u32 %s875_s18, 2 }
  0x10   : > { %s328_s8 = scalar_lea.vmem %s865_s1, %s801_s30  ;;  %s338_s11 = scalar_lea.vmem %s866_s2, %s801_s30 }
  0x11   : > { %v367_v14 = vld [vmem:[%s328_s8] sm:$0xf]  ;;  %s318_s18 = scalar_lea.vmem %s864_s0, %s801_s30  ;;  %672 = vmatpush3.bf16.msra.mxu0 %v671_v20  ;;  %s348_s16 = scalar_lea.vmem %s869_s5, %s801_s30 }
  0x12   : > { %v381_v15 = vld [vmem:[%s338_s11] sm:$0xf]  ;;  %v376_v16 = vmul.f32 %v619_v11, %v367_v14  ;;  %673 = vmatprep.subr.bf16.mxu0 %v735_v2  ;;  %s739_s11 = smov 64  }
  0x13   : > { %v391_v17 = vmul.f32 0.0, %v381_v15  ;;  %v349_v19 = vld [vmem:[%s318_s18] sm:$0xf] }
  0x14   : > { %v361_v23 = vmul.f32 %v618_v18, %v349_v19  ;;  %vm377_vm3 = vcmp.ge.f32.partialorder %v376_v16, 0.0  ;;  %v378_v24 = vmul.f32 0.1, %v376_v16 }
  0x15   : > { %vm392_vm4 = vcmp.ge.f32.partialorder %v391_v17, 0.0  ;;  %v393_v25 = vmul.f32 0.1, %v391_v17  ;;  %675 = vmatpush3.bf16.msra.mxu0 %v674_v29 }
  0x16   : > { %vm362_vm5 = vcmp.ge.f32.partialorder %v361_v23, 0.0  ;;  %v363_v26 = vmul.f32 0.1, %v361_v23  ;;  %v379_v27 = vsel %vm377_vm3, %v376_v16, %v378_v24  ;;  %676 = vmatprep.subr.bf16.mxu0 %v735_v2 }
  0x17   : > { %v394_v28 = vsel %vm392_vm4, %v391_v17, %v393_v25  ;;  %380 = vst.msk [vmem:[#allocation2 + $0x4] sm:$0xf] %vm365_vm2, %v379_v27 }
  0x18   : > { %395 = vst.msk [vmem:[#allocation2 + $0x8] sm:$0xf] %vm365_vm2, %v394_v28  ;;  %v364_v30 = vsel %vm362_vm5, %v361_v23, %v363_v26 }
  0x19   : > { %366 = vst.msk [vmem:[#allocation2] sm:$0xf] %vm365_vm2, %v364_v30  ;;  %678 = vmatpush3.bf16.msra.mxu0 %v677_v33 }
  0x1a   : > { %679 = vmatprep.subr.bf16.mxu0 %v735_v2 }
  0x1d   : > { %681 = vmatpush3.bf16.msra.mxu0 %v680_v37 }
  0x1e   : > { %v397_v36 = vld [vmem:[#allocation2 + $0x4] sm:$0xf] }
  0x1f   : > { %400 = vrot.lane.b32.xlu0 %v397_v36, %s738_s10  ;;  %v398_v38 = vld [vmem:[#allocation2 + $0x5] sm:$0xf] }
  0x20   : > { %v396_v40 = vld [vmem:[#allocation2 + $0x3] sm:$0xf] }
  0x23   : > { %404 = vrot.lane.b32.xlu0 %v398_v38, %s739_s11 }
  0x91   : > { %v401_v39 = vpop.permute.xlu0 %400 }
  0x92   : > { %v408_v41 = vsel %vm407_vm7, %v396_v40, %v401_v39 }
  0x95   : > { %v405_v42 = vpop.permute.xlu0 %404 }
  0x96   : > { %v410_v43 = vsel %vm409_vm8, %v408_v41, %v405_v42 }
  0x97   : > { %662 = vmatmul.mubr.msk.f32.vlgmr.msra.gmra.mrb[0].mxu0 %vm430_vm9, %v410_v43 }
 0x16a   : > { %v500_v45 = vpop.f32.mrb[0].mxu0 }
 0x16b   : > { %v501_v46 = vadd.f32 %v620_v44, %v500_v45  ;;  %v663_v47 = vpop.f32.mrb[1].mxu0 }
 0x16d   : > { %504 = vst.msk [vmem:[%s348_s16] sm:$0xf] %vm365_vm2, %v501_v46 }
 0x16e PF: > { %s15_s20 = sadd.s32 1, %s733_s20   ;;  %s870_s18 = smov %s729_s19 }
 0x16f   : > { %p12_p5 = scmp.ge.s32.totalorder %s15_s20, 4   ;;  %s871_s19 = smov %s873_s21 }
 0x171   :  { %14 = sbr.rel (!%p12_p5) target bundleno = 2 (0x2), region = 76 }

// kernel: synthesizer_forward.102
= control target key start
LH: loop header
LB: loop body
LE: loop exit
PB: predicated region body
PF: predicated region fallthrough
CT: control target
= control target key end

     0   :  { %s734_s18 = smov 0   ;;  %s736_s19 = smov 0   ;;  %s805_s0 = inlined_call_operand.vmem [shape: f32[2,8,16], index: 0, kind: input, shape index: {}, may-alias: {0,1,2}]   ;;  %s806_s1 = inlined_call_operand.vmem [shape: f32[2,8,16], index: 1, kind: input, shape index: {}, may-alias: {0,1,2}]   ;;  %s807_s2 = inlined_call_operand.vmem [shape: f32[2,8,16], index: 2, kind: input, shape index: {}, may-alias: {0,1,2}]   ;;  %s808_s3 = inlined_call_operand.vmem [shape: f32[48,16], index: 3, kind: input, shape index: {}]   ;;  %s809_s4 = inlined_call_operand.vmem [shape: f32[1,16], index: 4, kind: input, shape index: {}]   ;;  %s810_s5 = inlined_call_operand.vmem [shape: f32[2,8,16], index: 5, kind: output, shape index: {}]  }
   0x1   :  { %s738_s20 = smov 0  }
   0x2 LB: > { %s27_s21 = sadd.s32 1, %s693_s19  ;;  %p606_p0 = scmp.ge.s32.totalorder %s697_s20, 1  ;;  %s697_s20 = sphi %s738_s20, %s15_s20   ;;  %s693_s19 = sphi %s736_s19, %s812_s19   ;;  %s689_s18 = sphi %s734_s18, %s811_s18  }
   0x3   : > { %p29_p1 = scmp.ge.s32.totalorder %s27_s21, 2  ;;  %p257_p2 = scmp.lt.s32.totalorder %s697_s20, 3 }
   0x5   : > { %s814_s21 = smov (%p29_p1, %s27_s21), 0  ;;  %p258_p3 = pnand %p606_p0, %p257_p2 }
   0x6   : > { %p312_p4 = scmp.lt.s32.totalorder (!%p258_p3), %s689_s18, 1  ;;  %v410_v0 = vld [vmem:[%s808_s3] sm:$0xff] (!%p258_p3)  ;;  %v411_v1 = vld [vmem:[%s808_s3 + $0x8] sm:$0xff] (!%p258_p3)  ;;  %v699_v2 = vmov (!%p258_p3), 0.0|0.0   ;;  %v412_v4 = vld [vmem:[%s808_s3 + $0x10] sm:$0xff] (!%p258_p3)  ;;  %vm365_vm0 = vcmask (!%p258_p3), 130048  }
   0x7   : > { %261 = sbr.rel (%p258_p3) target bundleno = 364 (0x16c), region = 40  ;;  %637 = vmatprep.subr.bf16.mxu0 (!%p258_p3), %v699_v2  ;;  %v638_v3 = vpack.c.bf16 (!%p258_p3), %v411_v1, %v410_v0  ;;  %v413_v5 = vld [vmem:[%s808_s3 + $0x18] sm:$0xff] (!%p258_p3)  ;;  %v414_v7 = vld [vmem:[%s808_s3 + $0x20] sm:$0xff] (!%p258_p3)  ;;  %v415_v8 = vld [vmem:[%s808_s3 + $0x28] sm:$0xff] (!%p258_p3)  ;;  %vm700_vm3 = vmmov (!%p258_p3), 0   ;;  %v701_v18 = vmov (!%p258_p3), 0.0  }
   0x8   : > { %v641_v6 = vpack.c.bf16 (!%p258_p3), %v413_v5, %v412_v4  ;;  %v644_v14 = vpack.c.bf16 (!%p258_p3), %v415_v8, %v414_v7  ;;  %634 = vmatprep.mubr.msk.f32.mxu0 (!%p258_p3), %vm700_vm3, %v701_v18  ;;  %s702_s22 = smov (!%p258_p3), 16   ;;  %s703_s23 = smov (!%p258_p3), 32   ;;  %vm408_vm5 = vcmask (!%p258_p3), 261120   ;;  %vm423_vm6 = vcmask (!%p258_p3), 392192   ;;  %v611_v29 = vld [vmem:[%s809_s4] ss:$0 sm:$0xff] (!%p258_p3) }
   0x9   : > { %639 = vmatpush3.bf16.msra.mxu0 (!%p258_p3), %v638_v3 }
   0xa   : > { %640 = vmatprep.subr.bf16.mxu0 (!%p258_p3), %v699_v2 }
   0xd   : > { %642 = vmatpush3.bf16.msra.mxu0 (!%p258_p3), %v641_v6 }
   0xe   : > { %s816_s18 = smov (!%p312_p4, %s689_s18), 1  ;;  %643 = vmatprep.subr.bf16.mxu0 %v699_v2 }
   0xf   : > { %s764_s30 = sshll.u32 %s816_s18, 3 }
  0x10   : > { %s328_s12 = scalar_lea.vmem %s806_s1, %s764_s30  ;;  %s338_s15 = scalar_lea.vmem %s807_s2, %s764_s30 }
  0x11   : > { %v367_v9 = vld [vmem:[%s328_s12] sm:$0xff]  ;;  %s318_s18 = scalar_lea.vmem %s805_s0, %s764_s30  ;;  %645 = vmatpush3.bf16.msra.mxu0 %v644_v14  ;;  %s348_s28 = scalar_lea.vmem %s810_s5, %s764_s30 }
  0x12   : > { %v381_v10 = vld [vmem:[%s338_s15] sm:$0xff]  ;;  %vm377_vm1 = vcmp.ge.f32.partialorder %v367_v9, 0.0  ;;  %v378_v11 = vmul.f32 0.1, %v367_v9 }
  0x13   : > { %v391_v12 = vmul.f32 0.0, %v381_v10  ;;  %v349_v13 = vld [vmem:[%s318_s18] sm:$0xff] }
  0x14   : > { %v361_v15 = vmul.f32 0.0, %v349_v13  ;;  %v379_v16 = vsel %vm377_vm1, %v367_v9, %v378_v11 }
  0x15   : > { %vm392_vm2 = vcmp.ge.f32.partialorder %v391_v12, 0.0  ;;  %v393_v17 = vmul.f32 0.1, %v391_v12  ;;  %380 = vst.msk [vmem:[#allocation2 + $0x8] sm:$0xff] %vm365_vm0, %v379_v16 }
  0x16   : > { %vm362_vm4 = vcmp.ge.f32.partialorder %v361_v15, 0.0  ;;  %v363_v19 = vmul.f32 0.1, %v361_v15 }
  0x17   : > { %v394_v20 = vsel %vm392_vm2, %v391_v12, %v393_v17 }
  0x18   : > { %395 = vst.msk [vmem:[#allocation2 + $0x10] sm:$0xff] %vm365_vm0, %v394_v20  ;;  %v364_v21 = vsel %vm362_vm4, %v361_v15, %v363_v19 }
  0x19   : > { %366 = vst.msk [vmem:[#allocation2] sm:$0xff] %vm365_vm0, %v364_v21 }
  0x1c   : > { %v397_v22 = vld [vmem:[#allocation2 + $0x8] sm:$0xff] }
  0x1d   : > { %400 = vrot.lane.b32.xlu0 %v397_v22, %s702_s22 }
  0x1f   : > { %v398_v23 = vld [vmem:[#allocation2 + $0xb] sm:$0xff] }
  0x20   : > { %v396_v25 = vld [vmem:[#allocation2 + $0x5] sm:$0xff] }
  0x21   : > { %404 = vrot.lane.b32.xlu0 %v398_v23, %s703_s23 }
  0x8f   : > { %v401_v24 = vpop.permute.xlu0 %400 }
  0x90   : > { %v407_v26 = vsel %vm365_vm0, %v396_v25, %v401_v24 }
  0x93   : > { %v405_v27 = vpop.permute.xlu0 %404 }
  0x94   : > { %v409_v28 = vsel %vm408_vm5, %v407_v26, %v405_v27 }
  0x95   : > { %635 = vmatmul.mubr.msk.f32.vlgmr.msra.gmra.mrb[0].mxu0 %vm423_vm6, %v409_v28 }
 0x168   : > { %v493_v30 = vpop.f32.mrb[0].mxu0 }
 0x169   : > { %v494_v31 = vadd.f32 %v611_v29, %v493_v30  ;;  %v636_v32 = vpop.f32.mrb[1].mxu0 }
 0x16b   : > { %497 = vst.msk [vmem:[%s348_s28] sm:$0xff] %vm365_vm0, %v494_v31 }
 0x16c PF: > { %s15_s20 = sadd.s32 1, %s697_s20   ;;  %s811_s18 = smov %s693_s19 }
 0x16d   : > { %p12_p5 = scmp.ge.s32.totalorder %s15_s20, 4   ;;  %s812_s19 = smov %s814_s21 }
 0x16f   :  { %14 = sbr.rel (!%p12_p5) target bundleno = 2 (0x2), region = 76 }

// kernel: synthesizer_forward.100
= control target key start
LH: loop header
LB: loop body
LE: loop exit
PB: predicated region body
PF: predicated region fallthrough
CT: control target
= control target key end

     0   :  { %s734_s18 = smov 0   ;;  %s736_s19 = smov 0   ;;  %s805_s0 = inlined_call_operand.vmem [shape: f32[2,8,16], index: 0, kind: input, shape index: {}, may-alias: {0,1,2}]   ;;  %s806_s1 = inlined_call_operand.vmem [shape: f32[2,8,16], index: 1, kind: input, shape index: {}, may-alias: {0,1,2}]   ;;  %s807_s2 = inlined_call_operand.vmem [shape: f32[2,8,16], index: 2, kind: input, shape index: {}, may-alias: {0,1,2}]   ;;  %s808_s3 = inlined_call_operand.vmem [shape: f32[48,16], index: 3, kind: input, shape index: {}]   ;;  %s809_s4 = inlined_call_operand.vmem [shape: f32[1,16], index: 4, kind: input, shape index: {}]   ;;  %s810_s5 = inlined_call_operand.vmem [shape: f32[2,8,16], index: 5, kind: output, shape index: {}]  }
   0x1   :  { %s738_s20 = smov 0  }
   0x2 LB: > { %s27_s21 = sadd.s32 1, %s693_s19  ;;  %p606_p0 = scmp.ge.s32.totalorder %s697_s20, 1  ;;  %s697_s20 = sphi %s738_s20, %s15_s20   ;;  %s693_s19 = sphi %s736_s19, %s812_s19   ;;  %s689_s18 = sphi %s734_s18, %s811_s18  }
   0x3   : > { %p29_p1 = scmp.ge.s32.totalorder %s27_s21, 2  ;;  %p257_p2 = scmp.lt.s32.totalorder %s697_s20, 3 }
   0x5   : > { %s814_s21 = smov (%p29_p1, %s27_s21), 0  ;;  %p258_p3 = pnand %p606_p0, %p257_p2 }
   0x6   : > { %p312_p4 = scmp.lt.s32.totalorder (!%p258_p3), %s689_s18, 1  ;;  %v410_v0 = vld [vmem:[%s808_s3] sm:$0xff] (!%p258_p3)  ;;  %v411_v1 = vld [vmem:[%s808_s3 + $0x8] sm:$0xff] (!%p258_p3)  ;;  %v699_v2 = vmov (!%p258_p3), 0.0|0.0   ;;  %v412_v4 = vld [vmem:[%s808_s3 + $0x10] sm:$0xff] (!%p258_p3)  ;;  %vm365_vm0 = vcmask (!%p258_p3), 130048  }
   0x7   : > { %261 = sbr.rel (%p258_p3) target bundleno = 364 (0x16c), region = 40  ;;  %637 = vmatprep.subr.bf16.mxu0 (!%p258_p3), %v699_v2  ;;  %v638_v3 = vpack.c.bf16 (!%p258_p3), %v411_v1, %v410_v0  ;;  %v413_v5 = vld [vmem:[%s808_s3 + $0x18] sm:$0xff] (!%p258_p3)  ;;  %v414_v7 = vld [vmem:[%s808_s3 + $0x20] sm:$0xff] (!%p258_p3)  ;;  %v415_v8 = vld [vmem:[%s808_s3 + $0x28] sm:$0xff] (!%p258_p3)  ;;  %vm700_vm3 = vmmov (!%p258_p3), 0   ;;  %v701_v18 = vmov (!%p258_p3), 0.0  }
   0x8   : > { %v641_v6 = vpack.c.bf16 (!%p258_p3), %v413_v5, %v412_v4  ;;  %v644_v14 = vpack.c.bf16 (!%p258_p3), %v415_v8, %v414_v7  ;;  %634 = vmatprep.mubr.msk.f32.mxu0 (!%p258_p3), %vm700_vm3, %v701_v18  ;;  %s702_s22 = smov (!%p258_p3), 16   ;;  %s703_s23 = smov (!%p258_p3), 32   ;;  %vm408_vm5 = vcmask (!%p258_p3), 261120   ;;  %vm423_vm6 = vcmask (!%p258_p3), 392192   ;;  %v611_v29 = vld [vmem:[%s809_s4] ss:$0 sm:$0xff] (!%p258_p3) }
   0x9   : > { %639 = vmatpush3.bf16.msra.mxu0 (!%p258_p3), %v638_v3 }
   0xa   : > { %640 = vmatprep.subr.bf16.mxu0 (!%p258_p3), %v699_v2 }
   0xd   : > { %642 = vmatpush3.bf16.msra.mxu0 (!%p258_p3), %v641_v6 }
   0xe   : > { %s816_s18 = smov (!%p312_p4, %s689_s18), 1  ;;  %643 = vmatprep.subr.bf16.mxu0 %v699_v2 }
   0xf   : > { %s764_s30 = sshll.u32 %s816_s18, 3 }
  0x10   : > { %s328_s12 = scalar_lea.vmem %s806_s1, %s764_s30  ;;  %s338_s15 = scalar_lea.vmem %s807_s2, %s764_s30 }
  0x11   : > { %v367_v9 = vld [vmem:[%s328_s12] sm:$0xff]  ;;  %s318_s18 = scalar_lea.vmem %s805_s0, %s764_s30  ;;  %645 = vmatpush3.bf16.msra.mxu0 %v644_v14  ;;  %s348_s28 = scalar_lea.vmem %s810_s5, %s764_s30 }
  0x12   : > { %v381_v10 = vld [vmem:[%s338_s15] sm:$0xff]  ;;  %vm377_vm1 = vcmp.ge.f32.partialorder %v367_v9, 0.0  ;;  %v378_v11 = vmul.f32 0.1, %v367_v9 }
  0x13   : > { %v391_v12 = vmul.f32 0.0, %v381_v10  ;;  %v349_v13 = vld [vmem:[%s318_s18] sm:$0xff] }
  0x14   : > { %v361_v15 = vmul.f32 0.0, %v349_v13  ;;  %v379_v16 = vsel %vm377_vm1, %v367_v9, %v378_v11 }
  0x15   : > { %vm392_vm2 = vcmp.ge.f32.partialorder %v391_v12, 0.0  ;;  %v393_v17 = vmul.f32 0.1, %v391_v12  ;;  %380 = vst.msk [vmem:[#allocation2 + $0x8] sm:$0xff] %vm365_vm0, %v379_v16 }
  0x16   : > { %vm362_vm4 = vcmp.ge.f32.partialorder %v361_v15, 0.0  ;;  %v363_v19 = vmul.f32 0.1, %v361_v15 }
  0x17   : > { %v394_v20 = vsel %vm392_vm2, %v391_v12, %v393_v17 }
  0x18   : > { %395 = vst.msk [vmem:[#allocation2 + $0x10] sm:$0xff] %vm365_vm0, %v394_v20  ;;  %v364_v21 = vsel %vm362_vm4, %v361_v15, %v363_v19 }
  0x19   : > { %366 = vst.msk [vmem:[#allocation2] sm:$0xff] %vm365_vm0, %v364_v21 }
  0x1c   : > { %v397_v22 = vld [vmem:[#allocation2 + $0x8] sm:$0xff] }
  0x1d   : > { %400 = vrot.lane.b32.xlu0 %v397_v22, %s702_s22 }
  0x1f   : > { %v398_v23 = vld [vmem:[#allocation2 + $0x9] sm:$0xff] }
  0x20   : > { %v396_v25 = vld [vmem:[#allocation2 + $0x7] sm:$0xff] }
  0x21   : > { %404 = vrot.lane.b32.xlu0 %v398_v23, %s703_s23 }
  0x8f   : > { %v401_v24 = vpop.permute.xlu0 %400 }
  0x90   : > { %v407_v26 = vsel %vm365_vm0, %v396_v25, %v401_v24 }
  0x93   : > { %v405_v27 = vpop.permute.xlu0 %404 }
  0x94   : > { %v409_v28 = vsel %vm408_vm5, %v407_v26, %v405_v27 }
  0x95   : > { %635 = vmatmul.mubr.msk.f32.vlgmr.msra.gmra.mrb[0].mxu0 %vm423_vm6, %v409_v28 }
 0x168   : > { %v493_v30 = vpop.f32.mrb[0].mxu0 }
 0x169   : > { %v494_v31 = vadd.f32 %v611_v29, %v493_v30  ;;  %v636_v32 = vpop.f32.mrb[1].mxu0 }
 0x16b   : > { %497 = vst.msk [vmem:[%s348_s28] sm:$0xff] %vm365_vm0, %v494_v31 }
 0x16c PF: > { %s15_s20 = sadd.s32 1, %s697_s20   ;;  %s811_s18 = smov %s693_s19 }
 0x16d   : > { %p12_p5 = scmp.ge.s32.totalorder %s15_s20, 4   ;;  %s812_s19 = smov %s814_s21 }
 0x16f   :  { %14 = sbr.rel (!%p12_p5) target bundleno = 2 (0x2), region = 76 }

// kernel: synthesizer_forward.104
= control target key start
LH: loop header
LB: loop body
LE: loop exit
PB: predicated region body
PF: predicated region fallthrough
CT: control target
= control target key end

     0   :  { %s734_s18 = smov 0   ;;  %s736_s19 = smov 0   ;;  %s805_s0 = inlined_call_operand.vmem [shape: f32[2,8,16], index: 0, kind: input, shape index: {}, may-alias: {0,1,2}]   ;;  %s806_s1 = inlined_call_operand.vmem [shape: f32[2,8,16], index: 1, kind: input, shape index: {}, may-alias: {0,1,2}]   ;;  %s807_s2 = inlined_call_operand.vmem [shape: f32[2,8,16], index: 2, kind: input, shape index: {}, may-alias: {0,1,2}]   ;;  %s808_s3 = inlined_call_operand.vmem [shape: f32[48,16], index: 3, kind: input, shape index: {}]   ;;  %s809_s4 = inlined_call_operand.vmem [shape: f32[1,16], index: 4, kind: input, shape index: {}]   ;;  %s810_s5 = inlined_call_operand.vmem [shape: f32[2,8,16], index: 5, kind: output, shape index: {}]  }
   0x1   :  { %s738_s20 = smov 0  }
   0x2 LB: > { %s27_s21 = sadd.s32 1, %s693_s19  ;;  %p606_p0 = scmp.ge.s32.totalorder %s697_s20, 1  ;;  %s697_s20 = sphi %s738_s20, %s15_s20   ;;  %s693_s19 = sphi %s736_s19, %s812_s19   ;;  %s689_s18 = sphi %s734_s18, %s811_s18  }
   0x3   : > { %p29_p1 = scmp.ge.s32.totalorder %s27_s21, 2  ;;  %p257_p2 = scmp.lt.s32.totalorder %s697_s20, 3 }
   0x5   : > { %s814_s21 = smov (%p29_p1, %s27_s21), 0  ;;  %p258_p3 = pnand %p606_p0, %p257_p2 }
   0x6   : > { %p312_p4 = scmp.lt.s32.totalorder (!%p258_p3), %s689_s18, 1  ;;  %v410_v0 = vld [vmem:[%s808_s3] sm:$0xff] (!%p258_p3)  ;;  %v411_v1 = vld [vmem:[%s808_s3 + $0x8] sm:$0xff] (!%p258_p3)  ;;  %v699_v2 = vmov (!%p258_p3), 0.0|0.0   ;;  %v412_v4 = vld [vmem:[%s808_s3 + $0x10] sm:$0xff] (!%p258_p3)  ;;  %vm365_vm0 = vcmask (!%p258_p3), 130048  }
   0x7   : > { %261 = sbr.rel (%p258_p3) target bundleno = 364 (0x16c), region = 40  ;;  %637 = vmatprep.subr.bf16.mxu0 (!%p258_p3), %v699_v2  ;;  %v638_v3 = vpack.c.bf16 (!%p258_p3), %v411_v1, %v410_v0  ;;  %v413_v5 = vld [vmem:[%s808_s3 + $0x18] sm:$0xff] (!%p258_p3)  ;;  %v414_v7 = vld [vmem:[%s808_s3 + $0x20] sm:$0xff] (!%p258_p3)  ;;  %v415_v8 = vld [vmem:[%s808_s3 + $0x28] sm:$0xff] (!%p258_p3)  ;;  %vm700_vm3 = vmmov (!%p258_p3), 0   ;;  %v701_v18 = vmov (!%p258_p3), 0.0  }
   0x8   : > { %v641_v6 = vpack.c.bf16 (!%p258_p3), %v413_v5, %v412_v4  ;;  %v644_v14 = vpack.c.bf16 (!%p258_p3), %v415_v8, %v414_v7  ;;  %634 = vmatprep.mubr.msk.f32.mxu0 (!%p258_p3), %vm700_vm3, %v701_v18  ;;  %s702_s22 = smov (!%p258_p3), 16   ;;  %s703_s23 = smov (!%p258_p3), 32   ;;  %vm408_vm5 = vcmask (!%p258_p3), 261120   ;;  %vm423_vm6 = vcmask (!%p258_p3), 392192   ;;  %v611_v29 = vld [vmem:[%s809_s4] ss:$0 sm:$0xff] (!%p258_p3) }
   0x9   : > { %639 = vmatpush3.bf16.msra.mxu0 (!%p258_p3), %v638_v3 }
   0xa   : > { %640 = vmatprep.subr.bf16.mxu0 (!%p258_p3), %v699_v2 }
   0xd   : > { %642 = vmatpush3.bf16.msra.mxu0 (!%p258_p3), %v641_v6 }
   0xe   : > { %s816_s18 = smov (!%p312_p4, %s689_s18), 1  ;;  %643 = vmatprep.subr.bf16.mxu0 %v699_v2 }
   0xf   : > { %s764_s30 = sshll.u32 %s816_s18, 3 }
  0x10   : > { %s328_s12 = scalar_lea.vmem %s806_s1, %s764_s30  ;;  %s338_s15 = scalar_lea.vmem %s807_s2, %s764_s30 }
  0x11   : > { %v367_v9 = vld [vmem:[%s328_s12] sm:$0xff]  ;;  %s318_s18 = scalar_lea.vmem %s805_s0, %s764_s30  ;;  %645 = vmatpush3.bf16.msra.mxu0 %v644_v14  ;;  %s348_s28 = scalar_lea.vmem %s810_s5, %s764_s30 }
  0x12   : > { %v381_v10 = vld [vmem:[%s338_s15] sm:$0xff]  ;;  %vm377_vm1 = vcmp.ge.f32.partialorder %v367_v9, 0.0  ;;  %v378_v11 = vmul.f32 0.1, %v367_v9 }
  0x13   : > { %v391_v12 = vmul.f32 0.0, %v381_v10  ;;  %v349_v13 = vld [vmem:[%s318_s18] sm:$0xff] }
  0x14   : > { %v361_v15 = vmul.f32 0.0, %v349_v13  ;;  %v379_v16 = vsel %vm377_vm1, %v367_v9, %v378_v11 }
  0x15   : > { %vm392_vm2 = vcmp.ge.f32.partialorder %v391_v12, 0.0  ;;  %v393_v17 = vmul.f32 0.1, %v391_v12  ;;  %380 = vst.msk [vmem:[#allocation2 + $0x8] sm:$0xff] %vm365_vm0, %v379_v16 }
  0x16   : > { %vm362_vm4 = vcmp.ge.f32.partialorder %v361_v15, 0.0  ;;  %v363_v19 = vmul.f32 0.1, %v361_v15 }
  0x17   : > { %v394_v20 = vsel %vm392_vm2, %v391_v12, %v393_v17 }
  0x18   : > { %395 = vst.msk [vmem:[#allocation2 + $0x10] sm:$0xff] %vm365_vm0, %v394_v20  ;;  %v364_v21 = vsel %vm362_vm4, %v361_v15, %v363_v19 }
  0x19   : > { %366 = vst.msk [vmem:[#allocation2] sm:$0xff] %vm365_vm0, %v364_v21 }
  0x1c   : > { %v397_v22 = vld [vmem:[#allocation2 + $0x8] sm:$0xff] }
  0x1d   : > { %400 = vrot.lane.b32.xlu0 %v397_v22, %s702_s22 }
  0x1f   : > { %v398_v23 = vld [vmem:[#allocation2 + $0xd] sm:$0xff] }
  0x20   : > { %v396_v25 = vld [vmem:[#allocation2 + $0x3] sm:$0xff] }
  0x21   : > { %404 = vrot.lane.b32.xlu0 %v398_v23, %s703_s23 }
  0x8f   : > { %v401_v24 = vpop.permute.xlu0 %400 }
  0x90   : > { %v407_v26 = vsel %vm365_vm0, %v396_v25, %v401_v24 }
  0x93   : > { %v405_v27 = vpop.permute.xlu0 %404 }
  0x94   : > { %v409_v28 = vsel %vm408_vm5, %v407_v26, %v405_v27 }
  0x95   : > { %635 = vmatmul.mubr.msk.f32.vlgmr.msra.gmra.mrb[0].mxu0 %vm423_vm6, %v409_v28 }
 0x168   : > { %v493_v30 = vpop.f32.mrb[0].mxu0 }
 0x169   : > { %v494_v31 = vadd.f32 %v611_v29, %v493_v30  ;;  %v636_v32 = vpop.f32.mrb[1].mxu0 }
 0x16b   : > { %497 = vst.msk [vmem:[%s348_s28] sm:$0xff] %vm365_vm0, %v494_v31 }
 0x16c PF: > { %s15_s20 = sadd.s32 1, %s697_s20   ;;  %s811_s18 = smov %s693_s19 }
 0x16d   : > { %p12_p5 = scmp.ge.s32.totalorder %s15_s20, 4   ;;  %s812_s19 = smov %s814_s21 }
 0x16f   :  { %14 = sbr.rel (!%p12_p5) target bundleno = 2 (0x2), region = 76 }

// kernel: synthesizer_forward.107
= control target key start
LH: loop header
LB: loop body
LE: loop exit
PB: predicated region body
PF: predicated region fallthrough
CT: control target
= control target key end

     0   :  { %s828_s18 = smov 0   ;;  %s830_s19 = smov 0   ;;  %s893_s0 = inlined_call_operand.vmem [shape: f32[2,16,8], index: 0, kind: input, shape index: {}, may-alias: {0,1,2}]   ;;  %s894_s1 = inlined_call_operand.vmem [shape: f32[2,16,8], index: 1, kind: input, shape index: {}, may-alias: {0,1,2}]   ;;  %s895_s2 = inlined_call_operand.vmem [shape: f32[2,16,8], index: 2, kind: input, shape index: {}, may-alias: {0,1,2}]   ;;  %s896_s3 = inlined_call_operand.vmem [shape: f32[24,8], index: 3, kind: input, shape index: {}]   ;;  %s897_s4 = inlined_call_operand.vmem [shape: f32[1,8], index: 4, kind: input, shape index: {}]   ;;  %s898_s5 = inlined_call_operand.vmem [shape: f32[2,16,8], index: 5, kind: output, shape index: {}]  }
   0x1   :  { %s832_s20 = smov 0  }
   0x2 LB: > { %s27_s21 = sadd.s32 1, %s790_s19  ;;  %p710_p0 = scmp.ge.s32.totalorder %s794_s20, 1  ;;  %s794_s20 = sphi %s832_s20, %s15_s20   ;;  %s790_s19 = sphi %s830_s19, %s900_s19   ;;  %s786_s18 = sphi %s828_s18, %s899_s18  }
   0x3   : > { %p29_p1 = scmp.ge.s32.totalorder %s27_s21, 2  ;;  %p266_p2 = scmp.lt.s32.totalorder %s794_s20, 3 }
   0x5   : > { %s902_s21 = smov (%p29_p1, %s27_s21), 0  ;;  %p267_p3 = pnand %p710_p0, %p266_p2 }
   0x6   : > { %p330_p4 = scmp.lt.s32.totalorder (!%p267_p3), %s786_s18, 1  ;;  %v489_v0 = vld [vmem:[%s896_s3] sm:$0xff] (!%p267_p3)  ;;  %v490_v1 = vld [vmem:[%s896_s3 + $0x8] sm:$0xff] (!%p267_p3)  ;;  %vm406_vm0 = vcmask (!%p267_p3), 64512   ;;  %v491_v12 = vld [vmem:[%s896_s3 + $0x10] sm:$0xff] (!%p267_p3)  ;;  %s796_s13 = smov (!%p267_p3), 8  }
   0x7   : > { %270 = sbr.rel (%p267_p3) target bundleno = 366 (0x16e), region = 40  ;;  %v742_v2 = vpack.c.bf16 (!%p267_p3), %v490_v1, %v489_v0  ;;  %s797_s14 = smov (!%p267_p3), 16   ;;  %vm486_vm5 = vcmask (!%p267_p3), 130048   ;;  %vm499_vm6 = vcmask (!%p267_p3), 195584   ;;  %v719_v32 = vld [vmem:[%s897_s4] ss:$0 sm:$0xff] (!%p267_p3) }
   0x9   : > { %743 = vmatprep.subr.bf16.mxu0 (!%p267_p3), %v742_v2 }
   0xa   : > { %745 = vmatpush3.bf16.msra.mxu0 (!%p267_p3), %v742_v2 }
   0xb   : > { %737 = vmatprep.subr.mxu0 (!%p267_p3), %v491_v12 }
   0xe   : > { %s904_s18 = smov (!%p330_p4, %s786_s18), 1  ;;  %738 = vmatpush3.msra.mxu0 %v491_v12 }
   0xf   : > { %s852_s26 = sshll.u32 %s904_s18, 4 }
  0x10   : > { %s350_s29 = scalar_lea.vmem %s894_s1, %s852_s26  ;;  %s363_s7 = scalar_lea.vmem %s895_s2, %s852_s26 }
  0x11   : > { %v409_v3 = vld [vmem:[%s350_s29] sm:$0xff]  ;;  %v410_v4 = vld [vmem:[%s350_s29 + $0x8] sm:$0xff]  ;;  %s337_s10 = scalar_lea.vmem %s893_s0, %s852_s26  ;;  %s376_s22 = scalar_lea.vmem %s898_s5, %s852_s26 }
  0x12   : > { %v435_v5 = vld [vmem:[%s363_s7] sm:$0xff]  ;;  %vm427_vm1 = vcmp.ge.f32.partialorder %v409_v3, 0.0  ;;  %v429_v6 = vmul.f32 0.1, %v409_v3  ;;  %vm428_vm2 = vcmp.ge.f32.partialorder %v410_v4, 0.0  ;;  %v379_v9 = vld [vmem:[%s337_s10 + $0x8] sm:$0xff] }
  0x13   : > { %v430_v7 = vmul.f32 0.1, %v410_v4  ;;  %v452_v8 = vmul.f32 0.0, %v435_v5  ;;  %v399_v14 = vmul.f32 0.0, %v379_v9 }
  0x14   : > { %v431_v10 = vsel %vm427_vm1, %v409_v3, %v429_v6 }
  0x15   : > { %v432_v11 = vsel %vm428_vm2, %v410_v4, %v430_v7  ;;  %433 = vst.msk [vmem:[#allocation2 + $0x10] sm:$0xff] %vm406_vm0, %v431_v10  ;;  %vm454_vm3 = vcmp.ge.f32.partialorder %v452_v8, 0.0  ;;  %v456_v13 = vmul.f32 0.1, %v452_v8  ;;  %vm401_vm4 = vcmp.ge.f32.partialorder %v399_v14, 0.0 }
  0x16   : > { %434 = vst.msk [vmem:[#allocation2 + $0x18] sm:$0xff] %vm406_vm0, %v432_v11  ;;  %v403_v16 = vmul.f32 0.1, %v399_v14 }
  0x17   : > { %v458_v15 = vsel %vm454_vm3, %v452_v8, %v456_v13 }
  0x18   : > { %460 = vst.msk [vmem:[#allocation2 + $0x20] sm:$0xff] %vm406_vm0, %v458_v15  ;;  %v405_v17 = vsel %vm401_vm4, %v399_v14, %v403_v16 }
  0x19   : > { %408 = vst.msk [vmem:[#allocation2 + $0x8] sm:$0xff] %vm406_vm0, %v405_v17 }
  0x1c   : > { %v464_v18 = vld [vmem:[#allocation2 + $0x10] sm:$0xff] }
  0x1d   : > { %v466_v19 = vld [vmem:[#allocation2 + $0x11] sm:$0xff]  ;;  %470 = vrot.lane.b32.xlu0 %v464_v18, %s796_s13 }
  0x1e   : > { %478 = vrot.lane.b32.xlu1 %v466_v19, %s797_s14  ;;  %v465_v20 = vld [vmem:[#allocation2 + $0x18] sm:$0xff] }
  0x1f   : > { %v467_v21 = vld [vmem:[#allocation2 + $0x19] sm:$0xff] }
  0x20   : > { %v462_v22 = vld [vmem:[#allocation2 + $0xf] sm:$0xff]  ;;  %v463_v27 = vld [vmem:[#allocation2 + $0x17] sm:$0xff] }
  0x21   : > { %472 = vrot.lane.b32.xlu0 %v465_v20, %s796_s13 }
  0x22   : > { %480 = vrot.lane.b32.xlu1 %v467_v21, %s797_s14 }
  0x8f   : > { %v471_v23 = vpop.permute.xlu0 %470 }
  0x90   : > { %v479_v24 = vpop.permute.xlu1 %478  ;;  %v484_v25 = vsel %vm406_vm0, %v462_v22, %v471_v23 }
  0x91   : > { %v487_v26 = vsel %vm486_vm5, %v484_v25, %v479_v24 }
  0x92   : > { %739 = vmatprep.mubr.msk.f32.mxu0 %vm499_vm6, %v487_v26 }
  0x93   : > { %v473_v28 = vpop.permute.xlu0 %472 }
  0x94   : > { %v481_v29 = vpop.permute.xlu1 %480  ;;  %v485_v30 = vsel %vm406_vm0, %v463_v27, %v473_v28 }
  0x95   : > { %v488_v31 = vsel %vm486_vm5, %v485_v30, %v481_v29 }
  0x96   : > { %740 = vmatmul.mubr.msk.f32.vlgmr.msra.gmra.mrb[0].mxu0 %vm499_vm6, %v488_v31 }
 0x169   : > { %v741_v33 = vpop.f32.mrb[0].mxu0 }
 0x16a   : > { %v578_v34 = vadd.f32 %v741_v33, %v719_v32  ;;  %v572_v35 = vpop.f32.mrb[1].mxu0 }
 0x16b   : > { %v573_v36 = vadd.f32 %v719_v32, %v572_v35 }
 0x16c   : > { %582 = vst.msk [vmem:[%s376_s22 + $0x8] sm:$0xff] %vm406_vm0, %v578_v34 }
 0x16d   : > { %581 = vst.msk [vmem:[%s376_s22] sm:$0xff] %vm406_vm0, %v573_v36 }
 0x16e PF: > { %s15_s20 = sadd.s32 1, %s794_s20   ;;  %s899_s18 = smov %s790_s19 }
 0x16f   : > { %p12_p5 = scmp.ge.s32.totalorder %s15_s20, 4   ;;  %s900_s19 = smov %s902_s21 }
 0x171   :  { %14 = sbr.rel (!%p12_p5) target bundleno = 2 (0x2), region = 76 }

// kernel: synthesizer_forward.111
= control target key start
LH: loop header
LB: loop body
LE: loop exit
PB: predicated region body
PF: predicated region fallthrough
CT: control target
= control target key end

     0   :  { %s828_s18 = smov 0   ;;  %s830_s19 = smov 0   ;;  %s893_s0 = inlined_call_operand.vmem [shape: f32[2,16,8], index: 0, kind: input, shape index: {}, may-alias: {0,1,2}]   ;;  %s894_s1 = inlined_call_operand.vmem [shape: f32[2,16,8], index: 1, kind: input, shape index: {}, may-alias: {0,1,2}]   ;;  %s895_s2 = inlined_call_operand.vmem [shape: f32[2,16,8], index: 2, kind: input, shape index: {}, may-alias: {0,1,2}]   ;;  %s896_s3 = inlined_call_operand.vmem [shape: f32[24,8], index: 3, kind: input, shape index: {}]   ;;  %s897_s4 = inlined_call_operand.vmem [shape: f32[1,8], index: 4, kind: input, shape index: {}]   ;;  %s898_s5 = inlined_call_operand.vmem [shape: f32[2,16,8], index: 5, kind: output, shape index: {}]  }
   0x1   :  { %s832_s20 = smov 0  }
   0x2 LB: > { %s27_s21 = sadd.s32 1, %s790_s19  ;;  %p710_p0 = scmp.ge.s32.totalorder %s794_s20, 1  ;;  %s794_s20 = sphi %s832_s20, %s15_s20   ;;  %s790_s19 = sphi %s830_s19, %s900_s19   ;;  %s786_s18 = sphi %s828_s18, %s899_s18  }
   0x3   : > { %p29_p1 = scmp.ge.s32.totalorder %s27_s21, 2  ;;  %p266_p2 = scmp.lt.s32.totalorder %s794_s20, 3 }
   0x5   : > { %s902_s21 = smov (%p29_p1, %s27_s21), 0  ;;  %p267_p3 = pnand %p710_p0, %p266_p2 }
   0x6   : > { %p330_p4 = scmp.lt.s32.totalorder (!%p267_p3), %s786_s18, 1  ;;  %v489_v0 = vld [vmem:[%s896_s3] sm:$0xff] (!%p267_p3)  ;;  %v490_v1 = vld [vmem:[%s896_s3 + $0x8] sm:$0xff] (!%p267_p3)  ;;  %vm406_vm0 = vcmask (!%p267_p3), 64512   ;;  %v491_v12 = vld [vmem:[%s896_s3 + $0x10] sm:$0xff] (!%p267_p3)  ;;  %s796_s13 = smov (!%p267_p3), 8  }
   0x7   : > { %270 = sbr.rel (%p267_p3) target bundleno = 366 (0x16e), region = 40  ;;  %v742_v2 = vpack.c.bf16 (!%p267_p3), %v490_v1, %v489_v0  ;;  %s797_s14 = smov (!%p267_p3), 16   ;;  %vm486_vm5 = vcmask (!%p267_p3), 130048   ;;  %vm499_vm6 = vcmask (!%p267_p3), 195584   ;;  %v719_v32 = vld [vmem:[%s897_s4] ss:$0 sm:$0xff] (!%p267_p3) }
   0x9   : > { %743 = vmatprep.subr.bf16.mxu0 (!%p267_p3), %v742_v2 }
   0xa   : > { %745 = vmatpush3.bf16.msra.mxu0 (!%p267_p3), %v742_v2 }
   0xb   : > { %737 = vmatprep.subr.mxu0 (!%p267_p3), %v491_v12 }
   0xe   : > { %s904_s18 = smov (!%p330_p4, %s786_s18), 1  ;;  %738 = vmatpush3.msra.mxu0 %v491_v12 }
   0xf   : > { %s852_s26 = sshll.u32 %s904_s18, 4 }
  0x10   : > { %s350_s29 = scalar_lea.vmem %s894_s1, %s852_s26  ;;  %s363_s7 = scalar_lea.vmem %s895_s2, %s852_s26 }
  0x11   : > { %v409_v3 = vld [vmem:[%s350_s29] sm:$0xff]  ;;  %v410_v4 = vld [vmem:[%s350_s29 + $0x8] sm:$0xff]  ;;  %s337_s10 = scalar_lea.vmem %s893_s0, %s852_s26  ;;  %s376_s22 = scalar_lea.vmem %s898_s5, %s852_s26 }
  0x12   : > { %v435_v5 = vld [vmem:[%s363_s7] sm:$0xff]  ;;  %vm427_vm1 = vcmp.ge.f32.partialorder %v409_v3, 0.0  ;;  %v429_v6 = vmul.f32 0.1, %v409_v3  ;;  %vm428_vm2 = vcmp.ge.f32.partialorder %v410_v4, 0.0  ;;  %v379_v9 = vld [vmem:[%s337_s10 + $0x8] sm:$0xff] }
  0x13   : > { %v430_v7 = vmul.f32 0.1, %v410_v4  ;;  %v452_v8 = vmul.f32 0.0, %v435_v5  ;;  %v399_v14 = vmul.f32 0.0, %v379_v9 }
  0x14   : > { %v431_v10 = vsel %vm427_vm1, %v409_v3, %v429_v6 }
  0x15   : > { %v432_v11 = vsel %vm428_vm2, %v410_v4, %v430_v7  ;;  %433 = vst.msk [vmem:[#allocation2 + $0x10] sm:$0xff] %vm406_vm0, %v431_v10  ;;  %vm454_vm3 = vcmp.ge.f32.partialorder %v452_v8, 0.0  ;;  %v456_v13 = vmul.f32 0.1, %v452_v8  ;;  %vm401_vm4 = vcmp.ge.f32.partialorder %v399_v14, 0.0 }
  0x16   : > { %434 = vst.msk [vmem:[#allocation2 + $0x18] sm:$0xff] %vm406_vm0, %v432_v11  ;;  %v403_v16 = vmul.f32 0.1, %v399_v14 }
  0x17   : > { %v458_v15 = vsel %vm454_vm3, %v452_v8, %v456_v13 }
  0x18   : > { %460 = vst.msk [vmem:[#allocation2 + $0x20] sm:$0xff] %vm406_vm0, %v458_v15  ;;  %v405_v17 = vsel %vm401_vm4, %v399_v14, %v403_v16 }
  0x19   : > { %408 = vst.msk [vmem:[#allocation2 + $0x8] sm:$0xff] %vm406_vm0, %v405_v17 }
  0x1c   : > { %v464_v18 = vld [vmem:[#allocation2 + $0x10] sm:$0xff] }
  0x1d   : > { %v466_v19 = vld [vmem:[#allocation2 + $0x15] sm:$0xff]  ;;  %470 = vrot.lane.b32.xlu0 %v464_v18, %s796_s13 }
  0x1e   : > { %478 = vrot.lane.b32.xlu1 %v466_v19, %s797_s14  ;;  %v465_v20 = vld [vmem:[#allocation2 + $0x18] sm:$0xff] }
  0x1f   : > { %v467_v21 = vld [vmem:[#allocation2 + $0x1d] sm:$0xff]  ;;  %v463_v27 = vld [vmem:[#allocation2 + $0x13] sm:$0xff] }
  0x20   : > { %v462_v22 = vld [vmem:[#allocation2 + $0xb] sm:$0xff] }
  0x21   : > { %472 = vrot.lane.b32.xlu0 %v465_v20, %s796_s13 }
  0x22   : > { %480 = vrot.lane.b32.xlu1 %v467_v21, %s797_s14 }
  0x8f   : > { %v471_v23 = vpop.permute.xlu0 %470 }
  0x90   : > { %v479_v24 = vpop.permute.xlu1 %478  ;;  %v484_v25 = vsel %vm406_vm0, %v462_v22, %v471_v23 }
  0x91   : > { %v487_v26 = vsel %vm486_vm5, %v484_v25, %v479_v24 }
  0x92   : > { %739 = vmatprep.mubr.msk.f32.mxu0 %vm499_vm6, %v487_v26 }
  0x93   : > { %v473_v28 = vpop.permute.xlu0 %472 }
  0x94   : > { %v481_v29 = vpop.permute.xlu1 %480  ;;  %v485_v30 = vsel %vm406_vm0, %v463_v27, %v473_v28 }
  0x95   : > { %v488_v31 = vsel %vm486_vm5, %v485_v30, %v481_v29 }
  0x96   : > { %740 = vmatmul.mubr.msk.f32.vlgmr.msra.gmra.mrb[0].mxu0 %vm499_vm6, %v488_v31 }
 0x169   : > { %v741_v33 = vpop.f32.mrb[0].mxu0 }
 0x16a   : > { %v578_v34 = vadd.f32 %v741_v33, %v719_v32  ;;  %v572_v35 = vpop.f32.mrb[1].mxu0 }
 0x16b   : > { %v573_v36 = vadd.f32 %v719_v32, %v572_v35 }
 0x16c   : > { %582 = vst.msk [vmem:[%s376_s22 + $0x8] sm:$0xff] %vm406_vm0, %v578_v34 }
 0x16d   : > { %581 = vst.msk [vmem:[%s376_s22] sm:$0xff] %vm406_vm0, %v573_v36 }
 0x16e PF: > { %s15_s20 = sadd.s32 1, %s794_s20   ;;  %s899_s18 = smov %s790_s19 }
 0x16f   : > { %p12_p5 = scmp.ge.s32.totalorder %s15_s20, 4   ;;  %s900_s19 = smov %s902_s21 }
 0x171   :  { %14 = sbr.rel (!%p12_p5) target bundleno = 2 (0x2), region = 76 }

// kernel: synthesizer_forward.109
= control target key start
LH: loop header
LB: loop body
LE: loop exit
PB: predicated region body
PF: predicated region fallthrough
CT: control target
= control target key end

     0   :  { %s828_s18 = smov 0   ;;  %s830_s19 = smov 0   ;;  %s893_s0 = inlined_call_operand.vmem [shape: f32[2,16,8], index: 0, kind: input, shape index: {}, may-alias: {0,1,2}]   ;;  %s894_s1 = inlined_call_operand.vmem [shape: f32[2,16,8], index: 1, kind: input, shape index: {}, may-alias: {0,1,2}]   ;;  %s895_s2 = inlined_call_operand.vmem [shape: f32[2,16,8], index: 2, kind: input, shape index: {}, may-alias: {0,1,2}]   ;;  %s896_s3 = inlined_call_operand.vmem [shape: f32[24,8], index: 3, kind: input, shape index: {}]   ;;  %s897_s4 = inlined_call_operand.vmem [shape: f32[1,8], index: 4, kind: input, shape index: {}]   ;;  %s898_s5 = inlined_call_operand.vmem [shape: f32[2,16,8], index: 5, kind: output, shape index: {}]  }
   0x1   :  { %s832_s20 = smov 0  }
   0x2 LB: > { %s27_s21 = sadd.s32 1, %s790_s19  ;;  %p710_p0 = scmp.ge.s32.totalorder %s794_s20, 1  ;;  %s794_s20 = sphi %s832_s20, %s15_s20   ;;  %s790_s19 = sphi %s830_s19, %s900_s19   ;;  %s786_s18 = sphi %s828_s18, %s899_s18  }
   0x3   : > { %p29_p1 = scmp.ge.s32.totalorder %s27_s21, 2  ;;  %p266_p2 = scmp.lt.s32.totalorder %s794_s20, 3 }
   0x5   : > { %s902_s21 = smov (%p29_p1, %s27_s21), 0  ;;  %p267_p3 = pnand %p710_p0, %p266_p2 }
   0x6   : > { %p330_p4 = scmp.lt.s32.totalorder (!%p267_p3), %s786_s18, 1  ;;  %v489_v0 = vld [vmem:[%s896_s3] sm:$0xff] (!%p267_p3)  ;;  %v490_v1 = vld [vmem:[%s896_s3 + $0x8] sm:$0xff] (!%p267_p3)  ;;  %vm406_vm0 = vcmask (!%p267_p3), 64512   ;;  %v491_v12 = vld [vmem:[%s896_s3 + $0x10] sm:$0xff] (!%p267_p3)  ;;  %s796_s13 = smov (!%p267_p3), 8  }
   0x7   : > { %270 = sbr.rel (%p267_p3) target bundleno = 366 (0x16e), region = 40  ;;  %v742_v2 = vpack.c.bf16 (!%p267_p3), %v490_v1, %v489_v0  ;;  %s797_s14 = smov (!%p267_p3), 16   ;;  %vm486_vm5 = vcmask (!%p267_p3), 130048   ;;  %vm499_vm6 = vcmask (!%p267_p3), 195584   ;;  %v719_v32 = vld [vmem:[%s897_s4] ss:$0 sm:$0xff] (!%p267_p3) }
   0x9   : > { %743 = vmatprep.subr.bf16.mxu0 (!%p267_p3), %v742_v2 }
   0xa   : > { %745 = vmatpush3.bf16.msra.mxu0 (!%p267_p3), %v742_v2 }
   0xb   : > { %737 = vmatprep.subr.mxu0 (!%p267_p3), %v491_v12 }
   0xe   : > { %s904_s18 = smov (!%p330_p4, %s786_s18), 1  ;;  %738 = vmatpush3.msra.mxu0 %v491_v12 }
   0xf   : > { %s852_s26 = sshll.u32 %s904_s18, 4 }
  0x10   : > { %s350_s29 = scalar_lea.vmem %s894_s1, %s852_s26  ;;  %s363_s7 = scalar_lea.vmem %s895_s2, %s852_s26 }
  0x11   : > { %v409_v3 = vld [vmem:[%s350_s29] sm:$0xff]  ;;  %v410_v4 = vld [vmem:[%s350_s29 + $0x8] sm:$0xff]  ;;  %s337_s10 = scalar_lea.vmem %s893_s0, %s852_s26  ;;  %s376_s22 = scalar_lea.vmem %s898_s5, %s852_s26 }
  0x12   : > { %v435_v5 = vld [vmem:[%s363_s7] sm:$0xff]  ;;  %vm427_vm1 = vcmp.ge.f32.partialorder %v409_v3, 0.0  ;;  %v429_v6 = vmul.f32 0.1, %v409_v3  ;;  %vm428_vm2 = vcmp.ge.f32.partialorder %v410_v4, 0.0  ;;  %v379_v9 = vld [vmem:[%s337_s10 + $0x8] sm:$0xff] }
  0x13   : > { %v430_v7 = vmul.f32 0.1, %v410_v4  ;;  %v452_v8 = vmul.f32 0.0, %v435_v5  ;;  %v399_v14 = vmul.f32 0.0, %v379_v9 }
  0x14   : > { %v431_v10 = vsel %vm427_vm1, %v409_v3, %v429_v6 }
  0x15   : > { %v432_v11 = vsel %vm428_vm2, %v410_v4, %v430_v7  ;;  %433 = vst.msk [vmem:[#allocation2 + $0x10] sm:$0xff] %vm406_vm0, %v431_v10  ;;  %vm454_vm3 = vcmp.ge.f32.partialorder %v452_v8, 0.0  ;;  %v456_v13 = vmul.f32 0.1, %v452_v8  ;;  %vm401_vm4 = vcmp.ge.f32.partialorder %v399_v14, 0.0 }
  0x16   : > { %434 = vst.msk [vmem:[#allocation2 + $0x18] sm:$0xff] %vm406_vm0, %v432_v11  ;;  %v403_v16 = vmul.f32 0.1, %v399_v14 }
  0x17   : > { %v458_v15 = vsel %vm454_vm3, %v452_v8, %v456_v13 }
  0x18   : > { %460 = vst.msk [vmem:[#allocation2 + $0x20] sm:$0xff] %vm406_vm0, %v458_v15  ;;  %v405_v17 = vsel %vm401_vm4, %v399_v14, %v403_v16 }
  0x19   : > { %408 = vst.msk [vmem:[#allocation2 + $0x8] sm:$0xff] %vm406_vm0, %v405_v17 }
  0x1c   : > { %v464_v18 = vld [vmem:[#allocation2 + $0x10] sm:$0xff] }
  0x1d   : > { %v466_v19 = vld [vmem:[#allocation2 + $0x13] sm:$0xff]  ;;  %470 = vrot.lane.b32.xlu0 %v464_v18, %s796_s13 }
  0x1e   : > { %478 = vrot.lane.b32.xlu1 %v466_v19, %s797_s14  ;;  %v465_v20 = vld [vmem:[#allocation2 + $0x18] sm:$0xff] }
  0x1f   : > { %v467_v21 = vld [vmem:[#allocation2 + $0x1b] sm:$0xff] }
  0x20   : > { %v462_v22 = vld [vmem:[#allocation2 + $0xd] sm:$0xff]  ;;  %v463_v27 = vld [vmem:[#allocation2 + $0x15] sm:$0xff] }
  0x21   : > { %472 = vrot.lane.b32.xlu0 %v465_v20, %s796_s13 }
  0x22   : > { %480 = vrot.lane.b32.xlu1 %v467_v21, %s797_s14 }
  0x8f   : > { %v471_v23 = vpop.permute.xlu0 %470 }
  0x90   : > { %v479_v24 = vpop.permute.xlu1 %478  ;;  %v484_v25 = vsel %vm406_vm0, %v462_v22, %v471_v23 }
  0x91   : > { %v487_v26 = vsel %vm486_vm5, %v484_v25, %v479_v24 }
  0x92   : > { %739 = vmatprep.mubr.msk.f32.mxu0 %vm499_vm6, %v487_v26 }
  0x93   : > { %v473_v28 = vpop.permute.xlu0 %472 }
  0x94   : > { %v481_v29 = vpop.permute.xlu1 %480  ;;  %v485_v30 = vsel %vm406_vm0, %v463_v27, %v473_v28 }
  0x95   : > { %v488_v31 = vsel %vm486_vm5, %v485_v30, %v481_v29 }
  0x96   : > { %740 = vmatmul.mubr.msk.f32.vlgmr.msra.gmra.mrb[0].mxu0 %vm499_vm6, %v488_v31 }
 0x169   : > { %v741_v33 = vpop.f32.mrb[0].mxu0 }
 0x16a   : > { %v578_v34 = vadd.f32 %v741_v33, %v719_v32  ;;  %v572_v35 = vpop.f32.mrb[1].mxu0 }
 0x16b   : > { %v573_v36 = vadd.f32 %v719_v32, %v572_v35 }
 0x16c   : > { %582 = vst.msk [vmem:[%s376_s22 + $0x8] sm:$0xff] %vm406_vm0, %v578_v34 }
 0x16d   : > { %581 = vst.msk [vmem:[%s376_s22] sm:$0xff] %vm406_vm0, %v573_v36 }
 0x16e PF: > { %s15_s20 = sadd.s32 1, %s794_s20   ;;  %s899_s18 = smov %s790_s19 }
 0x16f   : > { %p12_p5 = scmp.ge.s32.totalorder %s15_s20, 4   ;;  %s900_s19 = smov %s902_s21 }
 0x171   :  { %14 = sbr.rel (!%p12_p5) target bundleno = 2 (0x2), region = 76 }

// kernel: synthesizer_forward.113
= control target key start
LH: loop header
LB: loop body
LE: loop exit
PB: predicated region body
PF: predicated region fallthrough
CT: control target
= control target key end

     0   :  { %9 = vsyncpa [#allocation4], 0  ;;  %s1087_s0 = inlined_call_operand.vmem [shape: f32[2,16,8], index: 0, kind: input, shape index: {}, may-alias: {0,1,2}]   ;;  %s1088_s1 = inlined_call_operand.vmem [shape: f32[2,16,8], index: 1, kind: input, shape index: {}, may-alias: {0,1,2}]   ;;  %s1089_s2 = inlined_call_operand.vmem [shape: f32[2,16,8], index: 2, kind: input, shape index: {}, may-alias: {0,1,2}]   ;;  %s1090_s3 = inlined_call_operand.vmem [shape: f32[1,56], index: 3, kind: input, shape index: {}]   ;;  %s1091_s4 = inlined_call_operand.hbm [shape: f32[2,1,16], index: 4, kind: output, shape index: {}]  }
   0x1   :  { %11 = vsyncpa [#allocation4 + $0x1], 0  ;;  %s951_s15 = smov 0   ;;  %s953_s16 = smov 0  }
   0x2   :  { %s955_s17 = smov 0   ;;  %s957_s18 = smov 0  }
   0x3   :  { %s959_s19 = smov 0   ;;  %s961_s20 = smov 0  }
   0x4 LB: > { %s706_s21 = sadd.s32 4294967295, %s914_s20   ;;  %s707_s22 = sadd.s32 4294967294, %s914_s20   ;;  %s914_s20 = sphi %s961_s20, %s17_s20   ;;  %s910_s19 = sphi %s959_s19, %s1098_s19   ;;  %s906_s18 = sphi %s957_s18, %s1097_s18   ;;  %s902_s17 = sphi %s955_s17, %s1096_s17   ;;  %s898_s16 = sphi %s953_s16, %s1095_s16   ;;  %s894_s15 = sphi %s951_s15, %s1094_s15  }
   0x5   : > { %s29_s23 = sadd.s32 1, %s910_s19  ;;  %s155_s24 = sadd.s32 1, %s902_s17 }
   0x6   : > { %p31_p0 = scmp.ge.s32.totalorder %s29_s23, 2  ;;  %p165_p1 = scmp.ne.s32.totalorder %s902_s17, %s898_s16 }
   0x7   : > { %p166_p2 = scmp.eq.s32.totalorder %s706_s21, 1  ;;  %p171_p3 = scmp.ne.s32.totalorder %s898_s16, %s894_s15 }
   0x8   : > { %s1100_s23 = smov (%p31_p0, %s29_s23), 0  ;;  %p172_p5 = scmp.eq.s32.totalorder %s707_s22, 1 }
   0x9   : > { %p991_p4 = por %p166_p2, %p165_p1  ;;  %s150_s26 = ssub.s32 %s910_s19, %s1100_s23 }
   0xa   : > { %p710_p6 = scmp.ge.s32.totalorder %s914_s20, 1  ;;  %p153_p7 = scmp.eq.s32.totalorder %s150_s26, 0 }
   0xb   : > { %p998_p8 = por %p172_p5, %p171_p3  ;;  %p244_p9 = scmp.lt.s32.totalorder %s914_s20, 3 }
   0xc   : > { %s1004_s28 = scalar_select %p153_p7, %s902_s17, %s155_s24  }
   0xd   : > { %p245_p10 = pnand %p710_p6, %p244_p9 }
   0xe   : > { %p301_p11 = scmp.lt.s32.totalorder (!%p245_p10), %s906_s18, 1  ;;  %vm367_vm0 = vcmask (!%p245_p10), 64512   ;;  %v916_v23 = vmov (!%p245_p10), 0.0|0.0   ;;  %s917_s14 = smov (!%p245_p10), 24   ;;  %vm920_vm5 = vmmov (!%p245_p10), 0   ;;  %v921_v32 = vmov (!%p245_p10), 0.0  }
   0xf   : > { %248 = sbr.rel (%p245_p10) target bundleno = 416 (0x1a0), region = 36  ;;  %736 = vmatprep.subr.bf16.mxu0 (!%p245_p10), %v916_v23  ;;  %s918_s21 = smov (!%p245_p10), 8   ;;  %733 = vmatprep.mubr.msk.f32.mxu0 (!%p245_p10), %vm920_vm5, %v921_v32  ;;  %vm487_vm6 = vcmask (!%p245_p10), 130048   ;;  %vm490_vm7 = vcmask (!%p245_p10), 195584   ;;  %vm493_vm8 = vcmask (!%p245_p10), 261120   ;;  %vm496_vm9 = vcmask (!%p245_p10), 326656  }
  0x10   : > { %s919_s22 = smov (!%p245_p10), 32   ;;  %s922_s24 = smov (!%p245_p10), 16   ;;  %vm499_vm10 = vcmask (!%p245_p10), 392192   ;;  %vm503_vm11 = vcmask (!%p245_p10), 457728   ;;  %vm584_vm13 = vcmask (!%p245_p10), 122880  }
  0x11   : > { %s923_s26 = smov (!%p245_p10), 48   ;;  %vm738_vm12 = vmpackc.low (!%p245_p10), %vm503_vm11, %vm503_vm11  ;;  %s295_s6 = sand.u32 (!%p245_p10), 1, %s898_s16  }
  0x12   : > { %s296_s8 = scalar_lea.vmem (!%p245_p10), [#allocation3], %s295_s6 }
  0x13   : > { %s600_s9 = sshll.u32 (!%p245_p10), %s296_s8, 4  ;;  %s1042_s9 = int_to_ptr.vmem [resolvable:$true] %s600_s9 }
  0x16   : > { %s302_s29 = scalar_select %p301_p11, %s906_s18, 1 }
  0x18   : > { %s723_s30 = sshll.u32 %s302_s29, 4  ;;  %s924_s29 = smov 40  }
  0x19   : > { %s308_s7 = scalar_lea.vmem %s1087_s0, %s723_s30  ;;  %s321_s10 = scalar_lea.vmem %s1088_s1, %s723_s30 }
  0x1a   : > { %s334_s13 = scalar_lea.vmem %s1089_s2, %s723_s30  ;;  %v340_v0 = vld [vmem:[%s308_s7 + $0x8] sm:$0xff]  ;;  %v370_v1 = vld [vmem:[%s321_s10] sm:$0xff]  ;;  %s720_s7 = sshll.u32 %s906_s18, 4 }
  0x1b   : > { %v371_v2 = vld [vmem:[%s321_s10 + $0x8] sm:$0xff]  ;;  %v360_v3 = vmul.f32 0.0, %v340_v0  ;;  %vm388_vm1 = vcmp.ge.f32.partialorder %v370_v1, 0.0  ;;  %v390_v4 = vmul.f32 0.01, %v370_v1  ;;  %v396_v6 = vld [vmem:[%s334_s13] sm:$0xff]  ;;  %s1040_s12 = scalar_lea.hbm %s1091_s4, %s720_s7 }
  0x1c   : > { %vm389_vm2 = vcmp.ge.f32.partialorder %v371_v2, 0.0  ;;  %v391_v5 = vmul.f32 0.01, %v371_v2  ;;  %v413_v10 = vmul.f32 0.0, %v396_v6  ;;  %s587_s13 = scalar_lea.sflag [#allocation4], %s295_s6  ;;  %s925_s18 = smov [#allocation3]  }
  0x1d   : > { %vm362_vm3 = vcmp.ge.f32.partialorder %v360_v3, 0.0  ;;  %v364_v7 = vmul.f32 0.01, %v360_v3  ;;  %v392_v8 = vsel %vm388_vm1, %v370_v1, %v390_v4 }
  0x1e   : > { %v393_v9 = vsel %vm389_vm2, %v371_v2, %v391_v5  ;;  %394 = vst.msk [vmem:[#allocation2 + $0x10] sm:$0xff] %vm367_vm0, %v392_v8  ;;  %vm415_vm4 = vcmp.ge.f32.partialorder %v413_v10, 0.0  ;;  %v417_v12 = vmul.f32 0.01, %v413_v10 }
  0x1f   : > { %v366_v11 = vsel %vm362_vm3, %v360_v3, %v364_v7  ;;  %395 = vst.msk [vmem:[#allocation2 + $0x18] sm:$0xff] %vm367_vm0, %v393_v9  ;;  %v502_v3 = vld [vmem:[%s1090_s3] sm:$0x1] }
  0x20   : > { %369 = vst.msk [vmem:[#allocation2 + $0x8] sm:$0xff] %vm367_vm0, %v366_v11  ;;  %v419_v13 = vsel %vm415_vm4, %v413_v10, %v417_v12 }
  0x21   : > { %421 = vst.msk [vmem:[#allocation2 + $0x20] sm:$0xff] %vm367_vm0, %v419_v13 }
  0x25   : > { %v429_v14 = vld [vmem:[#allocation2 + $0x10] sm:$0xff] }
  0x26   : > { %v426_v15 = vld [vmem:[#allocation2 + $0x16] sm:$0xff] }
  0x27   : > { %v430_v16 = vld [vmem:[#allocation2 + $0x18] sm:$0xff]  ;;  %v425_v17 = vld [vmem:[#allocation2 + $0xe] sm:$0xff] }
  0x28   : > { %v804_v18 = vpack.i.bf16 %v430_v16, %v429_v14  ;;  %v427_v19 = vld [vmem:[#allocation2 + $0xf] sm:$0xff]  ;;  %v428_v20 = vld [vmem:[#allocation2 + $0x17] sm:$0xff]  ;;  %v809_v21 = vpack.i.bf16 %v426_v15, %v425_v17 }
  0x29   : > { %v431_v22 = vld [vmem:[#allocation2 + $0x11] sm:$0xff]  ;;  %v814_v24 = vpack.i.bf16 %v428_v20, %v427_v19  ;;  %v432_v25 = vld [vmem:[#allocation2 + $0x19] sm:$0xff] }
  0x2a   : > { %805 = vrot.lane.b32.xlu1 %v804_v18, %s917_s14  ;;  %810 = vrot.lane.b32.xlu0 %v809_v21, %s918_s21  ;;  %v435_v26 = vld [vmem:[#allocation2 + $0x13] sm:$0xff]  ;;  %v436_v27 = vld [vmem:[#allocation2 + $0x1b] sm:$0xff]  ;;  %v819_v28 = vpack.i.bf16 %v432_v25, %v431_v22  ;;  %s836_s14 = scalar_lea.vmem %s1042_s9, 16  ;;  %s840_s21 = sshll.u32 %s925_s18, 4  ;;  %s841_s21 = int_to_ptr.vmem [resolvable:$false] %s840_s21 }
  0x2b   : > { %v433_v29 = vld [vmem:[#allocation2 + $0x12] sm:$0xff]  ;;  %v434_v30 = vld [vmem:[#allocation2 + $0x1a] sm:$0xff]  ;;  %v829_v31 = vpack.i.bf16 %v436_v27, %v435_v26  ;;  %p837_p12 = scmp.ne.s32.totalorder %s1042_s9, %s836_s14  ;;  %p843_p1 = scmp.lt.s32.totalorder %s1042_s9, %s841_s21 }
  0x2c   : > { %v824_v33 = vpack.i.bf16 %v434_v30, %v433_v29  ;;  %v424_v38 = vld [vmem:[#allocation2 + $0x15] sm:$0xff]  ;;  %v423_v39 = vld [vmem:[#allocation2 + $0xd] sm:$0xff] }
  0x2d   : > { %p838_p13 = pnand %p837_p12, %p991_p4 }
  0x2e   : > { %820 = vrot.lane.b32.xlu1 %v819_v28, %s919_s22  ;;  %815 = vrot.lane.b32.xlu0 %v814_v24, %s922_s24  ;;  %s842_s22 = scalar_lea.vmem %s841_s21, 32 }
  0x2f   : > { %p839_p0 = pneg %p838_p13  ;;  %p844_p2 = scmp.lt.s32.totalorder %s842_s22, %s836_s14 }
  0x31   : > { %p845_p3 = por %p844_p2, %p843_p1 }
  0x32   : > { %830 = vrot.lane.b32.xlu1 %v829_v31, %s923_s26  ;;  %825 = vrot.lane.b32.xlu0 %v824_v33, %s924_s29 }
  0x33   : > { %p846_p5 = pnand %p845_p3, %p839_p0 }
  0x9c   : > { %v806_v34 = vpop.permute.xlu1 %805  ;;  %v811_v35 = vpop.permute.xlu0 %810 }
  0x9d   : > { %v813_v36 = vunpack.i.h.bf16 %v811_v35  ;;  %v812_v37 = vunpack.i.l.bf16 %v811_v35  ;;  %v808_v48 = vunpack.i.h.bf16 %v806_v34  ;;  %v807_v49 = vunpack.i.l.bf16 %v806_v34 }
  0x9f   : > { %v486_v46 = vsel %vm367_vm0, %v424_v38, %v813_v36  ;;  %v485_v47 = vsel %vm367_vm0, %v423_v39, %v812_v37 }
  0xa0   : > { %v821_v40 = vpop.permute.xlu1 %820  ;;  %v816_v41 = vpop.permute.xlu0 %815 }
  0xa1   : > { %v818_v42 = vunpack.i.h.bf16 %v816_v41  ;;  %v817_v43 = vunpack.i.l.bf16 %v816_v41  ;;  %v823_v44 = vunpack.i.h.bf16 %v821_v40  ;;  %v822_v45 = vunpack.i.l.bf16 %v821_v40 }
  0xa3   : > { %v488_v50 = vsel %vm487_vm6, %v485_v47, %v817_v43  ;;  %v489_v51 = vsel %vm487_vm6, %v486_v46, %v818_v42 }
  0xa4   : > { %v831_v52 = vpop.permute.xlu1 %830  ;;  %v491_v53 = vsel %vm490_vm7, %v488_v50, %v807_v49  ;;  %v492_v54 = vsel %vm490_vm7, %v489_v51, %v808_v48  ;;  %v826_v55 = vpop.permute.xlu0 %825 }
  0xa5   : > { %v833_v56 = vunpack.i.h.bf16 %v831_v52  ;;  %v832_v57 = vunpack.i.l.bf16 %v831_v52  ;;  %v494_v58 = vsel %vm493_vm8, %v491_v53, %v822_v45  ;;  %v495_v59 = vsel %vm493_vm8, %v492_v54, %v823_v44 }
  0xa6   : > { %v828_v60 = vunpack.i.h.bf16 %v826_v55  ;;  %v827_v61 = vunpack.i.l.bf16 %v826_v55 }
  0xa8   : > { %v497_v62 = vsel %vm496_vm9, %v494_v58, %v827_v61  ;;  %v498_v63 = vsel %vm496_vm9, %v495_v59, %v828_v60 }
  0xa9   : > { %v500_v0 = vsel %vm499_vm10, %v497_v62, %v832_v57  ;;  %v501_v1 = vsel %vm499_vm10, %v498_v63, %v833_v56 }
  0xaa   : > { %v737_v2 = vpack.c.bf16 %v501_v1, %v500_v0 }
  0xac   : > { %739 = vmatpush3.bf16.xpose.msk.msra.mxu0 %vm738_vm12, %v737_v2 }
  0xb3   : > { %734 = vmatmul.mubr.msk.f32.vlgmr.msra.gmra.mrb[0].mxu0 %vm503_vm11, %v502_v3 }
 0x186   : > { %v579_v4 = vpop.f32.mrb[0].mxu0 }
 0x187   : > { %834 = vtanh.f32 %v579_v4  ;;  %v735_v5 = vpop.f32.mrb[1].mxu0 }
 0x191   : > { %v835_v6 = vpop.eup %834 }
 0x192   : > { %585 = vst.msk [vmem:[%s296_s8] sm:$0x1] %vm584_vm13, %v835_v6 }
 0x193   : > { %849 = shalt.err (!%p846_p5)
}
 0x194   : > { %s850_s24 = scalar_lea.hbm %s1040_s12, 16  ;;  %s854_s30 = scalar_lea.hbm %s1091_s4, 32 }
 0x195   : > { %p851_p6 = scmp.ne.s32.totalorder %s1040_s12, %s850_s24  ;;  %p855_p10 = scmp.lt.u32.totalorder %s1040_s12, %s1091_s4 }
 0x196   : > { %p856_p11 = scmp.lt.u32.totalorder %s854_s30, %s850_s24  ;;  %p858_p13 = scmp.lt.u32.totalorder %s850_s24, %s1040_s12 }
 0x197   : > { %p852_p7 = pnand %p851_p6, %p991_p4 }
 0x198   : > { %p857_p12 = por %p856_p11, %p855_p10 }
 0x199   : > { %p853_p9 = pneg %p852_p7 }
 0x19a   : > { %p859_p0 = por %p858_p13, %p857_p12 }
 0x19c   : > { %p860_p1 = pnand %p859_p0, %p853_p9 }
 0x19e   : > { %863 = shalt.err (!%p860_p1)
}
 0x19f   : > { %740 = dma.vmem_to_hbm [thread:$0]  (%p991_p4), %s1042_s9, 16, %s1040_s12, %s587_s13  }
 0x1a0 PF: > { %p746_p2 = scmp.ge.s32.totalorder %s914_s20, 2  ;;  %s612_s7 = sand.u32 1, %s894_s15  }
 0x1a1   : > { %s613_s8 = scalar_lea.sflag [#allocation4], %s612_s7 }
 0x1a2   : > { %p743_p3 = pnand %p746_p2, %p998_p8 }
 0x1a4   : > { %889 = dma.done.wait (!%p743_p3), %s613_s8, 16  }
 0x1a5   : > { %891 = vsyncadd (!%p743_p3), %s613_s8, 4294967280  ;;  %s17_s20 = sadd.s32 1, %s914_s20   ;;  %s1094_s15 = smov %s898_s16 }
 0x1a6   : > { %p14_p5 = scmp.ge.s32.totalorder %s17_s20, 4   ;;  %s1095_s16 = smov %s902_s17 }
 0x1a7   : > { %s1096_s17 = smov %s1004_s28  ;;  %s1097_s18 = smov %s910_s19 }
 0x1a8   : > { %s1098_s19 = smov %s1100_s23  ;;  %16 = sbr.rel (!%p14_p5) target bundleno = 4 (0x4), region = 77 }
 0x1af   :  { %617 = vsyncpa [#allocation4], 1 }
 0x1b0   :  { %619 = vsyncpa [#allocation4 + $0x1], 1 }

// kernel: synthesizer_forward.135
= control target key start
LH: loop header
LB: loop body
LE: loop exit
PB: predicated region body
PF: predicated region fallthrough
CT: control target
= control target key end

     0   :  { %s466_s12 = smov 0   ;;  %s468_s13 = smov 0   ;;  %s514_s0 = inlined_call_operand.vmem [shape: f32[2,8,32], index: 0, kind: input, shape index: {}]   ;;  %s515_s1 = inlined_call_operand.vmem [shape: f32[32,96], index: 1, kind: input, shape index: {}]   ;;  %s516_s2 = inlined_call_operand.vmem [shape: f32[1,96], index: 2, kind: input, shape index: {}]   ;;  %s517_s3 = inlined_call_operand.vmem [shape: f32[2,8,96], index: 3, kind: output, shape index: {}]  }
   0x1   :  { %s470_s14 = smov 0  }
   0x2 LB: > { %s25_s15 = sadd.s32 1, %s437_s13  ;;  %p363_p0 = scmp.ge.s32.totalorder %s441_s14, 1  ;;  %s441_s14 = sphi %s470_s14, %s13_s14   ;;  %s437_s13 = sphi %s468_s13, %s519_s13   ;;  %s433_s12 = sphi %s466_s12, %s518_s12  }
   0x3   : > { %p27_p1 = scmp.ge.s32.totalorder %s25_s15, 2  ;;  %p155_p2 = scmp.lt.s32.totalorder %s441_s14, 3 }
   0x5   : > { %s521_s15 = smov (%p27_p1, %s25_s15), 0  ;;  %p156_p3 = pnand %p363_p0, %p155_p2 }
   0x6   : > { %v198_v0 = vld [vmem:[%s515_s1] sm:$0xff] (!%p156_p3)  ;;  %v199_v1 = vld [vmem:[%s515_s1 + $0x8] sm:$0xff] (!%p156_p3)  ;;  %v200_v2 = vld [vmem:[%s515_s1 + $0x10] sm:$0xff] (!%p156_p3)  ;;  %v443_v3 = vmov (!%p156_p3), 0.0|0.0   ;;  %vm444_vm0 = vmmov (!%p156_p3), 0   ;;  %v445_v6 = vmov (!%p156_p3), 0.0  }
   0x7   : > { %159 = sbr.rel (%p156_p3) target bundleno = 233 (0xe9), region = 32  ;;  %386 = vmatprep.subr.bf16.mxu0 (!%p156_p3), %v443_v3  ;;  %v387_v4 = vpack.c.bf16 (!%p156_p3), %v199_v1, %v198_v0  ;;  %v201_v5 = vld [vmem:[%s515_s1 + $0x18] sm:$0xff] (!%p156_p3)  ;;  %383 = vmatprep.mubr.msk.f32.mxu0 (!%p156_p3), %vm444_vm0, %v445_v6  ;;  %p183_p4 = scmp.lt.s32.totalorder (!%p156_p3), %s433_s12, 1  ;;  %vm209_vm1 = vcmask (!%p156_p3), 261120   ;;  %v366_v9 = vld [vmem:[%s516_s2] ss:$0 sm:$0xff] (!%p156_p3) }
   0x8   : > { %v390_v7 = vpack.c.bf16 (!%p156_p3), %v201_v5, %v200_v2  ;;  %vm283_vm2 = vcmask (!%p156_p3), 785408  }
   0x9   : > { %388 = vmatpush3.bf16.msra.mxu0 (!%p156_p3), %v387_v4 }
   0xa   : > { %389 = vmatprep.subr.bf16.mxu0 (!%p156_p3), %v443_v3 }
   0xd   : > { %391 = vmatpush3.bf16.msra.mxu0 (!%p156_p3), %v390_v7 }
   0xe   : > { %s523_s12 = smov (!%p183_p4, %s433_s12), 1 }
   0xf   : > { %s364_s24 = sshll.u32 %s523_s12, 3 }
  0x10   : > { %s189_s27 = scalar_lea.vmem %s514_s0, %s364_s24  ;;  %s196_s5 = scalar_lea.vmem %s517_s3, %s364_s24 }
  0x11   : > { %v197_v8 = vld [vmem:[%s189_s27] sm:$0xff] }
  0x12   : > { %384 = vmatmul.mubr.msk.f32.vlgmr.msra.gmra.mrb[0].mxu0 %vm209_vm1, %v197_v8 }
  0xe5   : > { %v279_v10 = vpop.f32.mrb[0].mxu0 }
  0xe6   : > { %v280_v11 = vadd.f32 %v366_v9, %v279_v10  ;;  %v385_v12 = vpop.f32.mrb[1].mxu0 }
  0xe8   : > { %284 = vst.msk [vmem:[%s196_s5] sm:$0xff] %vm283_vm2, %v280_v11 }
  0xe9 PF: > { %s13_s14 = sadd.s32 1, %s441_s14   ;;  %s518_s12 = smov %s437_s13 }
  0xea   : > { %p10_p5 = scmp.ge.s32.totalorder %s13_s14, 4   ;;  %s519_s13 = smov %s521_s15 }
  0xec   :  { %12 = sbr.rel (!%p10_p5) target bundleno = 2 (0x2), region = 62 }

// kernel: synthesizer_forward.134
= control target key start
LH: loop header
LB: loop body
LE: loop exit
PB: predicated region body
PF: predicated region fallthrough
CT: control target
= control target key end

     0   :  { %s973_s15 = smov 0   ;;  %s975_s16 = smov 0   ;;  %s1322_s0 = inlined_call_operand.vmem [shape: f32[2,8,768], index: 0, kind: input, shape index: {}]   ;;  %s1323_s1 = inlined_call_operand.vmem [shape: f32[768,32], index: 1, kind: input, shape index: {}]   ;;  %s1324_s2 = inlined_call_operand.vmem [shape: f32[1,32], index: 2, kind: input, shape index: {}]   ;;  %s1325_s3 = inlined_call_operand.vmem [shape: f32[2,8,1], index: 3, kind: input, shape index: {}]   ;;  %s1326_s4 = inlined_call_operand.vmem [shape: f32[2,8,32], index: 4, kind: output, shape index: {}]  }
   0x1   :  { %s977_s17 = smov 0  }
   0x2 LB: > { %s26_s18 = sadd.s32 1, %s941_s16  ;;  %p688_p0 = scmp.ge.s32.totalorder %s945_s17, 1  ;;  %s945_s17 = sphi %s977_s17, %s14_s17   ;;  %s941_s16 = sphi %s975_s16, %s1328_s16   ;;  %s937_s15 = sphi %s973_s15, %s1327_s15  }
   0x3   : > { %p28_p1 = scmp.ge.s32.totalorder %s26_s18, 2  ;;  %p196_p2 = scmp.lt.s32.totalorder %s945_s17, 3 }
   0x5   : > { %s1330_s18 = smov (%p28_p1, %s26_s18), 0  ;;  %p197_p3 = pnand %p688_p0, %p196_p2 }
   0x6   : > { %v280_v0 = vld [vmem:[%s1323_s1 + $0x80] sm:$0xff] (!%p197_p3)  ;;  %v281_v1 = vld [vmem:[%s1323_s1 + $0x88] sm:$0xff] (!%p197_p3)  ;;  %v947_v7 = vmov (!%p197_p3), 0   ;;  %v282_v12 = vld [vmem:[%s1323_s1 + $0x90] sm:$0xff] (!%p197_p3)  ;;  %p235_p4 = scmp.lt.s32.totalorder (!%p197_p3), %s937_s15, 1  ;;  %vm587_vm1 = vcmask (!%p197_p3), 261120  }
   0x7   : > { %200 = sbr.rel (%p197_p3) target bundleno = 296 (0x128), region = 36  ;;  %v264_v2 = vld [vmem:[%s1323_s1] sm:$0xff] (!%p197_p3)  ;;  %v800_v3 = vpack.c.bf16 (!%p197_p3), %v281_v1, %v280_v0  ;;  %v265_v4 = vld [vmem:[%s1323_s1 + $0x8] sm:$0xff] (!%p197_p3)  ;;  %922 = vset.pattern.permute.xlu0 (!%p197_p3), %v947_v7  ;;  %v283_v14 = vld [vmem:[%s1323_s1 + $0x98] sm:$0xff] (!%p197_p3) }
   0x8   : > { %v312_v5 = vld [vmem:[%s1323_s1 + $0x180] sm:$0xff] (!%p197_p3)  ;;  %v313_v6 = vld [vmem:[%s1323_s1 + $0x188] sm:$0xff] (!%p197_p3)  ;;  %v802_v8 = vpack.c.bf16 (!%p197_p3), %v265_v4, %v264_v2  ;;  %v266_v15 = vld [vmem:[%s1323_s1 + $0x10] sm:$0xff] (!%p197_p3)  ;;  %v804_v17 = vpack.c.bf16 (!%p197_p3), %v283_v14, %v282_v12 }
   0x9   : > { %v832_v9 = vpack.c.bf16 (!%p197_p3), %v313_v6, %v312_v5  ;;  %v296_v10 = vld [vmem:[%s1323_s1 + $0x100] sm:$0xff] (!%p197_p3)  ;;  %v297_v11 = vld [vmem:[%s1323_s1 + $0x108] sm:$0xff] (!%p197_p3)  ;;  %801 = vmatprep.subr.bf16.mxu0 (!%p197_p3), %v800_v3  ;;  %v267_v16 = vld [vmem:[%s1323_s1 + $0x18] sm:$0xff] (!%p197_p3) }
   0xa   : > { %v834_v13 = vpack.c.bf16 (!%p197_p3), %v297_v11, %v296_v10  ;;  %803 = vmatpush3.bf16.msra.mxu0 (!%p197_p3), %v802_v8  ;;  %v806_v18 = vpack.c.bf16 (!%p197_p3), %v267_v16, %v266_v15  ;;  %v314_v19 = vld [vmem:[%s1323_s1 + $0x190] sm:$0xff] (!%p197_p3)  ;;  %v315_v20 = vld [vmem:[%s1323_s1 + $0x198] sm:$0xff] (!%p197_p3)  ;;  %v284_v24 = vld [vmem:[%s1323_s1 + $0xa0] sm:$0xff] (!%p197_p3) }
   0xb   : > { %833 = vmatprep.subr.bf16.mxu1 (!%p197_p3), %v832_v9  ;;  %v298_v21 = vld [vmem:[%s1323_s1 + $0x110] sm:$0xff] (!%p197_p3)  ;;  %v836_v22 = vpack.c.bf16 (!%p197_p3), %v315_v20, %v314_v19  ;;  %v299_v23 = vld [vmem:[%s1323_s1 + $0x118] sm:$0xff] (!%p197_p3)  ;;  %v285_v25 = vld [vmem:[%s1323_s1 + $0xa8] sm:$0xff] (!%p197_p3)  ;;  %805 = vmatprep.subr.bf16.mxu0 (!%p197_p3), %v804_v17 }
   0xc   : > { %835 = vmatpush3.bf16.msra.mxu1 (!%p197_p3), %v834_v13  ;;  %v838_v26 = vpack.c.bf16 (!%p197_p3), %v299_v23, %v298_v21  ;;  %v808_v27 = vpack.c.bf16 (!%p197_p3), %v285_v25, %v284_v24  ;;  %v268_v28 = vld [vmem:[%s1323_s1 + $0x20] sm:$0xff] (!%p197_p3)  ;;  %v269_v29 = vld [vmem:[%s1323_s1 + $0x28] sm:$0xff] (!%p197_p3)  ;;  %v286_v36 = vld [vmem:[%s1323_s1 + $0xb0] sm:$0xff] (!%p197_p3) }
   0xd   : > { %v316_v30 = vld [vmem:[%s1323_s1 + $0x1a0] sm:$0xff] (!%p197_p3)  ;;  %837 = vmatprep.subr.bf16.mxu1 (!%p197_p3), %v836_v22  ;;  %v317_v31 = vld [vmem:[%s1323_s1 + $0x1a8] sm:$0xff] (!%p197_p3)  ;;  %v810_v34 = vpack.c.bf16 (!%p197_p3), %v269_v29, %v268_v28  ;;  %v287_v37 = vld [vmem:[%s1323_s1 + $0xb8] sm:$0xff] (!%p197_p3) }
   0xe   : > { %v300_v32 = vld [vmem:[%s1323_s1 + $0x120] sm:$0xff]  ;;  %v301_v33 = vld [vmem:[%s1323_s1 + $0x128] sm:$0xff]  ;;  %807 = vmatpush3.bf16.msra.mxu0 %v806_v18  ;;  %v840_v35 = vpack.c.bf16 %v317_v31, %v316_v30  ;;  %v270_v38 = vld [vmem:[%s1323_s1 + $0x30] sm:$0xff]  ;;  %v812_v40 = vpack.c.bf16 %v287_v37, %v286_v36  ;;  %s1332_s15 = smov (!%p235_p4, %s937_s15), 1 }
   0xf   : > { %809 = vmatprep.subr.bf16.mxu0 %v808_v27  ;;  %v842_v39 = vpack.c.bf16 %v301_v33, %v300_v32  ;;  %v271_v41 = vld [vmem:[%s1323_s1 + $0x38] sm:$0xff]  ;;  %v318_v42 = vld [vmem:[%s1323_s1 + $0x1b0] sm:$0xff]  ;;  %v288_v47 = vld [vmem:[%s1323_s1 + $0xc0] sm:$0xff]  ;;  %s896_s5 = smul.u32 48, %s1332_s15  ;;  %s690_s24 = sshll.u32 %s1332_s15, 3 }
  0x10   : > { %839 = vmatpush3.bf16.msra.mxu1 %v838_v26  ;;  %v319_v43 = vld [vmem:[%s1323_s1 + $0x1b8] sm:$0xff]  ;;  %v302_v45 = vld [vmem:[%s1323_s1 + $0x130] sm:$0xff]  ;;  %v289_v48 = vld [vmem:[%s1323_s1 + $0xc8] sm:$0xff]  ;;  %v814_v49 = vpack.c.bf16 %v271_v41, %v270_v38  ;;  %s250_s11 = scalar_lea.vmem %s1325_s3, %s690_s24  ;;  %s257_s7 = scalar_lea.vmem %s1326_s4, %s690_s24 }
  0x11   : > { %841 = vmatprep.subr.bf16.mxu1 %v840_v35  ;;  %v844_v44 = vpack.c.bf16 %v319_v43, %v318_v42  ;;  %v303_v46 = vld [vmem:[%s1323_s1 + $0x138] sm:$0xff]  ;;  %v320_v50 = vld [vmem:[%s1323_s1 + $0x1c0] sm:$0xff]  ;;  %v321_v51 = vld [vmem:[%s1323_s1 + $0x1c8] sm:$0xff]  ;;  %v816_v53 = vpack.c.bf16 %v289_v48, %v288_v47  ;;  %s1144_s28 = scalar_lea.vmem %s1322_s0, %s896_s5 }
  0x12   : > { %811 = vmatpush3.bf16.msra.mxu0 %v810_v34  ;;  %v846_v52 = vpack.c.bf16 %v303_v46, %v302_v45  ;;  %v272_v54 = vld [vmem:[%s1323_s1 + $0x40] sm:$0xff]  ;;  %v273_v55 = vld [vmem:[%s1323_s1 + $0x48] sm:$0xff]  ;;  %v848_v57 = vpack.c.bf16 %v321_v51, %v320_v50  ;;  %v290_v59 = vld [vmem:[%s1323_s1 + $0xd0] sm:$0xff] }
  0x13   : > { %813 = vmatprep.subr.bf16.mxu0 %v812_v40  ;;  %v304_v56 = vld [vmem:[%s1323_s1 + $0x140] sm:$0xff]  ;;  %v305_v58 = vld [vmem:[%s1323_s1 + $0x148] sm:$0xff]  ;;  %v291_v60 = vld [vmem:[%s1323_s1 + $0xd8] sm:$0xff]  ;;  %v818_v63 = vpack.c.bf16 %v273_v55, %v272_v54 }
  0x14   : > { %843 = vmatpush3.bf16.msra.mxu1 %v842_v39  ;;  %v322_v61 = vld [vmem:[%s1323_s1 + $0x1d0] sm:$0xff]  ;;  %v323_v62 = vld [vmem:[%s1323_s1 + $0x1d8] sm:$0xff]  ;;  %v850_v0 = vpack.c.bf16 %v305_v58, %v304_v56  ;;  %v820_v1 = vpack.c.bf16 %v291_v60, %v290_v59  ;;  %v292_v7 = vld [vmem:[%s1323_s1 + $0xe0] sm:$0xff] }
  0x15   : > { %845 = vmatprep.subr.bf16.mxu1 %v844_v44  ;;  %v274_v2 = vld [vmem:[%s1323_s1 + $0x50] sm:$0xff]  ;;  %v275_v3 = vld [vmem:[%s1323_s1 + $0x58] sm:$0xff]  ;;  %v852_v5 = vpack.c.bf16 %v323_v62, %v322_v61  ;;  %v293_v8 = vld [vmem:[%s1323_s1 + $0xe8] sm:$0xff] }
  0x16   : > { %815 = vmatpush3.bf16.msra.mxu0 %v814_v49  ;;  %v306_v4 = vld [vmem:[%s1323_s1 + $0x150] sm:$0xff]  ;;  %v307_v6 = vld [vmem:[%s1323_s1 + $0x158] sm:$0xff]  ;;  %v324_v9 = vld [vmem:[%s1323_s1 + $0x1e0] sm:$0xff]  ;;  %v822_v11 = vpack.c.bf16 %v275_v3, %v274_v2  ;;  %v824_v15 = vpack.c.bf16 %v293_v8, %v292_v7 }
  0x17   : > { %817 = vmatprep.subr.bf16.mxu0 %v816_v53  ;;  %v325_v10 = vld [vmem:[%s1323_s1 + $0x1e8] sm:$0xff]  ;;  %v276_v12 = vld [vmem:[%s1323_s1 + $0x60] sm:$0xff]  ;;  %v854_v14 = vpack.c.bf16 %v307_v6, %v306_v4  ;;  %v294_v20 = vld [vmem:[%s1323_s1 + $0xf0] sm:$0xff] }
  0x18   : > { %847 = vmatpush3.bf16.msra.mxu1 %v846_v52  ;;  %v259_v13 = vld [vmem:[%s1144_s28 + $0x8] sm:$0xff]  ;;  %v308_v17 = vld [vmem:[%s1323_s1 + $0x160] sm:$0xff]  ;;  %v856_v19 = vpack.c.bf16 %v325_v10, %v324_v9  ;;  %v295_v21 = vld [vmem:[%s1323_s1 + $0xf8] sm:$0xff] }
  0x19   : > { %849 = vmatprep.subr.bf16.mxu1 %v848_v57  ;;  %v277_v16 = vld [vmem:[%s1323_s1 + $0x68] sm:$0xff]  ;;  %431 = vmatprep.mubr.f32.mxu0 %v259_v13  ;;  %v261_v22 = vld [vmem:[%s1144_s28 + $0x18] sm:$0xff]  ;;  %v326_v23 = vld [vmem:[%s1323_s1 + $0x1f0] sm:$0xff]  ;;  %v828_v27 = vpack.c.bf16 %v295_v21, %v294_v20 }
  0x1a   : > { %819 = vmatpush3.bf16.msra.mxu0 %v818_v63  ;;  %v309_v18 = vld [vmem:[%s1323_s1 + $0x168] sm:$0xff]  ;;  %v327_v24 = vld [vmem:[%s1323_s1 + $0x1f8] sm:$0xff]  ;;  %501 = vmatprep.mubr.f32.mxu1 %v261_v22  ;;  %v826_v25 = vpack.c.bf16 %v277_v16, %v276_v12  ;;  %v278_v28 = vld [vmem:[%s1323_s1 + $0x70] sm:$0xff] }
  0x1b   : > { %821 = vmatprep.subr.bf16.mxu0 %v820_v1  ;;  %v858_v26 = vpack.c.bf16 %v309_v18, %v308_v17  ;;  %v279_v29 = vld [vmem:[%s1323_s1 + $0x78] sm:$0xff]  ;;  %v310_v30 = vld [vmem:[%s1323_s1 + $0x170] sm:$0xff]  ;;  %v860_v31 = vpack.c.bf16 %v327_v24, %v326_v23  ;;  %v344_v33 = vld [vmem:[%s1323_s1 + $0x280] sm:$0xff] }
  0x1c   : > { %851 = vmatpush3.bf16.msra.mxu1 %v850_v0  ;;  %v311_v32 = vld [vmem:[%s1323_s1 + $0x178] sm:$0xff]  ;;  %v345_v34 = vld [vmem:[%s1323_s1 + $0x288] sm:$0xff]  ;;  %v830_v35 = vpack.c.bf16 %v279_v29, %v278_v28  ;;  %v328_v38 = vld [vmem:[%s1323_s1 + $0x200] sm:$0xff] }
  0x1d   : > { %853 = vmatprep.subr.bf16.mxu1 %v852_v5  ;;  %v862_v36 = vpack.c.bf16 %v311_v32, %v310_v30  ;;  %v864_v37 = vpack.c.bf16 %v345_v34, %v344_v33  ;;  %v329_v39 = vld [vmem:[%s1323_s1 + $0x208] sm:$0xff]  ;;  %v346_v40 = vld [vmem:[%s1323_s1 + $0x290] sm:$0xff]  ;;  %v347_v41 = vld [vmem:[%s1323_s1 + $0x298] sm:$0xff] }
  0x1e   : > { %823 = vmatpush3.bf16.msra.mxu0 %v822_v11  ;;  %v258_v42 = vld [vmem:[%s1144_s28] sm:$0xff]  ;;  %v866_v43 = vpack.c.bf16 %v329_v39, %v328_v38  ;;  %v260_v44 = vld [vmem:[%s1144_s28 + $0x10] sm:$0xff]  ;;  %v868_v45 = vpack.c.bf16 %v347_v41, %v346_v40  ;;  %v331_v47 = vld [vmem:[%s1323_s1 + $0x218] sm:$0xff] }
  0x1f   : > { %825 = vmatprep.subr.bf16.mxu0 %v824_v15  ;;  %v330_v46 = vld [vmem:[%s1323_s1 + $0x210] sm:$0xff]  ;;  %v348_v48 = vld [vmem:[%s1323_s1 + $0x2a0] sm:$0xff]  ;;  %v349_v49 = vld [vmem:[%s1323_s1 + $0x2a8] sm:$0xff] }
  0x20   : > { %855 = vmatpush3.bf16.msra.mxu1 %v854_v14  ;;  %v263_v50 = vld [vmem:[%s1144_s28 + $0x28] sm:$0xff]  ;;  %v580_v51 = vld [vmem:[%s250_s11] sm:$0xff]  ;;  %v870_v52 = vpack.c.bf16 %v331_v47, %v330_v46  ;;  %v872_v53 = vpack.c.bf16 %v349_v49, %v348_v48  ;;  %v350_v56 = vld [vmem:[%s1323_s1 + $0x2b0] sm:$0xff] }
  0x21   : > { %857 = vmatprep.subr.bf16.mxu1 %v856_v19  ;;  %583 = vperm.xlu0 %922, %v580_v51   ;;  %v332_v54 = vld [vmem:[%s1323_s1 + $0x220] sm:$0xff]  ;;  %v333_v55 = vld [vmem:[%s1323_s1 + $0x228] sm:$0xff]  ;;  %v351_v57 = vld [vmem:[%s1323_s1 + $0x2b8] sm:$0xff] }
  0x22   : > { %827 = vmatpush3.bf16.msra.mxu0 %v826_v25  ;;  %v874_v58 = vpack.c.bf16 %v333_v55, %v332_v54  ;;  %v876_v59 = vpack.c.bf16 %v351_v57, %v350_v56  ;;  %v334_v60 = vld [vmem:[%s1323_s1 + $0x230] sm:$0xff]  ;;  %v335_v61 = vld [vmem:[%s1323_s1 + $0x238] sm:$0xff]  ;;  %v352_v62 = vld [vmem:[%s1323_s1 + $0x2c0] sm:$0xff] }
  0x23   : > { %829 = vmatprep.subr.bf16.mxu0 %v828_v27  ;;  %v353_v63 = vld [vmem:[%s1323_s1 + $0x2c8] sm:$0xff]  ;;  %v878_v0 = vpack.c.bf16 %v335_v61, %v334_v60  ;;  %v336_v2 = vld [vmem:[%s1323_s1 + $0x240] sm:$0xff]  ;;  %v354_v4 = vld [vmem:[%s1323_s1 + $0x2d0] sm:$0xff] }
  0x24   : > { %859 = vmatpush3.bf16.msra.mxu1 %v858_v26  ;;  %v880_v1 = vpack.c.bf16 %v353_v63, %v352_v62  ;;  %v337_v3 = vld [vmem:[%s1323_s1 + $0x248] sm:$0xff]  ;;  %v355_v5 = vld [vmem:[%s1323_s1 + $0x2d8] sm:$0xff]  ;;  %v338_v8 = vld [vmem:[%s1323_s1 + $0x250] sm:$0xff] }
  0x25   : > { %861 = vmatprep.subr.bf16.mxu1 %v860_v31  ;;  %v882_v6 = vpack.c.bf16 %v337_v3, %v336_v2  ;;  %v884_v7 = vpack.c.bf16 %v355_v5, %v354_v4  ;;  %v339_v9 = vld [vmem:[%s1323_s1 + $0x258] sm:$0xff]  ;;  %v356_v10 = vld [vmem:[%s1323_s1 + $0x2e0] sm:$0xff]  ;;  %v357_v11 = vld [vmem:[%s1323_s1 + $0x2e8] sm:$0xff] }
  0x26   : > { %831 = vmatpush3.bf16.msra.mxu0 %v830_v35  ;;  %v886_v12 = vpack.c.bf16 %v339_v9, %v338_v8  ;;  %v888_v13 = vpack.c.bf16 %v357_v11, %v356_v10  ;;  %v340_v14 = vld [vmem:[%s1323_s1 + $0x260] sm:$0xff]  ;;  %v341_v15 = vld [vmem:[%s1323_s1 + $0x268] sm:$0xff]  ;;  %v358_v16 = vld [vmem:[%s1323_s1 + $0x2f0] sm:$0xff] }
  0x27   : > { %865 = vmatprep.subr.bf16.mxu0 %v864_v37  ;;  %v359_v17 = vld [vmem:[%s1323_s1 + $0x2f8] sm:$0xff]  ;;  %v890_v18 = vpack.c.bf16 %v341_v15, %v340_v14  ;;  %v342_v20 = vld [vmem:[%s1323_s1 + $0x270] sm:$0xff]  ;;  %v262_v23 = vld [vmem:[%s1144_s28 + $0x20] sm:$0xff] }
  0x28   : > { %863 = vmatpush3.bf16.msra.mxu1 %v862_v36  ;;  %v892_v19 = vpack.c.bf16 %v359_v17, %v358_v16  ;;  %v343_v21 = vld [vmem:[%s1323_s1 + $0x278] sm:$0xff]  ;;  %v692_v25 = vld [vmem:[%s1324_s2] ss:$0 sm:$0xff] }
  0x29   : > { %432 = vmatmul.mubr.f32.vlgmr.msra.gmra.mrb[0].mxu0 %v258_v42  ;;  %v894_v22 = vpack.c.bf16 %v343_v21, %v342_v20 }
  0x2a   : > { %867 = vmatpush3.bf16.msra.mxu0 %v866_v43  ;;  %571 = vmatprep.mubr.f32.mxu0 %v263_v50 }
  0x2b   : > { %502 = vmatmul.mubr.f32.vlgmr.msra.gmra.mrb[0].mxu1 %v260_v44  ;;  %869 = vmatprep.subr.bf16.mxu0 %v868_v45 }
  0x2e   : > { %871 = vmatpush3.bf16.msra.mxu0 %v870_v52 }
  0x2f   : > { %873 = vmatprep.subr.bf16.mxu0 %v872_v53 }
  0x32   : > { %875 = vmatpush3.bf16.msra.mxu0 %v874_v58 }
  0x33   : > { %877 = vmatprep.subr.bf16.mxu0 %v876_v59 }
  0x36   : > { %879 = vmatpush3.bf16.msra.mxu0 %v878_v0 }
  0x37   : > { %881 = vmatprep.subr.bf16.mxu0 %v880_v1 }
  0x3a   : > { %883 = vmatpush3.bf16.msra.mxu0 %v882_v6 }
  0x3b   : > { %885 = vmatprep.subr.bf16.mxu0 %v884_v7 }
  0x3e   : > { %887 = vmatpush3.bf16.msra.mxu0 %v886_v12 }
  0x3f   : > { %889 = vmatprep.subr.bf16.mxu0 %v888_v13 }
  0x42   : > { %891 = vmatpush3.bf16.msra.mxu0 %v890_v18 }
  0x43   : > { %893 = vmatprep.subr.bf16.mxu0 %v892_v19 }
  0x46   : > { %895 = vmatpush3.bf16.msra.mxu0 %v894_v22 }
  0x49   : > { %572 = vmatmul.mubr.f32.vlgmr.msra.gmra.mrb[2].mxu0 %v262_v23 }
  0xa0   : > { %v584_v37 = vpop.permute.xlu0 %583 }
  0xfc   : > { %v727_v24 = vpop.f32.mrb[0].mxu0 }
  0xfd   : > { %v728_v26 = vpop.f32.mrb[1].mxu0 }
  0xfe   : > { %v762_v27 = vpop.f32.mrb[0].mxu1  ;;  %v729_v28 = vadd.f32 %v728_v26, %v727_v24 }
  0xff   : > { %v763_v29 = vpop.f32.mrb[1].mxu1 }
 0x100   : > { %v764_v30 = vadd.f32 %v763_v29, %v762_v27  ;;  %v434_v31 = vadd.f32 %v729_v28, %v692_v25 }
 0x102   : > { %v504_v32 = vadd.f32 %v764_v30, %v434_v31 }
 0x11c   : > { %v797_v33 = vpop.f32.mrb[2].mxu0 }
 0x11d   : > { %v798_v34 = vpop.f32.mrb[3].mxu0 }
 0x11e   : > { %v799_v35 = vadd.f32 %v798_v34, %v797_v33 }
 0x120   : > { %v574_v36 = vadd.f32 %v799_v35, %v504_v32 }
 0x122   : > { %vm577_vm0 = vcmp.ge.f32.partialorder %v574_v36, 0.0  ;;  %v578_v38 = vmul.f32 0.1, %v574_v36 }
 0x124   : > { %v579_v39 = vsel %vm577_vm0, %v574_v36, %v578_v38 }
 0x125   : > { %v586_v40 = vmul.f32 %v584_v37, %v579_v39 }
 0x127   : > { %588 = vst.msk [vmem:[%s257_s7] sm:$0xff] %vm587_vm1, %v586_v40 }
 0x128 PF: > { %s14_s17 = sadd.s32 1, %s945_s17   ;;  %s1327_s15 = smov %s941_s16 }
 0x129   : > { %p11_p5 = scmp.ge.s32.totalorder %s14_s17, 4   ;;  %s1328_s16 = smov %s1330_s18 }
 0x12b   :  { %13 = sbr.rel (!%p11_p5) target bundleno = 2 (0x2), region = 69 }

// kernel: synthesizer_forward.137
= control target key start
LH: loop header
LB: loop body
LE: loop exit
PB: predicated region body
PF: predicated region fallthrough
CT: control target
= control target key end

     0   :  { %s465_s12 = smov 0   ;;  %s467_s13 = smov 0   ;;  %s513_s0 = inlined_call_operand.vmem [shape: f32[2,8,32], index: 0, kind: input, shape index: {}]   ;;  %s514_s1 = inlined_call_operand.vmem [shape: f32[32,32], index: 1, kind: input, shape index: {}]   ;;  %s515_s2 = inlined_call_operand.vmem [shape: f32[1,32], index: 2, kind: input, shape index: {}]   ;;  %s516_s3 = inlined_call_operand.vmem [shape: f32[2,8,32], index: 3, kind: output, shape index: {}]  }
   0x1   :  { %s469_s14 = smov 0  }
   0x2 LB: > { %s25_s15 = sadd.s32 1, %s436_s13  ;;  %p362_p0 = scmp.ge.s32.totalorder %s440_s14, 1  ;;  %s440_s14 = sphi %s469_s14, %s13_s14   ;;  %s436_s13 = sphi %s467_s13, %s518_s13   ;;  %s432_s12 = sphi %s465_s12, %s517_s12  }
   0x3   : > { %p27_p1 = scmp.ge.s32.totalorder %s25_s15, 2  ;;  %p155_p2 = scmp.lt.s32.totalorder %s440_s14, 3 }
   0x5   : > { %s520_s15 = smov (%p27_p1, %s25_s15), 0  ;;  %p156_p3 = pnand %p362_p0, %p155_p2 }
   0x6   : > { %v198_v0 = vld [vmem:[%s514_s1] sm:$0xff] (!%p156_p3)  ;;  %v199_v1 = vld [vmem:[%s514_s1 + $0x8] sm:$0xff] (!%p156_p3)  ;;  %v200_v2 = vld [vmem:[%s514_s1 + $0x10] sm:$0xff] (!%p156_p3)  ;;  %v442_v3 = vmov (!%p156_p3), 0.0|0.0   ;;  %vm443_vm0 = vmmov (!%p156_p3), 0   ;;  %v444_v6 = vmov (!%p156_p3), 0.0  }
   0x7   : > { %159 = sbr.rel (%p156_p3) target bundleno = 233 (0xe9), region = 32  ;;  %385 = vmatprep.subr.bf16.mxu0 (!%p156_p3), %v442_v3  ;;  %v386_v4 = vpack.c.bf16 (!%p156_p3), %v199_v1, %v198_v0  ;;  %v201_v5 = vld [vmem:[%s514_s1 + $0x18] sm:$0xff] (!%p156_p3)  ;;  %382 = vmatprep.mubr.msk.f32.mxu0 (!%p156_p3), %vm443_vm0, %v444_v6  ;;  %p183_p4 = scmp.lt.s32.totalorder (!%p156_p3), %s432_s12, 1  ;;  %vm209_vm1 = vcmask (!%p156_p3), 261120   ;;  %v365_v9 = vld [vmem:[%s515_s2] ss:$0 sm:$0xff] (!%p156_p3) }
   0x8   : > { %v389_v7 = vpack.c.bf16 (!%p156_p3), %v201_v5, %v200_v2 }
   0x9   : > { %387 = vmatpush3.bf16.msra.mxu0 (!%p156_p3), %v386_v4 }
   0xa   : > { %388 = vmatprep.subr.bf16.mxu0 (!%p156_p3), %v442_v3 }
   0xd   : > { %390 = vmatpush3.bf16.msra.mxu0 (!%p156_p3), %v389_v7 }
   0xe   : > { %s522_s12 = smov (!%p183_p4, %s432_s12), 1 }
   0xf   : > { %s363_s24 = sshll.u32 %s522_s12, 3 }
  0x10   : > { %s189_s27 = scalar_lea.vmem %s513_s0, %s363_s24  ;;  %s196_s5 = scalar_lea.vmem %s516_s3, %s363_s24 }
  0x11   : > { %v197_v8 = vld [vmem:[%s189_s27] sm:$0xff] }
  0x12   : > { %383 = vmatmul.mubr.msk.f32.vlgmr.msra.gmra.mrb[0].mxu0 %vm209_vm1, %v197_v8 }
  0xe5   : > { %v279_v10 = vpop.f32.mrb[0].mxu0 }
  0xe6   : > { %v280_v11 = vadd.f32 %v365_v9, %v279_v10  ;;  %v384_v12 = vpop.f32.mrb[1].mxu0 }
  0xe8   : > { %283 = vst.msk [vmem:[%s196_s5] sm:$0xff] %vm209_vm1, %v280_v11 }
  0xe9 PF: > { %s13_s14 = sadd.s32 1, %s440_s14   ;;  %s517_s12 = smov %s436_s13 }
  0xea   : > { %p10_p5 = scmp.ge.s32.totalorder %s13_s14, 4   ;;  %s518_s13 = smov %s520_s15 }
  0xec   :  { %12 = sbr.rel (!%p10_p5) target bundleno = 2 (0x2), region = 62 }

// kernel: synthesizer_forward.136
= control target key start
LH: loop header
LB: loop body
LE: loop exit
PB: predicated region body
PF: predicated region fallthrough
CT: control target
= control target key end

     0   :  { %s1369_s24 = smov 0   ;;  %s1371_s25 = smov 0   ;;  %s1577_s0 = inlined_call_operand.vmem [shape: f32[3,2,2,8,16], index: 0, kind: input, shape index: {}, may-alias: {0,1,2}]   ;;  %s1578_s1 = inlined_call_operand.vmem [shape: f32[3,2,2,8,16], index: 1, kind: input, shape index: {}, may-alias: {0,1,2}]   ;;  %s1579_s2 = inlined_call_operand.vmem [shape: f32[3,2,2,8,16], index: 2, kind: input, shape index: {}, may-alias: {0,1,2}]   ;;  %s1580_s3 = inlined_call_operand.vmem [shape: f32[15,16], index: 3, kind: input, shape index: {}]   ;;  %s1581_s4 = inlined_call_operand.vmem [shape: f32[15,16], index: 4, kind: input, shape index: {}]   ;;  %s1582_s5 = inlined_call_operand.vmem [shape: f32[2,8,1], index: 5, kind: input, shape index: {}]   ;;  %s1583_s6 = inlined_call_operand.vmem [shape: f32[2,1,8], index: 6, kind: input, shape index: {}]   ;;  %s1584_s7 = inlined_call_operand.vmem [shape: f32[2,2,8,16], index: 7, kind: output, shape index: {}]  }
   0x1   :  { %s1373_s26 = smov 0   ;;  %s1375_s27 = smov 0  }
   0x2   :  { %s1377_s28 = smov 0  }
   0x3 LB: > { %s32_s29 = sadd.s32 1, %s1301_s26  ;;  %s36_s30 = sadd.s32 1, %s1305_s27  ;;  %s1309_s28 = sphi %s1377_s28, %s17_s28   ;;  %s1305_s27 = sphi %s1375_s27, %s1592_s27   ;;  %s1301_s26 = sphi %s1373_s26, %s1591_s26   ;;  %s1297_s25 = sphi %s1371_s25, %s1590_s25   ;;  %s1293_s24 = sphi %s1369_s24, %s1589_s24  }
   0x4   : > { %p34_p0 = scmp.ge.s32.totalorder %s32_s29, 2  ;;  %p1143_p1 = scmp.ge.s32.totalorder %s1309_s28, 1 }
   0x5   : > { %p324_p2 = scmp.lt.s32.totalorder %s1309_s28, 5 }
   0x6   : > { %s1594_s29 = smov (%p34_p0, %s32_s29), 0  ;;  %s1596_s30 = smov (!%p34_p0, %s36_s30), %s1305_s27 }
   0x7   : > { %p325_p3 = pnand %p1143_p1, %p324_p2  ;;  %p38_p4 = scmp.ge.s32.totalorder %s1596_s30, 2 }
   0x8   : > { %v450_v0 = vld [vmem:[%s1580_s3] sm:$0xff] (!%p325_p3)  ;;  %v451_v1 = vld [vmem:[%s1580_s3 + $0x8] sm:$0x7f] (!%p325_p3)  ;;  %vm1585_vm0 = vcmask (!%p325_p3), 130048   ;;  %v1311_v2 = vmov (!%p325_p3), 0.0|0.0   ;;  %p396_p5 = scmp.lt.s32.totalorder (!%p325_p3), %s1297_s25, 1  ;;  %v533_v28 = vlaneseq (!%p325_p3) }
   0x9   : > { %s1598_s30 = smov (%p38_p4, %s1596_s30), 0  ;;  %328 = sbr.rel (%p325_p3) target bundleno = 970 (0x3ca), region = 48 }
   0xa   : > { %1188 = vmatprep.subr.bf16.mxu0 (!%p325_p3), %v1311_v2  ;;  %v1189_v3 = vpack.c.bf16 (!%p325_p3), %v451_v1, %v450_v0  ;;  %vm1190_vm1 = vmpackc.low (!%p325_p3), %vm1585_vm0, %vm1585_vm0  ;;  %p398_p6 = scmp.lt.s32.totalorder (!%p325_p3), %s1293_s24, 1  ;;  %vm1312_vm2 = vmmov (!%p325_p3), 0   ;;  %v1313_v4 = vmov (!%p325_p3), 0.0   ;;  %v1314_v5 = vmov (!%p325_p3), 2  }
   0xb   : > { %1175 = vmatprep.mubr.msk.f32.mxu0 (!%p325_p3), %vm1312_vm2, %v1313_v4  ;;  %1178 = vmatprep.subr.mxu1 (!%p325_p3), %v1313_v4  ;;  %v1315_v6 = vmov (!%p325_p3), 0   ;;  %v1316_v14 = vmov (!%p325_p3), 3   ;;  %v1317_v15 = vmov (!%p325_p3), 1   ;;  %v1318_v16 = vmov (!%p325_p3), 4  }
   0xc   : > { %1191 = vmatpush3.bf16.xpose.msk.msra.mxu0 (!%p325_p3), %vm1190_vm1, %v1189_v3  ;;  %1180 = vmatprep.mubr.msk.f32.mxu1 (!%p325_p3), %vm1312_vm2, %v1313_v4  ;;  %v1319_v17 = vmov (!%p325_p3), 5   ;;  %v1320_v18 = vmov (!%p325_p3), 6   ;;  %v1321_v19 = vmov (!%p325_p3), 8   ;;  %v1322_v20 = vmov (!%p325_p3), 7  }
   0xd   : > { %1252 = vset.pattern.permute.xlu1 (!%p325_p3), %v1314_v5  ;;  %1250 = vset.pattern.permute.xlu0 (!%p325_p3), %v1315_v6  ;;  %v1323_v21 = vmov (!%p325_p3), 11   ;;  %v1324_v22 = vmov (!%p325_p3), 9   ;;  %v1325_v23 = vmov (!%p325_p3), 14   ;;  %v1326_v24 = vmov (!%p325_p3), 10  }
   0xe   : > { %v1327_v25 = vmov (!%p325_p3), 12   ;;  %v1328_v26 = vmov (!%p325_p3), 13   ;;  %v1437_v29 = vshrl.u32 (!%p325_p3), %v533_v28, 7  ;;  %v538_v30 = vand.u32 (!%p325_p3), 127, %v533_v28 }
  0x10   : > { %s1600_s25 = smov (!%p396_p5, %s1297_s25), 1  ;;  %s1602_s24 = smov (!%p398_p6, %s1293_s24), 1  ;;  %v1440_v31 = vsub.s32 %v538_v30, %v1437_v29 }
  0x11   : > { %s1144_s12 = sshll.u32 %s1600_s25, 1  ;;  %s1150_s21 = sshll.u32 %s1600_s25, 3 }
  0x12   : > { %s404_s13 = sadd.s32 %s1144_s12, %s1602_s24  ;;  %s431_s24 = scalar_lea.vmem %s1582_s5, %s1150_s21  ;;  %vm540_vm3 = vcmp.eq.s32.totalorder %v1440_v31, 4294967289  ;;  %vm620_vm4 = vcmp.eq.s32.totalorder %v1440_v31, 4294967290  ;;  %vm627_vm5 = vcmp.eq.s32.totalorder %v1440_v31, 4294967291  ;;  %vm634_vm6 = vcmp.eq.s32.totalorder %v1440_v31, 4294967292 }
  0x13   : > { %s1417_s14 = sshll.u32 %s404_s13, 3  ;;  %v718_v27 = vld [vmem:[%s431_s24] sm:$0xff]  ;;  %vm641_vm7 = vcmp.eq.s32.totalorder %v1440_v31, 4294967293  ;;  %vm648_vm8 = vcmp.eq.s32.totalorder %v1440_v31, 4294967294  ;;  %vm655_vm9 = vcmp.eq.s32.totalorder %v1440_v31, 4294967295  ;;  %vm662_vm10 = vcmp.eq.s32.totalorder %v1440_v31, 0  ;;  %s434_s10 = scalar_lea.vmem %s1583_s6, %s1600_s25 }
  0x14   : > { %s406_s17 = scalar_lea.vmem %s1577_s0, %s1417_s14  ;;  %s1055_s20 = scalar_lea.vmem %s1578_s1, %s1417_s14  ;;  %vm669_vm11 = vcmp.eq.s32.totalorder %v1440_v31, 1  ;;  %vm676_vm12 = vcmp.eq.s32.totalorder %v1440_v31, 2  ;;  %vm683_vm13 = vcmp.eq.s32.totalorder %v1440_v31, 3  ;;  %vm690_vm14 = vcmp.eq.s32.totalorder %v1440_v31, 4 }
  0x15   : > { %v446_v7 = vld [vmem:[%s406_s17] sm:$0xff]  ;;  %vm1586_vm15 = vcmp.eq.s32.totalorder %v1440_v31, 5  ;;  %vm704_vm1 = vcmp.eq.s32.totalorder %v1440_v31, 6  ;;  %s1060_s12 = scalar_lea.vmem %s1579_s2, %s1417_s14 }
  0x16   : > { %v447_v8 = vmul.f32 0.25, %v446_v7  ;;  %v1153_v9 = vld [vmem:[%s1055_s20 + $0x20] sm:$0xff]  ;;  %s445_s20 = scalar_lea.vmem %s1584_s7, %s1417_s14 }
  0x17   : > { %1179 = vmatpush3.xpose.msk.msra.mxu1 %vm1585_vm0, %v1153_v9 }
  0x18   : > { %1176 = vmatmul.mubr.msk.f32.vlgmr.msra.gmra.mrb[0].mxu0 %vm1585_vm0, %v447_v8  ;;  %1183 = vmatprep.subr.mxu1 %v1313_v4 }
  0x1a   : > { %1181 = vmatmul.mubr.msk.f32.vlgmr.msra.gmra.mrb[0].mxu1 %vm1585_vm0, %v447_v8  ;;  %vm734_vm0 = vcmask 64512  }
  0x1b   : > { %1185 = vmatprep.mubr.msk.f32.mxu1 %vm1312_vm2, %v1313_v4  ;;  %vm711_vm2 = vcmp.eq.s32.totalorder %v1440_v31, 7 }
  0xeb   : > { %v528_v10 = vpop.f32.mrb[0].mxu0 }
  0xec   : > { %629 = vperm.xlu1 %1252, %v528_v10   ;;  %543 = vperm.xlu0 %1250, %v528_v10   ;;  %v1177_v11 = vpop.f32.mrb[1].mxu0 }
  0xed   : > { %v616_v12 = vpop.f32.mrb[0].mxu1  ;;  %v1160_v11 = vld [vmem:[%s434_s10] ss:$0 sm:$0xff] }
  0xee   : > { %v1182_v13 = vpop.f32.mrb[1].mxu1 }
  0xf0   : > { %1253 = vset.pattern.permute.xlu1 %v1316_v14  ;;  %1251 = vset.pattern.permute.xlu0 %v1317_v15 }
  0xf1   : > { %636 = vperm.xlu1 %1253, %v528_v10   ;;  %622 = vperm.xlu0 %1251, %v528_v10  }
  0xf5   : > { %1254 = vset.pattern.permute.xlu1 %v1318_v16  ;;  %1255 = vset.pattern.permute.xlu0 %v1319_v17 }
  0xf6   : > { %643 = vperm.xlu1 %1254, %v528_v10   ;;  %650 = vperm.xlu0 %1255, %v528_v10  }
  0xfa   : > { %1256 = vset.pattern.permute.xlu1 %v1320_v18  ;;  %1258 = vset.pattern.permute.xlu0 %v1321_v19 }
  0xfb   : > { %657 = vperm.xlu1 %1256, %v528_v10   ;;  %671 = vperm.xlu0 %1258, %v528_v10  }
  0xff   : > { %1257 = vset.pattern.permute.xlu1 %v1322_v20  ;;  %1261 = vset.pattern.permute.xlu0 %v1323_v21 }
 0x100   : > { %664 = vperm.xlu1 %1257, %v528_v10   ;;  %692 = vperm.xlu0 %1261, %v528_v10  }
 0x104   : > { %1259 = vset.pattern.permute.xlu1 %v1324_v22  ;;  %1264 = vset.pattern.permute.xlu0 %v1325_v23  ;;  %v1154_v23 = vld [vmem:[%s1060_s12 + $0x40] sm:$0xff] }
 0x105   : > { %678 = vperm.xlu1 %1259, %v528_v10   ;;  %713 = vperm.xlu0 %1264, %v528_v10  }
 0x106   : > { %1184 = vmatpush3.msra.mxu1 %v1154_v23 }
 0x109   : > { %1260 = vset.pattern.permute.xlu1 %v1326_v24  ;;  %1266 = vset.pattern.permute.xlu0 %v1315_v6 }
 0x10a   : > { %685 = vperm.xlu1 %1260, %v528_v10  }
 0x10e   : > { %1262 = vset.pattern.permute.xlu1 %v1327_v25 }
 0x10f   : > { %699 = vperm.xlu1 %1262, %v528_v10  }
 0x113   : > { %1263 = vset.pattern.permute.xlu1 %v1328_v26 }
 0x114   : > { %706 = vperm.xlu1 %1263, %v528_v10  }
 0x118   : > { %1265 = vset.pattern.permute.xlu1 %v1315_v6 }
 0x119   : > { %722 = vperm.xlu1 %1265, %v718_v27  }
 0x16b   : > { %v630_v32 = vpop.permute.xlu1 %629  ;;  %v544_v33 = vpop.permute.xlu0 %543 }
 0x16c   : > { %v546_v34 = vsel %vm540_vm3, %v544_v33, 0.0  ;;  %v632_v40 = vsel %vm627_vm5, %v630_v32, 0.0 }
 0x16d   : > { %v617_v35 = vadd.f32 %v616_v12, %v546_v34 }
 0x170   : > { %v637_v36 = vpop.permute.xlu1 %636  ;;  %v623_v37 = vpop.permute.xlu0 %622 }
 0x171   : > { %v625_v38 = vsel %vm620_vm4, %v623_v37, 0.0  ;;  %v639_v42 = vsel %vm634_vm6, %v637_v36, 0.0 }
 0x172   : > { %v626_v39 = vadd.f32 %v625_v38, %v617_v35 }
 0x174   : > { %v633_v41 = vadd.f32 %v632_v40, %v626_v39 }
 0x175   : > { %v644_v43 = vpop.permute.xlu1 %643  ;;  %v651_v47 = vpop.permute.xlu0 %650 }
 0x176   : > { %v640_v44 = vadd.f32 %v639_v42, %v633_v41  ;;  %v646_v45 = vsel %vm641_vm7, %v644_v43, 0.0  ;;  %v653_v49 = vsel %vm648_vm8, %v651_v47, 0.0 }
 0x178   : > { %v647_v46 = vadd.f32 %v646_v45, %v640_v44 }
 0x17a   : > { %v658_v48 = vpop.permute.xlu1 %657  ;;  %v654_v50 = vadd.f32 %v653_v49, %v647_v46  ;;  %v672_v55 = vpop.permute.xlu0 %671 }
 0x17b   : > { %v660_v51 = vsel %vm655_vm9, %v658_v48, 0.0  ;;  %v674_v58 = vsel %vm669_vm11, %v672_v55, 0.0 }
 0x17c   : > { %v661_v53 = vadd.f32 %v660_v51, %v654_v50 }
 0x17f   : > { %v665_v52 = vpop.permute.xlu1 %664  ;;  %v693_v0 = vpop.permute.xlu0 %692 }
 0x180   : > { %v667_v54 = vsel %vm662_vm10, %v665_v52, 0.0  ;;  %v695_v3 = vsel %vm690_vm14, %v693_v0, 0.0 }
 0x181   : > { %v668_v56 = vadd.f32 %v667_v54, %v661_v53 }
 0x183   : > { %v675_v59 = vadd.f32 %v674_v58, %v668_v56 }
 0x184   : > { %v679_v57 = vpop.permute.xlu1 %678  ;;  %v714_v9 = vpop.permute.xlu0 %713 }
 0x185   : > { %v681_v60 = vsel %vm676_vm12, %v679_v57, 0.0  ;;  %v716_v13 = vsel %vm711_vm2, %v714_v9, 0.0  ;;  %v866_v9 = vsub.s32 4, %v1437_v29 }
 0x186   : > { %v682_v62 = vadd.f32 %v681_v60, %v675_v59 }
 0x189   : > { %v686_v61 = vpop.permute.xlu1 %685 }
 0x18a   : > { %v688_v63 = vsel %vm683_vm13, %v686_v61, 0.0 }
 0x18b   : > { %v689_v1 = vadd.f32 %v688_v63, %v682_v62  ;;  %v754_v62 = vsub.s32 0, %v1437_v29  ;;  %v746_v63 = vld [vmem:[%s1581_s4] sm:$0xff] }
 0x18d   : > { %v696_v4 = vadd.f32 %v695_v3, %v689_v1  ;;  %v836_v1 = vsub.s32 1, %v1437_v29  ;;  %v755_v3 = vrot.slane %v746_v63, %v754_v62 }
 0x18e   : > { %v700_v2 = vpop.permute.xlu1 %699 }
 0x18f   : > { %v702_v5 = vsel %vm1586_vm15, %v700_v2, 0.0 }
 0x190   : > { %v703_v7 = vadd.f32 %v702_v5, %v696_v4  ;;  %v837_v4 = vrot.slane %v746_v63, %v836_v1  ;;  %v856_v5 = vsub.s32 3, %v1437_v29 }
 0x193   : > { %v707_v6 = vpop.permute.xlu1 %706 }
 0x194   : > { %v709_v8 = vsel %vm704_vm1, %v707_v6, 0.0 }
 0x195   : > { %v710_v10 = vadd.f32 %v709_v8, %v703_v7 }
 0x197   : > { %v717_v15 = vadd.f32 %v716_v13, %v710_v10  ;;  %v857_v13 = vrot.slane %v746_v63, %v856_v5 }
 0x198   : > { %v723_v12 = vpop.permute.xlu1 %722 }
 0x199   : > { %v731_v14 = vmul.f32 %v1160_v11, %v723_v12 }
 0x19b   : > { %vm732_vm15 = vcmp.gt.f32.partialorder %v731_v14, 0.0  ;;  %v876_v14 = vsub.s32 5, %v1437_v29 }
 0x19c   : > { %v733_v16 = vsel %vm732_vm15, %v717_v15, -10000.0 }
 0x19d   : > { %v735_v17 = vsel %vm734_vm0, %v733_v16, -inf  ;;  %v877_v23 = vrot.slane %v746_v63, %v876_v14 }
 0x19e   : > { %736 = vmax.xlane.f32.xlu1 %v735_v17 }
 0x22b   : > { %v737_v18 = vpop.xlane.xlu1 %736 }
 0x22c   : > { %v738_v19 = vsub.f32 %v733_v16, %v737_v18  ;;  %v867_v18 = vrot.slane %v746_v63, %v866_v9 }
 0x22e   : > { %v739_v20 = vmul.f32 1.442695, %v738_v19  ;;  %v886_v19 = vsub.s32 6, %v1437_v29 }
 0x230   : > { %1267 = vpow2.f32 %v739_v20 }
 0x23a   : > { %v1268_v21 = vpop.eup %1267 }
 0x23b   : > { %v741_v22 = vsel %vm734_vm0, %v1268_v21, 0.0 }
 0x23c   : > { %742 = vadd.xlane.f32.xlu0 %v741_v22 }
 0x2c9   : > { %v743_v24 = vpop.xlane.xlu0 %742 }
 0x2ca   : > { %1269 = vrcp.f32 %v743_v24  ;;  %v896_v24 = vsub.s32 7, %v1437_v29 }
 0x2d4   : > { %v1270_v25 = vpop.eup %1269 }
 0x2d5   : > { %v745_v26 = vmul.f32 %v1270_v25, %v1268_v21 }
 0x2d7   : > { %1186 = vmatmul.mubr.msk.f32.vlgmr.msra.gmra.mrb[2].mxu1 %vm734_vm0, %v745_v26  ;;  %v830_v27 = vsel %vm620_vm4, %v745_v26, 0.0  ;;  %v748_v28 = vsel %vm540_vm3, %v745_v26, 0.0  ;;  %v850_v33 = vsel %vm634_vm6, %v745_v26, 0.0  ;;  %v840_v34 = vsel %vm627_vm5, %v745_v26, 0.0 }
 0x2d8   : > { %v831_v30 = vsel %vm734_vm0, %v830_v27, 0.0  ;;  %v749_v32 = vsel %vm734_vm0, %v748_v28, 0.0  ;;  %v851_v35 = vsel %vm734_vm0, %v850_v33, 0.0  ;;  %v841_v36 = vsel %vm734_vm0, %v840_v34, 0.0 }
 0x2d9   : > { %832 = vadd.xlane.f32.xlu1 %v831_v30  ;;  %750 = vadd.xlane.f32.xlu0 %v749_v32  ;;  %v870_v37 = vsel %vm648_vm8, %v745_v26, 0.0  ;;  %v860_v38 = vsel %vm641_vm7, %v745_v26, 0.0  ;;  %v890_v41 = vsel %vm662_vm10, %v745_v26, 0.0  ;;  %v880_v42 = vsel %vm655_vm9, %v745_v26, 0.0  ;;  %v747_v32 = vld [vmem:[%s1581_s4 + $0x8] sm:$0x7f] }
 0x2da   : > { %v871_v39 = vsel %vm734_vm0, %v870_v37, 0.0  ;;  %v861_v40 = vsel %vm734_vm0, %v860_v38, 0.0  ;;  %v891_v43 = vsel %vm734_vm0, %v890_v41, 0.0  ;;  %v881_v44 = vsel %vm734_vm0, %v880_v42, 0.0 }
 0x2db   : > { %v910_v45 = vsel %vm676_vm12, %v745_v26, 0.0  ;;  %v900_v46 = vsel %vm669_vm11, %v745_v26, 0.0  ;;  %v930_v49 = vsel %vm690_vm14, %v745_v26, 0.0  ;;  %v920_v50 = vsel %vm683_vm13, %v745_v26, 0.0 }
 0x2dc   : > { %v911_v47 = vsel %vm734_vm0, %v910_v45, 0.0  ;;  %v901_v48 = vsel %vm734_vm0, %v900_v46, 0.0  ;;  %v931_v51 = vsel %vm734_vm0, %v930_v49, 0.0  ;;  %v921_v52 = vsel %vm734_vm0, %v920_v50, 0.0 }
 0x2dd   : > { %852 = vadd.xlane.f32.xlu1 %v851_v35  ;;  %842 = vadd.xlane.f32.xlu0 %v841_v36  ;;  %v950_v53 = vsel %vm704_vm1, %v745_v26, 0.0  ;;  %vm1587_vm3 = vcmp.eq.s32.totalorder %v1440_v31, 5  ;;  %v960_v57 = vsel %vm711_vm2, %v745_v26, 0.0  ;;  %v846_v31 = vsub.s32 2, %v1437_v29 }
 0x2de   : > { %v940_v54 = vsel %vm1587_vm3, %v745_v26, 0.0  ;;  %v951_v55 = vsel %vm734_vm0, %v950_v53, 0.0  ;;  %v961_v58 = vsel %vm734_vm0, %v960_v57, 0.0  ;;  %v887_v28 = vrot.slane %v746_v63, %v886_v19 }
 0x2df   : > { %v941_v56 = vsel %vm734_vm0, %v940_v54, 0.0  ;;  %v847_v8 = vrot.slane %v746_v63, %v846_v31  ;;  %v897_v34 = vrot.slane %v746_v63, %v896_v24  ;;  %v907_v38 = vrot.slane %v747_v32, %v754_v62 }
 0x2e0   : > { %v917_v42 = vrot.slane %v747_v32, %v836_v1  ;;  %vm1588_vm0 = vcmask 130048  }
 0x2e1   : > { %872 = vadd.xlane.f32.xlu1 %v871_v39  ;;  %862 = vadd.xlane.f32.xlu0 %v861_v40 }
 0x2e5   : > { %892 = vadd.xlane.f32.xlu1 %v891_v43  ;;  %882 = vadd.xlane.f32.xlu0 %v881_v44  ;;  %v927_v44 = vrot.slane %v747_v32, %v846_v31 }
 0x2e9   : > { %912 = vadd.xlane.f32.xlu1 %v911_v47  ;;  %902 = vadd.xlane.f32.xlu0 %v901_v48  ;;  %v937_v48 = vrot.slane %v747_v32, %v856_v5 }
 0x2ed   : > { %932 = vadd.xlane.f32.xlu1 %v931_v51  ;;  %922 = vadd.xlane.f32.xlu0 %v921_v52  ;;  %v947_v52 = vrot.slane %v747_v32, %v866_v9 }
 0x2f1   : > { %952 = vadd.xlane.f32.xlu1 %v951_v55  ;;  %942 = vadd.xlane.f32.xlu0 %v941_v56  ;;  %v957_v55 = vrot.slane %v747_v32, %v876_v14 }
 0x2f5   : > { %962 = vadd.xlane.f32.xlu0 %v961_v58 }
 0x366   : > { %v751_v59 = vpop.xlane.xlu0 %750  ;;  %v833_v60 = vpop.xlane.xlu1 %832 }
 0x367   : > { %v756_v7 = vmul.f32 %v755_v3, %v751_v59  ;;  %v838_v12 = vmul.f32 %v837_v4, %v833_v60  ;;  %v967_v59 = vrot.slane %v747_v32, %v886_v19 }
 0x36a   : > { %v843_v61 = vpop.xlane.xlu0 %842  ;;  %v853_v0 = vpop.xlane.xlu1 %852 }
 0x36b   : > { %v848_v17 = vmul.f32 %v847_v8, %v843_v61  ;;  %v858_v22 = vmul.f32 %v857_v13, %v853_v0 }
 0x36e   : > { %v863_v2 = vpop.xlane.xlu0 %862  ;;  %v873_v6 = vpop.xlane.xlu1 %872 }
 0x36f   : > { %v868_v27 = vmul.f32 %v867_v18, %v863_v2  ;;  %v878_v33 = vmul.f32 %v877_v23, %v873_v6 }
 0x372   : > { %v883_v10 = vpop.xlane.xlu0 %882  ;;  %v893_v21 = vpop.xlane.xlu1 %892 }
 0x373   : > { %v888_v37 = vmul.f32 %v887_v28, %v883_v10  ;;  %v898_v41 = vmul.f32 %v897_v34, %v893_v21 }
 0x376   : > { %v903_v26 = vpop.xlane.xlu0 %902  ;;  %v913_v36 = vpop.xlane.xlu1 %912 }
 0x377   : > { %v908_v43 = vmul.f32 %v907_v38, %v903_v26  ;;  %v918_v47 = vmul.f32 %v917_v42, %v913_v36 }
 0x37a   : > { %v923_v40 = vpop.xlane.xlu0 %922  ;;  %v933_v46 = vpop.xlane.xlu1 %932 }
 0x37b   : > { %v928_v51 = vmul.f32 %v927_v44, %v923_v40  ;;  %v938_v54 = vmul.f32 %v937_v48, %v933_v46 }
 0x37e   : > { %v943_v50 = vpop.xlane.xlu0 %942  ;;  %v953_v57 = vpop.xlane.xlu1 %952 }
 0x37f   : > { %v948_v58 = vmul.f32 %v947_v52, %v943_v50  ;;  %v958_v62 = vmul.f32 %v957_v55, %v953_v57 }
 0x382   : > { %v963_v61 = vpop.xlane.xlu0 %962 }
 0x383   : > { %v968_v0 = vmul.f32 %v967_v59, %v963_v61 }
 0x3aa   : > { %v826_v11 = vpop.f32.mrb[2].mxu1 }
 0x3ab   : > { %v827_v15 = vadd.f32 %v826_v11, %v756_v7  ;;  %v1187_v16 = vpop.f32.mrb[3].mxu1 }
 0x3ad   : > { %v839_v20 = vadd.f32 %v838_v12, %v827_v15 }
 0x3af   : > { %v849_v25 = vadd.f32 %v848_v17, %v839_v20 }
 0x3b1   : > { %v859_v30 = vadd.f32 %v858_v22, %v849_v25 }
 0x3b3   : > { %v869_v35 = vadd.f32 %v868_v27, %v859_v30 }
 0x3b5   : > { %v879_v39 = vadd.f32 %v878_v33, %v869_v35 }
 0x3b7   : > { %v889_v29 = vadd.f32 %v888_v37, %v879_v39 }
 0x3b9   : > { %v899_v45 = vadd.f32 %v898_v41, %v889_v29 }
 0x3bb   : > { %v909_v49 = vadd.f32 %v908_v43, %v899_v45 }
 0x3bd   : > { %v919_v53 = vadd.f32 %v918_v47, %v909_v49 }
 0x3bf   : > { %v929_v56 = vadd.f32 %v928_v51, %v919_v53 }
 0x3c1   : > { %v939_v60 = vadd.f32 %v938_v54, %v929_v56 }
 0x3c3   : > { %v949_v63 = vadd.f32 %v948_v58, %v939_v60 }
 0x3c5   : > { %v959_v1 = vadd.f32 %v958_v62, %v949_v63 }
 0x3c7   : > { %v969_v2 = vadd.f32 %v968_v0, %v959_v1 }
 0x3c9   : > { %970 = vst.msk [vmem:[%s445_s20] sm:$0xff] %vm1588_vm0, %v969_v2 }
 0x3ca PF: > { %s17_s28 = sadd.s32 1, %s1309_s28   ;;  %s1589_s24 = smov %s1301_s26 }
 0x3cb   : > { %p14_p7 = scmp.ge.s32.totalorder %s17_s28, 6   ;;  %s1590_s25 = smov %s1305_s27 }
 0x3cc   : > { %s1591_s26 = smov %s1594_s29  ;;  %s1592_s27 = smov %s1598_s30 }
 0x3cd   :  { %16 = sbr.rel (!%p14_p7) target bundleno = 3 (0x3), region = 90 }

// kernel: synthesizer_forward.138
= control target key start
LH: loop header
LB: loop body
LE: loop exit
PB: predicated region body
PF: predicated region fallthrough
CT: control target
= control target key end

     0   :  { %s463_s15 = smov 0   ;;  %s465_s16 = smov 0   ;;  %s508_s0 = inlined_call_operand.vmem [shape: f32[2,8,32], index: 0, kind: input, shape index: {}]   ;;  %s509_s1 = inlined_call_operand.vmem [shape: f32[2,8,32], index: 1, kind: input, shape index: {}]   ;;  %s510_s2 = inlined_call_operand.vmem [shape: f32[1,32], index: 2, kind: input, shape index: {}]   ;;  %s511_s3 = inlined_call_operand.vmem [shape: f32[1,32], index: 3, kind: input, shape index: {}]   ;;  %s512_s4 = inlined_call_operand.vmem [shape: f32[2,8,32], index: 4, kind: output, shape index: {}]  }
   0x1   :  { %s467_s17 = smov 0  }
   0x2 LB: > { %s26_s18 = sadd.s32 1, %s432_s16  ;;  %p380_p0 = scmp.ge.s32.totalorder %s436_s17, 1  ;;  %s436_s17 = sphi %s467_s17, %s14_s17   ;;  %s432_s16 = sphi %s465_s16, %s514_s16   ;;  %s428_s15 = sphi %s463_s15, %s513_s15  }
   0x3   : > { %p28_p1 = scmp.ge.s32.totalorder %s26_s18, 2  ;;  %p194_p2 = scmp.lt.s32.totalorder %s436_s17, 3 }
   0x5   : > { %s516_s18 = smov (%p28_p1, %s26_s18), 0  ;;  %p195_p3 = pnand %p380_p0, %p194_p2 }
   0x6   : > { %p231_p4 = scmp.lt.s32.totalorder (!%p195_p3), %s428_s15, 1  ;;  %vm255_vm0 = vcmask (!%p195_p3), 261120   ;;  %v384_v13 = vld [vmem:[%s510_s2] ss:$0 sm:$0xff] (!%p195_p3) }
   0x7   : > { %198 = sbr.rel (%p195_p3) target bundleno = 335 (0x14f), region = 36  ;;  %v385_v15 = vld [vmem:[%s511_s3] ss:$0 sm:$0xff] (!%p195_p3) }
   0xe   : > { %s518_s15 = smov (!%p231_p4, %s428_s15), 1 }
   0xf   : > { %s381_s19 = sshll.u32 %s518_s15, 3 }
  0x10   : > { %s237_s22 = scalar_lea.vmem %s508_s0, %s381_s19  ;;  %s244_s25 = scalar_lea.vmem %s509_s1, %s381_s19 }
  0x11   : > { %v252_v0 = vld [vmem:[%s237_s22] sm:$0xff]  ;;  %s251_s6 = scalar_lea.vmem %s512_s4, %s381_s19 }
  0x12   : > { %v253_v1 = vld [vmem:[%s244_s25] sm:$0xff] }
  0x13   : > { %v254_v2 = vadd.f32 %v253_v1, %v252_v0 }
  0x15   : > { %v256_v3 = vsel %vm255_vm0, %v254_v2, 0.0 }
  0x16   : > { %257 = vadd.xlane.f32.xlu0 %v256_v3 }
  0xa3   : > { %v258_v4 = vpop.xlane.xlu0 %257 }
  0xa4   : > { %v260_v5 = vmul.f32 0.03125, %v258_v4 }
  0xa6   : > { %v261_v6 = vsub.f32 %v254_v2, %v260_v5 }
  0xa8   : > { %v262_v7 = vmul.f32 %v261_v6, %v261_v6 }
  0xaa   : > { %v263_v8 = vsel %vm255_vm0, %v262_v7, 0.0 }
  0xab   : > { %264 = vadd.xlane.f32.xlu0 %v263_v8 }
 0x138   : > { %v265_v9 = vpop.xlane.xlu0 %264 }
 0x139   : > { %v266_v10 = vmul.f32 0.03125, %v265_v9 }
 0x13b   : > { %v267_v11 = vadd.f32 1e-05, %v266_v10 }
 0x13d   : > { %412 = vrsqrt.f32 %v267_v11 }
 0x147   : > { %v413_v12 = vpop.eup %412 }
 0x148   : > { %v269_v14 = vmul.f32 %v413_v12, %v261_v6 }
 0x14a   : > { %v277_v16 = vmul.f32 %v384_v13, %v269_v14 }
 0x14c   : > { %v285_v17 = vadd.f32 %v385_v15, %v277_v16 }
 0x14e   : > { %286 = vst.msk [vmem:[%s251_s6] sm:$0xff] %vm255_vm0, %v285_v17 }
 0x14f PF: > { %s14_s17 = sadd.s32 1, %s436_s17   ;;  %s513_s15 = smov %s432_s16 }
 0x150   : > { %p11_p5 = scmp.ge.s32.totalorder %s14_s17, 4   ;;  %s514_s16 = smov %s516_s18 }
 0x152   :  { %13 = sbr.rel (!%p11_p5) target bundleno = 2 (0x2), region = 69 }

// kernel: synthesizer_forward.139
= control target key start
LH: loop header
LB: loop body
LE: loop exit
PB: predicated region body
PF: predicated region fallthrough
CT: control target
= control target key end

     0   :  { %s1054_s27 = smov 0   ;;  %s1056_s28 = smov 0   ;;  %s1154_s0 = inlined_call_operand.vmem [shape: f32[2,8,32], index: 0, kind: input, shape index: {}, may-alias: {0,1,2}]   ;;  %s1155_s1 = inlined_call_operand.vmem [shape: f32[2,8,32], index: 1, kind: input, shape index: {}, may-alias: {0,1,2}]   ;;  %s1156_s2 = inlined_call_operand.vmem [shape: f32[2,8,32], index: 2, kind: input, shape index: {}, may-alias: {0,1,2}]   ;;  %s1157_s3 = inlined_call_operand.vmem [shape: f32[2,8,1], index: 3, kind: input, shape index: {}, may-alias: {3,4,5}]   ;;  %s1158_s4 = inlined_call_operand.vmem [shape: f32[2,8,1], index: 4, kind: input, shape index: {}, may-alias: {3,4,5}]   ;;  %s1159_s5 = inlined_call_operand.vmem [shape: f32[2,8,1], index: 5, kind: input, shape index: {}, may-alias: {3,4,5}]   ;;  %s1160_s6 = inlined_call_operand.vmem [shape: f32[96,64], index: 6, kind: input, shape index: {}]   ;;  %s1161_s7 = inlined_call_operand.vmem [shape: f32[1,64], index: 7, kind: input, shape index: {}]   ;;  %s1162_s8 = inlined_call_operand.vmem [shape: f32[2,8,64], index: 8, kind: output, shape index: {}]  }
   0x1   :  { %s1058_s29 = smov 0  }
   0x2 LB: > { %s30_s30 = sadd.s32 1, %s997_s28  ;;  %p877_p0 = scmp.ge.s32.totalorder %s1001_s29, 1  ;;  %s1001_s29 = sphi %s1058_s29, %s18_s29   ;;  %s997_s28 = sphi %s1056_s28, %s1164_s28   ;;  %s993_s27 = sphi %s1054_s27, %s1163_s27  }
   0x3   : > { %p32_p1 = scmp.ge.s32.totalorder %s30_s30, 2  ;;  %p398_p2 = scmp.lt.s32.totalorder %s1001_s29, 3 }
   0x5   : > { %s1166_s30 = smov (%p32_p1, %s30_s30), 0  ;;  %p399_p3 = pnand %p877_p0, %p398_p2 }
   0x6   : > { %p486_p4 = scmp.lt.s32.totalorder (!%p399_p3), %s993_s27, 1  ;;  %v1003_v0 = vmov (!%p399_p3), 0   ;;  %v629_v4 = vld [vmem:[%s1160_s6] sm:$0xff] (!%p399_p3)  ;;  %v630_v5 = vld [vmem:[%s1160_s6 + $0x8] sm:$0xff] (!%p399_p3)  ;;  %v631_v6 = vld [vmem:[%s1160_s6 + $0x10] sm:$0xff] (!%p399_p3)  ;;  %v1004_v7 = vmov (!%p399_p3), 0.0|0.0  }
   0x7   : > { %402 = sbr.rel (%p399_p3) target bundleno = 495 (0x1ef), region = 52  ;;  %977 = vset.pattern.permute.xlu0 (!%p399_p3), %v1003_v0  ;;  %978 = vset.pattern.permute.xlu1 (!%p399_p3), %v1003_v0  ;;  %v930_v8 = vpack.c.bf16 (!%p399_p3), %v630_v5, %v629_v4  ;;  %v632_v9 = vld [vmem:[%s1160_s6 + $0x18] sm:$0xff] (!%p399_p3)  ;;  %v633_v11 = vld [vmem:[%s1160_s6 + $0x20] sm:$0xff] (!%p399_p3)  ;;  %v634_v12 = vld [vmem:[%s1160_s6 + $0x28] sm:$0xff] (!%p399_p3)  ;;  %vm576_vm0 = vcmask (!%p399_p3), 261120   ;;  %vm1005_vm1 = vmmov (!%p399_p3), 0  }
   0x8   : > { %929 = vmatprep.subr.bf16.mxu0 (!%p399_p3), %v1004_v7  ;;  %v933_v10 = vpack.c.bf16 (!%p399_p3), %v632_v9, %v631_v6  ;;  %v936_v13 = vpack.c.bf16 (!%p399_p3), %v634_v12, %v633_v11  ;;  %v635_v14 = vld [vmem:[%s1160_s6 + $0x30] sm:$0xff] (!%p399_p3)  ;;  %v636_v15 = vld [vmem:[%s1160_s6 + $0x38] sm:$0xff] (!%p399_p3)  ;;  %v637_v17 = vld [vmem:[%s1160_s6 + $0x40] sm:$0xff] (!%p399_p3)  ;;  %v1006_v32 = vmov (!%p399_p3), 0.0   ;;  %s1007_s16 = smov (!%p399_p3), 64   ;;  %s1008_s17 = smov (!%p399_p3), 32  }
   0x9   : > { %931 = vmatpush3.bf16.msra.mxu0 (!%p399_p3), %v930_v8  ;;  %v939_v16 = vpack.c.bf16 (!%p399_p3), %v636_v15, %v635_v14  ;;  %v638_v18 = vld [vmem:[%s1160_s6 + $0x48] sm:$0xff] (!%p399_p3)  ;;  %v639_v20 = vld [vmem:[%s1160_s6 + $0x50] sm:$0xff] (!%p399_p3)  ;;  %v640_v21 = vld [vmem:[%s1160_s6 + $0x58] sm:$0xff] (!%p399_p3)  ;;  %926 = vmatprep.mubr.msk.f32.mxu0 (!%p399_p3), %vm1005_vm1, %v1006_v32  ;;  %vm627_vm2 = vcmask (!%p399_p3), 523264   ;;  %vm648_vm3 = vcmask (!%p399_p3), 785408  }
   0xa   : > { %932 = vmatprep.subr.bf16.mxu0 (!%p399_p3), %v1004_v7  ;;  %v942_v19 = vpack.c.bf16 (!%p399_p3), %v638_v18, %v637_v17  ;;  %v945_v22 = vpack.c.bf16 (!%p399_p3), %v640_v21, %v639_v20  ;;  %v885_v42 = vld [vmem:[%s1161_s7] ss:$0 sm:$0xff] (!%p399_p3) }
   0xd   : > { %934 = vmatpush3.bf16.msra.mxu0 (!%p399_p3), %v933_v10 }
   0xe   : > { %s1168_s27 = smov (!%p486_p4, %s993_s27), 1  ;;  %935 = vmatprep.subr.bf16.mxu0 %v1004_v7 }
   0xf   : > { %s1072_s9 = sshll.u32 %s1168_s27, 3 }
  0x10   : > { %s545_s12 = scalar_lea.vmem %s1159_s5, %s1072_s9  ;;  %s525_s15 = scalar_lea.vmem %s1157_s3, %s1072_s9 }
  0x11   : > { %v597_v1 = vld [vmem:[%s545_s12] sm:$0xff]  ;;  %s535_s18 = scalar_lea.vmem %s1158_s4, %s1072_s9  ;;  %937 = vmatpush3.bf16.msra.mxu0 %v936_v13  ;;  %s512_s27 = scalar_lea.vmem %s1156_s2, %s1072_s9 }
  0x12   : > { %v557_v2 = vld [vmem:[%s525_s15] sm:$0xff]  ;;  %600 = vperm.xlu0 %977, %v597_v1   ;;  %938 = vmatprep.subr.bf16.mxu0 %v1004_v7  ;;  %s492_s12 = scalar_lea.vmem %s1154_s0, %s1072_s9  ;;  %s502_s15 = scalar_lea.vmem %s1155_s1, %s1072_s9 }
  0x13   : > { %560 = vperm.xlu1 %978, %v557_v2   ;;  %v579_v3 = vld [vmem:[%s535_s18] sm:$0xff]  ;;  %s555_s22 = scalar_lea.vmem %s1162_s8, %s1072_s9 }
  0x14   : > { %v596_v23 = vld [vmem:[%s512_s27] sm:$0xff] }
  0x15   : > { %940 = vmatpush3.bf16.msra.mxu0 %v939_v16  ;;  %v556_v24 = vld [vmem:[%s492_s12] sm:$0xff] }
  0x16   : > { %582 = vperm.xlu0 %977, %v579_v3   ;;  %941 = vmatprep.subr.bf16.mxu0 %v1004_v7  ;;  %v578_v29 = vld [vmem:[%s502_s15] sm:$0xff] }
  0x19   : > { %943 = vmatpush3.bf16.msra.mxu0 %v942_v19 }
  0x1a   : > { %944 = vmatprep.subr.bf16.mxu0 %v1004_v7 }
  0x1d   : > { %946 = vmatpush3.bf16.msra.mxu0 %v945_v22 }
  0x91   : > { %v601_v25 = vpop.permute.xlu0 %600 }
  0x92   : > { %v561_v26 = vpop.permute.xlu1 %560  ;;  %v603_v27 = vmul.f32 %v601_v25, %v596_v23 }
  0x93   : > { %v563_v28 = vmul.f32 %v561_v26, %v556_v24 }
  0x94   : > { %v613_v30 = vmul.f32 0.0, %v603_v27 }
  0x95   : > { %v575_v31 = vmul.f32 0.0, %v563_v28  ;;  %v583_v33 = vpop.permute.xlu0 %582 }
  0x96   : > { %614 = vst.msk [vmem:[#allocation2 + $0x10] sm:$0xff] %vm576_vm0, %v613_v30  ;;  %v585_v34 = vmul.f32 %v583_v33, %v578_v29 }
  0x97   : > { %577 = vst.msk [vmem:[#allocation2] sm:$0xff] %vm576_vm0, %v575_v31 }
  0x98   : > { %595 = vst.msk [vmem:[#allocation2 + $0x8] sm:$0xff] %vm576_vm0, %v585_v34 }
  0x9f   : > { %v617_v35 = vld [vmem:[#allocation2 + $0x9] sm:$0xff] }
  0xa0   : > { %v616_v36 = vld [vmem:[#allocation2 + $0x8] sm:$0xff]  ;;  %623 = vrot.lane.b32.xlu0 %v617_v35, %s1007_s16 }
  0xa1   : > { %619 = vrot.lane.b32.xlu1 %v616_v36, %s1008_s17  ;;  %v615_v39 = vld [vmem:[#allocation2 + $0x7] sm:$0xff] }
 0x112   : > { %v624_v37 = vpop.permute.xlu0 %623 }
 0x113   : > { %v620_v38 = vpop.permute.xlu1 %619 }
 0x114   : > { %v626_v40 = vsel %vm576_vm0, %v615_v39, %v620_v38 }
 0x115   : > { %v628_v41 = vsel %vm627_vm2, %v626_v40, %v624_v37 }
 0x116   : > { %927 = vmatmul.mubr.msk.f32.vlgmr.msra.gmra.mrb[0].mxu0 %vm648_vm3, %v628_v41 }
 0x1e9   : > { %v718_v43 = vpop.f32.mrb[0].mxu0 }
 0x1ea   : > { %v719_v44 = vadd.f32 %v885_v42, %v718_v43  ;;  %v928_v45 = vpop.f32.mrb[1].mxu0 }
 0x1ec   : > { %v722_v46 = vmax.f32 %v719_v44, 0.0 }
 0x1ee   : > { %723 = vst.msk [vmem:[%s555_s22] sm:$0xff] %vm627_vm2, %v722_v46 }
 0x1ef PF: > { %s18_s29 = sadd.s32 1, %s1001_s29   ;;  %s1163_s27 = smov %s997_s28 }
 0x1f0   : > { %p15_p5 = scmp.ge.s32.totalorder %s18_s29, 4   ;;  %s1164_s28 = smov %s1166_s30 }
 0x1f2   :  { %17 = sbr.rel (!%p15_p5) target bundleno = 2 (0x2), region = 97 }

// kernel: synthesizer_forward.140
= control target key start
LH: loop header
LB: loop body
LE: loop exit
PB: predicated region body
PF: predicated region fallthrough
CT: control target
= control target key end

     0   :  { %s1114_s30 = smov 0   ;;  %s1116_s10 = smov 0   ;;  %s1255_s0 = inlined_call_operand.vmem [shape: f32[2,8,64], index: 0, kind: input, shape index: {}, may-alias: {0,1,2}]   ;;  %s1256_s1 = inlined_call_operand.vmem [shape: f32[2,8,64], index: 1, kind: input, shape index: {}, may-alias: {0,1,2}]   ;;  %s1257_s2 = inlined_call_operand.vmem [shape: f32[2,8,64], index: 2, kind: input, shape index: {}, may-alias: {0,1,2}]   ;;  %s1258_s3 = inlined_call_operand.vmem [shape: f32[2,8,1], index: 3, kind: input, shape index: {}, may-alias: {3,4,5,8}]   ;;  %s1259_s4 = inlined_call_operand.vmem [shape: f32[2,8,1], index: 4, kind: input, shape index: {}, may-alias: {3,4,5,8}]   ;;  %s1260_s5 = inlined_call_operand.vmem [shape: f32[2,8,1], index: 5, kind: input, shape index: {}, may-alias: {3,4,5,8}]   ;;  %s1261_s6 = inlined_call_operand.vmem [shape: f32[192,32], index: 6, kind: input, shape index: {}]   ;;  %s1262_s7 = inlined_call_operand.vmem [shape: f32[1,32], index: 7, kind: input, shape index: {}]   ;;  %s1263_s8 = inlined_call_operand.vmem [shape: f32[2,8,1], index: 8, kind: input, shape index: {}, may-alias: {3,4,5,8}]   ;;  %s1264_s9 = inlined_call_operand.vmem [shape: f32[2,8,32], index: 9, kind: output, shape index: {}]  }
   0x1   :  { %s1118_s11 = smov 0  }
   0x2 LB: > { %s31_s12 = sadd.s32 1, %s1055_s10  ;;  %p959_p0 = scmp.ge.s32.totalorder %s1059_s11, 1  ;;  %s1059_s11 = sphi %s1118_s11, %s19_s11   ;;  %s1055_s10 = sphi %s1116_s10, %s1266_s10   ;;  %s1051_s30 = sphi %s1114_s30, %s1265_s30  }
   0x3   : > { %p33_p1 = scmp.ge.s32.totalorder %s31_s12, 2  ;;  %p437_p2 = scmp.lt.s32.totalorder %s1059_s11, 3 }
   0x5   : > { %s1268_s12 = smov (%p33_p1, %s31_s12), 0  ;;  %p438_p3 = pnand %p959_p0, %p437_p2 }
   0x6   : > { %p534_p4 = scmp.lt.s32.totalorder (!%p438_p3), %s1051_s30, 1  ;;  %v1061_v0 = vmov (!%p438_p3), 0   ;;  %v678_v5 = vld [vmem:[%s1261_s6] sm:$0xff] (!%p438_p3)  ;;  %v679_v6 = vld [vmem:[%s1261_s6 + $0x8] sm:$0xff] (!%p438_p3)  ;;  %v680_v7 = vld [vmem:[%s1261_s6 + $0x10] sm:$0xff] (!%p438_p3)  ;;  %v1062_v8 = vmov (!%p438_p3), 0.0|0.0  }
   0x7   : > { %441 = sbr.rel (%p438_p3) target bundleno = 490 (0x1ea), region = 56  ;;  %1036 = vset.pattern.permute.xlu1 (!%p438_p3), %v1061_v0  ;;  %1035 = vset.pattern.permute.xlu0 (!%p438_p3), %v1061_v0  ;;  %v973_v9 = vpack.c.bf16 (!%p438_p3), %v679_v6, %v678_v5  ;;  %v681_v10 = vld [vmem:[%s1261_s6 + $0x18] sm:$0xff] (!%p438_p3)  ;;  %v682_v12 = vld [vmem:[%s1261_s6 + $0x20] sm:$0xff] (!%p438_p3)  ;;  %v683_v13 = vld [vmem:[%s1261_s6 + $0x28] sm:$0xff] (!%p438_p3)  ;;  %vm631_vm0 = vcmask (!%p438_p3), 523264   ;;  %s1063_s15 = smov (!%p438_p3), 64  }
   0x8   : > { %972 = vmatprep.subr.bf16.mxu0 (!%p438_p3), %v1062_v8  ;;  %v976_v11 = vpack.c.bf16 (!%p438_p3), %v681_v10, %v680_v7  ;;  %v979_v14 = vpack.c.bf16 (!%p438_p3), %v683_v13, %v682_v12  ;;  %v684_v15 = vld [vmem:[%s1261_s6 + $0x30] sm:$0xff] (!%p438_p3)  ;;  %v685_v16 = vld [vmem:[%s1261_s6 + $0x38] sm:$0xff] (!%p438_p3)  ;;  %v686_v18 = vld [vmem:[%s1261_s6 + $0x40] sm:$0xff] (!%p438_p3)  ;;  %vm789_vm1 = vcmask (!%p438_p3), 261120  }
   0x9   : > { %974 = vmatpush1.bf16.msra.mxu0 (!%p438_p3), %v973_v9  ;;  %v982_v17 = vpack.c.bf16 (!%p438_p3), %v685_v16, %v684_v15  ;;  %v687_v19 = vld [vmem:[%s1261_s6 + $0x48] sm:$0xff] (!%p438_p3)  ;;  %v688_v21 = vld [vmem:[%s1261_s6 + $0x50] sm:$0xff] (!%p438_p3)  ;;  %v689_v22 = vld [vmem:[%s1261_s6 + $0x58] sm:$0xff] (!%p438_p3) }
   0xa   : > { %975 = vmatprep.subr.bf16.mxu0 (!%p438_p3), %v1062_v8  ;;  %v985_v20 = vpack.c.bf16 (!%p438_p3), %v687_v19, %v686_v18  ;;  %v988_v23 = vpack.c.bf16 (!%p438_p3), %v689_v22, %v688_v21  ;;  %v690_v24 = vld [vmem:[%s1261_s6 + $0x60] sm:$0xff] (!%p438_p3)  ;;  %v691_v25 = vld [vmem:[%s1261_s6 + $0x68] sm:$0xff] (!%p438_p3)  ;;  %v692_v27 = vld [vmem:[%s1261_s6 + $0x70] sm:$0xff] (!%p438_p3) }
   0xb   : > { %v991_v26 = vpack.c.bf16 (!%p438_p3), %v691_v25, %v690_v24  ;;  %v693_v28 = vld [vmem:[%s1261_s6 + $0x78] sm:$0xff] (!%p438_p3)  ;;  %v694_v30 = vld [vmem:[%s1261_s6 + $0x80] sm:$0xff] (!%p438_p3)  ;;  %v695_v31 = vld [vmem:[%s1261_s6 + $0x88] sm:$0xff] (!%p438_p3) }
   0xc   : > { %v994_v29 = vpack.c.bf16 (!%p438_p3), %v693_v28, %v692_v27  ;;  %v997_v32 = vpack.c.bf16 (!%p438_p3), %v695_v31, %v694_v30  ;;  %v696_v33 = vld [vmem:[%s1261_s6 + $0x90] sm:$0xff] (!%p438_p3)  ;;  %v697_v34 = vld [vmem:[%s1261_s6 + $0x98] sm:$0xff] (!%p438_p3)  ;;  %v698_v36 = vld [vmem:[%s1261_s6 + $0xa0] sm:$0xff] (!%p438_p3) }
   0xd   : > { %977 = vmatpush1.bf16.msra.mxu0 (!%p438_p3), %v976_v11  ;;  %v1000_v35 = vpack.c.bf16 (!%p438_p3), %v697_v34, %v696_v33  ;;  %v699_v37 = vld [vmem:[%s1261_s6 + $0xa8] sm:$0xff] (!%p438_p3)  ;;  %v700_v39 = vld [vmem:[%s1261_s6 + $0xb0] sm:$0xff] (!%p438_p3)  ;;  %v701_v40 = vld [vmem:[%s1261_s6 + $0xb8] sm:$0xff] (!%p438_p3) }
   0xe   : > { %s1270_s30 = smov (!%p534_p4, %s1051_s30), 1  ;;  %978 = vmatprep.subr.bf16.mxu0 %v1062_v8  ;;  %v1003_v38 = vpack.c.bf16 %v699_v37, %v698_v36  ;;  %v1006_v41 = vpack.c.bf16 %v701_v40, %v700_v39  ;;  %v968_v58 = vld [vmem:[%s1262_s7] ss:$0 sm:$0xff] }
   0xf   : > { %s1132_s13 = sshll.u32 %s1270_s30, 3 }
  0x10   : > { %s593_s16 = scalar_lea.vmem %s1260_s5, %s1132_s13  ;;  %s583_s19 = scalar_lea.vmem %s1259_s4, %s1132_s13 }
  0x11   : > { %v652_v1 = vld [vmem:[%s593_s16] sm:$0xff]  ;;  %s573_s22 = scalar_lea.vmem %s1258_s3, %s1132_s13  ;;  %s603_s25 = scalar_lea.vmem %s1263_s8, %s1132_s13  ;;  %980 = vmatpush1.bf16.msra.mxu0 %v979_v14 }
  0x12   : > { %v634_v2 = vld [vmem:[%s583_s19] sm:$0xff]  ;;  %655 = vperm.xlu1 %1036, %v652_v1   ;;  %981 = vmatprep.subr.bf16.mxu0 %v1062_v8  ;;  %s550_s28 = scalar_lea.vmem %s1256_s1, %s1132_s13  ;;  %s540_s14 = scalar_lea.vmem %s1255_s0, %s1132_s13 }
  0x13   : > { %637 = vperm.xlu0 %1035, %v634_v2   ;;  %v612_v3 = vld [vmem:[%s573_s22] sm:$0xff]  ;;  %s610_s20 = scalar_lea.vmem %s1264_s9, %s1132_s13 }
  0x14   : > { %v782_v4 = vld [vmem:[%s603_s25] sm:$0xff]  ;;  %s560_s25 = scalar_lea.vmem %s1257_s2, %s1132_s13 }
  0x15   : > { %983 = vmatpush1.bf16.msra.mxu0 %v982_v17  ;;  %v651_v42 = vld [vmem:[%s560_s25] sm:$0xff] }
  0x16   : > { %984 = vmatprep.subr.bf16.mxu0 %v1062_v8  ;;  %v633_v43 = vld [vmem:[%s550_s28] sm:$0xff] }
  0x17   : > { %615 = vperm.xlu0 %1035, %v612_v3   ;;  %v611_v48 = vld [vmem:[%s540_s14] sm:$0xff] }
  0x19   : > { %986 = vmatpush1.bf16.msra.mxu0 %v985_v20 }
  0x1a   : > { %987 = vmatprep.subr.bf16.mxu0 %v1062_v8 }
  0x1b   : > { %785 = vperm.xlu0 %1035, %v782_v4  }
  0x1d   : > { %989 = vmatpush1.bf16.msra.mxu0 %v988_v23 }
  0x1e   : > { %990 = vmatprep.subr.bf16.mxu0 %v1062_v8 }
  0x21   : > { %992 = vmatpush1.bf16.msra.mxu0 %v991_v26 }
  0x22   : > { %993 = vmatprep.subr.bf16.mxu0 %v1062_v8 }
  0x25   : > { %995 = vmatpush1.bf16.msra.mxu0 %v994_v29 }
  0x26   : > { %996 = vmatprep.subr.bf16.mxu0 %v1062_v8 }
  0x29   : > { %998 = vmatpush1.bf16.msra.mxu0 %v997_v32 }
  0x2a   : > { %999 = vmatprep.subr.bf16.mxu0 %v1062_v8 }
  0x2d   : > { %1001 = vmatpush1.bf16.msra.mxu0 %v1000_v35 }
  0x2e   : > { %1002 = vmatprep.subr.bf16.mxu0 %v1062_v8 }
  0x31   : > { %1004 = vmatpush1.bf16.msra.mxu0 %v1003_v38 }
  0x32   : > { %1005 = vmatprep.subr.bf16.mxu0 %v1062_v8 }
  0x35   : > { %1007 = vmatpush1.bf16.msra.mxu0 %v1006_v41 }
  0x91   : > { %v656_v44 = vpop.permute.xlu1 %655 }
  0x92   : > { %v638_v45 = vpop.permute.xlu0 %637  ;;  %v658_v46 = vmul.f32 %v656_v44, %v651_v42 }
  0x93   : > { %v640_v47 = vmul.f32 %v638_v45, %v633_v43 }
  0x94   : > { %v668_v49 = vmul.f32 0.0, %v658_v46 }
  0x95   : > { %650 = vst.msk [vmem:[#allocation2 + $0x8] sm:$0xff] %vm631_vm0, %v640_v47 }
  0x96   : > { %v616_v50 = vpop.permute.xlu0 %615  ;;  %669 = vst.msk [vmem:[#allocation2 + $0x10] sm:$0xff] %vm631_vm0, %v668_v49 }
  0x97   : > { %v618_v51 = vmul.f32 %v616_v50, %v611_v48 }
  0x99   : > { %v630_v52 = vmul.f32 0.0, %v618_v51 }
  0x9a   : > { %v786_v62 = vpop.permute.xlu0 %785 }
  0x9b   : > { %632 = vst.msk [vmem:[#allocation2] sm:$0xff] %vm631_vm0, %v630_v52 }
  0x9c   : > { %v671_v53 = vld [vmem:[#allocation2 + $0x8] sm:$0xff] }
  0x9d   : > { %674 = vrot.lane.b32.xlu1 %v671_v53, %s1063_s15  ;;  %v672_v54 = vld [vmem:[#allocation2 + $0x9] sm:$0xff] }
  0x9e   : > { %969 = vmatprep.mubr.msk.f32.mxu0 %vm631_vm0, %v672_v54 }
  0xa2   : > { %v670_v56 = vld [vmem:[#allocation2 + $0x7] sm:$0xff] }
 0x10f   : > { %v675_v55 = vpop.permute.xlu1 %674 }
 0x110   : > { %v677_v57 = vsel %vm631_vm0, %v670_v56, %v675_v55 }
 0x111   : > { %777 = vmatmul.mubr.f32.vlgmr.msra.gmra.mrb[0].mxu0 %v677_v57 }
 0x1e4   : > { %v778_v59 = vpop.f32.mrb[0].mxu0 }
 0x1e5   : > { %v779_v60 = vadd.f32 %v968_v58, %v778_v59  ;;  %v780_v61 = vpop.f32.mrb[1].mxu0 }
 0x1e7   : > { %v788_v63 = vmul.f32 %v786_v62, %v779_v60 }
 0x1e9   : > { %790 = vst.msk [vmem:[%s610_s20] sm:$0xff] %vm789_vm1, %v788_v63 }
 0x1ea PF: > { %s19_s11 = sadd.s32 1, %s1059_s11   ;;  %s1265_s30 = smov %s1055_s10 }
 0x1eb   : > { %p16_p5 = scmp.ge.s32.totalorder %s19_s11, 4   ;;  %s1266_s10 = smov %s1268_s12 }
 0x1ed   :  { %18 = sbr.rel (!%p16_p5) target bundleno = 2 (0x2), region = 104 }

</bundles_post_ra>
